<compile_context>
chip_gen: v5e
topology: v5e:2x2
jax: 0.10.0
libtpu: 0.0.40
codegen_flags: <defaults>
</compile_context>

<pallas_src>
import functools

import numpy as np
import jax
import jax.numpy as jnp
from jax import lax
from jax.experimental import pallas as pl
from jax.experimental.pallas import tpu as pltpu


_STAGES = ((1, 2), (2, 4), (4, 8))      # (cin, cout) of the three conv layers


def _stage_dims(H, W):
    dims = []
    h, w = H, W
    for cin, cout in _STAGES:
        ho, wo = h - 2, w - 2            # valid 3x3 conv output
        hp, wp = ho // 2, wo // 2        # 2x2 max-pool output
        dims.append((cin, cout, h, w, ho, wo, hp, wp))
        h, w = hp, wp
    return tuple(dims)


def _pool_select_mats(ho, wo, cout):
    """0/1 matrices gathering even rows / even (channel-packed) cols via matmul."""
    hp, wp = ho // 2, wo // 2
    eh = np.zeros((hp, ho), np.float32)
    eh[np.arange(hp), 2 * np.arange(hp)] = 1.0
    ew = np.zeros((cout * wo, cout * wp), np.float32)
    for c in range(cout):
        ew[c * wo + 2 * np.arange(wp), c * wp + np.arange(wp)] = 1.0
    return eh, ew


# ---------------------------------------------------------------------------
# Fused Pallas kernel: all three conv(3x3,valid)+tanh+maxpool(2) stages for
# one batch element.  Activations live in vregs, lane-packed as (h, cin*w).
# ---------------------------------------------------------------------------
def _model_f1_kernel(x_ref, w1_ref, b1_ref, w2_ref, b2_ref, w3_ref, b3_ref,
                     eh1_ref, ew1_ref, eh2_ref, ew2_ref, eh3_ref, ew3_ref,
                     o_ref, *, dims):
    w_refs = ((w1_ref, b1_ref), (w2_ref, b2_ref), (w3_ref, b3_ref))
    sel_refs = ((eh1_ref, ew1_ref), (eh2_ref, ew2_ref), (eh3_ref, ew3_ref))

    a = x_ref[0]   # (H, W) == packed (h, cin*w) with cin == 1 for stage 0
    for (cin, cout, h, w, ho, wo, hp, wp), (w_ref, b_ref), (eh_ref, ew_ref) in zip(
            dims, w_refs, sel_refs):
        # ---- 3x3 valid conv -------------------------------------------------
        # Hoisted shifted views of the packed input: cin*9 unique slices,
        # reused for every output channel.
        sl = [[[a[di:di + ho, ci * w + dj: ci * w + dj + wo]
                for dj in range(3)] for di in range(3)] for ci in range(cin)]

        # Iotas for the per-channel placement matrices (hoisted out of co loop).
        r_io = lax.broadcasted_iota(jnp.int32, (wo, cout * wo), 0)
        c_io = lax.broadcasted_iota(jnp.int32, (wo, cout * wo), 1)

        # Accumulate each output channel (bias init, unrolled taps; weight taps
        # are SMEM scalars), then place it into the lane-packed (ho, cout*wo)
        # activation via a 0/1 placement matmul (exact; keeps data in vregs).
        packed = None
        for co in range(cout):
            acc = jnp.full((ho, wo), b_ref[co], dtype=jnp.float32)
            for ci in range(cin):
                base = (co * cin + ci) * 9
                for di in range(3):
                    for dj in range(3):
                        acc = acc + w_ref[base + 3 * di + dj] * sl[ci][di][dj]
            place = (c_io == r_io + co * wo).astype(jnp.float32)   # (wo, cout*wo)
            contrib = jnp.dot(acc, place, preferred_element_type=jnp.float32)
            packed = contrib if packed is None else packed + contrib

        # ---- tanh + 2x2 max-pool on the packed activation --------------------
        y = jnp.tanh(packed)                                       # one EUP pass
        # pair-max with right / lower neighbor (wrap only hits odd positions,
        # which the selection matmuls below discard; wo/ho are even).
        z = jnp.maximum(y, pltpu.roll(y, shift=cout * wo - 1, axis=1))
        z = jnp.maximum(z, pltpu.roll(z, shift=ho - 1, axis=0))
        # even-(row, col) gather, batched across all channels: 2 matmuls/stage.
        a = jnp.dot(jnp.dot(eh_ref[...], z, preferred_element_type=jnp.float32),
                    ew_ref[...], preferred_element_type=jnp.float32)
        # `a` now has layout (hp, cout*wp) == next stage's packed (h, cin*w)

    o_ref[0] = a   # single lane-dense store of the whole per-sample feature slab


# ---------------------------------------------------------------------------
# Wrapper
# ---------------------------------------------------------------------------
@functools.lru_cache(maxsize=None)
def _build_forward(B, H, W):
    dims = _stage_dims(H, W)
    sel_np = []
    for (cin, cout, h, w, ho, wo, hp, wp) in dims:
        eh, ew = _pool_select_mats(ho, wo, cout)
        sel_np += [eh, ew]
    cout3, hp3, wp3 = dims[-1][1], dims[-1][6], dims[-1][7]

    kernel = functools.partial(_model_f1_kernel, dims=dims)
    smem = pl.BlockSpec(memory_space=pltpu.MemorySpace.SMEM)

    call = pl.pallas_call(
        kernel,
        out_shape=jax.ShapeDtypeStruct((B, hp3, cout3 * wp3), jnp.float32),
        grid=(B,),
        in_specs=([pl.BlockSpec((1, H, W), lambda b: (b, 0, 0))]   # input image
                  + [smem] * 6                                     # w1,b1,w2,b2,w3,b3
                  + [pl.BlockSpec(s.shape, lambda b: (0, 0))       # pooling consts
                     for s in sel_np]),
        out_specs=pl.BlockSpec((1, hp3, cout3 * wp3), lambda b: (b, 0, 0)),
        compiler_params=pltpu.CompilerParams(dimension_semantics=("parallel",)),
    )
    sels = tuple(jnp.asarray(s) for s in sel_np)

    def forward(x, params):
        xp = x.reshape(B, H, W)            # cin = 1 -> packed (h, cin*w) layout
        out = call(xp, params["w1"], params["b1"], params["w2"], params["b2"],
                   params["w3"], params["b3"], *sels)
        # packed (b, h, c*wp) -> PyTorch Flatten order (b, c, h, w) -> (b, -1)
        return out.reshape(B, hp3, cout3, wp3).transpose(0, 2, 1, 3).reshape(B, -1)

    return forward


def model_f1_forward(x, params):
    B, cin, H, W = x.shape
    assert cin == 1
    return _build_forward(B, H, W)(x, params)


def init_params(key):
    """Deterministic init mimicking PyTorch Conv2d defaults: U(-1/sqrt(fan_in), ...)."""
    params = {}
    for name, (cin, cout) in zip(("1", "2", "3"), _STAGES):
        key, kw, kb = jax.random.split(key, 3)
        fan_in = cin * 3 * 3
        bound = 1.0 / np.sqrt(fan_in)
        w = jax.random.uniform(kw, (cout, cin, 3, 3), jnp.float32, -bound, bound)
        b = jax.random.uniform(kb, (cout,), jnp.float32, -bound, bound)
        params["w" + name] = w.reshape(-1)   # flat, PyTorch (cout, cin, kh, kw) order
        params["b" + name] = b
    return params


# ---------------------------------------------------------------------------
# Pure-numpy reference for validation.
# ---------------------------------------------------------------------------
def _ref_layer(x, w, b):
    B, cin, H, W = x.shape
    cout = w.shape[0]
    ho, wo = H - 2, W - 2
    out = np.zeros((B, cout, ho, wo), np.float32)
    for di in range(3):
        for dj in range(3):
            out += np.einsum("bchw,oc->bohw",
                             x[:, :, di:di + ho, dj:dj + wo], w[:, :, di, dj])
    out += b[None, :, None, None]
    out = np.tanh(out)
    hp, wp = ho // 2, wo // 2
    return out.reshape(B, cout, hp, 2, wp, 2).max(axis=(3, 5)).astype(np.float32)


def model_f1_reference(x, params):
    h = np.asarray(x, np.float32)
    for name, (cin, cout) in zip(("1", "2", "3"), _STAGES):
        w = np.asarray(params["w" + name]).reshape(cout, cin, 3, 3)
        b = np.asarray(params["b" + name])
        h = _ref_layer(h, w, b)
    return h.reshape(h.shape[0], -1)


if __name__ == "__main__":
    key = jax.random.PRNGKey(0)
    kx, kp = jax.random.split(key)

    # Input: batch=2, 1 channel, 30x30 spatial -> final features (2, 32).
    x = jax.random.normal(kx, (2, 1, 30, 30), jnp.float32)
    params = init_params(kp)

    out = model_f1_forward(x, params)
    out = jax.block_until_ready(out)

    ref = model_f1_reference(np.asarray(x), params)
    assert out.shape == (2, 32), out.shape
    np.testing.assert_allclose(np.asarray(out), ref, rtol=2e-3, atol=2e-3)

    print("KERNEL_OK")
</pallas_src>

<mosaic_0001>
module attributes {stable_mosaic.version = 11 : i64} {
  func.func @_model_f1_kernel(%arg0: i32, %arg1: memref<1x30x30xf32, #tpu.memory_space<vmem>>, %arg2: memref<18xf32, #tpu.memory_space<smem>>, %arg3: memref<2xf32, #tpu.memory_space<smem>>, %arg4: memref<72xf32, #tpu.memory_space<smem>>, %arg5: memref<4xf32, #tpu.memory_space<smem>>, %arg6: memref<288xf32, #tpu.memory_space<smem>>, %arg7: memref<8xf32, #tpu.memory_space<smem>>, %arg8: memref<14x28xf32, #tpu.memory_space<vmem>>, %arg9: memref<56x28xf32, #tpu.memory_space<vmem>>, %arg10: memref<6x12xf32, #tpu.memory_space<vmem>>, %arg11: memref<48x24xf32, #tpu.memory_space<vmem>>, %arg12: memref<2x4xf32, #tpu.memory_space<vmem>>, %arg13: memref<32x16xf32, #tpu.memory_space<vmem>>, %arg14: memref<1x2x16xf32, #tpu.memory_space<vmem>>) attributes {dimension_semantics = [#tpu.dimension_semantics<parallel>], iteration_bounds = array<i64: 2>, scalar_prefetch = 0 : i64, scratch_operands = 0 : i64, tpu.core_type = #tpu.core_type<tc>, window_params = [{transform_indices = @transform_0, window_bounds = array<i64: 1, 30, 30>}, {transform_indices = @transform_1, window_bounds = array<i64: 18>}, {transform_indices = @transform_2, window_bounds = array<i64: 2>}, {transform_indices = @transform_3, window_bounds = array<i64: 72>}, {transform_indices = @transform_4, window_bounds = array<i64: 4>}, {transform_indices = @transform_5, window_bounds = array<i64: 288>}, {transform_indices = @transform_6, window_bounds = array<i64: 8>}, {pipeline_mode = #tpu.pipeline_mode<synchronous>, transform_indices = @transform_7, window_bounds = array<i64: 14, 28>}, {pipeline_mode = #tpu.pipeline_mode<synchronous>, transform_indices = @transform_8, window_bounds = array<i64: 56, 28>}, {pipeline_mode = #tpu.pipeline_mode<synchronous>, transform_indices = @transform_9, window_bounds = array<i64: 6, 12>}, {pipeline_mode = #tpu.pipeline_mode<synchronous>, transform_indices = @transform_10, window_bounds = array<i64: 48, 24>}, {pipeline_mode = #tpu.pipeline_mode<synchronous>, transform_indices = @transform_11, window_bounds = array<i64: 2, 4>}, {pipeline_mode = #tpu.pipeline_mode<synchronous>, transform_indices = @transform_12, window_bounds = array<i64: 32, 16>}, {transform_indices = @transform_13, window_bounds = array<i64: 1, 2, 16>}]} {
    %c0 = arith.constant 0 : index
    %c0_0 = arith.constant 0 : index
    %c0_1 = arith.constant 0 : index
    %0 = vector.load %arg1[%c0, %c0_0, %c0_1] : memref<1x30x30xf32, #tpu.memory_space<vmem>>, vector<1x30x30xf32>
    %1 = vector.shape_cast %0 : vector<1x30x30xf32> to vector<30x30xf32>
    %2 = vector.extract_strided_slice %1 {offsets = [0, 0], sizes = [28, 28], strides = [1, 1]} : vector<30x30xf32> to vector<28x28xf32>
    %3 = vector.extract_strided_slice %1 {offsets = [0, 1], sizes = [28, 28], strides = [1, 1]} : vector<30x30xf32> to vector<28x28xf32>
    %4 = vector.extract_strided_slice %1 {offsets = [0, 2], sizes = [28, 28], strides = [1, 1]} : vector<30x30xf32> to vector<28x28xf32>
    %5 = vector.extract_strided_slice %1 {offsets = [1, 0], sizes = [28, 28], strides = [1, 1]} : vector<30x30xf32> to vector<28x28xf32>
    %6 = vector.extract_strided_slice %1 {offsets = [1, 1], sizes = [28, 28], strides = [1, 1]} : vector<30x30xf32> to vector<28x28xf32>
    %7 = vector.extract_strided_slice %1 {offsets = [1, 2], sizes = [28, 28], strides = [1, 1]} : vector<30x30xf32> to vector<28x28xf32>
    %8 = vector.extract_strided_slice %1 {offsets = [2, 0], sizes = [28, 28], strides = [1, 1]} : vector<30x30xf32> to vector<28x28xf32>
    %9 = vector.extract_strided_slice %1 {offsets = [2, 1], sizes = [28, 28], strides = [1, 1]} : vector<30x30xf32> to vector<28x28xf32>
    %10 = vector.extract_strided_slice %1 {offsets = [2, 2], sizes = [28, 28], strides = [1, 1]} : vector<30x30xf32> to vector<28x28xf32>
    %11 = tpu.iota {dimensions = array<i32: 0>} : vector<28x56xi32>
    %12 = tpu.iota {dimensions = array<i32: 1>} : vector<28x56xi32>
    %c0_2 = arith.constant 0 : index
    %13 = memref.load %arg3[%c0_2] : memref<2xf32, #tpu.memory_space<smem>>
    %14 = vector.broadcast %13 : f32 to vector<28x28xf32>
    %c0_3 = arith.constant 0 : index
    %15 = memref.load %arg2[%c0_3] : memref<18xf32, #tpu.memory_space<smem>>
    %16 = vector.broadcast %15 : f32 to vector<28x28xf32>
    %17 = arith.mulf %16, %2 : vector<28x28xf32>
    %18 = arith.addf %14, %17 : vector<28x28xf32>
    %c1 = arith.constant 1 : index
    %19 = memref.load %arg2[%c1] : memref<18xf32, #tpu.memory_space<smem>>
    %20 = vector.broadcast %19 : f32 to vector<28x28xf32>
    %21 = arith.mulf %20, %3 : vector<28x28xf32>
    %22 = arith.addf %18, %21 : vector<28x28xf32>
    %c2 = arith.constant 2 : index
    %23 = memref.load %arg2[%c2] : memref<18xf32, #tpu.memory_space<smem>>
    %24 = vector.broadcast %23 : f32 to vector<28x28xf32>
    %25 = arith.mulf %24, %4 : vector<28x28xf32>
    %26 = arith.addf %22, %25 : vector<28x28xf32>
    %c3 = arith.constant 3 : index
    %27 = memref.load %arg2[%c3] : memref<18xf32, #tpu.memory_space<smem>>
    %28 = vector.broadcast %27 : f32 to vector<28x28xf32>
    %29 = arith.mulf %28, %5 : vector<28x28xf32>
    %30 = arith.addf %26, %29 : vector<28x28xf32>
    %c4 = arith.constant 4 : index
    %31 = memref.load %arg2[%c4] : memref<18xf32, #tpu.memory_space<smem>>
    %32 = vector.broadcast %31 : f32 to vector<28x28xf32>
    %33 = arith.mulf %32, %6 : vector<28x28xf32>
    %34 = arith.addf %30, %33 : vector<28x28xf32>
    %c5 = arith.constant 5 : index
    %35 = memref.load %arg2[%c5] : memref<18xf32, #tpu.memory_space<smem>>
    %36 = vector.broadcast %35 : f32 to vector<28x28xf32>
    %37 = arith.mulf %36, %7 : vector<28x28xf32>
    %38 = arith.addf %34, %37 : vector<28x28xf32>
    %c6 = arith.constant 6 : index
    %39 = memref.load %arg2[%c6] : memref<18xf32, #tpu.memory_space<smem>>
    %40 = vector.broadcast %39 : f32 to vector<28x28xf32>
    %41 = arith.mulf %40, %8 : vector<28x28xf32>
    %42 = arith.addf %38, %41 : vector<28x28xf32>
    %c7 = arith.constant 7 : index
    %43 = memref.load %arg2[%c7] : memref<18xf32, #tpu.memory_space<smem>>
    %44 = vector.broadcast %43 : f32 to vector<28x28xf32>
    %45 = arith.mulf %44, %9 : vector<28x28xf32>
    %46 = arith.addf %42, %45 : vector<28x28xf32>
    %c8 = arith.constant 8 : index
    %47 = memref.load %arg2[%c8] : memref<18xf32, #tpu.memory_space<smem>>
    %48 = vector.broadcast %47 : f32 to vector<28x28xf32>
    %49 = arith.mulf %48, %10 : vector<28x28xf32>
    %50 = arith.addf %46, %49 : vector<28x28xf32>
    %c0_i32 = arith.constant 0 : i32
    %51 = vector.broadcast %c0_i32 : i32 to vector<28x56xi32>
    %52 = arith.addi %11, %51 : vector<28x56xi32>
    %53 = arith.cmpi eq, %12, %52 : vector<28x56xi32>
    %54 = arith.extui %53 : vector<28x56xi1> to vector<28x56xi32>
    %55 = arith.sitofp %54 : vector<28x56xi32> to vector<28x56xf32>
    %cst = arith.constant dense<0.000000e+00> : vector<28x56xf32>
    %56 = tpu.matmul %50, %55, %cst {dimension_numbers = #tpu.dot_dimension_numbers<[1], [0], [0], [1], [0, 0, 1, 1], [], []>} : vector<28x28xf32>, vector<28x56xf32>, vector<28x56xf32> -> vector<28x56xf32>
    %c1_4 = arith.constant 1 : index
    %57 = memref.load %arg3[%c1_4] : memref<2xf32, #tpu.memory_space<smem>>
    %58 = vector.broadcast %57 : f32 to vector<28x28xf32>
    %c9 = arith.constant 9 : index
    %59 = memref.load %arg2[%c9] : memref<18xf32, #tpu.memory_space<smem>>
    %60 = vector.broadcast %59 : f32 to vector<28x28xf32>
    %61 = arith.mulf %60, %2 : vector<28x28xf32>
    %62 = arith.addf %58, %61 : vector<28x28xf32>
    %c10 = arith.constant 10 : index
    %63 = memref.load %arg2[%c10] : memref<18xf32, #tpu.memory_space<smem>>
    %64 = vector.broadcast %63 : f32 to vector<28x28xf32>
    %65 = arith.mulf %64, %3 : vector<28x28xf32>
    %66 = arith.addf %62, %65 : vector<28x28xf32>
    %c11 = arith.constant 11 : index
    %67 = memref.load %arg2[%c11] : memref<18xf32, #tpu.memory_space<smem>>
    %68 = vector.broadcast %67 : f32 to vector<28x28xf32>
    %69 = arith.mulf %68, %4 : vector<28x28xf32>
    %70 = arith.addf %66, %69 : vector<28x28xf32>
    %c12 = arith.constant 12 : index
    %71 = memref.load %arg2[%c12] : memref<18xf32, #tpu.memory_space<smem>>
    %72 = vector.broadcast %71 : f32 to vector<28x28xf32>
    %73 = arith.mulf %72, %5 : vector<28x28xf32>
    %74 = arith.addf %70, %73 : vector<28x28xf32>
    %c13 = arith.constant 13 : index
    %75 = memref.load %arg2[%c13] : memref<18xf32, #tpu.memory_space<smem>>
    %76 = vector.broadcast %75 : f32 to vector<28x28xf32>
    %77 = arith.mulf %76, %6 : vector<28x28xf32>
    %78 = arith.addf %74, %77 : vector<28x28xf32>
    %c14 = arith.constant 14 : index
    %79 = memref.load %arg2[%c14] : memref<18xf32, #tpu.memory_space<smem>>
    %80 = vector.broadcast %79 : f32 to vector<28x28xf32>
    %81 = arith.mulf %80, %7 : vector<28x28xf32>
    %82 = arith.addf %78, %81 : vector<28x28xf32>
    %c15 = arith.constant 15 : index
    %83 = memref.load %arg2[%c15] : memref<18xf32, #tpu.memory_space<smem>>
    %84 = vector.broadcast %83 : f32 to vector<28x28xf32>
    %85 = arith.mulf %84, %8 : vector<28x28xf32>
    %86 = arith.addf %82, %85 : vector<28x28xf32>
    %c16 = arith.constant 16 : index
    %87 = memref.load %arg2[%c16] : memref<18xf32, #tpu.memory_space<smem>>
    %88 = vector.broadcast %87 : f32 to vector<28x28xf32>
    %89 = arith.mulf %88, %9 : vector<28x28xf32>
    %90 = arith.addf %86, %89 : vector<28x28xf32>
    %c17 = arith.constant 17 : index
    %91 = memref.load %arg2[%c17] : memref<18xf32, #tpu.memory_space<smem>>
    %92 = vector.broadcast %91 : f32 to vector<28x28xf32>
    %93 = arith.mulf %92, %10 : vector<28x28xf32>
    %94 = arith.addf %90, %93 : vector<28x28xf32>
    %c28_i32 = arith.constant 28 : i32
    %95 = vector.broadcast %c28_i32 : i32 to vector<28x56xi32>
    %96 = arith.addi %11, %95 : vector<28x56xi32>
    %97 = arith.cmpi eq, %12, %96 : vector<28x56xi32>
    %98 = arith.extui %97 : vector<28x56xi1> to vector<28x56xi32>
    %99 = arith.sitofp %98 : vector<28x56xi32> to vector<28x56xf32>
    %cst_5 = arith.constant dense<0.000000e+00> : vector<28x56xf32>
    %100 = tpu.matmul %94, %99, %cst_5 {dimension_numbers = #tpu.dot_dimension_numbers<[1], [0], [0], [1], [0, 0, 1, 1], [], []>} : vector<28x28xf32>, vector<28x56xf32>, vector<28x56xf32> -> vector<28x56xf32>
    %101 = arith.addf %56, %100 : vector<28x56xf32>
    %102 = math.tanh %101 : vector<28x56xf32>
    %c55_i32 = arith.constant 55 : i32
    %103 = tpu.dynamic_rotate %102 by %c55_i32 dim 1 : vector<28x56xf32>, i32 -> vector<28x56xf32>
    %104 = arith.maximumf %102, %103 : vector<28x56xf32>
    %c27_i32 = arith.constant 27 : i32
    %105 = tpu.dynamic_rotate %104 by %c27_i32 dim 0 : vector<28x56xf32>, i32 -> vector<28x56xf32>
    %106 = arith.maximumf %104, %105 : vector<28x56xf32>
    %c0_6 = arith.constant 0 : index
    %c0_7 = arith.constant 0 : index
    %107 = vector.load %arg8[%c0_6, %c0_7] : memref<14x28xf32, #tpu.memory_space<vmem>>, vector<14x28xf32>
    %cst_8 = arith.constant dense<0.000000e+00> : vector<14x56xf32>
    %108 = tpu.matmul %107, %106, %cst_8 {dimension_numbers = #tpu.dot_dimension_numbers<[1], [0], [0], [1], [0, 0, 1, 1], [], []>} : vector<14x28xf32>, vector<28x56xf32>, vector<14x56xf32> -> vector<14x56xf32>
    %c0_9 = arith.constant 0 : index
    %c0_10 = arith.constant 0 : index
    %109 = vector.load %arg9[%c0_9, %c0_10] : memref<56x28xf32, #tpu.memory_space<vmem>>, vector<56x28xf32>
    %cst_11 = arith.constant dense<0.000000e+00> : vector<14x28xf32>
    %110 = tpu.matmul %108, %109, %cst_11 {dimension_numbers = #tpu.dot_dimension_numbers<[1], [0], [0], [1], [0, 0, 1, 1], [], []>} : vector<14x56xf32>, vector<56x28xf32>, vector<14x28xf32> -> vector<14x28xf32>
    %111 = vector.extract_strided_slice %110 {offsets = [0, 0], sizes = [12, 12], strides = [1, 1]} : vector<14x28xf32> to vector<12x12xf32>
    %112 = vector.extract_strided_slice %110 {offsets = [0, 1], sizes = [12, 12], strides = [1, 1]} : vector<14x28xf32> to vector<12x12xf32>
    %113 = vector.extract_strided_slice %110 {offsets = [0, 2], sizes = [12, 12], strides = [1, 1]} : vector<14x28xf32> to vector<12x12xf32>
    %114 = vector.extract_strided_slice %110 {offsets = [1, 0], sizes = [12, 12], strides = [1, 1]} : vector<14x28xf32> to vector<12x12xf32>
    %115 = vector.extract_strided_slice %110 {offsets = [1, 1], sizes = [12, 12], strides = [1, 1]} : vector<14x28xf32> to vector<12x12xf32>
    %116 = vector.extract_strided_slice %110 {offsets = [1, 2], sizes = [12, 12], strides = [1, 1]} : vector<14x28xf32> to vector<12x12xf32>
    %117 = vector.extract_strided_slice %110 {offsets = [2, 0], sizes = [12, 12], strides = [1, 1]} : vector<14x28xf32> to vector<12x12xf32>
    %118 = vector.extract_strided_slice %110 {offsets = [2, 1], sizes = [12, 12], strides = [1, 1]} : vector<14x28xf32> to vector<12x12xf32>
    %119 = vector.extract_strided_slice %110 {offsets = [2, 2], sizes = [12, 12], strides = [1, 1]} : vector<14x28xf32> to vector<12x12xf32>
    %120 = vector.extract_strided_slice %110 {offsets = [0, 14], sizes = [12, 12], strides = [1, 1]} : vector<14x28xf32> to vector<12x12xf32>
    %121 = vector.extract_strided_slice %110 {offsets = [0, 15], sizes = [12, 12], strides = [1, 1]} : vector<14x28xf32> to vector<12x12xf32>
    %122 = vector.extract_strided_slice %110 {offsets = [0, 16], sizes = [12, 12], strides = [1, 1]} : vector<14x28xf32> to vector<12x12xf32>
    %123 = vector.extract_strided_slice %110 {offsets = [1, 14], sizes = [12, 12], strides = [1, 1]} : vector<14x28xf32> to vector<12x12xf32>
    %124 = vector.extract_strided_slice %110 {offsets = [1, 15], sizes = [12, 12], strides = [1, 1]} : vector<14x28xf32> to vector<12x12xf32>
    %125 = vector.extract_strided_slice %110 {offsets = [1, 16], sizes = [12, 12], strides = [1, 1]} : vector<14x28xf32> to vector<12x12xf32>
    %126 = vector.extract_strided_slice %110 {offsets = [2, 14], sizes = [12, 12], strides = [1, 1]} : vector<14x28xf32> to vector<12x12xf32>
    %127 = vector.extract_strided_slice %110 {offsets = [2, 15], sizes = [12, 12], strides = [1, 1]} : vector<14x28xf32> to vector<12x12xf32>
    %128 = vector.extract_strided_slice %110 {offsets = [2, 16], sizes = [12, 12], strides = [1, 1]} : vector<14x28xf32> to vector<12x12xf32>
    %129 = tpu.iota {dimensions = array<i32: 0>} : vector<12x48xi32>
    %130 = tpu.iota {dimensions = array<i32: 1>} : vector<12x48xi32>
    %c0_12 = arith.constant 0 : index
    %131 = memref.load %arg5[%c0_12] : memref<4xf32, #tpu.memory_space<smem>>
    %132 = vector.broadcast %131 : f32 to vector<12x12xf32>
    %c0_13 = arith.constant 0 : index
    %133 = memref.load %arg4[%c0_13] : memref<72xf32, #tpu.memory_space<smem>>
    %134 = vector.broadcast %133 : f32 to vector<12x12xf32>
    %135 = arith.mulf %134, %111 : vector<12x12xf32>
    %136 = arith.addf %132, %135 : vector<12x12xf32>
    %c1_14 = arith.constant 1 : index
    %137 = memref.load %arg4[%c1_14] : memref<72xf32, #tpu.memory_space<smem>>
    %138 = vector.broadcast %137 : f32 to vector<12x12xf32>
    %139 = arith.mulf %138, %112 : vector<12x12xf32>
    %140 = arith.addf %136, %139 : vector<12x12xf32>
    %c2_15 = arith.constant 2 : index
    %141 = memref.load %arg4[%c2_15] : memref<72xf32, #tpu.memory_space<smem>>
    %142 = vector.broadcast %141 : f32 to vector<12x12xf32>
    %143 = arith.mulf %142, %113 : vector<12x12xf32>
    %144 = arith.addf %140, %143 : vector<12x12xf32>
    %c3_16 = arith.constant 3 : index
    %145 = memref.load %arg4[%c3_16] : memref<72xf32, #tpu.memory_space<smem>>
    %146 = vector.broadcast %145 : f32 to vector<12x12xf32>
    %147 = arith.mulf %146, %114 : vector<12x12xf32>
    %148 = arith.addf %144, %147 : vector<12x12xf32>
    %c4_17 = arith.constant 4 : index
    %149 = memref.load %arg4[%c4_17] : memref<72xf32, #tpu.memory_space<smem>>
    %150 = vector.broadcast %149 : f32 to vector<12x12xf32>
    %151 = arith.mulf %150, %115 : vector<12x12xf32>
    %152 = arith.addf %148, %151 : vector<12x12xf32>
    %c5_18 = arith.constant 5 : index
    %153 = memref.load %arg4[%c5_18] : memref<72xf32, #tpu.memory_space<smem>>
    %154 = vector.broadcast %153 : f32 to vector<12x12xf32>
    %155 = arith.mulf %154, %116 : vector<12x12xf32>
    %156 = arith.addf %152, %155 : vector<12x12xf32>
    %c6_19 = arith.constant 6 : index
    %157 = memref.load %arg4[%c6_19] : memref<72xf32, #tpu.memory_space<smem>>
    %158 = vector.broadcast %157 : f32 to vector<12x12xf32>
    %159 = arith.mulf %158, %117 : vector<12x12xf32>
    %160 = arith.addf %156, %159 : vector<12x12xf32>
    %c7_20 = arith.constant 7 : index
    %161 = memref.load %arg4[%c7_20] : memref<72xf32, #tpu.memory_space<smem>>
    %162 = vector.broadcast %161 : f32 to vector<12x12xf32>
    %163 = arith.mulf %162, %118 : vector<12x12xf32>
    %164 = arith.addf %160, %163 : vector<12x12xf32>
    %c8_21 = arith.constant 8 : index
    %165 = memref.load %arg4[%c8_21] : memref<72xf32, #tpu.memory_space<smem>>
    %166 = vector.broadcast %165 : f32 to vector<12x12xf32>
    %167 = arith.mulf %166, %119 : vector<12x12xf32>
    %168 = arith.addf %164, %167 : vector<12x12xf32>
    %c9_22 = arith.constant 9 : index
    %169 = memref.load %arg4[%c9_22] : memref<72xf32, #tpu.memory_space<smem>>
    %170 = vector.broadcast %169 : f32 to vector<12x12xf32>
    %171 = arith.mulf %170, %120 : vector<12x12xf32>
    %172 = arith.addf %168, %171 : vector<12x12xf32>
    %c10_23 = arith.constant 10 : index
    %173 = memref.load %arg4[%c10_23] : memref<72xf32, #tpu.memory_space<smem>>
    %174 = vector.broadcast %173 : f32 to vector<12x12xf32>
    %175 = arith.mulf %174, %121 : vector<12x12xf32>
    %176 = arith.addf %172, %175 : vector<12x12xf32>
    %c11_24 = arith.constant 11 : index
    %177 = memref.load %arg4[%c11_24] : memref<72xf32, #tpu.memory_space<smem>>
    %178 = vector.broadcast %177 : f32 to vector<12x12xf32>
    %179 = arith.mulf %178, %122 : vector<12x12xf32>
    %180 = arith.addf %176, %179 : vector<12x12xf32>
    %c12_25 = arith.constant 12 : index
    %181 = memref.load %arg4[%c12_25] : memref<72xf32, #tpu.memory_space<smem>>
    %182 = vector.broadcast %181 : f32 to vector<12x12xf32>
    %183 = arith.mulf %182, %123 : vector<12x12xf32>
    %184 = arith.addf %180, %183 : vector<12x12xf32>
    %c13_26 = arith.constant 13 : index
    %185 = memref.load %arg4[%c13_26] : memref<72xf32, #tpu.memory_space<smem>>
    %186 = vector.broadcast %185 : f32 to vector<12x12xf32>
    %187 = arith.mulf %186, %124 : vector<12x12xf32>
    %188 = arith.addf %184, %187 : vector<12x12xf32>
    %c14_27 = arith.constant 14 : index
    %189 = memref.load %arg4[%c14_27] : memref<72xf32, #tpu.memory_space<smem>>
    %190 = vector.broadcast %189 : f32 to vector<12x12xf32>
    %191 = arith.mulf %190, %125 : vector<12x12xf32>
    %192 = arith.addf %188, %191 : vector<12x12xf32>
    %c15_28 = arith.constant 15 : index
    %193 = memref.load %arg4[%c15_28] : memref<72xf32, #tpu.memory_space<smem>>
    %194 = vector.broadcast %193 : f32 to vector<12x12xf32>
    %195 = arith.mulf %194, %126 : vector<12x12xf32>
    %196 = arith.addf %192, %195 : vector<12x12xf32>
    %c16_29 = arith.constant 16 : index
    %197 = memref.load %arg4[%c16_29] : memref<72xf32, #tpu.memory_space<smem>>
    %198 = vector.broadcast %197 : f32 to vector<12x12xf32>
    %199 = arith.mulf %198, %127 : vector<12x12xf32>
    %200 = arith.addf %196, %199 : vector<12x12xf32>
    %c17_30 = arith.constant 17 : index
    %201 = memref.load %arg4[%c17_30] : memref<72xf32, #tpu.memory_space<smem>>
    %202 = vector.broadcast %201 : f32 to vector<12x12xf32>
    %203 = arith.mulf %202, %128 : vector<12x12xf32>
    %204 = arith.addf %200, %203 : vector<12x12xf32>
    %c0_i32_31 = arith.constant 0 : i32
    %205 = vector.broadcast %c0_i32_31 : i32 to vector<12x48xi32>
    %206 = arith.addi %129, %205 : vector<12x48xi32>
    %207 = arith.cmpi eq, %130, %206 : vector<12x48xi32>
    %208 = arith.extui %207 : vector<12x48xi1> to vector<12x48xi32>
    %209 = arith.sitofp %208 : vector<12x48xi32> to vector<12x48xf32>
    %cst_32 = arith.constant dense<0.000000e+00> : vector<12x48xf32>
    %210 = tpu.matmul %204, %209, %cst_32 {dimension_numbers = #tpu.dot_dimension_numbers<[1], [0], [0], [1], [0, 0, 1, 1], [], []>} : vector<12x12xf32>, vector<12x48xf32>, vector<12x48xf32> -> vector<12x48xf32>
    %c1_33 = arith.constant 1 : index
    %211 = memref.load %arg5[%c1_33] : memref<4xf32, #tpu.memory_space<smem>>
    %212 = vector.broadcast %211 : f32 to vector<12x12xf32>
    %c18 = arith.constant 18 : index
    %213 = memref.load %arg4[%c18] : memref<72xf32, #tpu.memory_space<smem>>
    %214 = vector.broadcast %213 : f32 to vector<12x12xf32>
    %215 = arith.mulf %214, %111 : vector<12x12xf32>
    %216 = arith.addf %212, %215 : vector<12x12xf32>
    %c19 = arith.constant 19 : index
    %217 = memref.load %arg4[%c19] : memref<72xf32, #tpu.memory_space<smem>>
    %218 = vector.broadcast %217 : f32 to vector<12x12xf32>
    %219 = arith.mulf %218, %112 : vector<12x12xf32>
    %220 = arith.addf %216, %219 : vector<12x12xf32>
    %c20 = arith.constant 20 : index
    %221 = memref.load %arg4[%c20] : memref<72xf32, #tpu.memory_space<smem>>
    %222 = vector.broadcast %221 : f32 to vector<12x12xf32>
    %223 = arith.mulf %222, %113 : vector<12x12xf32>
    %224 = arith.addf %220, %223 : vector<12x12xf32>
    %c21 = arith.constant 21 : index
    %225 = memref.load %arg4[%c21] : memref<72xf32, #tpu.memory_space<smem>>
    %226 = vector.broadcast %225 : f32 to vector<12x12xf32>
    %227 = arith.mulf %226, %114 : vector<12x12xf32>
    %228 = arith.addf %224, %227 : vector<12x12xf32>
    %c22 = arith.constant 22 : index
    %229 = memref.load %arg4[%c22] : memref<72xf32, #tpu.memory_space<smem>>
    %230 = vector.broadcast %229 : f32 to vector<12x12xf32>
    %231 = arith.mulf %230, %115 : vector<12x12xf32>
    %232 = arith.addf %228, %231 : vector<12x12xf32>
    %c23 = arith.constant 23 : index
    %233 = memref.load %arg4[%c23] : memref<72xf32, #tpu.memory_space<smem>>
    %234 = vector.broadcast %233 : f32 to vector<12x12xf32>
    %235 = arith.mulf %234, %116 : vector<12x12xf32>
    %236 = arith.addf %232, %235 : vector<12x12xf32>
    %c24 = arith.constant 24 : index
    %237 = memref.load %arg4[%c24] : memref<72xf32, #tpu.memory_space<smem>>
    %238 = vector.broadcast %237 : f32 to vector<12x12xf32>
    %239 = arith.mulf %238, %117 : vector<12x12xf32>
    %240 = arith.addf %236, %239 : vector<12x12xf32>
    %c25 = arith.constant 25 : index
    %241 = memref.load %arg4[%c25] : memref<72xf32, #tpu.memory_space<smem>>
    %242 = vector.broadcast %241 : f32 to vector<12x12xf32>
    %243 = arith.mulf %242, %118 : vector<12x12xf32>
    %244 = arith.addf %240, %243 : vector<12x12xf32>
    %c26 = arith.constant 26 : index
    %245 = memref.load %arg4[%c26] : memref<72xf32, #tpu.memory_space<smem>>
    %246 = vector.broadcast %245 : f32 to vector<12x12xf32>
    %247 = arith.mulf %246, %119 : vector<12x12xf32>
    %248 = arith.addf %244, %247 : vector<12x12xf32>
    %c27 = arith.constant 27 : index
    %249 = memref.load %arg4[%c27] : memref<72xf32, #tpu.memory_space<smem>>
    %250 = vector.broadcast %249 : f32 to vector<12x12xf32>
    %251 = arith.mulf %250, %120 : vector<12x12xf32>
    %252 = arith.addf %248, %251 : vector<12x12xf32>
    %c28 = arith.constant 28 : index
    %253 = memref.load %arg4[%c28] : memref<72xf32, #tpu.memory_space<smem>>
    %254 = vector.broadcast %253 : f32 to vector<12x12xf32>
    %255 = arith.mulf %254, %121 : vector<12x12xf32>
    %256 = arith.addf %252, %255 : vector<12x12xf32>
    %c29 = arith.constant 29 : index
    %257 = memref.load %arg4[%c29] : memref<72xf32, #tpu.memory_space<smem>>
    %258 = vector.broadcast %257 : f32 to vector<12x12xf32>
    %259 = arith.mulf %258, %122 : vector<12x12xf32>
    %260 = arith.addf %256, %259 : vector<12x12xf32>
    %c30 = arith.constant 30 : index
    %261 = memref.load %arg4[%c30] : memref<72xf32, #tpu.memory_space<smem>>
    %262 = vector.broadcast %261 : f32 to vector<12x12xf32>
    %263 = arith.mulf %262, %123 : vector<12x12xf32>
    %264 = arith.addf %260, %263 : vector<12x12xf32>
    %c31 = arith.constant 31 : index
    %265 = memref.load %arg4[%c31] : memref<72xf32, #tpu.memory_space<smem>>
    %266 = vector.broadcast %265 : f32 to vector<12x12xf32>
    %267 = arith.mulf %266, %124 : vector<12x12xf32>
    %268 = arith.addf %264, %267 : vector<12x12xf32>
    %c32 = arith.constant 32 : index
    %269 = memref.load %arg4[%c32] : memref<72xf32, #tpu.memory_space<smem>>
    %270 = vector.broadcast %269 : f32 to vector<12x12xf32>
    %271 = arith.mulf %270, %125 : vector<12x12xf32>
    %272 = arith.addf %268, %271 : vector<12x12xf32>
    %c33 = arith.constant 33 : index
    %273 = memref.load %arg4[%c33] : memref<72xf32, #tpu.memory_space<smem>>
    %274 = vector.broadcast %273 : f32 to vector<12x12xf32>
    %275 = arith.mulf %274, %126 : vector<12x12xf32>
    %276 = arith.addf %272, %275 : vector<12x12xf32>
    %c34 = arith.constant 34 : index
    %277 = memref.load %arg4[%c34] : memref<72xf32, #tpu.memory_space<smem>>
    %278 = vector.broadcast %277 : f32 to vector<12x12xf32>
    %279 = arith.mulf %278, %127 : vector<12x12xf32>
    %280 = arith.addf %276, %279 : vector<12x12xf32>
    %c35 = arith.constant 35 : index
    %281 = memref.load %arg4[%c35] : memref<72xf32, #tpu.memory_space<smem>>
    %282 = vector.broadcast %281 : f32 to vector<12x12xf32>
    %283 = arith.mulf %282, %128 : vector<12x12xf32>
    %284 = arith.addf %280, %283 : vector<12x12xf32>
    %c12_i32 = arith.constant 12 : i32
    %285 = vector.broadcast %c12_i32 : i32 to vector<12x48xi32>
    %286 = arith.addi %129, %285 : vector<12x48xi32>
    %287 = arith.cmpi eq, %130, %286 : vector<12x48xi32>
    %288 = arith.extui %287 : vector<12x48xi1> to vector<12x48xi32>
    %289 = arith.sitofp %288 : vector<12x48xi32> to vector<12x48xf32>
    %cst_34 = arith.constant dense<0.000000e+00> : vector<12x48xf32>
    %290 = tpu.matmul %284, %289, %cst_34 {dimension_numbers = #tpu.dot_dimension_numbers<[1], [0], [0], [1], [0, 0, 1, 1], [], []>} : vector<12x12xf32>, vector<12x48xf32>, vector<12x48xf32> -> vector<12x48xf32>
    %291 = arith.addf %210, %290 : vector<12x48xf32>
    %c2_35 = arith.constant 2 : index
    %292 = memref.load %arg5[%c2_35] : memref<4xf32, #tpu.memory_space<smem>>
    %293 = vector.broadcast %292 : f32 to vector<12x12xf32>
    %c36 = arith.constant 36 : index
    %294 = memref.load %arg4[%c36] : memref<72xf32, #tpu.memory_space<smem>>
    %295 = vector.broadcast %294 : f32 to vector<12x12xf32>
    %296 = arith.mulf %295, %111 : vector<12x12xf32>
    %297 = arith.addf %293, %296 : vector<12x12xf32>
    %c37 = arith.constant 37 : index
    %298 = memref.load %arg4[%c37] : memref<72xf32, #tpu.memory_space<smem>>
    %299 = vector.broadcast %298 : f32 to vector<12x12xf32>
    %300 = arith.mulf %299, %112 : vector<12x12xf32>
    %301 = arith.addf %297, %300 : vector<12x12xf32>
    %c38 = arith.constant 38 : index
    %302 = memref.load %arg4[%c38] : memref<72xf32, #tpu.memory_space<smem>>
    %303 = vector.broadcast %302 : f32 to vector<12x12xf32>
    %304 = arith.mulf %303, %113 : vector<12x12xf32>
    %305 = arith.addf %301, %304 : vector<12x12xf32>
    %c39 = arith.constant 39 : index
    %306 = memref.load %arg4[%c39] : memref<72xf32, #tpu.memory_space<smem>>
    %307 = vector.broadcast %306 : f32 to vector<12x12xf32>
    %308 = arith.mulf %307, %114 : vector<12x12xf32>
    %309 = arith.addf %305, %308 : vector<12x12xf32>
    %c40 = arith.constant 40 : index
    %310 = memref.load %arg4[%c40] : memref<72xf32, #tpu.memory_space<smem>>
    %311 = vector.broadcast %310 : f32 to vector<12x12xf32>
    %312 = arith.mulf %311, %115 : vector<12x12xf32>
    %313 = arith.addf %309, %312 : vector<12x12xf32>
    %c41 = arith.constant 41 : index
    %314 = memref.load %arg4[%c41] : memref<72xf32, #tpu.memory_space<smem>>
    %315 = vector.broadcast %314 : f32 to vector<12x12xf32>
    %316 = arith.mulf %315, %116 : vector<12x12xf32>
    %317 = arith.addf %313, %316 : vector<12x12xf32>
    %c42 = arith.constant 42 : index
    %318 = memref.load %arg4[%c42] : memref<72xf32, #tpu.memory_space<smem>>
    %319 = vector.broadcast %318 : f32 to vector<12x12xf32>
    %320 = arith.mulf %319, %117 : vector<12x12xf32>
    %321 = arith.addf %317, %320 : vector<12x12xf32>
    %c43 = arith.constant 43 : index
    %322 = memref.load %arg4[%c43] : memref<72xf32, #tpu.memory_space<smem>>
    %323 = vector.broadcast %322 : f32 to vector<12x12xf32>
    %324 = arith.mulf %323, %118 : vector<12x12xf32>
    %325 = arith.addf %321, %324 : vector<12x12xf32>
    %c44 = arith.constant 44 : index
    %326 = memref.load %arg4[%c44] : memref<72xf32, #tpu.memory_space<smem>>
    %327 = vector.broadcast %326 : f32 to vector<12x12xf32>
    %328 = arith.mulf %327, %119 : vector<12x12xf32>
    %329 = arith.addf %325, %328 : vector<12x12xf32>
    %c45 = arith.constant 45 : index
    %330 = memref.load %arg4[%c45] : memref<72xf32, #tpu.memory_space<smem>>
    %331 = vector.broadcast %330 : f32 to vector<12x12xf32>
    %332 = arith.mulf %331, %120 : vector<12x12xf32>
    %333 = arith.addf %329, %332 : vector<12x12xf32>
    %c46 = arith.constant 46 : index
    %334 = memref.load %arg4[%c46] : memref<72xf32, #tpu.memory_space<smem>>
    %335 = vector.broadcast %334 : f32 to vector<12x12xf32>
    %336 = arith.mulf %335, %121 : vector<12x12xf32>
    %337 = arith.addf %333, %336 : vector<12x12xf32>
    %c47 = arith.constant 47 : index
    %338 = memref.load %arg4[%c47] : memref<72xf32, #tpu.memory_space<smem>>
    %339 = vector.broadcast %338 : f32 to vector<12x12xf32>
    %340 = arith.mulf %339, %122 : vector<12x12xf32>
    %341 = arith.addf %337, %340 : vector<12x12xf32>
    %c48 = arith.constant 48 : index
    %342 = memref.load %arg4[%c48] : memref<72xf32, #tpu.memory_space<smem>>
    %343 = vector.broadcast %342 : f32 to vector<12x12xf32>
    %344 = arith.mulf %343, %123 : vector<12x12xf32>
    %345 = arith.addf %341, %344 : vector<12x12xf32>
    %c49 = arith.constant 49 : index
    %346 = memref.load %arg4[%c49] : memref<72xf32, #tpu.memory_space<smem>>
    %347 = vector.broadcast %346 : f32 to vector<12x12xf32>
    %348 = arith.mulf %347, %124 : vector<12x12xf32>
    %349 = arith.addf %345, %348 : vector<12x12xf32>
    %c50 = arith.constant 50 : index
    %350 = memref.load %arg4[%c50] : memref<72xf32, #tpu.memory_space<smem>>
    %351 = vector.broadcast %350 : f32 to vector<12x12xf32>
    %352 = arith.mulf %351, %125 : vector<12x12xf32>
    %353 = arith.addf %349, %352 : vector<12x12xf32>
    %c51 = arith.constant 51 : index
    %354 = memref.load %arg4[%c51] : memref<72xf32, #tpu.memory_space<smem>>
    %355 = vector.broadcast %354 : f32 to vector<12x12xf32>
    %356 = arith.mulf %355, %126 : vector<12x12xf32>
    %357 = arith.addf %353, %356 : vector<12x12xf32>
    %c52 = arith.constant 52 : index
    %358 = memref.load %arg4[%c52] : memref<72xf32, #tpu.memory_space<smem>>
    %359 = vector.broadcast %358 : f32 to vector<12x12xf32>
    %360 = arith.mulf %359, %127 : vector<12x12xf32>
    %361 = arith.addf %357, %360 : vector<12x12xf32>
    %c53 = arith.constant 53 : index
    %362 = memref.load %arg4[%c53] : memref<72xf32, #tpu.memory_space<smem>>
    %363 = vector.broadcast %362 : f32 to vector<12x12xf32>
    %364 = arith.mulf %363, %128 : vector<12x12xf32>
    %365 = arith.addf %361, %364 : vector<12x12xf32>
    %c24_i32 = arith.constant 24 : i32
    %366 = vector.broadcast %c24_i32 : i32 to vector<12x48xi32>
    %367 = arith.addi %129, %366 : vector<12x48xi32>
    %368 = arith.cmpi eq, %130, %367 : vector<12x48xi32>
    %369 = arith.extui %368 : vector<12x48xi1> to vector<12x48xi32>
    %370 = arith.sitofp %369 : vector<12x48xi32> to vector<12x48xf32>
    %cst_36 = arith.constant dense<0.000000e+00> : vector<12x48xf32>
    %371 = tpu.matmul %365, %370, %cst_36 {dimension_numbers = #tpu.dot_dimension_numbers<[1], [0], [0], [1], [0, 0, 1, 1], [], []>} : vector<12x12xf32>, vector<12x48xf32>, vector<12x48xf32> -> vector<12x48xf32>
    %372 = arith.addf %291, %371 : vector<12x48xf32>
    %c3_37 = arith.constant 3 : index
    %373 = memref.load %arg5[%c3_37] : memref<4xf32, #tpu.memory_space<smem>>
    %374 = vector.broadcast %373 : f32 to vector<12x12xf32>
    %c54 = arith.constant 54 : index
    %375 = memref.load %arg4[%c54] : memref<72xf32, #tpu.memory_space<smem>>
    %376 = vector.broadcast %375 : f32 to vector<12x12xf32>
    %377 = arith.mulf %376, %111 : vector<12x12xf32>
    %378 = arith.addf %374, %377 : vector<12x12xf32>
    %c55 = arith.constant 55 : index
    %379 = memref.load %arg4[%c55] : memref<72xf32, #tpu.memory_space<smem>>
    %380 = vector.broadcast %379 : f32 to vector<12x12xf32>
    %381 = arith.mulf %380, %112 : vector<12x12xf32>
    %382 = arith.addf %378, %381 : vector<12x12xf32>
    %c56 = arith.constant 56 : index
    %383 = memref.load %arg4[%c56] : memref<72xf32, #tpu.memory_space<smem>>
    %384 = vector.broadcast %383 : f32 to vector<12x12xf32>
    %385 = arith.mulf %384, %113 : vector<12x12xf32>
    %386 = arith.addf %382, %385 : vector<12x12xf32>
    %c57 = arith.constant 57 : index
    %387 = memref.load %arg4[%c57] : memref<72xf32, #tpu.memory_space<smem>>
    %388 = vector.broadcast %387 : f32 to vector<12x12xf32>
    %389 = arith.mulf %388, %114 : vector<12x12xf32>
    %390 = arith.addf %386, %389 : vector<12x12xf32>
    %c58 = arith.constant 58 : index
    %391 = memref.load %arg4[%c58] : memref<72xf32, #tpu.memory_space<smem>>
    %392 = vector.broadcast %391 : f32 to vector<12x12xf32>
    %393 = arith.mulf %392, %115 : vector<12x12xf32>
    %394 = arith.addf %390, %393 : vector<12x12xf32>
    %c59 = arith.constant 59 : index
    %395 = memref.load %arg4[%c59] : memref<72xf32, #tpu.memory_space<smem>>
    %396 = vector.broadcast %395 : f32 to vector<12x12xf32>
    %397 = arith.mulf %396, %116 : vector<12x12xf32>
    %398 = arith.addf %394, %397 : vector<12x12xf32>
    %c60 = arith.constant 60 : index
    %399 = memref.load %arg4[%c60] : memref<72xf32, #tpu.memory_space<smem>>
    %400 = vector.broadcast %399 : f32 to vector<12x12xf32>
    %401 = arith.mulf %400, %117 : vector<12x12xf32>
    %402 = arith.addf %398, %401 : vector<12x12xf32>
    %c61 = arith.constant 61 : index
    %403 = memref.load %arg4[%c61] : memref<72xf32, #tpu.memory_space<smem>>
    %404 = vector.broadcast %403 : f32 to vector<12x12xf32>
    %405 = arith.mulf %404, %118 : vector<12x12xf32>
    %406 = arith.addf %402, %405 : vector<12x12xf32>
    %c62 = arith.constant 62 : index
    %407 = memref.load %arg4[%c62] : memref<72xf32, #tpu.memory_space<smem>>
    %408 = vector.broadcast %407 : f32 to vector<12x12xf32>
    %409 = arith.mulf %408, %119 : vector<12x12xf32>
    %410 = arith.addf %406, %409 : vector<12x12xf32>
    %c63 = arith.constant 63 : index
    %411 = memref.load %arg4[%c63] : memref<72xf32, #tpu.memory_space<smem>>
    %412 = vector.broadcast %411 : f32 to vector<12x12xf32>
    %413 = arith.mulf %412, %120 : vector<12x12xf32>
    %414 = arith.addf %410, %413 : vector<12x12xf32>
    %c64 = arith.constant 64 : index
    %415 = memref.load %arg4[%c64] : memref<72xf32, #tpu.memory_space<smem>>
    %416 = vector.broadcast %415 : f32 to vector<12x12xf32>
    %417 = arith.mulf %416, %121 : vector<12x12xf32>
    %418 = arith.addf %414, %417 : vector<12x12xf32>
    %c65 = arith.constant 65 : index
    %419 = memref.load %arg4[%c65] : memref<72xf32, #tpu.memory_space<smem>>
    %420 = vector.broadcast %419 : f32 to vector<12x12xf32>
    %421 = arith.mulf %420, %122 : vector<12x12xf32>
    %422 = arith.addf %418, %421 : vector<12x12xf32>
    %c66 = arith.constant 66 : index
    %423 = memref.load %arg4[%c66] : memref<72xf32, #tpu.memory_space<smem>>
    %424 = vector.broadcast %423 : f32 to vector<12x12xf32>
    %425 = arith.mulf %424, %123 : vector<12x12xf32>
    %426 = arith.addf %422, %425 : vector<12x12xf32>
    %c67 = arith.constant 67 : index
    %427 = memref.load %arg4[%c67] : memref<72xf32, #tpu.memory_space<smem>>
    %428 = vector.broadcast %427 : f32 to vector<12x12xf32>
    %429 = arith.mulf %428, %124 : vector<12x12xf32>
    %430 = arith.addf %426, %429 : vector<12x12xf32>
    %c68 = arith.constant 68 : index
    %431 = memref.load %arg4[%c68] : memref<72xf32, #tpu.memory_space<smem>>
    %432 = vector.broadcast %431 : f32 to vector<12x12xf32>
    %433 = arith.mulf %432, %125 : vector<12x12xf32>
    %434 = arith.addf %430, %433 : vector<12x12xf32>
    %c69 = arith.constant 69 : index
    %435 = memref.load %arg4[%c69] : memref<72xf32, #tpu.memory_space<smem>>
    %436 = vector.broadcast %435 : f32 to vector<12x12xf32>
    %437 = arith.mulf %436, %126 : vector<12x12xf32>
    %438 = arith.addf %434, %437 : vector<12x12xf32>
    %c70 = arith.constant 70 : index
    %439 = memref.load %arg4[%c70] : memref<72xf32, #tpu.memory_space<smem>>
    %440 = vector.broadcast %439 : f32 to vector<12x12xf32>
    %441 = arith.mulf %440, %127 : vector<12x12xf32>
    %442 = arith.addf %438, %441 : vector<12x12xf32>
    %c71 = arith.constant 71 : index
    %443 = memref.load %arg4[%c71] : memref<72xf32, #tpu.memory_space<smem>>
    %444 = vector.broadcast %443 : f32 to vector<12x12xf32>
    %445 = arith.mulf %444, %128 : vector<12x12xf32>
    %446 = arith.addf %442, %445 : vector<12x12xf32>
    %c36_i32 = arith.constant 36 : i32
    %447 = vector.broadcast %c36_i32 : i32 to vector<12x48xi32>
    %448 = arith.addi %129, %447 : vector<12x48xi32>
    %449 = arith.cmpi eq, %130, %448 : vector<12x48xi32>
    %450 = arith.extui %449 : vector<12x48xi1> to vector<12x48xi32>
    %451 = arith.sitofp %450 : vector<12x48xi32> to vector<12x48xf32>
    %cst_38 = arith.constant dense<0.000000e+00> : vector<12x48xf32>
    %452 = tpu.matmul %446, %451, %cst_38 {dimension_numbers = #tpu.dot_dimension_numbers<[1], [0], [0], [1], [0, 0, 1, 1], [], []>} : vector<12x12xf32>, vector<12x48xf32>, vector<12x48xf32> -> vector<12x48xf32>
    %453 = arith.addf %372, %452 : vector<12x48xf32>
    %454 = math.tanh %453 : vector<12x48xf32>
    %c47_i32 = arith.constant 47 : i32
    %455 = tpu.dynamic_rotate %454 by %c47_i32 dim 1 : vector<12x48xf32>, i32 -> vector<12x48xf32>
    %456 = arith.maximumf %454, %455 : vector<12x48xf32>
    %c11_i32 = arith.constant 11 : i32
    %457 = tpu.dynamic_rotate %456 by %c11_i32 dim 0 : vector<12x48xf32>, i32 -> vector<12x48xf32>
    %458 = arith.maximumf %456, %457 : vector<12x48xf32>
    %c0_39 = arith.constant 0 : index
    %c0_40 = arith.constant 0 : index
    %459 = vector.load %arg10[%c0_39, %c0_40] : memref<6x12xf32, #tpu.memory_space<vmem>>, vector<6x12xf32>
    %cst_41 = arith.constant dense<0.000000e+00> : vector<6x48xf32>
    %460 = tpu.matmul %459, %458, %cst_41 {dimension_numbers = #tpu.dot_dimension_numbers<[1], [0], [0], [1], [0, 0, 1, 1], [], []>} : vector<6x12xf32>, vector<12x48xf32>, vector<6x48xf32> -> vector<6x48xf32>
    %c0_42 = arith.constant 0 : index
    %c0_43 = arith.constant 0 : index
    %461 = vector.load %arg11[%c0_42, %c0_43] : memref<48x24xf32, #tpu.memory_space<vmem>>, vector<48x24xf32>
    %cst_44 = arith.constant dense<0.000000e+00> : vector<6x24xf32>
    %462 = tpu.matmul %460, %461, %cst_44 {dimension_numbers = #tpu.dot_dimension_numbers<[1], [0], [0], [1], [0, 0, 1, 1], [], []>} : vector<6x48xf32>, vector<48x24xf32>, vector<6x24xf32> -> vector<6x24xf32>
    %463 = vector.extract_strided_slice %462 {offsets = [0, 0], sizes = [4, 4], strides = [1, 1]} : vector<6x24xf32> to vector<4x4xf32>
    %464 = vector.extract_strided_slice %462 {offsets = [0, 1], sizes = [4, 4], strides = [1, 1]} : vector<6x24xf32> to vector<4x4xf32>
    %465 = vector.extract_strided_slice %462 {offsets = [0, 2], sizes = [4, 4], strides = [1, 1]} : vector<6x24xf32> to vector<4x4xf32>
    %466 = vector.extract_strided_slice %462 {offsets = [1, 0], sizes = [4, 4], strides = [1, 1]} : vector<6x24xf32> to vector<4x4xf32>
    %467 = vector.extract_strided_slice %462 {offsets = [1, 1], sizes = [4, 4], strides = [1, 1]} : vector<6x24xf32> to vector<4x4xf32>
    %468 = vector.extract_strided_slice %462 {offsets = [1, 2], sizes = [4, 4], strides = [1, 1]} : vector<6x24xf32> to vector<4x4xf32>
    %469 = vector.extract_strided_slice %462 {offsets = [2, 0], sizes = [4, 4], strides = [1, 1]} : vector<6x24xf32> to vector<4x4xf32>
    %470 = vector.extract_strided_slice %462 {offsets = [2, 1], sizes = [4, 4], strides = [1, 1]} : vector<6x24xf32> to vector<4x4xf32>
    %471 = vector.extract_strided_slice %462 {offsets = [2, 2], sizes = [4, 4], strides = [1, 1]} : vector<6x24xf32> to vector<4x4xf32>
    %472 = vector.extract_strided_slice %462 {offsets = [0, 6], sizes = [4, 4], strides = [1, 1]} : vector<6x24xf32> to vector<4x4xf32>
    %473 = vector.extract_strided_slice %462 {offsets = [0, 7], sizes = [4, 4], strides = [1, 1]} : vector<6x24xf32> to vector<4x4xf32>
    %474 = vector.extract_strided_slice %462 {offsets = [0, 8], sizes = [4, 4], strides = [1, 1]} : vector<6x24xf32> to vector<4x4xf32>
    %475 = vector.extract_strided_slice %462 {offsets = [1, 6], sizes = [4, 4], strides = [1, 1]} : vector<6x24xf32> to vector<4x4xf32>
    %476 = vector.extract_strided_slice %462 {offsets = [1, 7], sizes = [4, 4], strides = [1, 1]} : vector<6x24xf32> to vector<4x4xf32>
    %477 = vector.extract_strided_slice %462 {offsets = [1, 8], sizes = [4, 4], strides = [1, 1]} : vector<6x24xf32> to vector<4x4xf32>
    %478 = vector.extract_strided_slice %462 {offsets = [2, 6], sizes = [4, 4], strides = [1, 1]} : vector<6x24xf32> to vector<4x4xf32>
    %479 = vector.extract_strided_slice %462 {offsets = [2, 7], sizes = [4, 4], strides = [1, 1]} : vector<6x24xf32> to vector<4x4xf32>
    %480 = vector.extract_strided_slice %462 {offsets = [2, 8], sizes = [4, 4], strides = [1, 1]} : vector<6x24xf32> to vector<4x4xf32>
    %481 = vector.extract_strided_slice %462 {offsets = [0, 12], sizes = [4, 4], strides = [1, 1]} : vector<6x24xf32> to vector<4x4xf32>
    %482 = vector.extract_strided_slice %462 {offsets = [0, 13], sizes = [4, 4], strides = [1, 1]} : vector<6x24xf32> to vector<4x4xf32>
    %483 = vector.extract_strided_slice %462 {offsets = [0, 14], sizes = [4, 4], strides = [1, 1]} : vector<6x24xf32> to vector<4x4xf32>
    %484 = vector.extract_strided_slice %462 {offsets = [1, 12], sizes = [4, 4], strides = [1, 1]} : vector<6x24xf32> to vector<4x4xf32>
    %485 = vector.extract_strided_slice %462 {offsets = [1, 13], sizes = [4, 4], strides = [1, 1]} : vector<6x24xf32> to vector<4x4xf32>
    %486 = vector.extract_strided_slice %462 {offsets = [1, 14], sizes = [4, 4], strides = [1, 1]} : vector<6x24xf32> to vector<4x4xf32>
    %487 = vector.extract_strided_slice %462 {offsets = [2, 12], sizes = [4, 4], strides = [1, 1]} : vector<6x24xf32> to vector<4x4xf32>
    %488 = vector.extract_strided_slice %462 {offsets = [2, 13], sizes = [4, 4], strides = [1, 1]} : vector<6x24xf32> to vector<4x4xf32>
    %489 = vector.extract_strided_slice %462 {offsets = [2, 14], sizes = [4, 4], strides = [1, 1]} : vector<6x24xf32> to vector<4x4xf32>
    %490 = vector.extract_strided_slice %462 {offsets = [0, 18], sizes = [4, 4], strides = [1, 1]} : vector<6x24xf32> to vector<4x4xf32>
    %491 = vector.extract_strided_slice %462 {offsets = [0, 19], sizes = [4, 4], strides = [1, 1]} : vector<6x24xf32> to vector<4x4xf32>
    %492 = vector.extract_strided_slice %462 {offsets = [0, 20], sizes = [4, 4], strides = [1, 1]} : vector<6x24xf32> to vector<4x4xf32>
    %493 = vector.extract_strided_slice %462 {offsets = [1, 18], sizes = [4, 4], strides = [1, 1]} : vector<6x24xf32> to vector<4x4xf32>
    %494 = vector.extract_strided_slice %462 {offsets = [1, 19], sizes = [4, 4], strides = [1, 1]} : vector<6x24xf32> to vector<4x4xf32>
    %495 = vector.extract_strided_slice %462 {offsets = [1, 20], sizes = [4, 4], strides = [1, 1]} : vector<6x24xf32> to vector<4x4xf32>
    %496 = vector.extract_strided_slice %462 {offsets = [2, 18], sizes = [4, 4], strides = [1, 1]} : vector<6x24xf32> to vector<4x4xf32>
    %497 = vector.extract_strided_slice %462 {offsets = [2, 19], sizes = [4, 4], strides = [1, 1]} : vector<6x24xf32> to vector<4x4xf32>
    %498 = vector.extract_strided_slice %462 {offsets = [2, 20], sizes = [4, 4], strides = [1, 1]} : vector<6x24xf32> to vector<4x4xf32>
    %499 = tpu.iota {dimensions = array<i32: 0>} : vector<4x32xi32>
    %500 = tpu.iota {dimensions = array<i32: 1>} : vector<4x32xi32>
    %c0_45 = arith.constant 0 : index
    %501 = memref.load %arg7[%c0_45] : memref<8xf32, #tpu.memory_space<smem>>
    %502 = vector.broadcast %501 : f32 to vector<4x4xf32>
    %c0_46 = arith.constant 0 : index
    %503 = memref.load %arg6[%c0_46] : memref<288xf32, #tpu.memory_space<smem>>
    %504 = vector.broadcast %503 : f32 to vector<4x4xf32>
    %505 = arith.mulf %504, %463 : vector<4x4xf32>
    %506 = arith.addf %502, %505 : vector<4x4xf32>
    %c1_47 = arith.constant 1 : index
    %507 = memref.load %arg6[%c1_47] : memref<288xf32, #tpu.memory_space<smem>>
    %508 = vector.broadcast %507 : f32 to vector<4x4xf32>
    %509 = arith.mulf %508, %464 : vector<4x4xf32>
    %510 = arith.addf %506, %509 : vector<4x4xf32>
    %c2_48 = arith.constant 2 : index
    %511 = memref.load %arg6[%c2_48] : memref<288xf32, #tpu.memory_space<smem>>
    %512 = vector.broadcast %511 : f32 to vector<4x4xf32>
    %513 = arith.mulf %512, %465 : vector<4x4xf32>
    %514 = arith.addf %510, %513 : vector<4x4xf32>
    %c3_49 = arith.constant 3 : index
    %515 = memref.load %arg6[%c3_49] : memref<288xf32, #tpu.memory_space<smem>>
    %516 = vector.broadcast %515 : f32 to vector<4x4xf32>
    %517 = arith.mulf %516, %466 : vector<4x4xf32>
    %518 = arith.addf %514, %517 : vector<4x4xf32>
    %c4_50 = arith.constant 4 : index
    %519 = memref.load %arg6[%c4_50] : memref<288xf32, #tpu.memory_space<smem>>
    %520 = vector.broadcast %519 : f32 to vector<4x4xf32>
    %521 = arith.mulf %520, %467 : vector<4x4xf32>
    %522 = arith.addf %518, %521 : vector<4x4xf32>
    %c5_51 = arith.constant 5 : index
    %523 = memref.load %arg6[%c5_51] : memref<288xf32, #tpu.memory_space<smem>>
    %524 = vector.broadcast %523 : f32 to vector<4x4xf32>
    %525 = arith.mulf %524, %468 : vector<4x4xf32>
    %526 = arith.addf %522, %525 : vector<4x4xf32>
    %c6_52 = arith.constant 6 : index
    %527 = memref.load %arg6[%c6_52] : memref<288xf32, #tpu.memory_space<smem>>
    %528 = vector.broadcast %527 : f32 to vector<4x4xf32>
    %529 = arith.mulf %528, %469 : vector<4x4xf32>
    %530 = arith.addf %526, %529 : vector<4x4xf32>
    %c7_53 = arith.constant 7 : index
    %531 = memref.load %arg6[%c7_53] : memref<288xf32, #tpu.memory_space<smem>>
    %532 = vector.broadcast %531 : f32 to vector<4x4xf32>
    %533 = arith.mulf %532, %470 : vector<4x4xf32>
    %534 = arith.addf %530, %533 : vector<4x4xf32>
    %c8_54 = arith.constant 8 : index
    %535 = memref.load %arg6[%c8_54] : memref<288xf32, #tpu.memory_space<smem>>
    %536 = vector.broadcast %535 : f32 to vector<4x4xf32>
    %537 = arith.mulf %536, %471 : vector<4x4xf32>
    %538 = arith.addf %534, %537 : vector<4x4xf32>
    %c9_55 = arith.constant 9 : index
    %539 = memref.load %arg6[%c9_55] : memref<288xf32, #tpu.memory_space<smem>>
    %540 = vector.broadcast %539 : f32 to vector<4x4xf32>
    %541 = arith.mulf %540, %472 : vector<4x4xf32>
    %542 = arith.addf %538, %541 : vector<4x4xf32>
    %c10_56 = arith.constant 10 : index
    %543 = memref.load %arg6[%c10_56] : memref<288xf32, #tpu.memory_space<smem>>
    %544 = vector.broadcast %543 : f32 to vector<4x4xf32>
    %545 = arith.mulf %544, %473 : vector<4x4xf32>
    %546 = arith.addf %542, %545 : vector<4x4xf32>
    %c11_57 = arith.constant 11 : index
    %547 = memref.load %arg6[%c11_57] : memref<288xf32, #tpu.memory_space<smem>>
    %548 = vector.broadcast %547 : f32 to vector<4x4xf32>
    %549 = arith.mulf %548, %474 : vector<4x4xf32>
    %550 = arith.addf %546, %549 : vector<4x4xf32>
    %c12_58 = arith.constant 12 : index
    %551 = memref.load %arg6[%c12_58] : memref<288xf32, #tpu.memory_space<smem>>
    %552 = vector.broadcast %551 : f32 to vector<4x4xf32>
    %553 = arith.mulf %552, %475 : vector<4x4xf32>
    %554 = arith.addf %550, %553 : vector<4x4xf32>
    %c13_59 = arith.constant 13 : index
    %555 = memref.load %arg6[%c13_59] : memref<288xf32, #tpu.memory_space<smem>>
    %556 = vector.broadcast %555 : f32 to vector<4x4xf32>
    %557 = arith.mulf %556, %476 : vector<4x4xf32>
    %558 = arith.addf %554, %557 : vector<4x4xf32>
    %c14_60 = arith.constant 14 : index
    %559 = memref.load %arg6[%c14_60] : memref<288xf32, #tpu.memory_space<smem>>
    %560 = vector.broadcast %559 : f32 to vector<4x4xf32>
    %561 = arith.mulf %560, %477 : vector<4x4xf32>
    %562 = arith.addf %558, %561 : vector<4x4xf32>
    %c15_61 = arith.constant 15 : index
    %563 = memref.load %arg6[%c15_61] : memref<288xf32, #tpu.memory_space<smem>>
    %564 = vector.broadcast %563 : f32 to vector<4x4xf32>
    %565 = arith.mulf %564, %478 : vector<4x4xf32>
    %566 = arith.addf %562, %565 : vector<4x4xf32>
    %c16_62 = arith.constant 16 : index
    %567 = memref.load %arg6[%c16_62] : memref<288xf32, #tpu.memory_space<smem>>
    %568 = vector.broadcast %567 : f32 to vector<4x4xf32>
    %569 = arith.mulf %568, %479 : vector<4x4xf32>
    %570 = arith.addf %566, %569 : vector<4x4xf32>
    %c17_63 = arith.constant 17 : index
    %571 = memref.load %arg6[%c17_63] : memref<288xf32, #tpu.memory_space<smem>>
    %572 = vector.broadcast %571 : f32 to vector<4x4xf32>
    %573 = arith.mulf %572, %480 : vector<4x4xf32>
    %574 = arith.addf %570, %573 : vector<4x4xf32>
    %c18_64 = arith.constant 18 : index
    %575 = memref.load %arg6[%c18_64] : memref<288xf32, #tpu.memory_space<smem>>
    %576 = vector.broadcast %575 : f32 to vector<4x4xf32>
    %577 = arith.mulf %576, %481 : vector<4x4xf32>
    %578 = arith.addf %574, %577 : vector<4x4xf32>
    %c19_65 = arith.constant 19 : index
    %579 = memref.load %arg6[%c19_65] : memref<288xf32, #tpu.memory_space<smem>>
    %580 = vector.broadcast %579 : f32 to vector<4x4xf32>
    %581 = arith.mulf %580, %482 : vector<4x4xf32>
    %582 = arith.addf %578, %581 : vector<4x4xf32>
    %c20_66 = arith.constant 20 : index
    %583 = memref.load %arg6[%c20_66] : memref<288xf32, #tpu.memory_space<smem>>
    %584 = vector.broadcast %583 : f32 to vector<4x4xf32>
    %585 = arith.mulf %584, %483 : vector<4x4xf32>
    %586 = arith.addf %582, %585 : vector<4x4xf32>
    %c21_67 = arith.constant 21 : index
    %587 = memref.load %arg6[%c21_67] : memref<288xf32, #tpu.memory_space<smem>>
    %588 = vector.broadcast %587 : f32 to vector<4x4xf32>
    %589 = arith.mulf %588, %484 : vector<4x4xf32>
    %590 = arith.addf %586, %589 : vector<4x4xf32>
    %c22_68 = arith.constant 22 : index
    %591 = memref.load %arg6[%c22_68] : memref<288xf32, #tpu.memory_space<smem>>
    %592 = vector.broadcast %591 : f32 to vector<4x4xf32>
    %593 = arith.mulf %592, %485 : vector<4x4xf32>
    %594 = arith.addf %590, %593 : vector<4x4xf32>
    %c23_69 = arith.constant 23 : index
    %595 = memref.load %arg6[%c23_69] : memref<288xf32, #tpu.memory_space<smem>>
    %596 = vector.broadcast %595 : f32 to vector<4x4xf32>
    %597 = arith.mulf %596, %486 : vector<4x4xf32>
    %598 = arith.addf %594, %597 : vector<4x4xf32>
    %c24_70 = arith.constant 24 : index
    %599 = memref.load %arg6[%c24_70] : memref<288xf32, #tpu.memory_space<smem>>
    %600 = vector.broadcast %599 : f32 to vector<4x4xf32>
    %601 = arith.mulf %600, %487 : vector<4x4xf32>
    %602 = arith.addf %598, %601 : vector<4x4xf32>
    %c25_71 = arith.constant 25 : index
    %603 = memref.load %arg6[%c25_71] : memref<288xf32, #tpu.memory_space<smem>>
    %604 = vector.broadcast %603 : f32 to vector<4x4xf32>
    %605 = arith.mulf %604, %488 : vector<4x4xf32>
    %606 = arith.addf %602, %605 : vector<4x4xf32>
    %c26_72 = arith.constant 26 : index
    %607 = memref.load %arg6[%c26_72] : memref<288xf32, #tpu.memory_space<smem>>
    %608 = vector.broadcast %607 : f32 to vector<4x4xf32>
    %609 = arith.mulf %608, %489 : vector<4x4xf32>
    %610 = arith.addf %606, %609 : vector<4x4xf32>
    %c27_73 = arith.constant 27 : index
    %611 = memref.load %arg6[%c27_73] : memref<288xf32, #tpu.memory_space<smem>>
    %612 = vector.broadcast %611 : f32 to vector<4x4xf32>
    %613 = arith.mulf %612, %490 : vector<4x4xf32>
    %614 = arith.addf %610, %613 : vector<4x4xf32>
    %c28_74 = arith.constant 28 : index
    %615 = memref.load %arg6[%c28_74] : memref<288xf32, #tpu.memory_space<smem>>
    %616 = vector.broadcast %615 : f32 to vector<4x4xf32>
    %617 = arith.mulf %616, %491 : vector<4x4xf32>
    %618 = arith.addf %614, %617 : vector<4x4xf32>
    %c29_75 = arith.constant 29 : index
    %619 = memref.load %arg6[%c29_75] : memref<288xf32, #tpu.memory_space<smem>>
    %620 = vector.broadcast %619 : f32 to vector<4x4xf32>
    %621 = arith.mulf %620, %492 : vector<4x4xf32>
    %622 = arith.addf %618, %621 : vector<4x4xf32>
    %c30_76 = arith.constant 30 : index
    %623 = memref.load %arg6[%c30_76] : memref<288xf32, #tpu.memory_space<smem>>
    %624 = vector.broadcast %623 : f32 to vector<4x4xf32>
    %625 = arith.mulf %624, %493 : vector<4x4xf32>
    %626 = arith.addf %622, %625 : vector<4x4xf32>
    %c31_77 = arith.constant 31 : index
    %627 = memref.load %arg6[%c31_77] : memref<288xf32, #tpu.memory_space<smem>>
    %628 = vector.broadcast %627 : f32 to vector<4x4xf32>
    %629 = arith.mulf %628, %494 : vector<4x4xf32>
    %630 = arith.addf %626, %629 : vector<4x4xf32>
    %c32_78 = arith.constant 32 : index
    %631 = memref.load %arg6[%c32_78] : memref<288xf32, #tpu.memory_space<smem>>
    %632 = vector.broadcast %631 : f32 to vector<4x4xf32>
    %633 = arith.mulf %632, %495 : vector<4x4xf32>
    %634 = arith.addf %630, %633 : vector<4x4xf32>
    %c33_79 = arith.constant 33 : index
    %635 = memref.load %arg6[%c33_79] : memref<288xf32, #tpu.memory_space<smem>>
    %636 = vector.broadcast %635 : f32 to vector<4x4xf32>
    %637 = arith.mulf %636, %496 : vector<4x4xf32>
    %638 = arith.addf %634, %637 : vector<4x4xf32>
    %c34_80 = arith.constant 34 : index
    %639 = memref.load %arg6[%c34_80] : memref<288xf32, #tpu.memory_space<smem>>
    %640 = vector.broadcast %639 : f32 to vector<4x4xf32>
    %641 = arith.mulf %640, %497 : vector<4x4xf32>
    %642 = arith.addf %638, %641 : vector<4x4xf32>
    %c35_81 = arith.constant 35 : index
    %643 = memref.load %arg6[%c35_81] : memref<288xf32, #tpu.memory_space<smem>>
    %644 = vector.broadcast %643 : f32 to vector<4x4xf32>
    %645 = arith.mulf %644, %498 : vector<4x4xf32>
    %646 = arith.addf %642, %645 : vector<4x4xf32>
    %c0_i32_82 = arith.constant 0 : i32
    %647 = vector.broadcast %c0_i32_82 : i32 to vector<4x32xi32>
    %648 = arith.addi %499, %647 : vector<4x32xi32>
    %649 = arith.cmpi eq, %500, %648 : vector<4x32xi32>
    %650 = arith.extui %649 : vector<4x32xi1> to vector<4x32xi32>
    %651 = arith.sitofp %650 : vector<4x32xi32> to vector<4x32xf32>
    %cst_83 = arith.constant dense<0.000000e+00> : vector<4x32xf32>
    %652 = tpu.matmul %646, %651, %cst_83 {dimension_numbers = #tpu.dot_dimension_numbers<[1], [0], [0], [1], [0, 0, 1, 1], [], []>} : vector<4x4xf32>, vector<4x32xf32>, vector<4x32xf32> -> vector<4x32xf32>
    %c1_84 = arith.constant 1 : index
    %653 = memref.load %arg7[%c1_84] : memref<8xf32, #tpu.memory_space<smem>>
    %654 = vector.broadcast %653 : f32 to vector<4x4xf32>
    %c36_85 = arith.constant 36 : index
    %655 = memref.load %arg6[%c36_85] : memref<288xf32, #tpu.memory_space<smem>>
    %656 = vector.broadcast %655 : f32 to vector<4x4xf32>
    %657 = arith.mulf %656, %463 : vector<4x4xf32>
    %658 = arith.addf %654, %657 : vector<4x4xf32>
    %c37_86 = arith.constant 37 : index
    %659 = memref.load %arg6[%c37_86] : memref<288xf32, #tpu.memory_space<smem>>
    %660 = vector.broadcast %659 : f32 to vector<4x4xf32>
    %661 = arith.mulf %660, %464 : vector<4x4xf32>
    %662 = arith.addf %658, %661 : vector<4x4xf32>
    %c38_87 = arith.constant 38 : index
    %663 = memref.load %arg6[%c38_87] : memref<288xf32, #tpu.memory_space<smem>>
    %664 = vector.broadcast %663 : f32 to vector<4x4xf32>
    %665 = arith.mulf %664, %465 : vector<4x4xf32>
    %666 = arith.addf %662, %665 : vector<4x4xf32>
    %c39_88 = arith.constant 39 : index
    %667 = memref.load %arg6[%c39_88] : memref<288xf32, #tpu.memory_space<smem>>
    %668 = vector.broadcast %667 : f32 to vector<4x4xf32>
    %669 = arith.mulf %668, %466 : vector<4x4xf32>
    %670 = arith.addf %666, %669 : vector<4x4xf32>
    %c40_89 = arith.constant 40 : index
    %671 = memref.load %arg6[%c40_89] : memref<288xf32, #tpu.memory_space<smem>>
    %672 = vector.broadcast %671 : f32 to vector<4x4xf32>
    %673 = arith.mulf %672, %467 : vector<4x4xf32>
    %674 = arith.addf %670, %673 : vector<4x4xf32>
    %c41_90 = arith.constant 41 : index
    %675 = memref.load %arg6[%c41_90] : memref<288xf32, #tpu.memory_space<smem>>
    %676 = vector.broadcast %675 : f32 to vector<4x4xf32>
    %677 = arith.mulf %676, %468 : vector<4x4xf32>
    %678 = arith.addf %674, %677 : vector<4x4xf32>
    %c42_91 = arith.constant 42 : index
    %679 = memref.load %arg6[%c42_91] : memref<288xf32, #tpu.memory_space<smem>>
    %680 = vector.broadcast %679 : f32 to vector<4x4xf32>
    %681 = arith.mulf %680, %469 : vector<4x4xf32>
    %682 = arith.addf %678, %681 : vector<4x4xf32>
    %c43_92 = arith.constant 43 : index
    %683 = memref.load %arg6[%c43_92] : memref<288xf32, #tpu.memory_space<smem>>
    %684 = vector.broadcast %683 : f32 to vector<4x4xf32>
    %685 = arith.mulf %684, %470 : vector<4x4xf32>
    %686 = arith.addf %682, %685 : vector<4x4xf32>
    %c44_93 = arith.constant 44 : index
    %687 = memref.load %arg6[%c44_93] : memref<288xf32, #tpu.memory_space<smem>>
    %688 = vector.broadcast %687 : f32 to vector<4x4xf32>
    %689 = arith.mulf %688, %471 : vector<4x4xf32>
    %690 = arith.addf %686, %689 : vector<4x4xf32>
    %c45_94 = arith.constant 45 : index
    %691 = memref.load %arg6[%c45_94] : memref<288xf32, #tpu.memory_space<smem>>
    %692 = vector.broadcast %691 : f32 to vector<4x4xf32>
    %693 = arith.mulf %692, %472 : vector<4x4xf32>
    %694 = arith.addf %690, %693 : vector<4x4xf32>
    %c46_95 = arith.constant 46 : index
    %695 = memref.load %arg6[%c46_95] : memref<288xf32, #tpu.memory_space<smem>>
    %696 = vector.broadcast %695 : f32 to vector<4x4xf32>
    %697 = arith.mulf %696, %473 : vector<4x4xf32>
    %698 = arith.addf %694, %697 : vector<4x4xf32>
    %c47_96 = arith.constant 47 : index
    %699 = memref.load %arg6[%c47_96] : memref<288xf32, #tpu.memory_space<smem>>
    %700 = vector.broadcast %699 : f32 to vector<4x4xf32>
    %701 = arith.mulf %700, %474 : vector<4x4xf32>
    %702 = arith.addf %698, %701 : vector<4x4xf32>
    %c48_97 = arith.constant 48 : index
    %703 = memref.load %arg6[%c48_97] : memref<288xf32, #tpu.memory_space<smem>>
    %704 = vector.broadcast %703 : f32 to vector<4x4xf32>
    %705 = arith.mulf %704, %475 : vector<4x4xf32>
    %706 = arith.addf %702, %705 : vector<4x4xf32>
    %c49_98 = arith.constant 49 : index
    %707 = memref.load %arg6[%c49_98] : memref<288xf32, #tpu.memory_space<smem>>
    %708 = vector.broadcast %707 : f32 to vector<4x4xf32>
    %709 = arith.mulf %708, %476 : vector<4x4xf32>
    %710 = arith.addf %706, %709 : vector<4x4xf32>
    %c50_99 = arith.constant 50 : index
    %711 = memref.load %arg6[%c50_99] : memref<288xf32, #tpu.memory_space<smem>>
    %712 = vector.broadcast %711 : f32 to vector<4x4xf32>
    %713 = arith.mulf %712, %477 : vector<4x4xf32>
    %714 = arith.addf %710, %713 : vector<4x4xf32>
    %c51_100 = arith.constant 51 : index
    %715 = memref.load %arg6[%c51_100] : memref<288xf32, #tpu.memory_space<smem>>
    %716 = vector.broadcast %715 : f32 to vector<4x4xf32>
    %717 = arith.mulf %716, %478 : vector<4x4xf32>
    %718 = arith.addf %714, %717 : vector<4x4xf32>
    %c52_101 = arith.constant 52 : index
    %719 = memref.load %arg6[%c52_101] : memref<288xf32, #tpu.memory_space<smem>>
    %720 = vector.broadcast %719 : f32 to vector<4x4xf32>
    %721 = arith.mulf %720, %479 : vector<4x4xf32>
    %722 = arith.addf %718, %721 : vector<4x4xf32>
    %c53_102 = arith.constant 53 : index
    %723 = memref.load %arg6[%c53_102] : memref<288xf32, #tpu.memory_space<smem>>
    %724 = vector.broadcast %723 : f32 to vector<4x4xf32>
    %725 = arith.mulf %724, %480 : vector<4x4xf32>
    %726 = arith.addf %722, %725 : vector<4x4xf32>
    %c54_103 = arith.constant 54 : index
    %727 = memref.load %arg6[%c54_103] : memref<288xf32, #tpu.memory_space<smem>>
    %728 = vector.broadcast %727 : f32 to vector<4x4xf32>
    %729 = arith.mulf %728, %481 : vector<4x4xf32>
    %730 = arith.addf %726, %729 : vector<4x4xf32>
    %c55_104 = arith.constant 55 : index
    %731 = memref.load %arg6[%c55_104] : memref<288xf32, #tpu.memory_space<smem>>
    %732 = vector.broadcast %731 : f32 to vector<4x4xf32>
    %733 = arith.mulf %732, %482 : vector<4x4xf32>
    %734 = arith.addf %730, %733 : vector<4x4xf32>
    %c56_105 = arith.constant 56 : index
    %735 = memref.load %arg6[%c56_105] : memref<288xf32, #tpu.memory_space<smem>>
    %736 = vector.broadcast %735 : f32 to vector<4x4xf32>
    %737 = arith.mulf %736, %483 : vector<4x4xf32>
    %738 = arith.addf %734, %737 : vector<4x4xf32>
    %c57_106 = arith.constant 57 : index
    %739 = memref.load %arg6[%c57_106] : memref<288xf32, #tpu.memory_space<smem>>
    %740 = vector.broadcast %739 : f32 to vector<4x4xf32>
    %741 = arith.mulf %740, %484 : vector<4x4xf32>
    %742 = arith.addf %738, %741 : vector<4x4xf32>
    %c58_107 = arith.constant 58 : index
    %743 = memref.load %arg6[%c58_107] : memref<288xf32, #tpu.memory_space<smem>>
    %744 = vector.broadcast %743 : f32 to vector<4x4xf32>
    %745 = arith.mulf %744, %485 : vector<4x4xf32>
    %746 = arith.addf %742, %745 : vector<4x4xf32>
    %c59_108 = arith.constant 59 : index
    %747 = memref.load %arg6[%c59_108] : memref<288xf32, #tpu.memory_space<smem>>
    %748 = vector.broadcast %747 : f32 to vector<4x4xf32>
    %749 = arith.mulf %748, %486 : vector<4x4xf32>
    %750 = arith.addf %746, %749 : vector<4x4xf32>
    %c60_109 = arith.constant 60 : index
    %751 = memref.load %arg6[%c60_109] : memref<288xf32, #tpu.memory_space<smem>>
    %752 = vector.broadcast %751 : f32 to vector<4x4xf32>
    %753 = arith.mulf %752, %487 : vector<4x4xf32>
    %754 = arith.addf %750, %753 : vector<4x4xf32>
    %c61_110 = arith.constant 61 : index
    %755 = memref.load %arg6[%c61_110] : memref<288xf32, #tpu.memory_space<smem>>
    %756 = vector.broadcast %755 : f32 to vector<4x4xf32>
    %757 = arith.mulf %756, %488 : vector<4x4xf32>
    %758 = arith.addf %754, %757 : vector<4x4xf32>
    %c62_111 = arith.constant 62 : index
    %759 = memref.load %arg6[%c62_111] : memref<288xf32, #tpu.memory_space<smem>>
    %760 = vector.broadcast %759 : f32 to vector<4x4xf32>
    %761 = arith.mulf %760, %489 : vector<4x4xf32>
    %762 = arith.addf %758, %761 : vector<4x4xf32>
    %c63_112 = arith.constant 63 : index
    %763 = memref.load %arg6[%c63_112] : memref<288xf32, #tpu.memory_space<smem>>
    %764 = vector.broadcast %763 : f32 to vector<4x4xf32>
    %765 = arith.mulf %764, %490 : vector<4x4xf32>
    %766 = arith.addf %762, %765 : vector<4x4xf32>
    %c64_113 = arith.constant 64 : index
    %767 = memref.load %arg6[%c64_113] : memref<288xf32, #tpu.memory_space<smem>>
    %768 = vector.broadcast %767 : f32 to vector<4x4xf32>
    %769 = arith.mulf %768, %491 : vector<4x4xf32>
    %770 = arith.addf %766, %769 : vector<4x4xf32>
    %c65_114 = arith.constant 65 : index
    %771 = memref.load %arg6[%c65_114] : memref<288xf32, #tpu.memory_space<smem>>
    %772 = vector.broadcast %771 : f32 to vector<4x4xf32>
    %773 = arith.mulf %772, %492 : vector<4x4xf32>
    %774 = arith.addf %770, %773 : vector<4x4xf32>
    %c66_115 = arith.constant 66 : index
    %775 = memref.load %arg6[%c66_115] : memref<288xf32, #tpu.memory_space<smem>>
    %776 = vector.broadcast %775 : f32 to vector<4x4xf32>
    %777 = arith.mulf %776, %493 : vector<4x4xf32>
    %778 = arith.addf %774, %777 : vector<4x4xf32>
    %c67_116 = arith.constant 67 : index
    %779 = memref.load %arg6[%c67_116] : memref<288xf32, #tpu.memory_space<smem>>
    %780 = vector.broadcast %779 : f32 to vector<4x4xf32>
    %781 = arith.mulf %780, %494 : vector<4x4xf32>
    %782 = arith.addf %778, %781 : vector<4x4xf32>
    %c68_117 = arith.constant 68 : index
    %783 = memref.load %arg6[%c68_117] : memref<288xf32, #tpu.memory_space<smem>>
    %784 = vector.broadcast %783 : f32 to vector<4x4xf32>
    %785 = arith.mulf %784, %495 : vector<4x4xf32>
    %786 = arith.addf %782, %785 : vector<4x4xf32>
    %c69_118 = arith.constant 69 : index
    %787 = memref.load %arg6[%c69_118] : memref<288xf32, #tpu.memory_space<smem>>
    %788 = vector.broadcast %787 : f32 to vector<4x4xf32>
    %789 = arith.mulf %788, %496 : vector<4x4xf32>
    %790 = arith.addf %786, %789 : vector<4x4xf32>
    %c70_119 = arith.constant 70 : index
    %791 = memref.load %arg6[%c70_119] : memref<288xf32, #tpu.memory_space<smem>>
    %792 = vector.broadcast %791 : f32 to vector<4x4xf32>
    %793 = arith.mulf %792, %497 : vector<4x4xf32>
    %794 = arith.addf %790, %793 : vector<4x4xf32>
    %c71_120 = arith.constant 71 : index
    %795 = memref.load %arg6[%c71_120] : memref<288xf32, #tpu.memory_space<smem>>
    %796 = vector.broadcast %795 : f32 to vector<4x4xf32>
    %797 = arith.mulf %796, %498 : vector<4x4xf32>
    %798 = arith.addf %794, %797 : vector<4x4xf32>
    %c4_i32 = arith.constant 4 : i32
    %799 = vector.broadcast %c4_i32 : i32 to vector<4x32xi32>
    %800 = arith.addi %499, %799 : vector<4x32xi32>
    %801 = arith.cmpi eq, %500, %800 : vector<4x32xi32>
    %802 = arith.extui %801 : vector<4x32xi1> to vector<4x32xi32>
    %803 = arith.sitofp %802 : vector<4x32xi32> to vector<4x32xf32>
    %cst_121 = arith.constant dense<0.000000e+00> : vector<4x32xf32>
    %804 = tpu.matmul %798, %803, %cst_121 {dimension_numbers = #tpu.dot_dimension_numbers<[1], [0], [0], [1], [0, 0, 1, 1], [], []>} : vector<4x4xf32>, vector<4x32xf32>, vector<4x32xf32> -> vector<4x32xf32>
    %805 = arith.addf %652, %804 : vector<4x32xf32>
    %c2_122 = arith.constant 2 : index
    %806 = memref.load %arg7[%c2_122] : memref<8xf32, #tpu.memory_space<smem>>
    %807 = vector.broadcast %806 : f32 to vector<4x4xf32>
    %c72 = arith.constant 72 : index
    %808 = memref.load %arg6[%c72] : memref<288xf32, #tpu.memory_space<smem>>
    %809 = vector.broadcast %808 : f32 to vector<4x4xf32>
    %810 = arith.mulf %809, %463 : vector<4x4xf32>
    %811 = arith.addf %807, %810 : vector<4x4xf32>
    %c73 = arith.constant 73 : index
    %812 = memref.load %arg6[%c73] : memref<288xf32, #tpu.memory_space<smem>>
    %813 = vector.broadcast %812 : f32 to vector<4x4xf32>
    %814 = arith.mulf %813, %464 : vector<4x4xf32>
    %815 = arith.addf %811, %814 : vector<4x4xf32>
    %c74 = arith.constant 74 : index
    %816 = memref.load %arg6[%c74] : memref<288xf32, #tpu.memory_space<smem>>
    %817 = vector.broadcast %816 : f32 to vector<4x4xf32>
    %818 = arith.mulf %817, %465 : vector<4x4xf32>
    %819 = arith.addf %815, %818 : vector<4x4xf32>
    %c75 = arith.constant 75 : index
    %820 = memref.load %arg6[%c75] : memref<288xf32, #tpu.memory_space<smem>>
    %821 = vector.broadcast %820 : f32 to vector<4x4xf32>
    %822 = arith.mulf %821, %466 : vector<4x4xf32>
    %823 = arith.addf %819, %822 : vector<4x4xf32>
    %c76 = arith.constant 76 : index
    %824 = memref.load %arg6[%c76] : memref<288xf32, #tpu.memory_space<smem>>
    %825 = vector.broadcast %824 : f32 to vector<4x4xf32>
    %826 = arith.mulf %825, %467 : vector<4x4xf32>
    %827 = arith.addf %823, %826 : vector<4x4xf32>
    %c77 = arith.constant 77 : index
    %828 = memref.load %arg6[%c77] : memref<288xf32, #tpu.memory_space<smem>>
    %829 = vector.broadcast %828 : f32 to vector<4x4xf32>
    %830 = arith.mulf %829, %468 : vector<4x4xf32>
    %831 = arith.addf %827, %830 : vector<4x4xf32>
    %c78 = arith.constant 78 : index
    %832 = memref.load %arg6[%c78] : memref<288xf32, #tpu.memory_space<smem>>
    %833 = vector.broadcast %832 : f32 to vector<4x4xf32>
    %834 = arith.mulf %833, %469 : vector<4x4xf32>
    %835 = arith.addf %831, %834 : vector<4x4xf32>
    %c79 = arith.constant 79 : index
    %836 = memref.load %arg6[%c79] : memref<288xf32, #tpu.memory_space<smem>>
    %837 = vector.broadcast %836 : f32 to vector<4x4xf32>
    %838 = arith.mulf %837, %470 : vector<4x4xf32>
    %839 = arith.addf %835, %838 : vector<4x4xf32>
    %c80 = arith.constant 80 : index
    %840 = memref.load %arg6[%c80] : memref<288xf32, #tpu.memory_space<smem>>
    %841 = vector.broadcast %840 : f32 to vector<4x4xf32>
    %842 = arith.mulf %841, %471 : vector<4x4xf32>
    %843 = arith.addf %839, %842 : vector<4x4xf32>
    %c81 = arith.constant 81 : index
    %844 = memref.load %arg6[%c81] : memref<288xf32, #tpu.memory_space<smem>>
    %845 = vector.broadcast %844 : f32 to vector<4x4xf32>
    %846 = arith.mulf %845, %472 : vector<4x4xf32>
    %847 = arith.addf %843, %846 : vector<4x4xf32>
    %c82 = arith.constant 82 : index
    %848 = memref.load %arg6[%c82] : memref<288xf32, #tpu.memory_space<smem>>
    %849 = vector.broadcast %848 : f32 to vector<4x4xf32>
    %850 = arith.mulf %849, %473 : vector<4x4xf32>
    %851 = arith.addf %847, %850 : vector<4x4xf32>
    %c83 = arith.constant 83 : index
    %852 = memref.load %arg6[%c83] : memref<288xf32, #tpu.memory_space<smem>>
    %853 = vector.broadcast %852 : f32 to vector<4x4xf32>
    %854 = arith.mulf %853, %474 : vector<4x4xf32>
    %855 = arith.addf %851, %854 : vector<4x4xf32>
    %c84 = arith.constant 84 : index
    %856 = memref.load %arg6[%c84] : memref<288xf32, #tpu.memory_space<smem>>
    %857 = vector.broadcast %856 : f32 to vector<4x4xf32>
    %858 = arith.mulf %857, %475 : vector<4x4xf32>
    %859 = arith.addf %855, %858 : vector<4x4xf32>
    %c85 = arith.constant 85 : index
    %860 = memref.load %arg6[%c85] : memref<288xf32, #tpu.memory_space<smem>>
    %861 = vector.broadcast %860 : f32 to vector<4x4xf32>
    %862 = arith.mulf %861, %476 : vector<4x4xf32>
    %863 = arith.addf %859, %862 : vector<4x4xf32>
    %c86 = arith.constant 86 : index
    %864 = memref.load %arg6[%c86] : memref<288xf32, #tpu.memory_space<smem>>
    %865 = vector.broadcast %864 : f32 to vector<4x4xf32>
    %866 = arith.mulf %865, %477 : vector<4x4xf32>
    %867 = arith.addf %863, %866 : vector<4x4xf32>
    %c87 = arith.constant 87 : index
    %868 = memref.load %arg6[%c87] : memref<288xf32, #tpu.memory_space<smem>>
    %869 = vector.broadcast %868 : f32 to vector<4x4xf32>
    %870 = arith.mulf %869, %478 : vector<4x4xf32>
    %871 = arith.addf %867, %870 : vector<4x4xf32>
    %c88 = arith.constant 88 : index
    %872 = memref.load %arg6[%c88] : memref<288xf32, #tpu.memory_space<smem>>
    %873 = vector.broadcast %872 : f32 to vector<4x4xf32>
    %874 = arith.mulf %873, %479 : vector<4x4xf32>
    %875 = arith.addf %871, %874 : vector<4x4xf32>
    %c89 = arith.constant 89 : index
    %876 = memref.load %arg6[%c89] : memref<288xf32, #tpu.memory_space<smem>>
    %877 = vector.broadcast %876 : f32 to vector<4x4xf32>
    %878 = arith.mulf %877, %480 : vector<4x4xf32>
    %879 = arith.addf %875, %878 : vector<4x4xf32>
    %c90 = arith.constant 90 : index
    %880 = memref.load %arg6[%c90] : memref<288xf32, #tpu.memory_space<smem>>
    %881 = vector.broadcast %880 : f32 to vector<4x4xf32>
    %882 = arith.mulf %881, %481 : vector<4x4xf32>
    %883 = arith.addf %879, %882 : vector<4x4xf32>
    %c91 = arith.constant 91 : index
    %884 = memref.load %arg6[%c91] : memref<288xf32, #tpu.memory_space<smem>>
    %885 = vector.broadcast %884 : f32 to vector<4x4xf32>
    %886 = arith.mulf %885, %482 : vector<4x4xf32>
    %887 = arith.addf %883, %886 : vector<4x4xf32>
    %c92 = arith.constant 92 : index
    %888 = memref.load %arg6[%c92] : memref<288xf32, #tpu.memory_space<smem>>
    %889 = vector.broadcast %888 : f32 to vector<4x4xf32>
    %890 = arith.mulf %889, %483 : vector<4x4xf32>
    %891 = arith.addf %887, %890 : vector<4x4xf32>
    %c93 = arith.constant 93 : index
    %892 = memref.load %arg6[%c93] : memref<288xf32, #tpu.memory_space<smem>>
    %893 = vector.broadcast %892 : f32 to vector<4x4xf32>
    %894 = arith.mulf %893, %484 : vector<4x4xf32>
    %895 = arith.addf %891, %894 : vector<4x4xf32>
    %c94 = arith.constant 94 : index
    %896 = memref.load %arg6[%c94] : memref<288xf32, #tpu.memory_space<smem>>
    %897 = vector.broadcast %896 : f32 to vector<4x4xf32>
    %898 = arith.mulf %897, %485 : vector<4x4xf32>
    %899 = arith.addf %895, %898 : vector<4x4xf32>
    %c95 = arith.constant 95 : index
    %900 = memref.load %arg6[%c95] : memref<288xf32, #tpu.memory_space<smem>>
    %901 = vector.broadcast %900 : f32 to vector<4x4xf32>
    %902 = arith.mulf %901, %486 : vector<4x4xf32>
    %903 = arith.addf %899, %902 : vector<4x4xf32>
    %c96 = arith.constant 96 : index
    %904 = memref.load %arg6[%c96] : memref<288xf32, #tpu.memory_space<smem>>
    %905 = vector.broadcast %904 : f32 to vector<4x4xf32>
    %906 = arith.mulf %905, %487 : vector<4x4xf32>
    %907 = arith.addf %903, %906 : vector<4x4xf32>
    %c97 = arith.constant 97 : index
    %908 = memref.load %arg6[%c97] : memref<288xf32, #tpu.memory_space<smem>>
    %909 = vector.broadcast %908 : f32 to vector<4x4xf32>
    %910 = arith.mulf %909, %488 : vector<4x4xf32>
    %911 = arith.addf %907, %910 : vector<4x4xf32>
    %c98 = arith.constant 98 : index
    %912 = memref.load %arg6[%c98] : memref<288xf32, #tpu.memory_space<smem>>
    %913 = vector.broadcast %912 : f32 to vector<4x4xf32>
    %914 = arith.mulf %913, %489 : vector<4x4xf32>
    %915 = arith.addf %911, %914 : vector<4x4xf32>
    %c99 = arith.constant 99 : index
    %916 = memref.load %arg6[%c99] : memref<288xf32, #tpu.memory_space<smem>>
    %917 = vector.broadcast %916 : f32 to vector<4x4xf32>
    %918 = arith.mulf %917, %490 : vector<4x4xf32>
    %919 = arith.addf %915, %918 : vector<4x4xf32>
    %c100 = arith.constant 100 : index
    %920 = memref.load %arg6[%c100] : memref<288xf32, #tpu.memory_space<smem>>
    %921 = vector.broadcast %920 : f32 to vector<4x4xf32>
    %922 = arith.mulf %921, %491 : vector<4x4xf32>
    %923 = arith.addf %919, %922 : vector<4x4xf32>
    %c101 = arith.constant 101 : index
    %924 = memref.load %arg6[%c101] : memref<288xf32, #tpu.memory_space<smem>>
    %925 = vector.broadcast %924 : f32 to vector<4x4xf32>
    %926 = arith.mulf %925, %492 : vector<4x4xf32>
    %927 = arith.addf %923, %926 : vector<4x4xf32>
    %c102 = arith.constant 102 : index
    %928 = memref.load %arg6[%c102] : memref<288xf32, #tpu.memory_space<smem>>
    %929 = vector.broadcast %928 : f32 to vector<4x4xf32>
    %930 = arith.mulf %929, %493 : vector<4x4xf32>
    %931 = arith.addf %927, %930 : vector<4x4xf32>
    %c103 = arith.constant 103 : index
    %932 = memref.load %arg6[%c103] : memref<288xf32, #tpu.memory_space<smem>>
    %933 = vector.broadcast %932 : f32 to vector<4x4xf32>
    %934 = arith.mulf %933, %494 : vector<4x4xf32>
    %935 = arith.addf %931, %934 : vector<4x4xf32>
    %c104 = arith.constant 104 : index
    %936 = memref.load %arg6[%c104] : memref<288xf32, #tpu.memory_space<smem>>
    %937 = vector.broadcast %936 : f32 to vector<4x4xf32>
    %938 = arith.mulf %937, %495 : vector<4x4xf32>
    %939 = arith.addf %935, %938 : vector<4x4xf32>
    %c105 = arith.constant 105 : index
    %940 = memref.load %arg6[%c105] : memref<288xf32, #tpu.memory_space<smem>>
    %941 = vector.broadcast %940 : f32 to vector<4x4xf32>
    %942 = arith.mulf %941, %496 : vector<4x4xf32>
    %943 = arith.addf %939, %942 : vector<4x4xf32>
    %c106 = arith.constant 106 : index
    %944 = memref.load %arg6[%c106] : memref<288xf32, #tpu.memory_space<smem>>
    %945 = vector.broadcast %944 : f32 to vector<4x4xf32>
    %946 = arith.mulf %945, %497 : vector<4x4xf32>
    %947 = arith.addf %943, %946 : vector<4x4xf32>
    %c107 = arith.constant 107 : index
    %948 = memref.load %arg6[%c107] : memref<288xf32, #tpu.memory_space<smem>>
    %949 = vector.broadcast %948 : f32 to vector<4x4xf32>
    %950 = arith.mulf %949, %498 : vector<4x4xf32>
    %951 = arith.addf %947, %950 : vector<4x4xf32>
    %c8_i32 = arith.constant 8 : i32
    %952 = vector.broadcast %c8_i32 : i32 to vector<4x32xi32>
    %953 = arith.addi %499, %952 : vector<4x32xi32>
    %954 = arith.cmpi eq, %500, %953 : vector<4x32xi32>
    %955 = arith.extui %954 : vector<4x32xi1> to vector<4x32xi32>
    %956 = arith.sitofp %955 : vector<4x32xi32> to vector<4x32xf32>
    %cst_123 = arith.constant dense<0.000000e+00> : vector<4x32xf32>
    %957 = tpu.matmul %951, %956, %cst_123 {dimension_numbers = #tpu.dot_dimension_numbers<[1], [0], [0], [1], [0, 0, 1, 1], [], []>} : vector<4x4xf32>, vector<4x32xf32>, vector<4x32xf32> -> vector<4x32xf32>
    %958 = arith.addf %805, %957 : vector<4x32xf32>
    %c3_124 = arith.constant 3 : index
    %959 = memref.load %arg7[%c3_124] : memref<8xf32, #tpu.memory_space<smem>>
    %960 = vector.broadcast %959 : f32 to vector<4x4xf32>
    %c108 = arith.constant 108 : index
    %961 = memref.load %arg6[%c108] : memref<288xf32, #tpu.memory_space<smem>>
    %962 = vector.broadcast %961 : f32 to vector<4x4xf32>
    %963 = arith.mulf %962, %463 : vector<4x4xf32>
    %964 = arith.addf %960, %963 : vector<4x4xf32>
    %c109 = arith.constant 109 : index
    %965 = memref.load %arg6[%c109] : memref<288xf32, #tpu.memory_space<smem>>
    %966 = vector.broadcast %965 : f32 to vector<4x4xf32>
    %967 = arith.mulf %966, %464 : vector<4x4xf32>
    %968 = arith.addf %964, %967 : vector<4x4xf32>
    %c110 = arith.constant 110 : index
    %969 = memref.load %arg6[%c110] : memref<288xf32, #tpu.memory_space<smem>>
    %970 = vector.broadcast %969 : f32 to vector<4x4xf32>
    %971 = arith.mulf %970, %465 : vector<4x4xf32>
    %972 = arith.addf %968, %971 : vector<4x4xf32>
    %c111 = arith.constant 111 : index
    %973 = memref.load %arg6[%c111] : memref<288xf32, #tpu.memory_space<smem>>
    %974 = vector.broadcast %973 : f32 to vector<4x4xf32>
    %975 = arith.mulf %974, %466 : vector<4x4xf32>
    %976 = arith.addf %972, %975 : vector<4x4xf32>
    %c112 = arith.constant 112 : index
    %977 = memref.load %arg6[%c112] : memref<288xf32, #tpu.memory_space<smem>>
    %978 = vector.broadcast %977 : f32 to vector<4x4xf32>
    %979 = arith.mulf %978, %467 : vector<4x4xf32>
    %980 = arith.addf %976, %979 : vector<4x4xf32>
    %c113 = arith.constant 113 : index
    %981 = memref.load %arg6[%c113] : memref<288xf32, #tpu.memory_space<smem>>
    %982 = vector.broadcast %981 : f32 to vector<4x4xf32>
    %983 = arith.mulf %982, %468 : vector<4x4xf32>
    %984 = arith.addf %980, %983 : vector<4x4xf32>
    %c114 = arith.constant 114 : index
    %985 = memref.load %arg6[%c114] : memref<288xf32, #tpu.memory_space<smem>>
    %986 = vector.broadcast %985 : f32 to vector<4x4xf32>
    %987 = arith.mulf %986, %469 : vector<4x4xf32>
    %988 = arith.addf %984, %987 : vector<4x4xf32>
    %c115 = arith.constant 115 : index
    %989 = memref.load %arg6[%c115] : memref<288xf32, #tpu.memory_space<smem>>
    %990 = vector.broadcast %989 : f32 to vector<4x4xf32>
    %991 = arith.mulf %990, %470 : vector<4x4xf32>
    %992 = arith.addf %988, %991 : vector<4x4xf32>
    %c116 = arith.constant 116 : index
    %993 = memref.load %arg6[%c116] : memref<288xf32, #tpu.memory_space<smem>>
    %994 = vector.broadcast %993 : f32 to vector<4x4xf32>
    %995 = arith.mulf %994, %471 : vector<4x4xf32>
    %996 = arith.addf %992, %995 : vector<4x4xf32>
    %c117 = arith.constant 117 : index
    %997 = memref.load %arg6[%c117] : memref<288xf32, #tpu.memory_space<smem>>
    %998 = vector.broadcast %997 : f32 to vector<4x4xf32>
    %999 = arith.mulf %998, %472 : vector<4x4xf32>
    %1000 = arith.addf %996, %999 : vector<4x4xf32>
    %c118 = arith.constant 118 : index
    %1001 = memref.load %arg6[%c118] : memref<288xf32, #tpu.memory_space<smem>>
    %1002 = vector.broadcast %1001 : f32 to vector<4x4xf32>
    %1003 = arith.mulf %1002, %473 : vector<4x4xf32>
    %1004 = arith.addf %1000, %1003 : vector<4x4xf32>
    %c119 = arith.constant 119 : index
    %1005 = memref.load %arg6[%c119] : memref<288xf32, #tpu.memory_space<smem>>
    %1006 = vector.broadcast %1005 : f32 to vector<4x4xf32>
    %1007 = arith.mulf %1006, %474 : vector<4x4xf32>
    %1008 = arith.addf %1004, %1007 : vector<4x4xf32>
    %c120 = arith.constant 120 : index
    %1009 = memref.load %arg6[%c120] : memref<288xf32, #tpu.memory_space<smem>>
    %1010 = vector.broadcast %1009 : f32 to vector<4x4xf32>
    %1011 = arith.mulf %1010, %475 : vector<4x4xf32>
    %1012 = arith.addf %1008, %1011 : vector<4x4xf32>
    %c121 = arith.constant 121 : index
    %1013 = memref.load %arg6[%c121] : memref<288xf32, #tpu.memory_space<smem>>
    %1014 = vector.broadcast %1013 : f32 to vector<4x4xf32>
    %1015 = arith.mulf %1014, %476 : vector<4x4xf32>
    %1016 = arith.addf %1012, %1015 : vector<4x4xf32>
    %c122 = arith.constant 122 : index
    %1017 = memref.load %arg6[%c122] : memref<288xf32, #tpu.memory_space<smem>>
    %1018 = vector.broadcast %1017 : f32 to vector<4x4xf32>
    %1019 = arith.mulf %1018, %477 : vector<4x4xf32>
    %1020 = arith.addf %1016, %1019 : vector<4x4xf32>
    %c123 = arith.constant 123 : index
    %1021 = memref.load %arg6[%c123] : memref<288xf32, #tpu.memory_space<smem>>
    %1022 = vector.broadcast %1021 : f32 to vector<4x4xf32>
    %1023 = arith.mulf %1022, %478 : vector<4x4xf32>
    %1024 = arith.addf %1020, %1023 : vector<4x4xf32>
    %c124 = arith.constant 124 : index
    %1025 = memref.load %arg6[%c124] : memref<288xf32, #tpu.memory_space<smem>>
    %1026 = vector.broadcast %1025 : f32 to vector<4x4xf32>
    %1027 = arith.mulf %1026, %479 : vector<4x4xf32>
    %1028 = arith.addf %1024, %1027 : vector<4x4xf32>
    %c125 = arith.constant 125 : index
    %1029 = memref.load %arg6[%c125] : memref<288xf32, #tpu.memory_space<smem>>
    %1030 = vector.broadcast %1029 : f32 to vector<4x4xf32>
    %1031 = arith.mulf %1030, %480 : vector<4x4xf32>
    %1032 = arith.addf %1028, %1031 : vector<4x4xf32>
    %c126 = arith.constant 126 : index
    %1033 = memref.load %arg6[%c126] : memref<288xf32, #tpu.memory_space<smem>>
    %1034 = vector.broadcast %1033 : f32 to vector<4x4xf32>
    %1035 = arith.mulf %1034, %481 : vector<4x4xf32>
    %1036 = arith.addf %1032, %1035 : vector<4x4xf32>
    %c127 = arith.constant 127 : index
    %1037 = memref.load %arg6[%c127] : memref<288xf32, #tpu.memory_space<smem>>
    %1038 = vector.broadcast %1037 : f32 to vector<4x4xf32>
    %1039 = arith.mulf %1038, %482 : vector<4x4xf32>
    %1040 = arith.addf %1036, %1039 : vector<4x4xf32>
    %c128 = arith.constant 128 : index
    %1041 = memref.load %arg6[%c128] : memref<288xf32, #tpu.memory_space<smem>>
    %1042 = vector.broadcast %1041 : f32 to vector<4x4xf32>
    %1043 = arith.mulf %1042, %483 : vector<4x4xf32>
    %1044 = arith.addf %1040, %1043 : vector<4x4xf32>
    %c129 = arith.constant 129 : index
    %1045 = memref.load %arg6[%c129] : memref<288xf32, #tpu.memory_space<smem>>
    %1046 = vector.broadcast %1045 : f32 to vector<4x4xf32>
    %1047 = arith.mulf %1046, %484 : vector<4x4xf32>
    %1048 = arith.addf %1044, %1047 : vector<4x4xf32>
    %c130 = arith.constant 130 : index
    %1049 = memref.load %arg6[%c130] : memref<288xf32, #tpu.memory_space<smem>>
    %1050 = vector.broadcast %1049 : f32 to vector<4x4xf32>
    %1051 = arith.mulf %1050, %485 : vector<4x4xf32>
    %1052 = arith.addf %1048, %1051 : vector<4x4xf32>
    %c131 = arith.constant 131 : index
    %1053 = memref.load %arg6[%c131] : memref<288xf32, #tpu.memory_space<smem>>
    %1054 = vector.broadcast %1053 : f32 to vector<4x4xf32>
    %1055 = arith.mulf %1054, %486 : vector<4x4xf32>
    %1056 = arith.addf %1052, %1055 : vector<4x4xf32>
    %c132 = arith.constant 132 : index
    %1057 = memref.load %arg6[%c132] : memref<288xf32, #tpu.memory_space<smem>>
    %1058 = vector.broadcast %1057 : f32 to vector<4x4xf32>
    %1059 = arith.mulf %1058, %487 : vector<4x4xf32>
    %1060 = arith.addf %1056, %1059 : vector<4x4xf32>
    %c133 = arith.constant 133 : index
    %1061 = memref.load %arg6[%c133] : memref<288xf32, #tpu.memory_space<smem>>
    %1062 = vector.broadcast %1061 : f32 to vector<4x4xf32>
    %1063 = arith.mulf %1062, %488 : vector<4x4xf32>
    %1064 = arith.addf %1060, %1063 : vector<4x4xf32>
    %c134 = arith.constant 134 : index
    %1065 = memref.load %arg6[%c134] : memref<288xf32, #tpu.memory_space<smem>>
    %1066 = vector.broadcast %1065 : f32 to vector<4x4xf32>
    %1067 = arith.mulf %1066, %489 : vector<4x4xf32>
    %1068 = arith.addf %1064, %1067 : vector<4x4xf32>
    %c135 = arith.constant 135 : index
    %1069 = memref.load %arg6[%c135] : memref<288xf32, #tpu.memory_space<smem>>
    %1070 = vector.broadcast %1069 : f32 to vector<4x4xf32>
    %1071 = arith.mulf %1070, %490 : vector<4x4xf32>
    %1072 = arith.addf %1068, %1071 : vector<4x4xf32>
    %c136 = arith.constant 136 : index
    %1073 = memref.load %arg6[%c136] : memref<288xf32, #tpu.memory_space<smem>>
    %1074 = vector.broadcast %1073 : f32 to vector<4x4xf32>
    %1075 = arith.mulf %1074, %491 : vector<4x4xf32>
    %1076 = arith.addf %1072, %1075 : vector<4x4xf32>
    %c137 = arith.constant 137 : index
    %1077 = memref.load %arg6[%c137] : memref<288xf32, #tpu.memory_space<smem>>
    %1078 = vector.broadcast %1077 : f32 to vector<4x4xf32>
    %1079 = arith.mulf %1078, %492 : vector<4x4xf32>
    %1080 = arith.addf %1076, %1079 : vector<4x4xf32>
    %c138 = arith.constant 138 : index
    %1081 = memref.load %arg6[%c138] : memref<288xf32, #tpu.memory_space<smem>>
    %1082 = vector.broadcast %1081 : f32 to vector<4x4xf32>
    %1083 = arith.mulf %1082, %493 : vector<4x4xf32>
    %1084 = arith.addf %1080, %1083 : vector<4x4xf32>
    %c139 = arith.constant 139 : index
    %1085 = memref.load %arg6[%c139] : memref<288xf32, #tpu.memory_space<smem>>
    %1086 = vector.broadcast %1085 : f32 to vector<4x4xf32>
    %1087 = arith.mulf %1086, %494 : vector<4x4xf32>
    %1088 = arith.addf %1084, %1087 : vector<4x4xf32>
    %c140 = arith.constant 140 : index
    %1089 = memref.load %arg6[%c140] : memref<288xf32, #tpu.memory_space<smem>>
    %1090 = vector.broadcast %1089 : f32 to vector<4x4xf32>
    %1091 = arith.mulf %1090, %495 : vector<4x4xf32>
    %1092 = arith.addf %1088, %1091 : vector<4x4xf32>
    %c141 = arith.constant 141 : index
    %1093 = memref.load %arg6[%c141] : memref<288xf32, #tpu.memory_space<smem>>
    %1094 = vector.broadcast %1093 : f32 to vector<4x4xf32>
    %1095 = arith.mulf %1094, %496 : vector<4x4xf32>
    %1096 = arith.addf %1092, %1095 : vector<4x4xf32>
    %c142 = arith.constant 142 : index
    %1097 = memref.load %arg6[%c142] : memref<288xf32, #tpu.memory_space<smem>>
    %1098 = vector.broadcast %1097 : f32 to vector<4x4xf32>
    %1099 = arith.mulf %1098, %497 : vector<4x4xf32>
    %1100 = arith.addf %1096, %1099 : vector<4x4xf32>
    %c143 = arith.constant 143 : index
    %1101 = memref.load %arg6[%c143] : memref<288xf32, #tpu.memory_space<smem>>
    %1102 = vector.broadcast %1101 : f32 to vector<4x4xf32>
    %1103 = arith.mulf %1102, %498 : vector<4x4xf32>
    %1104 = arith.addf %1100, %1103 : vector<4x4xf32>
    %c12_i32_125 = arith.constant 12 : i32
    %1105 = vector.broadcast %c12_i32_125 : i32 to vector<4x32xi32>
    %1106 = arith.addi %499, %1105 : vector<4x32xi32>
    %1107 = arith.cmpi eq, %500, %1106 : vector<4x32xi32>
    %1108 = arith.extui %1107 : vector<4x32xi1> to vector<4x32xi32>
    %1109 = arith.sitofp %1108 : vector<4x32xi32> to vector<4x32xf32>
    %cst_126 = arith.constant dense<0.000000e+00> : vector<4x32xf32>
    %1110 = tpu.matmul %1104, %1109, %cst_126 {dimension_numbers = #tpu.dot_dimension_numbers<[1], [0], [0], [1], [0, 0, 1, 1], [], []>} : vector<4x4xf32>, vector<4x32xf32>, vector<4x32xf32> -> vector<4x32xf32>
    %1111 = arith.addf %958, %1110 : vector<4x32xf32>
    %c4_127 = arith.constant 4 : index
    %1112 = memref.load %arg7[%c4_127] : memref<8xf32, #tpu.memory_space<smem>>
    %1113 = vector.broadcast %1112 : f32 to vector<4x4xf32>
    %c144 = arith.constant 144 : index
    %1114 = memref.load %arg6[%c144] : memref<288xf32, #tpu.memory_space<smem>>
    %1115 = vector.broadcast %1114 : f32 to vector<4x4xf32>
    %1116 = arith.mulf %1115, %463 : vector<4x4xf32>
    %1117 = arith.addf %1113, %1116 : vector<4x4xf32>
    %c145 = arith.constant 145 : index
    %1118 = memref.load %arg6[%c145] : memref<288xf32, #tpu.memory_space<smem>>
    %1119 = vector.broadcast %1118 : f32 to vector<4x4xf32>
    %1120 = arith.mulf %1119, %464 : vector<4x4xf32>
    %1121 = arith.addf %1117, %1120 : vector<4x4xf32>
    %c146 = arith.constant 146 : index
    %1122 = memref.load %arg6[%c146] : memref<288xf32, #tpu.memory_space<smem>>
    %1123 = vector.broadcast %1122 : f32 to vector<4x4xf32>
    %1124 = arith.mulf %1123, %465 : vector<4x4xf32>
    %1125 = arith.addf %1121, %1124 : vector<4x4xf32>
    %c147 = arith.constant 147 : index
    %1126 = memref.load %arg6[%c147] : memref<288xf32, #tpu.memory_space<smem>>
    %1127 = vector.broadcast %1126 : f32 to vector<4x4xf32>
    %1128 = arith.mulf %1127, %466 : vector<4x4xf32>
    %1129 = arith.addf %1125, %1128 : vector<4x4xf32>
    %c148 = arith.constant 148 : index
    %1130 = memref.load %arg6[%c148] : memref<288xf32, #tpu.memory_space<smem>>
    %1131 = vector.broadcast %1130 : f32 to vector<4x4xf32>
    %1132 = arith.mulf %1131, %467 : vector<4x4xf32>
    %1133 = arith.addf %1129, %1132 : vector<4x4xf32>
    %c149 = arith.constant 149 : index
    %1134 = memref.load %arg6[%c149] : memref<288xf32, #tpu.memory_space<smem>>
    %1135 = vector.broadcast %1134 : f32 to vector<4x4xf32>
    %1136 = arith.mulf %1135, %468 : vector<4x4xf32>
    %1137 = arith.addf %1133, %1136 : vector<4x4xf32>
    %c150 = arith.constant 150 : index
    %1138 = memref.load %arg6[%c150] : memref<288xf32, #tpu.memory_space<smem>>
    %1139 = vector.broadcast %1138 : f32 to vector<4x4xf32>
    %1140 = arith.mulf %1139, %469 : vector<4x4xf32>
    %1141 = arith.addf %1137, %1140 : vector<4x4xf32>
    %c151 = arith.constant 151 : index
    %1142 = memref.load %arg6[%c151] : memref<288xf32, #tpu.memory_space<smem>>
    %1143 = vector.broadcast %1142 : f32 to vector<4x4xf32>
    %1144 = arith.mulf %1143, %470 : vector<4x4xf32>
    %1145 = arith.addf %1141, %1144 : vector<4x4xf32>
    %c152 = arith.constant 152 : index
    %1146 = memref.load %arg6[%c152] : memref<288xf32, #tpu.memory_space<smem>>
    %1147 = vector.broadcast %1146 : f32 to vector<4x4xf32>
    %1148 = arith.mulf %1147, %471 : vector<4x4xf32>
    %1149 = arith.addf %1145, %1148 : vector<4x4xf32>
    %c153 = arith.constant 153 : index
    %1150 = memref.load %arg6[%c153] : memref<288xf32, #tpu.memory_space<smem>>
    %1151 = vector.broadcast %1150 : f32 to vector<4x4xf32>
    %1152 = arith.mulf %1151, %472 : vector<4x4xf32>
    %1153 = arith.addf %1149, %1152 : vector<4x4xf32>
    %c154 = arith.constant 154 : index
    %1154 = memref.load %arg6[%c154] : memref<288xf32, #tpu.memory_space<smem>>
    %1155 = vector.broadcast %1154 : f32 to vector<4x4xf32>
    %1156 = arith.mulf %1155, %473 : vector<4x4xf32>
    %1157 = arith.addf %1153, %1156 : vector<4x4xf32>
    %c155 = arith.constant 155 : index
    %1158 = memref.load %arg6[%c155] : memref<288xf32, #tpu.memory_space<smem>>
    %1159 = vector.broadcast %1158 : f32 to vector<4x4xf32>
    %1160 = arith.mulf %1159, %474 : vector<4x4xf32>
    %1161 = arith.addf %1157, %1160 : vector<4x4xf32>
    %c156 = arith.constant 156 : index
    %1162 = memref.load %arg6[%c156] : memref<288xf32, #tpu.memory_space<smem>>
    %1163 = vector.broadcast %1162 : f32 to vector<4x4xf32>
    %1164 = arith.mulf %1163, %475 : vector<4x4xf32>
    %1165 = arith.addf %1161, %1164 : vector<4x4xf32>
    %c157 = arith.constant 157 : index
    %1166 = memref.load %arg6[%c157] : memref<288xf32, #tpu.memory_space<smem>>
    %1167 = vector.broadcast %1166 : f32 to vector<4x4xf32>
    %1168 = arith.mulf %1167, %476 : vector<4x4xf32>
    %1169 = arith.addf %1165, %1168 : vector<4x4xf32>
    %c158 = arith.constant 158 : index
    %1170 = memref.load %arg6[%c158] : memref<288xf32, #tpu.memory_space<smem>>
    %1171 = vector.broadcast %1170 : f32 to vector<4x4xf32>
    %1172 = arith.mulf %1171, %477 : vector<4x4xf32>
    %1173 = arith.addf %1169, %1172 : vector<4x4xf32>
    %c159 = arith.constant 159 : index
    %1174 = memref.load %arg6[%c159] : memref<288xf32, #tpu.memory_space<smem>>
    %1175 = vector.broadcast %1174 : f32 to vector<4x4xf32>
    %1176 = arith.mulf %1175, %478 : vector<4x4xf32>
    %1177 = arith.addf %1173, %1176 : vector<4x4xf32>
    %c160 = arith.constant 160 : index
    %1178 = memref.load %arg6[%c160] : memref<288xf32, #tpu.memory_space<smem>>
    %1179 = vector.broadcast %1178 : f32 to vector<4x4xf32>
    %1180 = arith.mulf %1179, %479 : vector<4x4xf32>
    %1181 = arith.addf %1177, %1180 : vector<4x4xf32>
    %c161 = arith.constant 161 : index
    %1182 = memref.load %arg6[%c161] : memref<288xf32, #tpu.memory_space<smem>>
    %1183 = vector.broadcast %1182 : f32 to vector<4x4xf32>
    %1184 = arith.mulf %1183, %480 : vector<4x4xf32>
    %1185 = arith.addf %1181, %1184 : vector<4x4xf32>
    %c162 = arith.constant 162 : index
    %1186 = memref.load %arg6[%c162] : memref<288xf32, #tpu.memory_space<smem>>
    %1187 = vector.broadcast %1186 : f32 to vector<4x4xf32>
    %1188 = arith.mulf %1187, %481 : vector<4x4xf32>
    %1189 = arith.addf %1185, %1188 : vector<4x4xf32>
    %c163 = arith.constant 163 : index
    %1190 = memref.load %arg6[%c163] : memref<288xf32, #tpu.memory_space<smem>>
    %1191 = vector.broadcast %1190 : f32 to vector<4x4xf32>
    %1192 = arith.mulf %1191, %482 : vector<4x4xf32>
    %1193 = arith.addf %1189, %1192 : vector<4x4xf32>
    %c164 = arith.constant 164 : index
    %1194 = memref.load %arg6[%c164] : memref<288xf32, #tpu.memory_space<smem>>
    %1195 = vector.broadcast %1194 : f32 to vector<4x4xf32>
    %1196 = arith.mulf %1195, %483 : vector<4x4xf32>
    %1197 = arith.addf %1193, %1196 : vector<4x4xf32>
    %c165 = arith.constant 165 : index
    %1198 = memref.load %arg6[%c165] : memref<288xf32, #tpu.memory_space<smem>>
    %1199 = vector.broadcast %1198 : f32 to vector<4x4xf32>
    %1200 = arith.mulf %1199, %484 : vector<4x4xf32>
    %1201 = arith.addf %1197, %1200 : vector<4x4xf32>
    %c166 = arith.constant 166 : index
    %1202 = memref.load %arg6[%c166] : memref<288xf32, #tpu.memory_space<smem>>
    %1203 = vector.broadcast %1202 : f32 to vector<4x4xf32>
    %1204 = arith.mulf %1203, %485 : vector<4x4xf32>
    %1205 = arith.addf %1201, %1204 : vector<4x4xf32>
    %c167 = arith.constant 167 : index
    %1206 = memref.load %arg6[%c167] : memref<288xf32, #tpu.memory_space<smem>>
    %1207 = vector.broadcast %1206 : f32 to vector<4x4xf32>
    %1208 = arith.mulf %1207, %486 : vector<4x4xf32>
    %1209 = arith.addf %1205, %1208 : vector<4x4xf32>
    %c168 = arith.constant 168 : index
    %1210 = memref.load %arg6[%c168] : memref<288xf32, #tpu.memory_space<smem>>
    %1211 = vector.broadcast %1210 : f32 to vector<4x4xf32>
    %1212 = arith.mulf %1211, %487 : vector<4x4xf32>
    %1213 = arith.addf %1209, %1212 : vector<4x4xf32>
    %c169 = arith.constant 169 : index
    %1214 = memref.load %arg6[%c169] : memref<288xf32, #tpu.memory_space<smem>>
    %1215 = vector.broadcast %1214 : f32 to vector<4x4xf32>
    %1216 = arith.mulf %1215, %488 : vector<4x4xf32>
    %1217 = arith.addf %1213, %1216 : vector<4x4xf32>
    %c170 = arith.constant 170 : index
    %1218 = memref.load %arg6[%c170] : memref<288xf32, #tpu.memory_space<smem>>
    %1219 = vector.broadcast %1218 : f32 to vector<4x4xf32>
    %1220 = arith.mulf %1219, %489 : vector<4x4xf32>
    %1221 = arith.addf %1217, %1220 : vector<4x4xf32>
    %c171 = arith.constant 171 : index
    %1222 = memref.load %arg6[%c171] : memref<288xf32, #tpu.memory_space<smem>>
    %1223 = vector.broadcast %1222 : f32 to vector<4x4xf32>
    %1224 = arith.mulf %1223, %490 : vector<4x4xf32>
    %1225 = arith.addf %1221, %1224 : vector<4x4xf32>
    %c172 = arith.constant 172 : index
    %1226 = memref.load %arg6[%c172] : memref<288xf32, #tpu.memory_space<smem>>
    %1227 = vector.broadcast %1226 : f32 to vector<4x4xf32>
    %1228 = arith.mulf %1227, %491 : vector<4x4xf32>
    %1229 = arith.addf %1225, %1228 : vector<4x4xf32>
    %c173 = arith.constant 173 : index
    %1230 = memref.load %arg6[%c173] : memref<288xf32, #tpu.memory_space<smem>>
    %1231 = vector.broadcast %1230 : f32 to vector<4x4xf32>
    %1232 = arith.mulf %1231, %492 : vector<4x4xf32>
    %1233 = arith.addf %1229, %1232 : vector<4x4xf32>
    %c174 = arith.constant 174 : index
    %1234 = memref.load %arg6[%c174] : memref<288xf32, #tpu.memory_space<smem>>
    %1235 = vector.broadcast %1234 : f32 to vector<4x4xf32>
    %1236 = arith.mulf %1235, %493 : vector<4x4xf32>
    %1237 = arith.addf %1233, %1236 : vector<4x4xf32>
    %c175 = arith.constant 175 : index
    %1238 = memref.load %arg6[%c175] : memref<288xf32, #tpu.memory_space<smem>>
    %1239 = vector.broadcast %1238 : f32 to vector<4x4xf32>
    %1240 = arith.mulf %1239, %494 : vector<4x4xf32>
    %1241 = arith.addf %1237, %1240 : vector<4x4xf32>
    %c176 = arith.constant 176 : index
    %1242 = memref.load %arg6[%c176] : memref<288xf32, #tpu.memory_space<smem>>
    %1243 = vector.broadcast %1242 : f32 to vector<4x4xf32>
    %1244 = arith.mulf %1243, %495 : vector<4x4xf32>
    %1245 = arith.addf %1241, %1244 : vector<4x4xf32>
    %c177 = arith.constant 177 : index
    %1246 = memref.load %arg6[%c177] : memref<288xf32, #tpu.memory_space<smem>>
    %1247 = vector.broadcast %1246 : f32 to vector<4x4xf32>
    %1248 = arith.mulf %1247, %496 : vector<4x4xf32>
    %1249 = arith.addf %1245, %1248 : vector<4x4xf32>
    %c178 = arith.constant 178 : index
    %1250 = memref.load %arg6[%c178] : memref<288xf32, #tpu.memory_space<smem>>
    %1251 = vector.broadcast %1250 : f32 to vector<4x4xf32>
    %1252 = arith.mulf %1251, %497 : vector<4x4xf32>
    %1253 = arith.addf %1249, %1252 : vector<4x4xf32>
    %c179 = arith.constant 179 : index
    %1254 = memref.load %arg6[%c179] : memref<288xf32, #tpu.memory_space<smem>>
    %1255 = vector.broadcast %1254 : f32 to vector<4x4xf32>
    %1256 = arith.mulf %1255, %498 : vector<4x4xf32>
    %1257 = arith.addf %1253, %1256 : vector<4x4xf32>
    %c16_i32 = arith.constant 16 : i32
    %1258 = vector.broadcast %c16_i32 : i32 to vector<4x32xi32>
    %1259 = arith.addi %499, %1258 : vector<4x32xi32>
    %1260 = arith.cmpi eq, %500, %1259 : vector<4x32xi32>
    %1261 = arith.extui %1260 : vector<4x32xi1> to vector<4x32xi32>
    %1262 = arith.sitofp %1261 : vector<4x32xi32> to vector<4x32xf32>
    %cst_128 = arith.constant dense<0.000000e+00> : vector<4x32xf32>
    %1263 = tpu.matmul %1257, %1262, %cst_128 {dimension_numbers = #tpu.dot_dimension_numbers<[1], [0], [0], [1], [0, 0, 1, 1], [], []>} : vector<4x4xf32>, vector<4x32xf32>, vector<4x32xf32> -> vector<4x32xf32>
    %1264 = arith.addf %1111, %1263 : vector<4x32xf32>
    %c5_129 = arith.constant 5 : index
    %1265 = memref.load %arg7[%c5_129] : memref<8xf32, #tpu.memory_space<smem>>
    %1266 = vector.broadcast %1265 : f32 to vector<4x4xf32>
    %c180 = arith.constant 180 : index
    %1267 = memref.load %arg6[%c180] : memref<288xf32, #tpu.memory_space<smem>>
    %1268 = vector.broadcast %1267 : f32 to vector<4x4xf32>
    %1269 = arith.mulf %1268, %463 : vector<4x4xf32>
    %1270 = arith.addf %1266, %1269 : vector<4x4xf32>
    %c181 = arith.constant 181 : index
    %1271 = memref.load %arg6[%c181] : memref<288xf32, #tpu.memory_space<smem>>
    %1272 = vector.broadcast %1271 : f32 to vector<4x4xf32>
    %1273 = arith.mulf %1272, %464 : vector<4x4xf32>
    %1274 = arith.addf %1270, %1273 : vector<4x4xf32>
    %c182 = arith.constant 182 : index
    %1275 = memref.load %arg6[%c182] : memref<288xf32, #tpu.memory_space<smem>>
    %1276 = vector.broadcast %1275 : f32 to vector<4x4xf32>
    %1277 = arith.mulf %1276, %465 : vector<4x4xf32>
    %1278 = arith.addf %1274, %1277 : vector<4x4xf32>
    %c183 = arith.constant 183 : index
    %1279 = memref.load %arg6[%c183] : memref<288xf32, #tpu.memory_space<smem>>
    %1280 = vector.broadcast %1279 : f32 to vector<4x4xf32>
    %1281 = arith.mulf %1280, %466 : vector<4x4xf32>
    %1282 = arith.addf %1278, %1281 : vector<4x4xf32>
    %c184 = arith.constant 184 : index
    %1283 = memref.load %arg6[%c184] : memref<288xf32, #tpu.memory_space<smem>>
    %1284 = vector.broadcast %1283 : f32 to vector<4x4xf32>
    %1285 = arith.mulf %1284, %467 : vector<4x4xf32>
    %1286 = arith.addf %1282, %1285 : vector<4x4xf32>
    %c185 = arith.constant 185 : index
    %1287 = memref.load %arg6[%c185] : memref<288xf32, #tpu.memory_space<smem>>
    %1288 = vector.broadcast %1287 : f32 to vector<4x4xf32>
    %1289 = arith.mulf %1288, %468 : vector<4x4xf32>
    %1290 = arith.addf %1286, %1289 : vector<4x4xf32>
    %c186 = arith.constant 186 : index
    %1291 = memref.load %arg6[%c186] : memref<288xf32, #tpu.memory_space<smem>>
    %1292 = vector.broadcast %1291 : f32 to vector<4x4xf32>
    %1293 = arith.mulf %1292, %469 : vector<4x4xf32>
    %1294 = arith.addf %1290, %1293 : vector<4x4xf32>
    %c187 = arith.constant 187 : index
    %1295 = memref.load %arg6[%c187] : memref<288xf32, #tpu.memory_space<smem>>
    %1296 = vector.broadcast %1295 : f32 to vector<4x4xf32>
    %1297 = arith.mulf %1296, %470 : vector<4x4xf32>
    %1298 = arith.addf %1294, %1297 : vector<4x4xf32>
    %c188 = arith.constant 188 : index
    %1299 = memref.load %arg6[%c188] : memref<288xf32, #tpu.memory_space<smem>>
    %1300 = vector.broadcast %1299 : f32 to vector<4x4xf32>
    %1301 = arith.mulf %1300, %471 : vector<4x4xf32>
    %1302 = arith.addf %1298, %1301 : vector<4x4xf32>
    %c189 = arith.constant 189 : index
    %1303 = memref.load %arg6[%c189] : memref<288xf32, #tpu.memory_space<smem>>
    %1304 = vector.broadcast %1303 : f32 to vector<4x4xf32>
    %1305 = arith.mulf %1304, %472 : vector<4x4xf32>
    %1306 = arith.addf %1302, %1305 : vector<4x4xf32>
    %c190 = arith.constant 190 : index
    %1307 = memref.load %arg6[%c190] : memref<288xf32, #tpu.memory_space<smem>>
    %1308 = vector.broadcast %1307 : f32 to vector<4x4xf32>
    %1309 = arith.mulf %1308, %473 : vector<4x4xf32>
    %1310 = arith.addf %1306, %1309 : vector<4x4xf32>
    %c191 = arith.constant 191 : index
    %1311 = memref.load %arg6[%c191] : memref<288xf32, #tpu.memory_space<smem>>
    %1312 = vector.broadcast %1311 : f32 to vector<4x4xf32>
    %1313 = arith.mulf %1312, %474 : vector<4x4xf32>
    %1314 = arith.addf %1310, %1313 : vector<4x4xf32>
    %c192 = arith.constant 192 : index
    %1315 = memref.load %arg6[%c192] : memref<288xf32, #tpu.memory_space<smem>>
    %1316 = vector.broadcast %1315 : f32 to vector<4x4xf32>
    %1317 = arith.mulf %1316, %475 : vector<4x4xf32>
    %1318 = arith.addf %1314, %1317 : vector<4x4xf32>
    %c193 = arith.constant 193 : index
    %1319 = memref.load %arg6[%c193] : memref<288xf32, #tpu.memory_space<smem>>
    %1320 = vector.broadcast %1319 : f32 to vector<4x4xf32>
    %1321 = arith.mulf %1320, %476 : vector<4x4xf32>
    %1322 = arith.addf %1318, %1321 : vector<4x4xf32>
    %c194 = arith.constant 194 : index
    %1323 = memref.load %arg6[%c194] : memref<288xf32, #tpu.memory_space<smem>>
    %1324 = vector.broadcast %1323 : f32 to vector<4x4xf32>
    %1325 = arith.mulf %1324, %477 : vector<4x4xf32>
    %1326 = arith.addf %1322, %1325 : vector<4x4xf32>
    %c195 = arith.constant 195 : index
    %1327 = memref.load %arg6[%c195] : memref<288xf32, #tpu.memory_space<smem>>
    %1328 = vector.broadcast %1327 : f32 to vector<4x4xf32>
    %1329 = arith.mulf %1328, %478 : vector<4x4xf32>
    %1330 = arith.addf %1326, %1329 : vector<4x4xf32>
    %c196 = arith.constant 196 : index
    %1331 = memref.load %arg6[%c196] : memref<288xf32, #tpu.memory_space<smem>>
    %1332 = vector.broadcast %1331 : f32 to vector<4x4xf32>
    %1333 = arith.mulf %1332, %479 : vector<4x4xf32>
    %1334 = arith.addf %1330, %1333 : vector<4x4xf32>
    %c197 = arith.constant 197 : index
    %1335 = memref.load %arg6[%c197] : memref<288xf32, #tpu.memory_space<smem>>
    %1336 = vector.broadcast %1335 : f32 to vector<4x4xf32>
    %1337 = arith.mulf %1336, %480 : vector<4x4xf32>
    %1338 = arith.addf %1334, %1337 : vector<4x4xf32>
    %c198 = arith.constant 198 : index
    %1339 = memref.load %arg6[%c198] : memref<288xf32, #tpu.memory_space<smem>>
    %1340 = vector.broadcast %1339 : f32 to vector<4x4xf32>
    %1341 = arith.mulf %1340, %481 : vector<4x4xf32>
    %1342 = arith.addf %1338, %1341 : vector<4x4xf32>
    %c199 = arith.constant 199 : index
    %1343 = memref.load %arg6[%c199] : memref<288xf32, #tpu.memory_space<smem>>
    %1344 = vector.broadcast %1343 : f32 to vector<4x4xf32>
    %1345 = arith.mulf %1344, %482 : vector<4x4xf32>
    %1346 = arith.addf %1342, %1345 : vector<4x4xf32>
    %c200 = arith.constant 200 : index
    %1347 = memref.load %arg6[%c200] : memref<288xf32, #tpu.memory_space<smem>>
    %1348 = vector.broadcast %1347 : f32 to vector<4x4xf32>
    %1349 = arith.mulf %1348, %483 : vector<4x4xf32>
    %1350 = arith.addf %1346, %1349 : vector<4x4xf32>
    %c201 = arith.constant 201 : index
    %1351 = memref.load %arg6[%c201] : memref<288xf32, #tpu.memory_space<smem>>
    %1352 = vector.broadcast %1351 : f32 to vector<4x4xf32>
    %1353 = arith.mulf %1352, %484 : vector<4x4xf32>
    %1354 = arith.addf %1350, %1353 : vector<4x4xf32>
    %c202 = arith.constant 202 : index
    %1355 = memref.load %arg6[%c202] : memref<288xf32, #tpu.memory_space<smem>>
    %1356 = vector.broadcast %1355 : f32 to vector<4x4xf32>
    %1357 = arith.mulf %1356, %485 : vector<4x4xf32>
    %1358 = arith.addf %1354, %1357 : vector<4x4xf32>
    %c203 = arith.constant 203 : index
    %1359 = memref.load %arg6[%c203] : memref<288xf32, #tpu.memory_space<smem>>
    %1360 = vector.broadcast %1359 : f32 to vector<4x4xf32>
    %1361 = arith.mulf %1360, %486 : vector<4x4xf32>
    %1362 = arith.addf %1358, %1361 : vector<4x4xf32>
    %c204 = arith.constant 204 : index
    %1363 = memref.load %arg6[%c204] : memref<288xf32, #tpu.memory_space<smem>>
    %1364 = vector.broadcast %1363 : f32 to vector<4x4xf32>
    %1365 = arith.mulf %1364, %487 : vector<4x4xf32>
    %1366 = arith.addf %1362, %1365 : vector<4x4xf32>
    %c205 = arith.constant 205 : index
    %1367 = memref.load %arg6[%c205] : memref<288xf32, #tpu.memory_space<smem>>
    %1368 = vector.broadcast %1367 : f32 to vector<4x4xf32>
    %1369 = arith.mulf %1368, %488 : vector<4x4xf32>
    %1370 = arith.addf %1366, %1369 : vector<4x4xf32>
    %c206 = arith.constant 206 : index
    %1371 = memref.load %arg6[%c206] : memref<288xf32, #tpu.memory_space<smem>>
    %1372 = vector.broadcast %1371 : f32 to vector<4x4xf32>
    %1373 = arith.mulf %1372, %489 : vector<4x4xf32>
    %1374 = arith.addf %1370, %1373 : vector<4x4xf32>
    %c207 = arith.constant 207 : index
    %1375 = memref.load %arg6[%c207] : memref<288xf32, #tpu.memory_space<smem>>
    %1376 = vector.broadcast %1375 : f32 to vector<4x4xf32>
    %1377 = arith.mulf %1376, %490 : vector<4x4xf32>
    %1378 = arith.addf %1374, %1377 : vector<4x4xf32>
    %c208 = arith.constant 208 : index
    %1379 = memref.load %arg6[%c208] : memref<288xf32, #tpu.memory_space<smem>>
    %1380 = vector.broadcast %1379 : f32 to vector<4x4xf32>
    %1381 = arith.mulf %1380, %491 : vector<4x4xf32>
    %1382 = arith.addf %1378, %1381 : vector<4x4xf32>
    %c209 = arith.constant 209 : index
    %1383 = memref.load %arg6[%c209] : memref<288xf32, #tpu.memory_space<smem>>
    %1384 = vector.broadcast %1383 : f32 to vector<4x4xf32>
    %1385 = arith.mulf %1384, %492 : vector<4x4xf32>
    %1386 = arith.addf %1382, %1385 : vector<4x4xf32>
    %c210 = arith.constant 210 : index
    %1387 = memref.load %arg6[%c210] : memref<288xf32, #tpu.memory_space<smem>>
    %1388 = vector.broadcast %1387 : f32 to vector<4x4xf32>
    %1389 = arith.mulf %1388, %493 : vector<4x4xf32>
    %1390 = arith.addf %1386, %1389 : vector<4x4xf32>
    %c211 = arith.constant 211 : index
    %1391 = memref.load %arg6[%c211] : memref<288xf32, #tpu.memory_space<smem>>
    %1392 = vector.broadcast %1391 : f32 to vector<4x4xf32>
    %1393 = arith.mulf %1392, %494 : vector<4x4xf32>
    %1394 = arith.addf %1390, %1393 : vector<4x4xf32>
    %c212 = arith.constant 212 : index
    %1395 = memref.load %arg6[%c212] : memref<288xf32, #tpu.memory_space<smem>>
    %1396 = vector.broadcast %1395 : f32 to vector<4x4xf32>
    %1397 = arith.mulf %1396, %495 : vector<4x4xf32>
    %1398 = arith.addf %1394, %1397 : vector<4x4xf32>
    %c213 = arith.constant 213 : index
    %1399 = memref.load %arg6[%c213] : memref<288xf32, #tpu.memory_space<smem>>
    %1400 = vector.broadcast %1399 : f32 to vector<4x4xf32>
    %1401 = arith.mulf %1400, %496 : vector<4x4xf32>
    %1402 = arith.addf %1398, %1401 : vector<4x4xf32>
    %c214 = arith.constant 214 : index
    %1403 = memref.load %arg6[%c214] : memref<288xf32, #tpu.memory_space<smem>>
    %1404 = vector.broadcast %1403 : f32 to vector<4x4xf32>
    %1405 = arith.mulf %1404, %497 : vector<4x4xf32>
    %1406 = arith.addf %1402, %1405 : vector<4x4xf32>
    %c215 = arith.constant 215 : index
    %1407 = memref.load %arg6[%c215] : memref<288xf32, #tpu.memory_space<smem>>
    %1408 = vector.broadcast %1407 : f32 to vector<4x4xf32>
    %1409 = arith.mulf %1408, %498 : vector<4x4xf32>
    %1410 = arith.addf %1406, %1409 : vector<4x4xf32>
    %c20_i32 = arith.constant 20 : i32
    %1411 = vector.broadcast %c20_i32 : i32 to vector<4x32xi32>
    %1412 = arith.addi %499, %1411 : vector<4x32xi32>
    %1413 = arith.cmpi eq, %500, %1412 : vector<4x32xi32>
    %1414 = arith.extui %1413 : vector<4x32xi1> to vector<4x32xi32>
    %1415 = arith.sitofp %1414 : vector<4x32xi32> to vector<4x32xf32>
    %cst_130 = arith.constant dense<0.000000e+00> : vector<4x32xf32>
    %1416 = tpu.matmul %1410, %1415, %cst_130 {dimension_numbers = #tpu.dot_dimension_numbers<[1], [0], [0], [1], [0, 0, 1, 1], [], []>} : vector<4x4xf32>, vector<4x32xf32>, vector<4x32xf32> -> vector<4x32xf32>
    %1417 = arith.addf %1264, %1416 : vector<4x32xf32>
    %c6_131 = arith.constant 6 : index
    %1418 = memref.load %arg7[%c6_131] : memref<8xf32, #tpu.memory_space<smem>>
    %1419 = vector.broadcast %1418 : f32 to vector<4x4xf32>
    %c216 = arith.constant 216 : index
    %1420 = memref.load %arg6[%c216] : memref<288xf32, #tpu.memory_space<smem>>
    %1421 = vector.broadcast %1420 : f32 to vector<4x4xf32>
    %1422 = arith.mulf %1421, %463 : vector<4x4xf32>
    %1423 = arith.addf %1419, %1422 : vector<4x4xf32>
    %c217 = arith.constant 217 : index
    %1424 = memref.load %arg6[%c217] : memref<288xf32, #tpu.memory_space<smem>>
    %1425 = vector.broadcast %1424 : f32 to vector<4x4xf32>
    %1426 = arith.mulf %1425, %464 : vector<4x4xf32>
    %1427 = arith.addf %1423, %1426 : vector<4x4xf32>
    %c218 = arith.constant 218 : index
    %1428 = memref.load %arg6[%c218] : memref<288xf32, #tpu.memory_space<smem>>
    %1429 = vector.broadcast %1428 : f32 to vector<4x4xf32>
    %1430 = arith.mulf %1429, %465 : vector<4x4xf32>
    %1431 = arith.addf %1427, %1430 : vector<4x4xf32>
    %c219 = arith.constant 219 : index
    %1432 = memref.load %arg6[%c219] : memref<288xf32, #tpu.memory_space<smem>>
    %1433 = vector.broadcast %1432 : f32 to vector<4x4xf32>
    %1434 = arith.mulf %1433, %466 : vector<4x4xf32>
    %1435 = arith.addf %1431, %1434 : vector<4x4xf32>
    %c220 = arith.constant 220 : index
    %1436 = memref.load %arg6[%c220] : memref<288xf32, #tpu.memory_space<smem>>
    %1437 = vector.broadcast %1436 : f32 to vector<4x4xf32>
    %1438 = arith.mulf %1437, %467 : vector<4x4xf32>
    %1439 = arith.addf %1435, %1438 : vector<4x4xf32>
    %c221 = arith.constant 221 : index
    %1440 = memref.load %arg6[%c221] : memref<288xf32, #tpu.memory_space<smem>>
    %1441 = vector.broadcast %1440 : f32 to vector<4x4xf32>
    %1442 = arith.mulf %1441, %468 : vector<4x4xf32>
    %1443 = arith.addf %1439, %1442 : vector<4x4xf32>
    %c222 = arith.constant 222 : index
    %1444 = memref.load %arg6[%c222] : memref<288xf32, #tpu.memory_space<smem>>
    %1445 = vector.broadcast %1444 : f32 to vector<4x4xf32>
    %1446 = arith.mulf %1445, %469 : vector<4x4xf32>
    %1447 = arith.addf %1443, %1446 : vector<4x4xf32>
    %c223 = arith.constant 223 : index
    %1448 = memref.load %arg6[%c223] : memref<288xf32, #tpu.memory_space<smem>>
    %1449 = vector.broadcast %1448 : f32 to vector<4x4xf32>
    %1450 = arith.mulf %1449, %470 : vector<4x4xf32>
    %1451 = arith.addf %1447, %1450 : vector<4x4xf32>
    %c224 = arith.constant 224 : index
    %1452 = memref.load %arg6[%c224] : memref<288xf32, #tpu.memory_space<smem>>
    %1453 = vector.broadcast %1452 : f32 to vector<4x4xf32>
    %1454 = arith.mulf %1453, %471 : vector<4x4xf32>
    %1455 = arith.addf %1451, %1454 : vector<4x4xf32>
    %c225 = arith.constant 225 : index
    %1456 = memref.load %arg6[%c225] : memref<288xf32, #tpu.memory_space<smem>>
    %1457 = vector.broadcast %1456 : f32 to vector<4x4xf32>
    %1458 = arith.mulf %1457, %472 : vector<4x4xf32>
    %1459 = arith.addf %1455, %1458 : vector<4x4xf32>
    %c226 = arith.constant 226 : index
    %1460 = memref.load %arg6[%c226] : memref<288xf32, #tpu.memory_space<smem>>
    %1461 = vector.broadcast %1460 : f32 to vector<4x4xf32>
    %1462 = arith.mulf %1461, %473 : vector<4x4xf32>
    %1463 = arith.addf %1459, %1462 : vector<4x4xf32>
    %c227 = arith.constant 227 : index
    %1464 = memref.load %arg6[%c227] : memref<288xf32, #tpu.memory_space<smem>>
    %1465 = vector.broadcast %1464 : f32 to vector<4x4xf32>
    %1466 = arith.mulf %1465, %474 : vector<4x4xf32>
    %1467 = arith.addf %1463, %1466 : vector<4x4xf32>
    %c228 = arith.constant 228 : index
    %1468 = memref.load %arg6[%c228] : memref<288xf32, #tpu.memory_space<smem>>
    %1469 = vector.broadcast %1468 : f32 to vector<4x4xf32>
    %1470 = arith.mulf %1469, %475 : vector<4x4xf32>
    %1471 = arith.addf %1467, %1470 : vector<4x4xf32>
    %c229 = arith.constant 229 : index
    %1472 = memref.load %arg6[%c229] : memref<288xf32, #tpu.memory_space<smem>>
    %1473 = vector.broadcast %1472 : f32 to vector<4x4xf32>
    %1474 = arith.mulf %1473, %476 : vector<4x4xf32>
    %1475 = arith.addf %1471, %1474 : vector<4x4xf32>
    %c230 = arith.constant 230 : index
    %1476 = memref.load %arg6[%c230] : memref<288xf32, #tpu.memory_space<smem>>
    %1477 = vector.broadcast %1476 : f32 to vector<4x4xf32>
    %1478 = arith.mulf %1477, %477 : vector<4x4xf32>
    %1479 = arith.addf %1475, %1478 : vector<4x4xf32>
    %c231 = arith.constant 231 : index
    %1480 = memref.load %arg6[%c231] : memref<288xf32, #tpu.memory_space<smem>>
    %1481 = vector.broadcast %1480 : f32 to vector<4x4xf32>
    %1482 = arith.mulf %1481, %478 : vector<4x4xf32>
    %1483 = arith.addf %1479, %1482 : vector<4x4xf32>
    %c232 = arith.constant 232 : index
    %1484 = memref.load %arg6[%c232] : memref<288xf32, #tpu.memory_space<smem>>
    %1485 = vector.broadcast %1484 : f32 to vector<4x4xf32>
    %1486 = arith.mulf %1485, %479 : vector<4x4xf32>
    %1487 = arith.addf %1483, %1486 : vector<4x4xf32>
    %c233 = arith.constant 233 : index
    %1488 = memref.load %arg6[%c233] : memref<288xf32, #tpu.memory_space<smem>>
    %1489 = vector.broadcast %1488 : f32 to vector<4x4xf32>
    %1490 = arith.mulf %1489, %480 : vector<4x4xf32>
    %1491 = arith.addf %1487, %1490 : vector<4x4xf32>
    %c234 = arith.constant 234 : index
    %1492 = memref.load %arg6[%c234] : memref<288xf32, #tpu.memory_space<smem>>
    %1493 = vector.broadcast %1492 : f32 to vector<4x4xf32>
    %1494 = arith.mulf %1493, %481 : vector<4x4xf32>
    %1495 = arith.addf %1491, %1494 : vector<4x4xf32>
    %c235 = arith.constant 235 : index
    %1496 = memref.load %arg6[%c235] : memref<288xf32, #tpu.memory_space<smem>>
    %1497 = vector.broadcast %1496 : f32 to vector<4x4xf32>
    %1498 = arith.mulf %1497, %482 : vector<4x4xf32>
    %1499 = arith.addf %1495, %1498 : vector<4x4xf32>
    %c236 = arith.constant 236 : index
    %1500 = memref.load %arg6[%c236] : memref<288xf32, #tpu.memory_space<smem>>
    %1501 = vector.broadcast %1500 : f32 to vector<4x4xf32>
    %1502 = arith.mulf %1501, %483 : vector<4x4xf32>
    %1503 = arith.addf %1499, %1502 : vector<4x4xf32>
    %c237 = arith.constant 237 : index
    %1504 = memref.load %arg6[%c237] : memref<288xf32, #tpu.memory_space<smem>>
    %1505 = vector.broadcast %1504 : f32 to vector<4x4xf32>
    %1506 = arith.mulf %1505, %484 : vector<4x4xf32>
    %1507 = arith.addf %1503, %1506 : vector<4x4xf32>
    %c238 = arith.constant 238 : index
    %1508 = memref.load %arg6[%c238] : memref<288xf32, #tpu.memory_space<smem>>
    %1509 = vector.broadcast %1508 : f32 to vector<4x4xf32>
    %1510 = arith.mulf %1509, %485 : vector<4x4xf32>
    %1511 = arith.addf %1507, %1510 : vector<4x4xf32>
    %c239 = arith.constant 239 : index
    %1512 = memref.load %arg6[%c239] : memref<288xf32, #tpu.memory_space<smem>>
    %1513 = vector.broadcast %1512 : f32 to vector<4x4xf32>
    %1514 = arith.mulf %1513, %486 : vector<4x4xf32>
    %1515 = arith.addf %1511, %1514 : vector<4x4xf32>
    %c240 = arith.constant 240 : index
    %1516 = memref.load %arg6[%c240] : memref<288xf32, #tpu.memory_space<smem>>
    %1517 = vector.broadcast %1516 : f32 to vector<4x4xf32>
    %1518 = arith.mulf %1517, %487 : vector<4x4xf32>
    %1519 = arith.addf %1515, %1518 : vector<4x4xf32>
    %c241 = arith.constant 241 : index
    %1520 = memref.load %arg6[%c241] : memref<288xf32, #tpu.memory_space<smem>>
    %1521 = vector.broadcast %1520 : f32 to vector<4x4xf32>
    %1522 = arith.mulf %1521, %488 : vector<4x4xf32>
    %1523 = arith.addf %1519, %1522 : vector<4x4xf32>
    %c242 = arith.constant 242 : index
    %1524 = memref.load %arg6[%c242] : memref<288xf32, #tpu.memory_space<smem>>
    %1525 = vector.broadcast %1524 : f32 to vector<4x4xf32>
    %1526 = arith.mulf %1525, %489 : vector<4x4xf32>
    %1527 = arith.addf %1523, %1526 : vector<4x4xf32>
    %c243 = arith.constant 243 : index
    %1528 = memref.load %arg6[%c243] : memref<288xf32, #tpu.memory_space<smem>>
    %1529 = vector.broadcast %1528 : f32 to vector<4x4xf32>
    %1530 = arith.mulf %1529, %490 : vector<4x4xf32>
    %1531 = arith.addf %1527, %1530 : vector<4x4xf32>
    %c244 = arith.constant 244 : index
    %1532 = memref.load %arg6[%c244] : memref<288xf32, #tpu.memory_space<smem>>
    %1533 = vector.broadcast %1532 : f32 to vector<4x4xf32>
    %1534 = arith.mulf %1533, %491 : vector<4x4xf32>
    %1535 = arith.addf %1531, %1534 : vector<4x4xf32>
    %c245 = arith.constant 245 : index
    %1536 = memref.load %arg6[%c245] : memref<288xf32, #tpu.memory_space<smem>>
    %1537 = vector.broadcast %1536 : f32 to vector<4x4xf32>
    %1538 = arith.mulf %1537, %492 : vector<4x4xf32>
    %1539 = arith.addf %1535, %1538 : vector<4x4xf32>
    %c246 = arith.constant 246 : index
    %1540 = memref.load %arg6[%c246] : memref<288xf32, #tpu.memory_space<smem>>
    %1541 = vector.broadcast %1540 : f32 to vector<4x4xf32>
    %1542 = arith.mulf %1541, %493 : vector<4x4xf32>
    %1543 = arith.addf %1539, %1542 : vector<4x4xf32>
    %c247 = arith.constant 247 : index
    %1544 = memref.load %arg6[%c247] : memref<288xf32, #tpu.memory_space<smem>>
    %1545 = vector.broadcast %1544 : f32 to vector<4x4xf32>
    %1546 = arith.mulf %1545, %494 : vector<4x4xf32>
    %1547 = arith.addf %1543, %1546 : vector<4x4xf32>
    %c248 = arith.constant 248 : index
    %1548 = memref.load %arg6[%c248] : memref<288xf32, #tpu.memory_space<smem>>
    %1549 = vector.broadcast %1548 : f32 to vector<4x4xf32>
    %1550 = arith.mulf %1549, %495 : vector<4x4xf32>
    %1551 = arith.addf %1547, %1550 : vector<4x4xf32>
    %c249 = arith.constant 249 : index
    %1552 = memref.load %arg6[%c249] : memref<288xf32, #tpu.memory_space<smem>>
    %1553 = vector.broadcast %1552 : f32 to vector<4x4xf32>
    %1554 = arith.mulf %1553, %496 : vector<4x4xf32>
    %1555 = arith.addf %1551, %1554 : vector<4x4xf32>
    %c250 = arith.constant 250 : index
    %1556 = memref.load %arg6[%c250] : memref<288xf32, #tpu.memory_space<smem>>
    %1557 = vector.broadcast %1556 : f32 to vector<4x4xf32>
    %1558 = arith.mulf %1557, %497 : vector<4x4xf32>
    %1559 = arith.addf %1555, %1558 : vector<4x4xf32>
    %c251 = arith.constant 251 : index
    %1560 = memref.load %arg6[%c251] : memref<288xf32, #tpu.memory_space<smem>>
    %1561 = vector.broadcast %1560 : f32 to vector<4x4xf32>
    %1562 = arith.mulf %1561, %498 : vector<4x4xf32>
    %1563 = arith.addf %1559, %1562 : vector<4x4xf32>
    %c24_i32_132 = arith.constant 24 : i32
    %1564 = vector.broadcast %c24_i32_132 : i32 to vector<4x32xi32>
    %1565 = arith.addi %499, %1564 : vector<4x32xi32>
    %1566 = arith.cmpi eq, %500, %1565 : vector<4x32xi32>
    %1567 = arith.extui %1566 : vector<4x32xi1> to vector<4x32xi32>
    %1568 = arith.sitofp %1567 : vector<4x32xi32> to vector<4x32xf32>
    %cst_133 = arith.constant dense<0.000000e+00> : vector<4x32xf32>
    %1569 = tpu.matmul %1563, %1568, %cst_133 {dimension_numbers = #tpu.dot_dimension_numbers<[1], [0], [0], [1], [0, 0, 1, 1], [], []>} : vector<4x4xf32>, vector<4x32xf32>, vector<4x32xf32> -> vector<4x32xf32>
    %1570 = arith.addf %1417, %1569 : vector<4x32xf32>
    %c7_134 = arith.constant 7 : index
    %1571 = memref.load %arg7[%c7_134] : memref<8xf32, #tpu.memory_space<smem>>
    %1572 = vector.broadcast %1571 : f32 to vector<4x4xf32>
    %c252 = arith.constant 252 : index
    %1573 = memref.load %arg6[%c252] : memref<288xf32, #tpu.memory_space<smem>>
    %1574 = vector.broadcast %1573 : f32 to vector<4x4xf32>
    %1575 = arith.mulf %1574, %463 : vector<4x4xf32>
    %1576 = arith.addf %1572, %1575 : vector<4x4xf32>
    %c253 = arith.constant 253 : index
    %1577 = memref.load %arg6[%c253] : memref<288xf32, #tpu.memory_space<smem>>
    %1578 = vector.broadcast %1577 : f32 to vector<4x4xf32>
    %1579 = arith.mulf %1578, %464 : vector<4x4xf32>
    %1580 = arith.addf %1576, %1579 : vector<4x4xf32>
    %c254 = arith.constant 254 : index
    %1581 = memref.load %arg6[%c254] : memref<288xf32, #tpu.memory_space<smem>>
    %1582 = vector.broadcast %1581 : f32 to vector<4x4xf32>
    %1583 = arith.mulf %1582, %465 : vector<4x4xf32>
    %1584 = arith.addf %1580, %1583 : vector<4x4xf32>
    %c255 = arith.constant 255 : index
    %1585 = memref.load %arg6[%c255] : memref<288xf32, #tpu.memory_space<smem>>
    %1586 = vector.broadcast %1585 : f32 to vector<4x4xf32>
    %1587 = arith.mulf %1586, %466 : vector<4x4xf32>
    %1588 = arith.addf %1584, %1587 : vector<4x4xf32>
    %c256 = arith.constant 256 : index
    %1589 = memref.load %arg6[%c256] : memref<288xf32, #tpu.memory_space<smem>>
    %1590 = vector.broadcast %1589 : f32 to vector<4x4xf32>
    %1591 = arith.mulf %1590, %467 : vector<4x4xf32>
    %1592 = arith.addf %1588, %1591 : vector<4x4xf32>
    %c257 = arith.constant 257 : index
    %1593 = memref.load %arg6[%c257] : memref<288xf32, #tpu.memory_space<smem>>
    %1594 = vector.broadcast %1593 : f32 to vector<4x4xf32>
    %1595 = arith.mulf %1594, %468 : vector<4x4xf32>
    %1596 = arith.addf %1592, %1595 : vector<4x4xf32>
    %c258 = arith.constant 258 : index
    %1597 = memref.load %arg6[%c258] : memref<288xf32, #tpu.memory_space<smem>>
    %1598 = vector.broadcast %1597 : f32 to vector<4x4xf32>
    %1599 = arith.mulf %1598, %469 : vector<4x4xf32>
    %1600 = arith.addf %1596, %1599 : vector<4x4xf32>
    %c259 = arith.constant 259 : index
    %1601 = memref.load %arg6[%c259] : memref<288xf32, #tpu.memory_space<smem>>
    %1602 = vector.broadcast %1601 : f32 to vector<4x4xf32>
    %1603 = arith.mulf %1602, %470 : vector<4x4xf32>
    %1604 = arith.addf %1600, %1603 : vector<4x4xf32>
    %c260 = arith.constant 260 : index
    %1605 = memref.load %arg6[%c260] : memref<288xf32, #tpu.memory_space<smem>>
    %1606 = vector.broadcast %1605 : f32 to vector<4x4xf32>
    %1607 = arith.mulf %1606, %471 : vector<4x4xf32>
    %1608 = arith.addf %1604, %1607 : vector<4x4xf32>
    %c261 = arith.constant 261 : index
    %1609 = memref.load %arg6[%c261] : memref<288xf32, #tpu.memory_space<smem>>
    %1610 = vector.broadcast %1609 : f32 to vector<4x4xf32>
    %1611 = arith.mulf %1610, %472 : vector<4x4xf32>
    %1612 = arith.addf %1608, %1611 : vector<4x4xf32>
    %c262 = arith.constant 262 : index
    %1613 = memref.load %arg6[%c262] : memref<288xf32, #tpu.memory_space<smem>>
    %1614 = vector.broadcast %1613 : f32 to vector<4x4xf32>
    %1615 = arith.mulf %1614, %473 : vector<4x4xf32>
    %1616 = arith.addf %1612, %1615 : vector<4x4xf32>
    %c263 = arith.constant 263 : index
    %1617 = memref.load %arg6[%c263] : memref<288xf32, #tpu.memory_space<smem>>
    %1618 = vector.broadcast %1617 : f32 to vector<4x4xf32>
    %1619 = arith.mulf %1618, %474 : vector<4x4xf32>
    %1620 = arith.addf %1616, %1619 : vector<4x4xf32>
    %c264 = arith.constant 264 : index
    %1621 = memref.load %arg6[%c264] : memref<288xf32, #tpu.memory_space<smem>>
    %1622 = vector.broadcast %1621 : f32 to vector<4x4xf32>
    %1623 = arith.mulf %1622, %475 : vector<4x4xf32>
    %1624 = arith.addf %1620, %1623 : vector<4x4xf32>
    %c265 = arith.constant 265 : index
    %1625 = memref.load %arg6[%c265] : memref<288xf32, #tpu.memory_space<smem>>
    %1626 = vector.broadcast %1625 : f32 to vector<4x4xf32>
    %1627 = arith.mulf %1626, %476 : vector<4x4xf32>
    %1628 = arith.addf %1624, %1627 : vector<4x4xf32>
    %c266 = arith.constant 266 : index
    %1629 = memref.load %arg6[%c266] : memref<288xf32, #tpu.memory_space<smem>>
    %1630 = vector.broadcast %1629 : f32 to vector<4x4xf32>
    %1631 = arith.mulf %1630, %477 : vector<4x4xf32>
    %1632 = arith.addf %1628, %1631 : vector<4x4xf32>
    %c267 = arith.constant 267 : index
    %1633 = memref.load %arg6[%c267] : memref<288xf32, #tpu.memory_space<smem>>
    %1634 = vector.broadcast %1633 : f32 to vector<4x4xf32>
    %1635 = arith.mulf %1634, %478 : vector<4x4xf32>
    %1636 = arith.addf %1632, %1635 : vector<4x4xf32>
    %c268 = arith.constant 268 : index
    %1637 = memref.load %arg6[%c268] : memref<288xf32, #tpu.memory_space<smem>>
    %1638 = vector.broadcast %1637 : f32 to vector<4x4xf32>
    %1639 = arith.mulf %1638, %479 : vector<4x4xf32>
    %1640 = arith.addf %1636, %1639 : vector<4x4xf32>
    %c269 = arith.constant 269 : index
    %1641 = memref.load %arg6[%c269] : memref<288xf32, #tpu.memory_space<smem>>
    %1642 = vector.broadcast %1641 : f32 to vector<4x4xf32>
    %1643 = arith.mulf %1642, %480 : vector<4x4xf32>
    %1644 = arith.addf %1640, %1643 : vector<4x4xf32>
    %c270 = arith.constant 270 : index
    %1645 = memref.load %arg6[%c270] : memref<288xf32, #tpu.memory_space<smem>>
    %1646 = vector.broadcast %1645 : f32 to vector<4x4xf32>
    %1647 = arith.mulf %1646, %481 : vector<4x4xf32>
    %1648 = arith.addf %1644, %1647 : vector<4x4xf32>
    %c271 = arith.constant 271 : index
    %1649 = memref.load %arg6[%c271] : memref<288xf32, #tpu.memory_space<smem>>
    %1650 = vector.broadcast %1649 : f32 to vector<4x4xf32>
    %1651 = arith.mulf %1650, %482 : vector<4x4xf32>
    %1652 = arith.addf %1648, %1651 : vector<4x4xf32>
    %c272 = arith.constant 272 : index
    %1653 = memref.load %arg6[%c272] : memref<288xf32, #tpu.memory_space<smem>>
    %1654 = vector.broadcast %1653 : f32 to vector<4x4xf32>
    %1655 = arith.mulf %1654, %483 : vector<4x4xf32>
    %1656 = arith.addf %1652, %1655 : vector<4x4xf32>
    %c273 = arith.constant 273 : index
    %1657 = memref.load %arg6[%c273] : memref<288xf32, #tpu.memory_space<smem>>
    %1658 = vector.broadcast %1657 : f32 to vector<4x4xf32>
    %1659 = arith.mulf %1658, %484 : vector<4x4xf32>
    %1660 = arith.addf %1656, %1659 : vector<4x4xf32>
    %c274 = arith.constant 274 : index
    %1661 = memref.load %arg6[%c274] : memref<288xf32, #tpu.memory_space<smem>>
    %1662 = vector.broadcast %1661 : f32 to vector<4x4xf32>
    %1663 = arith.mulf %1662, %485 : vector<4x4xf32>
    %1664 = arith.addf %1660, %1663 : vector<4x4xf32>
    %c275 = arith.constant 275 : index
    %1665 = memref.load %arg6[%c275] : memref<288xf32, #tpu.memory_space<smem>>
    %1666 = vector.broadcast %1665 : f32 to vector<4x4xf32>
    %1667 = arith.mulf %1666, %486 : vector<4x4xf32>
    %1668 = arith.addf %1664, %1667 : vector<4x4xf32>
    %c276 = arith.constant 276 : index
    %1669 = memref.load %arg6[%c276] : memref<288xf32, #tpu.memory_space<smem>>
    %1670 = vector.broadcast %1669 : f32 to vector<4x4xf32>
    %1671 = arith.mulf %1670, %487 : vector<4x4xf32>
    %1672 = arith.addf %1668, %1671 : vector<4x4xf32>
    %c277 = arith.constant 277 : index
    %1673 = memref.load %arg6[%c277] : memref<288xf32, #tpu.memory_space<smem>>
    %1674 = vector.broadcast %1673 : f32 to vector<4x4xf32>
    %1675 = arith.mulf %1674, %488 : vector<4x4xf32>
    %1676 = arith.addf %1672, %1675 : vector<4x4xf32>
    %c278 = arith.constant 278 : index
    %1677 = memref.load %arg6[%c278] : memref<288xf32, #tpu.memory_space<smem>>
    %1678 = vector.broadcast %1677 : f32 to vector<4x4xf32>
    %1679 = arith.mulf %1678, %489 : vector<4x4xf32>
    %1680 = arith.addf %1676, %1679 : vector<4x4xf32>
    %c279 = arith.constant 279 : index
    %1681 = memref.load %arg6[%c279] : memref<288xf32, #tpu.memory_space<smem>>
    %1682 = vector.broadcast %1681 : f32 to vector<4x4xf32>
    %1683 = arith.mulf %1682, %490 : vector<4x4xf32>
    %1684 = arith.addf %1680, %1683 : vector<4x4xf32>
    %c280 = arith.constant 280 : index
    %1685 = memref.load %arg6[%c280] : memref<288xf32, #tpu.memory_space<smem>>
    %1686 = vector.broadcast %1685 : f32 to vector<4x4xf32>
    %1687 = arith.mulf %1686, %491 : vector<4x4xf32>
    %1688 = arith.addf %1684, %1687 : vector<4x4xf32>
    %c281 = arith.constant 281 : index
    %1689 = memref.load %arg6[%c281] : memref<288xf32, #tpu.memory_space<smem>>
    %1690 = vector.broadcast %1689 : f32 to vector<4x4xf32>
    %1691 = arith.mulf %1690, %492 : vector<4x4xf32>
    %1692 = arith.addf %1688, %1691 : vector<4x4xf32>
    %c282 = arith.constant 282 : index
    %1693 = memref.load %arg6[%c282] : memref<288xf32, #tpu.memory_space<smem>>
    %1694 = vector.broadcast %1693 : f32 to vector<4x4xf32>
    %1695 = arith.mulf %1694, %493 : vector<4x4xf32>
    %1696 = arith.addf %1692, %1695 : vector<4x4xf32>
    %c283 = arith.constant 283 : index
    %1697 = memref.load %arg6[%c283] : memref<288xf32, #tpu.memory_space<smem>>
    %1698 = vector.broadcast %1697 : f32 to vector<4x4xf32>
    %1699 = arith.mulf %1698, %494 : vector<4x4xf32>
    %1700 = arith.addf %1696, %1699 : vector<4x4xf32>
    %c284 = arith.constant 284 : index
    %1701 = memref.load %arg6[%c284] : memref<288xf32, #tpu.memory_space<smem>>
    %1702 = vector.broadcast %1701 : f32 to vector<4x4xf32>
    %1703 = arith.mulf %1702, %495 : vector<4x4xf32>
    %1704 = arith.addf %1700, %1703 : vector<4x4xf32>
    %c285 = arith.constant 285 : index
    %1705 = memref.load %arg6[%c285] : memref<288xf32, #tpu.memory_space<smem>>
    %1706 = vector.broadcast %1705 : f32 to vector<4x4xf32>
    %1707 = arith.mulf %1706, %496 : vector<4x4xf32>
    %1708 = arith.addf %1704, %1707 : vector<4x4xf32>
    %c286 = arith.constant 286 : index
    %1709 = memref.load %arg6[%c286] : memref<288xf32, #tpu.memory_space<smem>>
    %1710 = vector.broadcast %1709 : f32 to vector<4x4xf32>
    %1711 = arith.mulf %1710, %497 : vector<4x4xf32>
    %1712 = arith.addf %1708, %1711 : vector<4x4xf32>
    %c287 = arith.constant 287 : index
    %1713 = memref.load %arg6[%c287] : memref<288xf32, #tpu.memory_space<smem>>
    %1714 = vector.broadcast %1713 : f32 to vector<4x4xf32>
    %1715 = arith.mulf %1714, %498 : vector<4x4xf32>
    %1716 = arith.addf %1712, %1715 : vector<4x4xf32>
    %c28_i32_135 = arith.constant 28 : i32
    %1717 = vector.broadcast %c28_i32_135 : i32 to vector<4x32xi32>
    %1718 = arith.addi %499, %1717 : vector<4x32xi32>
    %1719 = arith.cmpi eq, %500, %1718 : vector<4x32xi32>
    %1720 = arith.extui %1719 : vector<4x32xi1> to vector<4x32xi32>
    %1721 = arith.sitofp %1720 : vector<4x32xi32> to vector<4x32xf32>
    %cst_136 = arith.constant dense<0.000000e+00> : vector<4x32xf32>
    %1722 = tpu.matmul %1716, %1721, %cst_136 {dimension_numbers = #tpu.dot_dimension_numbers<[1], [0], [0], [1], [0, 0, 1, 1], [], []>} : vector<4x4xf32>, vector<4x32xf32>, vector<4x32xf32> -> vector<4x32xf32>
    %1723 = arith.addf %1570, %1722 : vector<4x32xf32>
    %1724 = math.tanh %1723 : vector<4x32xf32>
    %c31_i32 = arith.constant 31 : i32
    %1725 = tpu.dynamic_rotate %1724 by %c31_i32 dim 1 : vector<4x32xf32>, i32 -> vector<4x32xf32>
    %1726 = arith.maximumf %1724, %1725 : vector<4x32xf32>
    %c3_i32 = arith.constant 3 : i32
    %1727 = tpu.dynamic_rotate %1726 by %c3_i32 dim 0 : vector<4x32xf32>, i32 -> vector<4x32xf32>
    %1728 = arith.maximumf %1726, %1727 : vector<4x32xf32>
    %c0_137 = arith.constant 0 : index
    %c0_138 = arith.constant 0 : index
    %1729 = vector.load %arg12[%c0_137, %c0_138] : memref<2x4xf32, #tpu.memory_space<vmem>>, vector<2x4xf32>
    %cst_139 = arith.constant dense<0.000000e+00> : vector<2x32xf32>
    %1730 = tpu.matmul %1729, %1728, %cst_139 {dimension_numbers = #tpu.dot_dimension_numbers<[1], [0], [0], [1], [0, 0, 1, 1], [], []>} : vector<2x4xf32>, vector<4x32xf32>, vector<2x32xf32> -> vector<2x32xf32>
    %c0_140 = arith.constant 0 : index
    %c0_141 = arith.constant 0 : index
    %1731 = vector.load %arg13[%c0_140, %c0_141] : memref<32x16xf32, #tpu.memory_space<vmem>>, vector<32x16xf32>
    %cst_142 = arith.constant dense<0.000000e+00> : vector<2x16xf32>
    %1732 = tpu.matmul %1730, %1731, %cst_142 {dimension_numbers = #tpu.dot_dimension_numbers<[1], [0], [0], [1], [0, 0, 1, 1], [], []>} : vector<2x32xf32>, vector<32x16xf32>, vector<2x16xf32> -> vector<2x16xf32>
    %c0_143 = arith.constant 0 : index
    %c0_144 = arith.constant 0 : index
    %c0_145 = arith.constant 0 : index
    %1733 = vector.load %arg14[%c0_143, %c0_144, %c0_145] : memref<1x2x16xf32, #tpu.memory_space<vmem>>, vector<1x2x16xf32>
    %1734 = vector.shape_cast %1733 : vector<1x2x16xf32> to vector<2x16xf32>
    %1735 = vector.shape_cast %1732 : vector<2x16xf32> to vector<1x2x16xf32>
    tpu.vector_store %arg14[%c0_143, %c0_144, %c0_145], %1735 {strides = array<i32>} : memref<1x2x16xf32, #tpu.memory_space<vmem>>, vector<1x2x16xf32>,
    return
  }
  func.func @transform_0(%arg0: i32) -> (i32, i32, i32) {
    %c0_i32 = arith.constant 0 : i32
    %c0_i32_0 = arith.constant 0 : i32
    %c0_i32_1 = arith.constant 0 : i32
    return %arg0, %c0_i32, %c0_i32_0 : i32, i32, i32
  }
  func.func @transform_1(%arg0: i32) -> i32 {
    %c0_i32 = arith.constant 0 : i32
    %c0_i32_0 = arith.constant 0 : i32
    return %c0_i32 : i32
  }
  func.func @transform_2(%arg0: i32) -> i32 {
    %c0_i32 = arith.constant 0 : i32
    %c0_i32_0 = arith.constant 0 : i32
    return %c0_i32 : i32
  }
  func.func @transform_3(%arg0: i32) -> i32 {
    %c0_i32 = arith.constant 0 : i32
    %c0_i32_0 = arith.constant 0 : i32
    return %c0_i32 : i32
  }
  func.func @transform_4(%arg0: i32) -> i32 {
    %c0_i32 = arith.constant 0 : i32
    %c0_i32_0 = arith.constant 0 : i32
    return %c0_i32 : i32
  }
  func.func @transform_5(%arg0: i32) -> i32 {
    %c0_i32 = arith.constant 0 : i32
    %c0_i32_0 = arith.constant 0 : i32
    return %c0_i32 : i32
  }
  func.func @transform_6(%arg0: i32) -> i32 {
    %c0_i32 = arith.constant 0 : i32
    %c0_i32_0 = arith.constant 0 : i32
    return %c0_i32 : i32
  }
  func.func @transform_7(%arg0: i32) -> (i32, i32) {
    %c0_i32 = arith.constant 0 : i32
    %c0_i32_0 = arith.constant 0 : i32
    %c0_i32_1 = arith.constant 0 : i32
    return %c0_i32, %c0_i32_0 : i32, i32
  }
  func.func @transform_8(%arg0: i32) -> (i32, i32) {
    %c0_i32 = arith.constant 0 : i32
    %c0_i32_0 = arith.constant 0 : i32
    %c0_i32_1 = arith.constant 0 : i32
    return %c0_i32, %c0_i32_0 : i32, i32
  }
  func.func @transform_9(%arg0: i32) -> (i32, i32) {
    %c0_i32 = arith.constant 0 : i32
    %c0_i32_0 = arith.constant 0 : i32
    %c0_i32_1 = arith.constant 0 : i32
    return %c0_i32, %c0_i32_0 : i32, i32
  }
  func.func @transform_10(%arg0: i32) -> (i32, i32) {
    %c0_i32 = arith.constant 0 : i32
    %c0_i32_0 = arith.constant 0 : i32
    %c0_i32_1 = arith.constant 0 : i32
    return %c0_i32, %c0_i32_0 : i32, i32
  }
  func.func @transform_11(%arg0: i32) -> (i32, i32) {
    %c0_i32 = arith.constant 0 : i32
    %c0_i32_0 = arith.constant 0 : i32
    %c0_i32_1 = arith.constant 0 : i32
    return %c0_i32, %c0_i32_0 : i32, i32
  }
  func.func @transform_12(%arg0: i32) -> (i32, i32) {
    %c0_i32 = arith.constant 0 : i32
    %c0_i32_0 = arith.constant 0 : i32
    %c0_i32_1 = arith.constant 0 : i32
    return %c0_i32, %c0_i32_0 : i32, i32
  }
  func.func @transform_13(%arg0: i32) -> (i32, i32, i32) {
    %c0_i32 = arith.constant 0 : i32
    %c0_i32_0 = arith.constant 0 : i32
    %c0_i32_1 = arith.constant 0 : i32
    return %arg0, %c0_i32, %c0_i32_0 : i32, i32, i32
  }
}

</mosaic_0001>

<bundles_post_ra>
// kernel: tpu_custom_call.1
= control target key start
LH: loop header
LB: loop body
LE: loop exit
PB: predicated region body
PF: predicated region fallthrough
CT: control target
= control target key end

     0   :  { %s9942_s0 = inlined_call_operand.vmem [shape: f32[2,30,30], index: 0, kind: input, shape index: {}]   ;;  %s9943_s1 = inlined_call_operand.vmem [shape: f32[18], index: 1, kind: input, shape index: {}]   ;;  %s9944_s2 = inlined_call_operand.vmem [shape: f32[2], index: 2, kind: input, shape index: {}]   ;;  %s9945_s3 = inlined_call_operand.vmem [shape: f32[72], index: 3, kind: input, shape index: {}]   ;;  %s9946_s4 = inlined_call_operand.vmem [shape: f32[4], index: 4, kind: input, shape index: {}]   ;;  %s9947_s5 = inlined_call_operand.vmem [shape: f32[288], index: 5, kind: input, shape index: {}]   ;;  %s9948_s6 = inlined_call_operand.vmem [shape: f32[8], index: 6, kind: input, shape index: {}]   ;;  %s9949_s7 = inlined_call_operand.vmem [shape: f32[14,28], index: 7, kind: input, shape index: {}]   ;;  %s9950_s8 = inlined_call_operand.vmem [shape: f32[56,28], index: 8, kind: input, shape index: {}]   ;;  %s9951_s9 = inlined_call_operand.vmem [shape: f32[6,12], index: 9, kind: input, shape index: {}]   ;;  %s9952_s10 = inlined_call_operand.vmem [shape: f32[48,24], index: 10, kind: input, shape index: {}]   ;;  %s9953_s11 = inlined_call_operand.vmem [shape: f32[2,4], index: 11, kind: input, shape index: {}]   ;;  %s9954_s12 = inlined_call_operand.vmem [shape: f32[32,16], index: 12, kind: input, shape index: {}]   ;;  %s9955_s13 = inlined_call_operand.hbm [shape: f32[2,2,16], index: 13, kind: output, shape index: {}]  }
   0x1   :  { %10050 = sst [smem:[#allocation100_spill]] %s9942_s0 }
   0x2   :  { %10051 = sst [smem:[#allocation101_spill]] %s9943_s1 }
   0x3   :  { %10052 = sst [smem:[#allocation102_spill]] %s9944_s2 }
   0x4   :  { %10053 = sst [smem:[#allocation103_spill]] %s9945_s3 }
   0x5   :  { %10054 = sst [smem:[#allocation104_spill]] %s9946_s4 }
   0x6   :  { %10055 = sst [smem:[#allocation105_spill]] %s9947_s5 }
   0x7   :  { %10056 = sst [smem:[#allocation106_spill]] %s9948_s6 }
   0x8   :  { %10057 = sst [smem:[#allocation107_spill]] %s9949_s7 }
   0x9   :  { %10058 = sst [smem:[#allocation108_spill]] %s9950_s8 }
   0xa   :  { %10059 = sst [smem:[#allocation109_spill]] %s9951_s9 }
   0xb   :  { %10060 = sst [smem:[#allocation110_spill]] %s9952_s10 }
   0xc   :  { %10061 = sst [smem:[#allocation111_spill]] %s9953_s11 }
   0xd   :  { %10062 = sst [smem:[#allocation112_spill]] %s9954_s12 }
   0xe   :  { %10063 = sst [smem:[#allocation113_spill]] %s9955_s13 }
   0xf   :  { %18 = vsyncpa [#allocation4], 0 }
  0x10   :  { %19 = vsyncpa [#allocation6], 0 }
  0x11   :  { %20 = vsyncpa [#allocation9], 0 }
  0x12   :  { %21 = vsyncpa [#allocation12], 0 }
  0x13   :  { %22 = vsyncpa [#allocation3], 0 }
  0x14   :  { %24 = vsyncpa [#allocation3 + $0x1], 0  ;;  %s6396_s25 = smov 0   ;;  %s6398_s26 = smov 0  }
  0x15   :  { %s6400_s27 = smov 0   ;;  %s6402_s28 = smov 0  }
  0x16 LB: > { %10064 = sst [smem:[#allocation19_spill]] %s6288_s25  ;;  %s6417_s29 = sadd.s32 4294967295, %s6300_s28   ;;  %s6300_s28 = sphi %s6402_s28, %s10413_s28   ;;  %s6296_s27 = sphi %s6400_s27, %s10416_s27   ;;  %s6292_s26 = sphi %s6398_s26, %s10415_s26   ;;  %s6288_s25 = sphi %s6396_s25, %s10414_s25  }
  0x17   : > { %10065 = sst [smem:[#allocation20_spill]] %s6292_s26  ;;  %s5501_s30 = sadd.s32 4294967294, %s6300_s28  }
  0x18   : > { %10066 = sst [smem:[#allocation21_spill]] %s6296_s27  ;;  %s6421_s14 = sadd.s32 1, %s6300_s28  }
  0x19   : > { %10067 = sst [smem:[#allocation22_spill]] %s6300_s28  ;;  %s315_s15 = sadd.s32 1, %s6296_s27 }
  0x1a   : > { %10068 = sst [smem:[#allocation23_spill]] %s6417_s29  ;;  %s312_s16 = ssub.s32 %s6300_s28, %s6421_s14 }
  0x1b   : > { %10069 = sst [smem:[#allocation24_spill]] %s6421_s14  ;;  %p325_p0 = scmp.ne.s32.totalorder %s6296_s27, %s6292_s26 }
  0x1c   : > { %p313_p1 = scmp.eq.s32.totalorder %s312_s16, 0  ;;  %p326_p2 = scmp.eq.s32.totalorder %s6417_s29, 1 }
  0x1d   : > { %p331_p3 = scmp.ne.s32.totalorder %s6292_s26, %s6288_s25  ;;  %p332_p4 = scmp.eq.s32.totalorder %s5501_s30, 1 }
  0x1e   : > { %s6432_s17 = scalar_select %p313_p1, %s6296_s27, %s315_s15  }
  0x1f   : > { %p6434_p5 = por %p326_p2, %p325_p0  ;;  %p6438_p6 = por %p332_p4, %p331_p3 }
  0x20   : > { %10070 = sst [smem:[#allocation25_spill]] %s6432_s17  ;;  %p5502_p7 = scmp.ge.s32.totalorder %s6300_s28, 1 }
  0x21   : > { %s10071_s18 = scalar_select %p6434_p5, 1, 0 }
  0x22   : > { %s10073_s19 = scalar_select %p6438_p6, 1, 0 }
  0x23   : > { %10072 = sst [smem:[#allocation26_spill]] %s10071_s18  ;;  %p339_p8 = scmp.lt.s32.totalorder %s6300_s28, 3 }
  0x24   : > { %10074 = sst [smem:[#allocation27_spill]] %s10073_s19  ;;  %p6034_p9 = scmp.eq.s32.totalorder %s6417_s29, 0 }
  0x25   : > { %p6445_p10 = pnand %p5502_p7, %p339_p8  ;;  %s10076_s2 = sld [smem:[#allocation102_spill]] }
  0x26   : > { %s10077_s4 = sld [smem:[#allocation104_spill]]  ;;  %s6302_s30 = smov [#allocation5]  }
  0x27   : > { %p6011_p11 = pneg %p6445_p10  ;;  %s10079_s1 = sld [smem:[#allocation101_spill]] }
  0x28   : > { %s10080_s3 = sld [smem:[#allocation103_spill]]  ;;  %s6304_s14 = smov [#allocation2]  }
  0x29   : > { %p6459_p12 = pnand %p6034_p9, %p6011_p11  ;;  %s6305_s27 = smov [#allocation7]  }
  0x2a   : > { %s10081_s5 = sld [smem:[#allocation105_spill]] }
  0x2b   : > { %s361_s23 = sshll.u32 %s10076_s2, 4  ;;  %s10082_s6 = sld [smem:[#allocation106_spill]]  ;;  %s362_s23 = int_to_ptr.vmem [resolvable:$true] %s361_s23 }
  0x2c   : > { %s381_s15 = sshll.u32 %s10077_s4, 4  ;;  %s6303_s4 = smov [#allocation8]   ;;  %s382_s15 = int_to_ptr.vmem [resolvable:$true] %s381_s15 }
  0x2d   : > { %s351_s21 = sshll.u32 %s10079_s1, 4  ;;  %s352_s21 = int_to_ptr.vmem [resolvable:$true] %s351_s21 }
  0x2e   : > { %s371_s24 = sshll.u32 %s10080_s3, 4  ;;  %s372_s24 = int_to_ptr.vmem [resolvable:$true] %s371_s24 }
  0x2f   : > { %6017 = dma.vmem_to_smem (!%p6459_p12), %s362_s23, 16, %s6302_s30, [#allocation6]  }
  0x30   : > { %6023 = dma.vmem_to_smem (!%p6459_p12), %s382_s15, 16, %s6303_s4, [#allocation9]  }
  0x31   : > { %6014 = dma.vmem_to_smem (!%p6459_p12), %s352_s21, 16, %s6304_s14, [#allocation4]  }
  0x32   : > { %6020 = dma.vmem_to_smem (!%p6459_p12), %s372_s24, 16, %s6305_s27, [#allocation6]  }
  0x33   : > { %s391_s19 = sshll.u32 %s10081_s5, 4  ;;  %s401_s3 = sshll.u32 %s10082_s6, 4  ;;  %s392_s19 = int_to_ptr.vmem [resolvable:$true] %s391_s19  ;;  %s402_s3 = int_to_ptr.vmem [resolvable:$true] %s401_s3 }
  0x34   : > { %s6306_s23 = smov [#allocation10]   ;;  %s6307_s4 = smov [#allocation11]  }
  0x35   : > { %6026 = dma.vmem_to_smem (!%p6459_p12), %s392_s19, 48, %s6306_s23, [#allocation9]  }
  0x36   : > { %6029 = dma.vmem_to_smem (!%p6459_p12), %s402_s3, 16, %s6307_s4, [#allocation12]  }
  0x37   : > { %440 = sbr.rel (%p6445_p10) target bundleno = 3821 (0xeed), region = 72 }
  0x3c   : > { %6267 = dma.done.wait (%p6034_p9), [#allocation4], 16  }
  0x3d   : > { %6269 = vsyncadd (%p6034_p9), [#allocation4], 4294967280 }
  0x3e   : > { %6271 = dma.done.wait (%p6034_p9), [#allocation6], 32  }
  0x3f   : > { %6273 = vsyncadd (%p6034_p9), [#allocation6], 4294967264 }
  0x40   : > { %6275 = dma.done.wait (%p6034_p9), [#allocation9], 64  }
  0x41   : > { %6277 = vsyncadd (%p6034_p9), [#allocation9], 4294967232 }
  0x42   : > { %6279 = dma.done.wait (%p6034_p9), [#allocation12], 16  }
  0x43   : > { %6281 = vsyncadd (%p6034_p9), [#allocation12], 4294967280 }
  0x44   : > { %472 = sfence }
  0x45   : > { %p511_p13 = scmp.lt.s32.totalorder %s6417_s29, 1  ;;  %s5521_s1 = sld [smem:[#allocation2 + $0x2]]  ;;  %vm601_vm0 = vcmask 1046528   ;;  %vm693_vm1 = vcmask 1045504   ;;  %vm1062_vm3 = vcmask 1043456   ;;  %vm1049_vm11 = vcmask 228352  }
  0x46   : > { %s5520_s3 = sld [smem:[#allocation2 + $0x1]]  ;;  %s9962_s2 = smov 126   ;;  %vm1143_vm12 = vcmask 1048000   ;;  %vm1188_vm13 = vcmask 1047556   ;;  %vm1251_vm14 = vcmask 457728  }
  0x47   : > { %s512_s14 = scalar_select %p511_p13, %s6417_s29, 1 }
  0x48   : > { %s5535_s19 = sld [smem:[#allocation2 + $0xb]]  ;;  %s9960_s22 = smov 127  }
  0x49   : > { %s5984_s20 = sshll.u32 %s512_s14, 5  ;;  %s5534_s15 = sld [smem:[#allocation2 + $0xa]] }
  0x4a   : > { %s10083_s0 = sld [smem:[#allocation100_spill]] }
  0x4b   : > { %s5524_s30 = sld [smem:[#allocation2 + $0x5]]  ;;  %v6515_v1 = vstv %s5521_s1 }
  0x4c   : > { %s5523_s27 = sld [smem:[#allocation2 + $0x4]]  ;;  %v6519_v3 = vstv %s5520_s3 }
  0x4d   : > { %s5537_s17 = sld [smem:[#allocation2 + $0xd]] }
  0x4e   : > { %v6525_v5 = vstv %s5535_s19  ;;  %s5538_s23 = sld [smem:[#allocation2 + $0xe]] }
  0x4f   : > { %v6527_v6 = vstv %s5534_s15  ;;  %s5540_s4 = sld [smem:[#allocation2 + $0x10]] }
  0x50   : > { %s6510_s24 = scalar_lea.vmem %s10083_s0, %s5984_s20  ;;  %s5526_s1 = sld [smem:[#allocation2 + $0x7]] }
  0x51   : > { %v6513_v0 = vld [vmem:[%s6510_s24] sm:$0xff]  ;;  %v6530_v7 = vld [vmem:[%s6510_s24 + $0x8] sm:$0xff]  ;;  %v6532_v8 = vstv %s5524_s30  ;;  %s5527_s3 = sld [smem:[#allocation2 + $0x8]]  ;;  %v6611_v47 = vld [vmem:[%s6510_s24 + $0x10] sm:$0xff] }
  0x52   : > { %v567_v2 = vmul.f32 %v6515_v1, %v6513_v0  ;;  %v541_v4 = vmul.f32 %v6519_v3, %v6513_v0  ;;  %v6534_v9 = vstv %s5523_s27  ;;  %v827_v10 = vmul.f32 %v6525_v5, %v6513_v0  ;;  %s5541_s14 = sld [smem:[#allocation2 + $0x11]] }
  0x53   : > { %v619_v11 = vmul.f32 %v6534_v9, %v6513_v0  ;;  %v6542_v12 = vmul.f32 %v6534_v9, %v6530_v7  ;;  %v801_v13 = vmul.f32 %v6527_v6, %v6513_v0  ;;  %v652_v14 = vmul.f32 %v6532_v8, %v6513_v0  ;;  %s5533_s19 = sld [smem:[#allocation2 + $0x9]] }
  0x54   : > { %575 = vrot.lane.b32.xlu1 %v567_v2, %s9962_s2  ;;  %549 = vrot.lane.b32.xlu0 %v541_v4, %s9960_s22  ;;  %v6550_v15 = vmul.f32 %v6532_v8, %v6530_v7  ;;  %v6553_v18 = vstv %s5537_s17  ;;  %v6566_v26 = vstv %s5538_s23  ;;  %v542_v28 = vmul.f32 %v6519_v3, %v6530_v7  ;;  %s5532_s20 = sld [smem:[#allocation5 + $0x1]]  ;;  %s6312_s17 = smov 56  }
  0x55   : > { %v627_v16 = vrot.slane %v619_v11, 1  ;;  %v628_v17 = vrot.slane %v6542_v12, 1  ;;  %v878_v19 = vmul.f32 %v6553_v18, %v6513_v0  ;;  %v879_v21 = vmul.f32 %v6553_v18, %v6530_v7  ;;  %s5536_s15 = sld [smem:[#allocation2 + $0xc]] }
  0x56   : > { %v660_v22 = vrot.slane %v652_v14, 1  ;;  %v661_v23 = vrot.slane %v6550_v15, 1  ;;  %v911_v29 = vmul.f32 %v6566_v26, %v6513_v0  ;;  %v6577_v30 = vmul.f32 %v6566_v26, %v6530_v7  ;;  %s529_s16 = sld [smem:[#allocation2]] }
  0x57   : > { %v629_v20 = vsel %vm601_vm0, %v627_v16, %v628_v17  ;;  %v886_v24 = vrot.slane %v878_v19, 1  ;;  %v887_v25 = vrot.slane %v879_v21, 1  ;;  %v6584_v34 = vstv %s5540_s4  ;;  %s527_s21 = sld [smem:[#allocation5]] }
  0x58   : > { %634 = vrot.lane.b32.xlu2 %v629_v20, %s9960_s22  ;;  %v662_v27 = vsel %vm601_vm0, %v660_v22, %v661_v23  ;;  %v919_v32 = vrot.slane %v911_v29, 1  ;;  %v920_v33 = vrot.slane %v6577_v30, 1  ;;  %v6586_v35 = vstv %s5526_s1  ;;  %s5539_s30 = sld [smem:[#allocation2 + $0xf]]  ;;  %s9966_s1 = smov 114  }
  0x59   : > { %v888_v31 = vsel %vm601_vm0, %v886_v24, %v887_v25  ;;  %v568_v36 = vmul.f32 %v6515_v1, %v6530_v7  ;;  %v969_v37 = vmul.f32 %v6584_v34, %v6513_v0  ;;  %v6594_v38 = vmul.f32 %v6584_v34, %v6530_v7  ;;  %s5525_s27 = sld [smem:[#allocation2 + $0x6]] }
  0x5a   : > { %v802_v39 = vmul.f32 %v6527_v6, %v6530_v7  ;;  %v921_v40 = vsel %vm601_vm0, %v919_v32, %v920_v33  ;;  %v711_v41 = vmul.f32 %v6586_v35, %v6513_v0  ;;  %v6603_v42 = vmul.f32 %v6586_v35, %v6530_v7  ;;  %s10090_s8 = sld [smem:[#allocation108_spill]] }
  0x5b   : > { %v977_v43 = vrot.slane %v969_v37, 2  ;;  %v978_v44 = vrot.slane %v6594_v38, 2  ;;  %v6613_v48 = vstv %s5527_s3  ;;  %v880_v50 = vmul.f32 %v6553_v18, %v6611_v47  ;;  %s10091_s7 = sld [smem:[#allocation107_spill]] }
  0x5c   : > { %835 = vrot.lane.b32.xlu1 %v827_v10, %s9962_s2  ;;  %809 = vrot.lane.b32.xlu0 %v801_v13, %s9960_s22  ;;  %v719_v45 = vrot.slane %v711_v41, 2  ;;  %v720_v46 = vrot.slane %v6603_v42, 2  ;;  %v828_v51 = vmul.f32 %v6525_v5, %v6530_v7  ;;  %v744_v53 = vmul.f32 %v6613_v48, %v6513_v0  ;;  %s7062_s23 = sld [smem:[#allocation7 + $0x1b]] }
  0x5d   : > { %v979_v49 = vsel %vm693_vm1, %v977_v43, %v978_v44  ;;  %v745_v54 = vmul.f32 %v6613_v48, %v6530_v7  ;;  %v621_v55 = vmul.f32 %v6534_v9, %v6611_v47  ;;  %v889_v56 = vrot.slane %v880_v50, 1  ;;  %s7065_s4 = sld [smem:[#allocation7 + $0xa]] }
  0x5e   : > { %v721_v52 = vsel %vm693_vm1, %v719_v45, %v720_v46  ;;  %v752_v57 = vrot.slane %v744_v53, 2  ;;  %v6630_v60 = vstv %s5541_s14  ;;  %v654_v62 = vmul.f32 %v6532_v8, %v6611_v47  ;;  %s7008_s14 = sld [smem:[#allocation7 + $0x13]] }
  0x5f   : > { %v753_v58 = vrot.slane %v745_v54, 2  ;;  %v630_v59 = vrot.slane %v621_v55, 1  ;;  %v890_v61 = vsel %vm601_vm0, %v887_v25, %v889_v56  ;;  %v1002_v4 = vmul.f32 %v6630_v60, %v6513_v0  ;;  %s7077_s3 = sld [smem:[#allocation7 + $0x1d]] }
  0x60   : > { %893 = vrot.lane.b32.xlu2 %v888_v31, %s9960_s22  ;;  %v1003_v10 = vmul.f32 %v6630_v60, %v6530_v7  ;;  %v663_v11 = vrot.slane %v654_v62, 1  ;;  %v543_v16 = vmul.f32 %v6519_v3, %v6611_v47  ;;  %v569_v15 = vmul.f32 %v6515_v1, %v6611_v47  ;;  %s7101_s0 = sld [smem:[#allocation7 + $0x2e]] }
  0x61   : > { %v754_v63 = vsel %vm693_vm1, %v752_v57, %v753_v58  ;;  %v631_v2 = vsel %vm601_vm0, %v628_v17, %v630_v59  ;;  %v1010_v13 = vrot.slane %v1002_v4, 2  ;;  %v913_v17 = vmul.f32 %v6566_v26, %v6611_v47  ;;  %s7117_s5 = sld [smem:[#allocation7 + $0x3f]] }
  0x62   : > { %v1011_v14 = vrot.slane %v1003_v10, 2  ;;  %v664_v12 = vsel %vm601_vm0, %v661_v23, %v663_v11  ;;  %v971_v21 = vmul.f32 %v6584_v34, %v6611_v47  ;;  %v803_v22 = vmul.f32 %v6527_v6, %v6611_v47  ;;  %s7120_s6 = sld [smem:[#allocation7 + $0x40]] }
  0x63   : > { %v922_v20 = vrot.slane %v913_v17, 1  ;;  %v713_v24 = vmul.f32 %v6586_v35, %v6611_v47  ;;  %v829_v31 = vmul.f32 %v6525_v5, %v6611_v47  ;;  %s7153_s25 = sld [smem:[#allocation7 + $0x1a]] }
  0x64   : > { %667 = vrot.lane.b32.xlu1 %v662_v27, %s9962_s2  ;;  %551 = vrot.lane.b32.xlu0 %v542_v28, %s9960_s22  ;;  %v1012_v19 = vsel %vm693_vm1, %v1010_v13, %v1011_v14  ;;  %v980_v25 = vrot.slane %v971_v21, 2  ;;  %v6670_v28 = vld [vmem:[%s6510_s24 + $0x18] sm:$0x3f]  ;;  %v9975_v21 = vmov 1.0   ;;  %s5522_s24 = sld [smem:[#allocation2 + $0x3]] }
  0x65   : > { %v923_v23 = vsel %vm601_vm0, %v920_v33, %v922_v20  ;;  %v722_v27 = vrot.slane %v713_v24, 2  ;;  %v881_v30 = vmul.f32 %v6553_v18, %v6670_v28  ;;  %v746_v33 = vmul.f32 %v6613_v48, %v6611_v47  ;;  %s7166_s28 = sld [smem:[#allocation7 + $0x41]] }
  0x66   : > { %v981_v29 = vsel %vm693_vm1, %v978_v44, %v980_v25  ;;  %v6715_v53 = vmul.f32 %v6586_v35, %v6670_v28  ;;  %v747_v35 = vmul.f32 %v6613_v48, %v6670_v28  ;;  %s7169_s13 = sld [smem:[#allocation7 + $0x2b]] }
  0x67   : > { %v723_v32 = vsel %vm693_vm1, %v720_v46, %v722_v27  ;;  %v891_v37 = vrot.slane %v881_v30, 1  ;;  %v755_v38 = vrot.slane %v746_v33, 2  ;;  %v914_v46 = vmul.f32 %v6566_v26, %v6670_v28  ;;  %s7175_s18 = sld [smem:[#allocation7 + $0xc]] }
  0x68   : > { %811 = vrot.lane.b32.xlu2 %v802_v39, %s9960_s22  ;;  %v6815_v30 = vstv %s529_s16  ;;  %s7019_s16 = sld [smem:[#allocation7 + $0x37]] }
  0x69   : > { %v892_v39 = vsel %vm601_vm0, %v889_v56, %v891_v37  ;;  %v756_v41 = vsel %vm693_vm1, %v753_v58, %v755_v38  ;;  %v924_v50 = vrot.slane %v914_v46, 1  ;;  %v757_v56 = vrot.slane %v747_v35, 2  ;;  %s7681_s11 = sld [smem:[#allocation7 + $0x33]] }
  0x6a   : > { %s7715_s29 = sld [smem:[#allocation7 + $0x45]] }
  0x6b   : > { %v925_v26 = vsel %vm601_vm0, %v922_v20, %v924_v50  ;;  %v758_v58 = vsel %vm693_vm1, %v755_v38, %v757_v56  ;;  %v531_v38 = vmul.f32 %v6815_v30, %v6513_v0  ;;  %s7727_s26 = sld [smem:[#allocation7 + $0x43]] }
  0x6c   : > { %577 = vrot.lane.b32.xlu1 %v568_v36, %s9962_s2  ;;  %926 = vrot.lane.b32.xlu0 %v921_v40, %s9962_s2  ;;  %v622_v36 = vmul.f32 %v6534_v9, %v6670_v28  ;;  %v655_v40 = vmul.f32 %v6532_v8, %v6670_v28  ;;  %v1004_v9 = vmul.f32 %v6630_v60, %v6611_v47  ;;  %s7747_s12 = sld [smem:[#allocation7 + $0x47]] }
  0x6d   : > { %v544_v8 = vmul.f32 %v6519_v3, %v6670_v28  ;;  %v804_v3 = vmul.f32 %v6527_v6, %v6670_v28  ;;  %v830_v6 = vmul.f32 %v6525_v5, %v6670_v28  ;;  %v520_v5 = vlaneseq  ;;  %s7759_s9 = sld [smem:[#allocation7 + $0x44]] }
  0x6e   : > { %v632_v18 = vrot.slane %v622_v36, 1  ;;  %v665_v43 = vrot.slane %v655_v40, 1  ;;  %v1013_v44 = vrot.slane %v1004_v9, 2  ;;  %v6840_v40 = vstv %s5522_s24  ;;  %s7037_s24 = sld [smem:[#allocation7 + $0x26]] }
  0x6f   : > { %v6741_v48 = vshrl.u32 %v520_v5, 7  ;;  %s7792_s10 = sld [smem:[#allocation7 + $0x35]] }
  0x70   : > { %837 = vrot.lane.b32.xlu2 %v828_v51, %s9962_s2  ;;  %v633_v42 = vsel %vm601_vm0, %v630_v59, %v632_v18  ;;  %v666_v45 = vsel %vm601_vm0, %v663_v11, %v665_v43  ;;  %v570_v51 = vmul.f32 %v6515_v1, %v6670_v28  ;;  %v724_v1 = vrot.slane %v6715_v53, 2 }
  0x71   : > { %v6736_v59 = vmul.f32 %v6630_v60, %v6670_v28  ;;  %10084 = vst [vmem:[#allocation28_spill] sm:$0xff] %v6741_v48  ;;  %v6756_v10 = vadd.s32 16, %v6741_v48  ;;  %v9977_v11 = vmov 0.0  }
  0x72   : > { %v725_v55 = vsel %vm693_vm1, %v722_v27, %v724_v1  ;;  %v6807_v27 = vstv %s5536_s15  ;;  %s7014_s15 = sld [smem:[#allocation7 + $0x25]] }
  0x73   : > { %10087 = vst [vmem:[#allocation31_spill] sm:$0xff] %v6756_v10  ;;  %v853_v36 = vmul.f32 %v6807_v27, %v6513_v0 }
  0x74   : > { %984 = vrot.lane.b32.xlu1 %v979_v49, %s9960_s22  ;;  %726 = vrot.lane.b32.xlu0 %v721_v52, %s9960_s22  ;;  %v1014_v49 = vsel %vm693_vm1, %v1011_v14, %v1013_v44  ;;  %v6708_v52 = vmul.f32 %v6584_v34, %v6670_v28  ;;  %v1035_v14 = vadd.s32 28, %v6756_v10 }
  0x76   : > { %v982_v54 = vrot.slane %v6708_v52, 2 }
  0x78   : > { %636 = vrot.lane.b32.xlu2 %v631_v2, %s9960_s22  ;;  %v983_v34 = vsel %vm693_vm1, %v980_v25, %v982_v54  ;;  %v6749_v2 = vand.u32 127, %v520_v5  ;;  %v6799_v25 = vstv %s5532_s20  ;;  %s7012_s20 = sld [smem:[#allocation7 + $0x1]] }
  0x7a   : > { %10086 = vst [vmem:[#allocation30_spill] sm:$0xff] %v6749_v2  ;;  %vm1039_vm4 = vcmp.eq.s32.totalorder %v6749_v2, %v1035_v14  ;;  %vm777_vm8 = vcmp.eq.s32.totalorder %v6749_v2, %v6756_v10  ;;  %vm775_vm10 = vcmp.eq.s32.totalorder %v6749_v2, %v6741_v48 }
  0x7c   : > { %895 = vrot.lane.b32.xlu1 %v890_v61, %s9960_s22  ;;  %759 = vrot.lane.b32.xlu0 %v754_v63, %s9962_s2  ;;  %v1015_v61 = vrot.slane %v6736_v59, 2  ;;  %v6747_v63 = vadd.s32 24, %v6741_v48 }
  0x7e   : > { %10085 = vst [vmem:[#allocation29_spill] sm:$0xff] %v6747_v63  ;;  %v1036_v60 = vadd.s32 28, %v6747_v63  ;;  %v1016_v4 = vsel %vm693_vm1, %v1013_v44, %v1015_v61  ;;  %vm778_vm6 = vcmp.eq.s32.totalorder %v6749_v2, %v6747_v63 }
  0x80   : > { %1017 = vrot.lane.b32.xlu2 %v1012_v19, %s9962_s2  ;;  %vm1040_vm2 = vcmp.eq.s32.totalorder %v6749_v2, %v1036_v60 }
  0x81   : > { %v5545_v13 = vsel %vm1040_vm2, 1.0, %v9977_v11 }
  0x82   : > { %5546 = vmatpush.msk.msra.mxu0 %vm1062_vm3, %v5545_v13 }
  0x84   : > { %669 = vrot.lane.b32.xlu1 %v664_v12, %s9962_s2  ;;  %553 = vrot.lane.b32.xlu0 %v543_v16, %s9960_s22  ;;  %v6763_v12 = vadd.s32 8, %v6741_v48 }
  0x85   : > { %5547 = vmatpush.msk.msra.mxu0 %vm1039_vm4, %v9975_v21 }
  0x86   : > { %v1034_v17 = vadd.s32 28, %v6763_v12  ;;  %vm776_vm9 = vcmp.eq.s32.totalorder %v6749_v2, %v6763_v12 }
  0x88   : > { %813 = vrot.lane.b32.xlu2 %v803_v22, %s9960_s22  ;;  %vm1038_vm5 = vcmp.eq.s32.totalorder %v6749_v2, %v1034_v17  ;;  %v6779_v22 = vadd.s32 28, %v6741_v48 }
  0x89   : > { %5548 = vmatpush.msk.msra.mxu0 %vm1038_vm5, %v9975_v21 }
  0x8a   : > { %10088 = vst [vmem:[#allocation32_spill] sm:$0xff] %v6779_v22  ;;  %vm1037_vm7 = vcmp.eq.s32.totalorder %v6749_v2, %v6779_v22 }
  0x8b   : > { %5549 = vmatpush.msk.msra.mxu0 %vm1037_vm7, %v9975_v21 }
  0x8c   : > { %579 = vrot.lane.b32.xlu1 %v569_v15, %s9962_s2  ;;  %928 = vrot.lane.b32.xlu0 %v923_v23, %s9962_s2  ;;  %v6774_v15 = vstv %s5533_s19  ;;  %v6790_v23 = vsel %vm778_vm6, 1.0, %v9977_v11  ;;  %s7010_s19 = sld [smem:[#allocation7 + $0x2]] }
  0x8d   : > { %10089 = vst [vmem:[#allocation33_spill] sm:$0xff] %v6790_v23  ;;  %v791_v24 = vmul.f32 %v6774_v15, %v6513_v0  ;;  %5554 = vmatpush.msk.msra.mxu1 %vm1062_vm3, %v6790_v23 }
  0x8f   : > { %5555 = vmatpush.msk.msra.mxu1 %vm777_vm8, %v9975_v21 }
  0x90   : > { %839 = vrot.lane.b32.xlu2 %v829_v31, %s9962_s2  ;;  %v795_v31 = vadd.f32 %v791_v24, %v6799_v25 }
  0x91   : > { %5556 = vmatpush.msk.msra.mxu1 %vm776_vm9, %v9975_v21 }
  0x93   : > { %5557 = vmatpush.msk.msra.mxu1 %vm775_vm10, %v9975_v21 }
  0x94   : > { %986 = vrot.lane.b32.xlu1 %v981_v29, %s9960_s22  ;;  %728 = vrot.lane.b32.xlu0 %v723_v32, %s9960_s22 }
  0x98   : > { %638 = vrot.lane.b32.xlu2 %v633_v42, %s9960_s22 }
  0x9c   : > { %897 = vrot.lane.b32.xlu1 %v892_v39, %s9960_s22  ;;  %761 = vrot.lane.b32.xlu0 %v756_v41, %s9962_s2  ;;  %v861_v41 = vrot.slane %v853_v36, 1 }
  0xa0   : > { %1019 = vrot.lane.b32.xlu2 %v1014_v49, %s9962_s2 }
  0xa4   : > { %671 = vrot.lane.b32.xlu1 %v666_v45, %s9962_s2  ;;  %555 = vrot.lane.b32.xlu0 %v544_v8, %s9960_s22  ;;  %v593_v45 = vmul.f32 %v6840_v40, %v6513_v0  ;;  %v6851_v8 = vmul.f32 %v6840_v40, %v6530_v7 }
  0xa6   : > { %v602_v53 = vrot.slane %v593_v45, 1 }
  0xa8   : > { %815 = vrot.lane.b32.xlu2 %v804_v3, %s9960_s22 }
  0xac   : > { %581 = vrot.lane.b32.xlu1 %v570_v51, %s9962_s2  ;;  %930 = vrot.lane.b32.xlu0 %v925_v26, %s9962_s2 }
  0xb0   : > { %841 = vrot.lane.b32.xlu2 %v830_v6, %s9962_s2 }
  0xb2   : > { %v6731_v57 = vpop.permute.xlu2 %634 }
  0xb4   : > { %988 = vrot.lane.b32.xlu1 %v983_v34, %s9960_s22  ;;  %730 = vrot.lane.b32.xlu0 %v725_v55, %s9960_s22 }
  0xb8   : > { %640 = vrot.lane.b32.xlu2 %v632_v18, %s9960_s22  ;;  %v6838_v18 = vstv %s527_s21  ;;  %s7021_s21 = sld [smem:[#allocation7 + $0x14]] }
  0xb9   : > { %v535_v9 = vadd.f32 %v531_v38, %v6838_v18 }
  0xba   : > { %v6744_v62 = vpop.permute.xlu2 %893 }
  0xbc   : > { %899 = vrot.lane.b32.xlu1 %v891_v37, %s9960_s22  ;;  %763 = vrot.lane.b32.xlu0 %v758_v58, %s9962_s2  ;;  %v6824_v37 = vmul.f32 %v6807_v27, %v6530_v7 }
  0xbe   : > { %v862_v42 = vrot.slane %v6824_v37, 1 }
  0xc0   : > { %1021 = vrot.lane.b32.xlu2 %v1016_v4, %s9962_s2  ;;  %v863_v51 = vsel %vm601_vm0, %v861_v41, %v862_v42 }
  0xc2   : > { %v6772_v20 = vpop.permute.xlu2 %811 }
  0xc4   : > { %932 = vrot.lane.b32.xlu1 %v924_v50, %s9962_s2  ;;  %673 = vrot.lane.b32.xlu0 %v665_v43, %s9962_s2  ;;  %v6855_v50 = vstv %s5539_s30  ;;  %s7041_s30 = sld [smem:[#allocation7 + $0x38]] }
  0xc5   : > { %v944_v3 = vmul.f32 %v6855_v50, %v6513_v0  ;;  %v6864_v26 = vmul.f32 %v6855_v50, %v6530_v7 }
  0xc6   : > { %v6767_v16 = vpop.permute.xlu1 %575  ;;  %v550_v19 = vpop.permute.xlu0 %549 }
  0xc7   : > { %v561_v52 = vadd.f32 %v550_v19, %v535_v9  ;;  %v952_v55 = vrot.slane %v944_v3, 2  ;;  %v953_v35 = vrot.slane %v6864_v26, 2  ;;  %v792_v9 = vmul.f32 %v6774_v15, %v6530_v7 }
  0xc8   : > { %732 = vrot.lane.b32.xlu2 %v724_v1, %s9960_s22  ;;  %v532_v3 = vmul.f32 %v6815_v30, %v6530_v7 }
  0xc9   : > { %v587_v34 = vadd.f32 %v6767_v16, %v561_v52  ;;  %v954_v16 = vsel %vm693_vm1, %v952_v55, %v953_v35  ;;  %v796_v52 = vadd.f32 %v792_v9, %v6799_v25 }
  0xca   : > { %v6818_v33 = vpop.permute.xlu2 %837 }
  0xcb   : > { %v822_v26 = vadd.f32 %v6772_v20, %v796_v52  ;;  %v6911_v20 = vmul.f32 %v6855_v50, %v6611_v47 }
  0xcc   : > { %765 = vrot.lane.b32.xlu1 %v757_v56, %s9962_s2  ;;  %990 = vrot.lane.b32.xlu0 %v982_v54, %s9960_s22  ;;  %v603_v54 = vrot.slane %v6851_v8, 1  ;;  %v6869_v56 = vstv %s5525_s27  ;;  %s7044_s27 = sld [smem:[#allocation7 + $0x9]] }
  0xcd   : > { %v685_v4 = vmul.f32 %v6869_v56, %v6513_v0  ;;  %v6877_v13 = vmul.f32 %v6869_v56, %v6530_v7  ;;  %v687_v37 = vmul.f32 %v6869_v56, %v6611_v47 }
  0xce   : > { %v836_v29 = vpop.permute.xlu1 %835  ;;  %v810_v32 = vpop.permute.xlu0 %809  ;;  %v604_v58 = vsel %vm601_vm0, %v602_v53, %v603_v54 }
  0xcf   : > { %v821_v39 = vadd.f32 %v810_v32, %v795_v31  ;;  %v613_v14 = vadd.f32 %v604_v58, %v587_v34  ;;  %v694_v19 = vrot.slane %v685_v4, 2  ;;  %v695_v24 = vrot.slane %v6877_v13, 2 }
  0xd0   : > { %1023 = vrot.lane.b32.xlu2 %v1015_v61, %s9962_s2  ;;  %v595_v34 = vmul.f32 %v6840_v40, %v6611_v47 }
  0xd1   : > { %v847_v44 = vadd.f32 %v836_v29, %v821_v39  ;;  %v646_v29 = vadd.f32 %v6731_v57, %v613_v14  ;;  %v696_v0 = vsel %vm693_vm1, %v694_v19, %v695_v24 }
  0xd2   : > { %v6853_v49 = vpop.permute.xlu2 %636 }
  0xd3   : > { %v872_v1 = vadd.f32 %v863_v51, %v847_v44 }
  0xd5   : > { %v905_v59 = vadd.f32 %v6744_v62, %v872_v1 }
  0xd6   : > { %v668_v43 = vpop.permute.xlu1 %667  ;;  %v552_v46 = vpop.permute.xlu0 %551 }
  0xd7   : > { %v679_v38 = vadd.f32 %v668_v43, %v646_v29  ;;  %v6893_v43 = vmul.f32 %v6807_v27, %v6611_v47 }
  0xd9   : > { %v705_v41 = vadd.f32 %v696_v0, %v679_v38  ;;  %v864_v53 = vrot.slane %v6893_v43, 1 }
  0xda   : > { %v1018_v61 = vpop.permute.xlu2 %1017 }
  0xdb   : > { %v865_v7 = vsel %vm601_vm0, %v862_v42, %v864_v53 }
  0xde   : > { %v578_v6 = vpop.permute.xlu1 %577  ;;  %v927_v5 = vpop.permute.xlu0 %926 }
  0xdf   : > { %v938_v60 = vadd.f32 %v927_v5, %v905_v59  ;;  %v536_v59 = vadd.f32 %v532_v3, %v6838_v18  ;;  %v848_v5 = vadd.f32 %v6818_v33, %v822_v26 }
  0xe1   : > { %v963_v17 = vadd.f32 %v954_v16, %v938_v60  ;;  %v562_v60 = vadd.f32 %v552_v46, %v536_v59  ;;  %v873_v4 = vadd.f32 %v865_v7, %v848_v5  ;;  %v955_v16 = vrot.slane %v6911_v20, 2 }
  0xe2   : > { %v6882_v36 = vpop.permute.xlu2 %813  ;;  %v533_v46 = vmul.f32 %v6815_v30, %v6611_v47 }
  0xe3   : > { %v588_v13 = vadd.f32 %v578_v6, %v562_v60  ;;  %v697_v6 = vrot.slane %v687_v37, 2 }
  0xe6   : > { %v985_v62 = vpop.permute.xlu1 %984  ;;  %v727_v32 = vpop.permute.xlu0 %726 }
  0xe7   : > { %v996_v31 = vadd.f32 %v985_v62, %v963_v17  ;;  %v738_v44 = vadd.f32 %v727_v32, %v705_v41 }
  0xe9   : > { %v1029_v39 = vadd.f32 %v1018_v61, %v996_v31  ;;  %v605_v61 = vrot.slane %v595_v34, 1  ;;  %v956_v31 = vsel %vm693_vm1, %v953_v35, %v955_v16  ;;  %v698_v35 = vsel %vm693_vm1, %v695_v24, %v697_v6 }
  0xea   : > { %v6888_v57 = vpop.permute.xlu2 %839 }
  0xeb   : > { %5550 = vmatmul.msk.f32.vlgmr.msra.gmra.mxu0 %vm1049_vm11, %v1029_v39  ;;  %v606_v17 = vsel %vm601_vm0, %v603_v54, %v605_v61  ;;  %v6923_v54 = vmul.f32 %v6840_v40, %v6670_v28  ;;  %v537_v39 = vadd.f32 %v533_v46, %v6838_v18 }
  0xec   : > { %v614_v42 = vadd.f32 %v606_v17, %v588_v13 }
  0xee   : > { %v896_v45 = vpop.permute.xlu1 %895  ;;  %v760_v8 = vpop.permute.xlu0 %759  ;;  %v647_v38 = vadd.f32 %v6853_v49, %v614_v42  ;;  %v793_v49 = vmul.f32 %v6774_v15, %v6611_v47 }
  0xef   : > { %v771_v51 = vadd.f32 %v760_v8, %v738_v44  ;;  %v906_v33 = vadd.f32 %v896_v45, %v873_v4 }
  0xf0   : > { %v797_v24 = vadd.f32 %v793_v49, %v6799_v25 }
  0xf1   : > { %5558 = vmatmul.msk.f32.vlgmr.msra.gmra.mxu1 %vm1049_vm11, %v771_v51  ;;  %v607_v51 = vrot.slane %v6923_v54, 1 }
  0xf2   : > { %v639_v58 = vpop.permute.xlu2 %638  ;;  %v823_v4 = vadd.f32 %v6882_v36, %v797_v24 }
  0xf3   : > { %v608_v26 = vsel %vm601_vm0, %v605_v61, %v607_v51 }
  0xf6   : > { %v670_v1 = vpop.permute.xlu1 %669  ;;  %v554_v55 = vpop.permute.xlu0 %553 }
  0xf7   : > { %v680_v44 = vadd.f32 %v670_v1, %v647_v38  ;;  %v563_v52 = vadd.f32 %v554_v55, %v537_v39  ;;  %v688_v1 = vmul.f32 %v6869_v56, %v6670_v28  ;;  %v856_v55 = vmul.f32 %v6807_v27, %v6670_v28 }
  0xf9   : > { %v706_v40 = vadd.f32 %v698_v35, %v680_v44  ;;  %v699_v60 = vrot.slane %v688_v1, 2  ;;  %v866_v13 = vrot.slane %v856_v55, 1 }
  0xfa   : > { %v1020_v29 = vpop.permute.xlu2 %1019 }
  0xfb   : > { %v700_v17 = vsel %vm693_vm1, %v697_v6, %v699_v60  ;;  %v867_v27 = vsel %vm601_vm0, %v864_v53, %v866_v13 }
  0xfe   : > { %v580_v14 = vpop.permute.xlu1 %579  ;;  %v929_v19 = vpop.permute.xlu0 %928 }
  0xff   : > { %v939_v62 = vadd.f32 %v929_v19, %v906_v33  ;;  %v589_v3 = vadd.f32 %v580_v14, %v563_v52  ;;  %v947_v19 = vmul.f32 %v6855_v50, %v6670_v28  ;;  %v794_v50 = vmul.f32 %v6774_v15, %v6670_v28 }
 0x101   : > { %v964_v32 = vadd.f32 %v956_v31, %v939_v62  ;;  %v615_v20 = vadd.f32 %v608_v26, %v589_v3  ;;  %v957_v37 = vrot.slane %v947_v19, 2  ;;  %v798_v53 = vadd.f32 %v794_v50, %v6799_v25 }
 0x102   : > { %v816_v45 = vpop.permute.xlu2 %815 }
 0x103   : > { %v648_v61 = vadd.f32 %v639_v58, %v615_v20  ;;  %v824_v44 = vadd.f32 %v816_v45, %v798_v53 }
 0x106   : > { %v987_v0 = vpop.permute.xlu1 %986  ;;  %v729_v9 = vpop.permute.xlu0 %728 }
 0x107   : > { %v997_v41 = vadd.f32 %v987_v0, %v964_v32  ;;  %v739_v34 = vadd.f32 %v729_v9, %v706_v40  ;;  %v958_v32 = vsel %vm693_vm1, %v955_v16, %v957_v37 }
 0x109   : > { %v1030_v8 = vadd.f32 %v1020_v29, %v997_v41  ;;  %v849_v29 = vadd.f32 %v6888_v57, %v823_v4  ;;  %v534_v57 = vmul.f32 %v6815_v30, %v6670_v28 }
 0x10a   : > { %v842_v47 = vpop.permute.xlu2 %841 }
 0x10b   : > { %5551 = vmatmul.msk.f32.gmra.mxu0 %vm1049_vm11, %v1030_v8  ;;  %v874_v42 = vadd.f32 %v867_v27, %v849_v29  ;;  %v538_v41 = vadd.f32 %v534_v57, %v6838_v18  ;;  %v850_v15 = vadd.f32 %v842_v47, %v824_v44 }
 0x10d   : > { %v875_v30 = vadd.f32 %v866_v13, %v850_v15 }
 0x10e   : > { %v898_v59 = vpop.permute.xlu1 %897  ;;  %v762_v5 = vpop.permute.xlu0 %761 }
 0x10f   : > { %v772_v7 = vadd.f32 %v762_v5, %v739_v34  ;;  %v907_v58 = vadd.f32 %v898_v59, %v874_v42 }
 0x111   : > { %5559 = vmatmul.msk.f32.gmra.mxu1 %vm1049_vm11, %v772_v7 }
 0x112   : > { %v641_v36 = vpop.permute.xlu2 %640 }
 0x116   : > { %v672_v14 = vpop.permute.xlu1 %671  ;;  %v556_v33 = vpop.permute.xlu0 %555 }
 0x117   : > { %v681_v56 = vadd.f32 %v672_v14, %v648_v61  ;;  %v564_v16 = vadd.f32 %v556_v33, %v538_v41 }
 0x119   : > { %v707_v62 = vadd.f32 %v700_v17, %v681_v56 }
 0x11a   : > { %v1022_v54 = vpop.permute.xlu2 %1021 }
 0x11e   : > { %v582_v31 = vpop.permute.xlu1 %581  ;;  %v931_v46 = vpop.permute.xlu0 %930 }
 0x11f   : > { %v940_v6 = vadd.f32 %v931_v46, %v907_v58  ;;  %v590_v35 = vadd.f32 %v582_v31, %v564_v16 }
 0x121   : > { %v965_v38 = vadd.f32 %v958_v32, %v940_v6  ;;  %v616_v28 = vadd.f32 %v607_v51, %v590_v35 }
 0x122   : > { %v733_v3 = vpop.permute.xlu2 %732 }
 0x123   : > { %v649_v26 = vadd.f32 %v641_v36, %v616_v28  ;;  %v1250_v28 = vld [vmem:[%s10090_s8 + $0x30] sm:$0xff] }
 0x124   : > { %1267 = vmatpush.msra.mxu3 %v1250_v28 }
 0x126   : > { %v989_v43 = vpop.permute.xlu1 %988  ;;  %v731_v39 = vpop.permute.xlu0 %730 }
 0x127   : > { %v998_v0 = vadd.f32 %v989_v43, %v965_v38  ;;  %v740_v8 = vadd.f32 %v731_v39, %v707_v62 }
 0x129   : > { %v1031_v9 = vadd.f32 %v1022_v54, %v998_v0 }
 0x12a   : > { %v1024_v47 = vpop.permute.xlu2 %1023 }
 0x12b   : > { %5552 = vmatmul.msk.f32.gmra.mxu0 %vm1049_vm11, %v1031_v9 }
 0x12e   : > { %v900_v52 = vpop.permute.xlu1 %899  ;;  %v764_v49 = vpop.permute.xlu0 %763 }
 0x12f   : > { %v773_v40 = vadd.f32 %v764_v49, %v740_v8  ;;  %v908_v25 = vadd.f32 %v900_v52, %v875_v30  ;;  %v1249_v30 = vld [vmem:[%s10090_s8 + $0x28] sm:$0xff] }
 0x130   : > { %1268 = vmatpush.msra.mxu3 %v1249_v30 }
 0x131   : > { %5560 = vmatmul.msk.f32.gmra.mxu1 %vm1049_vm11, %v773_v40 }
 0x136   : > { %v933_v34 = vpop.permute.xlu1 %932  ;;  %v674_v59 = vpop.permute.xlu0 %673 }
 0x137   : > { %v941_v18 = vadd.f32 %v933_v34, %v908_v25  ;;  %v682_v45 = vadd.f32 %v674_v59, %v649_v26  ;;  %v1247_v59 = vld [vmem:[%s10090_s8 + $0x18] sm:$0xff] }
 0x139   : > { %v966_v1 = vadd.f32 %v957_v37, %v941_v18  ;;  %v708_v5 = vadd.f32 %v699_v60, %v682_v45 }
 0x13b   : > { %v741_v24 = vadd.f32 %v733_v3, %v708_v5  ;;  %v1248_v3 = vld [vmem:[%s10090_s8 + $0x20] sm:$0xff] }
 0x13c   : > { %1269 = vmatpush.msra.mxu3 %v1248_v3 }
 0x13e   : > { %v766_v7 = vpop.permute.xlu1 %765  ;;  %v991_v55 = vpop.permute.xlu0 %990  ;;  %1270 = vmatpush.msra.mxu3 %v1247_v59 }
 0x13f   : > { %v774_v20 = vadd.f32 %v766_v7, %v741_v24  ;;  %v999_v4 = vadd.f32 %v991_v55, %v966_v1  ;;  %v1246_v1 = vld [vmem:[%s10090_s8 + $0x10] sm:$0xff]  ;;  %v1245_v7 = vld [vmem:[%s10090_s8 + $0x8] sm:$0xff] }
 0x140   : > { %1271 = vmatpush.msra.mxu3 %v1246_v1 }
 0x141   : > { %5561 = vmatmul.msk.f32.gmra.mxu1 %vm1049_vm11, %v774_v20  ;;  %v1032_v51 = vadd.f32 %v1024_v47, %v999_v4 }
 0x142   : > { %1272 = vmatpush.msra.mxu3 %v1245_v7 }
 0x143   : > { %5553 = vmatmul.msk.f32.gmra.mxu0 %vm1049_vm11, %v1032_v51 }
 0x168   : > { %v1083_v61 = vpop.f32.mrf.mxu0 }
 0x16e   : > { %v1127_v13 = vpop.f32.mrf.mxu1 }
 0x16f   : > { %v1128_v14 = vadd.f32 %v1127_v13, %v1083_v61 }
 0x171   : > { %6118 = vtanh.f32 %v1128_v14 }
 0x177   : > { %v6119_v17 = vpop.eup %6118 }
 0x178   : > { %1144 = vrot.lane.b32.xlu0 %v6119_v17, %s6312_s17 }
 0x188   : > { %v1086_v60 = vpop.f32.mrf.mxu0 }
 0x18e   : > { %v1130_v56 = vpop.f32.mrf.mxu1 }
 0x18f   : > { %v1131_v33 = vadd.f32 %v1130_v56, %v1086_v60 }
 0x191   : > { %6120 = vtanh.f32 %v1131_v33 }
 0x197   : > { %v6121_v62 = vpop.eup %6120 }
 0x1a8   : > { %v1089_v19 = vpop.f32.mrf.mxu0 }
 0x1ae   : > { %v1133_v29 = vpop.f32.mrf.mxu1 }
 0x1af   : > { %v1134_v27 = vadd.f32 %v1133_v29, %v1089_v19 }
 0x1b1   : > { %6122 = vtanh.f32 %v1134_v27 }
 0x1b7   : > { %v6123_v37 = vpop.eup %6122 }
 0x1b8   : > { %v6103_v42 = vpack.i.bf16 %v6121_v62, %v6123_v37 }
 0x1ba   : > { %6104 = vrot.lane.b32.xlu2 %v6103_v42, %s6312_s17  ;;  %v1244_v42 = vld [vmem:[%s10090_s8] sm:$0xff]  ;;  %s7138_s8 = sld [smem:[#allocation7 + $0x2f]] }
 0x1bb   : > { %1273 = vmatpush.msra.mxu3 %v1244_v42 }
 0x1be   : > { %v1136_v36 = vpop.f32.mrf.mxu1 }
 0x1c0   : > { %v1092_v58 = vpop.f32.mrf.mxu0 }
 0x1c1   : > { %v1137_v31 = vadd.f32 %v1136_v36, %v1092_v58 }
 0x1c3   : > { %6124 = vtanh.f32 %v1137_v31  ;;  %v1564_v31 = vstv %s7008_s14  ;;  %s7407_s14 = sld [smem:[#allocation7 + $0x34]] }
 0x1c9   : > { %v6125_v46 = vpop.eup %6124 }
 0x1ca   : > { %1153 = vrot.lane.b32.xlu1 %v6125_v46, %s6312_s17 }
 0x1ea   : > { %v1145_v32 = vpop.permute.xlu0 %1144 }
 0x1eb   : > { %v1146_v6 = vsel %vm1143_vm12, %v1145_v32, %v6119_v17  ;;  %v1290_v32 = vstv %s7012_s20  ;;  %s7431_s20 = sld [smem:[#allocation7 + $0x1e]] }
 0x1ec   : > { %1156 = vrot.lane.b32.xlu0 %v1146_v6, %s6312_s17 }
 0x214   : > { %v6105_v38 = vpop.permute.xlu2 %6104 }
 0x215   : > { %v6107_v50 = vunpack.i.h.bf16 %v6105_v38  ;;  %v6106_v57 = vunpack.i.l.bf16 %v6105_v38 }
 0x217   : > { %v1149_v43 = vsel %vm1143_vm12, %v6107_v50, %v6121_v62  ;;  %v1152_v54 = vsel %vm1143_vm12, %v6106_v57, %v6123_v37 }
 0x218   : > { %v6108_v53 = vpack.i.bf16 %v1149_v43, %v1152_v54  ;;  %v1911_v43 = vstv %s7014_s15  ;;  %v2223_v54 = vstv %s7019_s16  ;;  %s7449_s15 = sld [smem:[#allocation7 + $0x46]] }
 0x219   : > { %s7456_s16 = sld [smem:[#allocation7 + $0x1f]] }
 0x21a   : > { %6109 = vrot.lane.b32.xlu2 %v6108_v53, %s6312_s17  ;;  %v1578_v53 = vstv %s7021_s21  ;;  %s7473_s21 = sld [smem:[#allocation7 + $0xd]] }
 0x23c   : > { %v1154_v0 = vpop.permute.xlu1 %1153 }
 0x23d   : > { %v1155_v39 = vsel %vm1143_vm12, %v1154_v0, %v6125_v46 }
 0x23e   : > { %1162 = vrot.lane.b32.xlu1 %v1155_v39, %s6312_s17  ;;  %s7058_s17 = sld [smem:[#allocation7 + $0x1c]] }
 0x25e   : > { %v1157_v41 = vpop.permute.xlu0 %1156 }
 0x25f   : > { %v1164_v9 = vsel %vm1143_vm12, %v1157_v41, %v6119_v17 }
 0x260   : > { %1172 = vrot.lane.b32.xlu0 %v1164_v9, %s9960_s22  ;;  %v1925_v9 = vstv %s7037_s24  ;;  %s7496_s24 = sld [smem:[#allocation7 + $0xe]] }
 0x274   : > { %v6110_v44 = vpop.permute.xlu2 %6109 }
 0x275   : > { %v6112_v16 = vunpack.i.h.bf16 %v6110_v44  ;;  %v6111_v35 = vunpack.i.l.bf16 %v6110_v44  ;;  %v2237_v44 = vstv %s7041_s30  ;;  %s5592_s30 = sld [smem:[#allocation7 + $0x19]] }
 0x277   : > { %v1165_v8 = vsel %vm1143_vm12, %v6112_v16, %v6121_v62  ;;  %v1166_v52 = vsel %vm1143_vm12, %v6111_v35, %v6123_v37  ;;  %v1412_v16 = vstv %s7044_s27  ;;  %s7513_s27 = sld [smem:[#allocation7 + $0x3e]] }
 0x278   : > { %v6113_v15 = vpack.i.bf16 %v1165_v8, %v1166_v52 }
 0x27a   : > { %6114 = vrot.lane.b32.xlu2 %v6113_v15, %s9960_s22  ;;  %v1700_v15 = vstv %s7058_s17  ;;  %s7097_s17 = sld [smem:[#allocation7 + $0x2d]] }
 0x2b0   : > { %v1163_v49 = vpop.permute.xlu1 %1162 }
 0x2b1   : > { %v1167_v40 = vsel %vm1143_vm12, %v1163_v49, %v6125_v46  ;;  %v1686_v49 = vstv %s7062_s23  ;;  %s7538_s23 = sld [smem:[#allocation7 + $0xf]]  ;;  %vm5340_vm12 = vcmask 261120  }
 0x2b2   : > { %1178 = vrot.lane.b32.xlu1 %v1167_v40, %s9960_s22  ;;  %v1426_v40 = vstv %s7065_s4  ;;  %s7550_s4 = sld [smem:[#allocation7 + $0x20]] }
 0x2d2   : > { %v1173_v26 = vpop.permute.xlu0 %1172 }
 0x2d3   : > { %v1184_v45 = vmax.f32 %v6119_v17, %v1173_v26  ;;  %v1714_v26 = vstv %s7077_s3  ;;  %s7575_s3 = sld [smem:[#allocation7 + $0x10]] }
 0x2d4   : > { %v6115_v25 = vpop.permute.xlu2 %6114 }
 0x2d5   : > { %v6117_v34 = vunpack.i.h.bf16 %v6115_v25  ;;  %v6116_v18 = vunpack.i.l.bf16 %v6115_v25  ;;  %v1189_v55 = vrot.slane %v1184_v45, 4  ;;  %v1195_v60 = vrot.slane %v1184_v45, 1 }
 0x2d7   : > { %v1186_v5 = vmax.f32 %v6123_v37, %v6116_v18  ;;  %v1185_v24 = vmax.f32 %v6121_v62, %v6117_v34  ;;  %v1210_v62 = vld [vmem:[%s10091_s7] sm:$0xff]  ;;  %v1211_v37 = vld [vmem:[%s10091_s7 + $0x8] sm:$0x3f]  ;;  %v1652_v34 = vstv %s5592_s30  ;;  %s9968_s30 = smov 112   ;;  %s5643_s7 = sld [smem:[#allocation7 + $0x3b]] }
 0x2d9   : > { %v1198_v51 = vrot.slane %v1186_v5, 1  ;;  %v1196_v61 = vrot.slane %v1185_v24, 1 }
 0x2db   : > { %v1199_v33 = vsel %vm601_vm0, %v1196_v61, %v1198_v51  ;;  %v1197_v19 = vsel %vm601_vm0, %v1195_v60, %v1196_v61 }
 0x2dc   : > { %v1207_v29 = vmax.f32 %v1185_v24, %v1199_v33  ;;  %v1206_v27 = vmax.f32 %v1184_v45, %v1197_v19  ;;  %v2359_v19 = vstv %s7120_s6  ;;  %s7343_s6 = sld [smem:[#allocation7 + $0x7]] }
 0x324   : > { %v1179_v20 = vpop.permute.xlu1 %1178 }
 0x325   : > { %v1187_v47 = vmax.f32 %v6125_v46, %v1179_v20  ;;  %v1304_v46 = vstv %s7010_s19  ;;  %s7414_s19 = sld [smem:[#allocation7 + $0x2c]] }
 0x327   : > { %v1190_v4 = vsel %vm1188_vm13, %v1189_v55, %v1187_v47  ;;  %v2033_v55 = vstv %s7097_s17  ;;  %s10093_s17 = smov 114  }
 0x328   : > { %v1200_v13 = vrot.slane %v1190_v4, 1 }
 0x32a   : > { %v1209_v14 = vmax.f32 %v1187_v47, %v1200_v13  ;;  %v1201_v17 = vsel %vm601_vm0, %v1198_v51, %v1200_v13  ;;  %v2047_v47 = vstv %s7101_s0  ;;  %s10094_s0 = smov 113  }
 0x32b   : > { %v1208_v56 = vmax.f32 %v1186_v5, %v1201_v17 }
 0x32c   : > { %5562 = vmatpush.msk.msra.mxu2 %vm1062_vm3, %v1209_v14 }
 0x32e   : > { %1234 = vmatpush.msra.mxu2 %v1208_v56  ;;  %v2345_v56 = vstv %s7117_s5  ;;  %s7324_s5 = sld [smem:[#allocation7 + $0x5]] }
 0x330   : > { %1235 = vmatpush.msra.mxu2 %v1207_v29  ;;  %v2281_v29 = vstv %s5643_s7  ;;  %s7163_s7 = sld [smem:[#allocation7 + $0x3d]] }
 0x332   : > { %1236 = vmatpush.msra.mxu2 %v1206_v27 }
 0x333   : > { %5563 = vmatmul.msk.f32.vlgmr.msra.gmra.mxu2 %vm1049_vm11, %v1210_v62 }
 0x334   : > { %v10111_v23 = vstv %s7324_s5 }
 0x33b   : > { %5564 = vmatmul.msk.f32.gmra.mxu2 %vm1049_vm11, %v1211_v37  ;;  %vm5289_vm11 = vcmask 1047808  }
 0x3b6   : > { %v1238_v36 = vpop.f32.mrf.mxu2 }
 0x3b7   : > { %5565 = vmatmul.msk.f32.vlgmr.msra.gmra.mxu3 %vm1251_vm14, %v1238_v36 }
 0x3be   : > { %v1241_v58 = vpop.f32.mrf.mxu2 }
 0x3bf   : > { %5566 = vmatmul.msk.f32.gmra.mxu3 %vm1251_vm14, %v1241_v58 }
 0x43a   : > { %v7023_v6 = vpop.f32.mrf.mxu3 }
 0x43b   : > { %v1565_v38 = vmul.f32 %v1564_v31, %v7023_v6  ;;  %v1305_v50 = vmul.f32 %v1304_v46, %v7023_v6  ;;  %v1291_v57 = vmul.f32 %v1290_v32, %v7023_v6  ;;  %v1912_v0 = vmul.f32 %v1911_v43, %v7023_v6 }
 0x43c   : > { %v2224_v39 = vmul.f32 %v2223_v54, %v7023_v6  ;;  %v1579_v41 = vmul.f32 %v1578_v53, %v7023_v6  ;;  %v1926_v35 = vmul.f32 %v1925_v9, %v7023_v6  ;;  %v2238_v8 = vmul.f32 %v2237_v44, %v7023_v6 }
 0x43d   : > { %1569 = vrot.lane.b32.xlu1 %v1565_v38, %s9960_s22  ;;  %1309 = vrot.lane.b32.xlu2 %v1305_v50, %s9962_s2  ;;  %v1413_v52 = vmul.f32 %v1412_v16, %v7023_v6  ;;  %v1701_v28 = vmul.f32 %v1700_v15, %v7023_v6  ;;  %v1687_v30 = vmul.f32 %v1686_v49, %v7023_v6 }
 0x43e   : > { %1295 = vrot.lane.b32.xlu0 %v1291_v57, %s9960_s22  ;;  %v1427_v25 = vmul.f32 %v1426_v40, %v7023_v6  ;;  %v1715_v1 = vmul.f32 %v1714_v26, %v7023_v6  ;;  %v1653_v5 = vmul.f32 %v1652_v34, %v7023_v6  ;;  %v2034_v61 = vmul.f32 %v2033_v55, %v7023_v6 }
 0x43f   : > { %v2048_v14 = vmul.f32 %v2047_v47, %v7023_v6  ;;  %v2346_v37 = vmul.f32 %v2345_v56, %v7023_v6  ;;  %v2360_v36 = vmul.f32 %v2359_v19, %v7023_v6  ;;  %v2282_v58 = vmul.f32 %v2281_v29, %v7023_v6 }
 0x440   : > { %v1657_v20 = vrot.slane %v1653_v5, 2  ;;  %v2311_v5 = vstv %s7163_s7  ;;  %s7587_s7 = sld [smem:[#allocation7 + $0x21]] }
 0x442   : > { %v7093_v3 = vpop.f32.mrf.mxu3 }
 0x443   : > { %v2239_v59 = vmul.f32 %v2237_v44, %v7093_v3  ;;  %v7104_v45 = vmul.f32 %v1652_v34, %v7093_v3  ;;  %v1702_v4 = vmul.f32 %v1700_v15, %v7093_v3  ;;  %v7144_v27 = vmul.f32 %v2281_v29, %v7093_v3 }
 0x444   : > { %v2035_v42 = vmul.f32 %v2033_v55, %v7093_v3  ;;  %v2286_v44 = vrot.slane %v2282_v58, 1  ;;  %v1292_v34 = vmul.f32 %v1290_v32, %v7093_v3  ;;  %v7200_v55 = vmul.f32 %v2311_v5, %v7093_v3 }
 0x445   : > { %1916 = vrot.lane.b32.xlu1 %v1912_v0, %s9960_s22  ;;  %2228 = vrot.lane.b32.xlu2 %v2224_v39, %s9960_s22  ;;  %s7082_s22 = sld [smem:[#allocation7 + $0xb]]  ;;  %v1658_v7 = vrot.slane %v7104_v45, 2  ;;  %v2287_v50 = vrot.slane %v7144_v27, 1  ;;  %v2061_v39 = vstv %s7138_s8  ;;  %s10095_s8 = smov 112   ;;  %v2373_v32 = vstv %s7166_s28 }
 0x446   : > { %1583 = vrot.lane.b32.xlu0 %v1579_v41, %s9962_s2  ;;  %v2062_v15 = vmul.f32 %v2061_v39, %v7023_v6  ;;  %v2312_v29 = vmul.f32 %v2311_v5, %v7023_v6  ;;  %v2317_v58 = vrot.slane %v7200_v55, 2  ;;  %s7372_s28 = sld [smem:[#allocation7 + $0x31]] }
 0x447   : > { %v7127_v51 = vsel %vm693_vm1, %v1657_v20, %v1658_v7 }
 0x44b   : > { %v1440_v18 = vstv %s7082_s22  ;;  %s7390_s22 = sld [smem:[#allocation7 + $0x3a]] }
 0x44c   : > { %v1441_v24 = vmul.f32 %v1440_v18, %v7023_v6  ;;  %v1442_v45 = vmul.f32 %v1440_v18, %v7093_v3 }
 0x44d   : > { %1930 = vrot.lane.b32.xlu1 %v1926_v35, %s9962_s2  ;;  %2242 = vrot.lane.b32.xlu2 %v2238_v8, %s9962_s2  ;;  %s9964_s2 = smov 113  }
 0x44e   : > { %1417 = vrot.lane.b32.xlu0 %v1413_v52, %s9966_s1  ;;  %v7182_v52 = vsel %vm601_vm0, %v2286_v44, %v2287_v50 }
 0x455   : > { %1705 = vrot.lane.b32.xlu1 %v1701_v28, %s9964_s2  ;;  %1691 = vrot.lane.b32.xlu2 %v1687_v30, %s9966_s1  ;;  %s10092_s1 = smov 126   ;;  %v2049_v28 = vmul.f32 %v2047_v47, %v7093_v3 }
 0x456   : > { %1431 = vrot.lane.b32.xlu0 %v1427_v25, %s9964_s2  ;;  %s5619_s2 = sld [smem:[#allocation7 + $0x29]] }
 0x45c   : > { %v1969_v13 = vstv %s5619_s2  ;;  %s5590_s2 = sld [smem:[#allocation7 + $0x17]] }
 0x45d   : > { %1719 = vrot.lane.b32.xlu2 %v1715_v1, %s9968_s30  ;;  %2244 = vrot.lane.b32.xlu1 %v2239_v59, %s10092_s1  ;;  %v7132_v17 = vmul.f32 %v1969_v13, %v7093_v3  ;;  %v1970_v60 = vmul.f32 %v1969_v13, %v7023_v6  ;;  %v1669_v1 = vstv %s7153_s25  ;;  %s7355_s25 = sld [smem:[#allocation7 + $0x28]] }
 0x45e   : > { %1445 = vrot.lane.b32.xlu0 %v1441_v24, %s9968_s30  ;;  %s5589_s30 = sld [smem:[#allocation7 + $0x16]]  ;;  %v1671_v20 = vmul.f32 %v1669_v1, %v7093_v3  ;;  %v1670_v13 = vmul.f32 %v1669_v1, %v7023_v6 }
 0x45f   : > { %v1975_v33 = vrot.slane %v7132_v17, 1  ;;  %v1974_v62 = vrot.slane %v1970_v60, 1  ;;  %v1454_v60 = vstv %s7175_s18  ;;  %s7378_s18 = sld [smem:[#allocation7 + $0x8]] }
 0x460   : > { %v1455_v44 = vmul.f32 %v1454_v60, %v7023_v6 }
 0x461   : > { %v7159_v38 = vsel %vm601_vm0, %v1974_v62, %v1975_v33  ;;  %v7214_v62 = vmul.f32 %v1454_v60, %v7093_v3  ;;  %v1913_v60 = vmul.f32 %v1911_v43, %v7093_v3  ;;  %v2225_v43 = vmul.f32 %v2223_v54, %v7093_v3 }
 0x462   : > { %v1622_v41 = vstv %s5590_s2  ;;  %s10096_s2 = smov 127   ;;  %v1688_v54 = vmul.f32 %v1686_v49, %v7093_v3  ;;  %v2347_v49 = vmul.f32 %v2345_v56, %v7093_v3 }
 0x463   : > { %v1624_v35 = vmul.f32 %v1622_v41, %v7093_v3  ;;  %v1623_v30 = vmul.f32 %v1622_v41, %v7023_v6  ;;  %v2063_v41 = vmul.f32 %v2061_v39, %v7093_v3 }
 0x464   : > { %v1605_v57 = vstv %s5589_s30  ;;  %s7195_s30 = sld [smem:[#allocation7 + $0x30]] }
 0x465   : > { %2038 = vrot.lane.b32.xlu2 %v2034_v61, %s10093_s17  ;;  %1707 = vrot.lane.b32.xlu1 %v1702_v4, %s10094_s0  ;;  %v7172_v0 = vmul.f32 %v1605_v57, %v7093_v3  ;;  %v1606_v8 = vmul.f32 %v1605_v57, %v7023_v6  ;;  %v1628_v59 = vrot.slane %v1624_v35, 1  ;;  %v1627_v47 = vrot.slane %v1623_v30, 1 }
 0x466   : > { %2052 = vrot.lane.b32.xlu0 %v2048_v14, %s10094_s0  ;;  %v1999_v4 = vstv %s7169_s13  ;;  %v2374_v57 = vmul.f32 %v2373_v32, %v7023_v6  ;;  %v1580_v35 = vmul.f32 %v1578_v53, %v7093_v3  ;;  %v1460_v30 = vrot.slane %v7214_v62, 1  ;;  %s7330_s13 = sld [smem:[#allocation7 + $0x4]] }
 0x467   : > { %v1611_v25 = vrot.slane %v7172_v0, 1  ;;  %v1610_v24 = vrot.slane %v1606_v8, 1  ;;  %v2001_v14 = vmul.f32 %v1999_v4, %v7093_v3  ;;  %v1674_v8 = vrot.slane %v1670_v13, 2 }
 0x469   : > { %v7207_v61 = vsel %vm601_vm0, %v1610_v24, %v1611_v25  ;;  %v1459_v24 = vrot.slane %v1455_v44, 1  ;;  %v9983_v44 = vstv %s7343_s6 }
 0x46a   : > { %v7387_v55 = vmul.f32 %v9983_v44, %v7093_v3  ;;  %v9994_v44 = vstv %s7456_s16 }
 0x46d   : > { %2350 = vrot.lane.b32.xlu2 %v2346_v37, %s10093_s17  ;;  %2040 = vrot.lane.b32.xlu1 %v2035_v42, %s10093_s17  ;;  %v7217_v37 = vsel %vm601_vm0, %v1627_v47, %v1628_v59  ;;  %v1675_v42 = vrot.slane %v1671_v20, 2 }
 0x46e   : > { %2364 = vrot.lane.b32.xlu0 %v2360_v36, %s10094_s0  ;;  %v2000_v36 = vmul.f32 %v1999_v4, %v7023_v6  ;;  %v7250_v4 = vsel %vm601_vm0, %v1459_v24, %v1460_v30  ;;  %v9997_v24 = vstv %s7378_s18 }
 0x46f   : > { %v7243_v5 = vsel %vm693_vm1, %v1674_v8, %v1675_v42 }
 0x470   : > { %v2004_v39 = vrot.slane %v2000_v36, 2  ;;  %v1414_v36 = vmul.f32 %v1412_v16, %v7093_v3  ;;  %v1428_v16 = vmul.f32 %v1426_v40, %v7093_v3  ;;  %v2361_v40 = vmul.f32 %v2359_v19, %v7093_v3 }
 0x471   : > { %v10002_v19 = vstv %s7324_s5  ;;  %s7621_s5 = sld [smem:[#allocation7 + $0x22]] }
 0x475   : > { %2066 = vrot.lane.b32.xlu2 %v2062_v15, %s10095_s8  ;;  %2054 = vrot.lane.b32.xlu1 %v2049_v28, %s10094_s0  ;;  %v2005_v15 = vrot.slane %v2001_v14, 2  ;;  %v2316_v28 = vrot.slane %v2312_v29, 2  ;;  %v1566_v14 = vmul.f32 %v1564_v31, %v7093_v3  ;;  %v1306_v31 = vmul.f32 %v1304_v46, %v7093_v3 }
 0x476   : > { %1297 = vrot.lane.b32.xlu0 %v1292_v34, %s10096_s2  ;;  %v2075_v34 = vstv %s7195_s30  ;;  %s7609_s30 = sld [smem:[#allocation7 + $0x11]] }
 0x477   : > { %v7235_v1 = vmul.f32 %v2075_v34, %v7093_v3  ;;  %v7240_v53 = vsel %vm693_vm1, %v2316_v28, %v2317_v58  ;;  %v2076_v20 = vmul.f32 %v2075_v34, %v7023_v6  ;;  %v7247_v47 = vsel %vm693_vm1, %v2004_v39, %v2005_v15 }
 0x478   : > { %v9981_v39 = vstv %s7372_s28 }
 0x479   : > { %v2081_v13 = vrot.slane %v7235_v1, 1  ;;  %v2080_v29 = vrot.slane %v2076_v20, 1 }
 0x47b   : > { %v7265_v62 = vsel %vm601_vm0, %v2080_v29, %v2081_v13 }
 0x47d   : > { %2378 = vrot.lane.b32.xlu2 %v2374_v57, %s10095_s8  ;;  %2068 = vrot.lane.b32.xlu1 %v2063_v41, %s10095_s8 }
 0x47e   : > { %1585 = vrot.lane.b32.xlu0 %v1580_v35, %s10092_s1 }
 0x485   : > { %1632 = vrot.lane.b32.xlu1 %v1628_v59, %s10092_s1  ;;  %1571 = vrot.lane.b32.xlu2 %v1566_v14, %s10096_s2  ;;  %v1927_v59 = vmul.f32 %v1925_v9, %v7093_v3  ;;  %v7428_v14 = vmul.f32 %v9997_v24, %v7093_v3 }
 0x486   : > { %1918 = vrot.lane.b32.xlu0 %v1913_v60, %s10096_s2  ;;  %v9987_v60 = vstv %s7390_s22 }
 0x48d   : > { %1662 = vrot.lane.b32.xlu1 %v1658_v7, %s10096_s2  ;;  %1311 = vrot.lane.b32.xlu2 %v1306_v31, %s10092_s1  ;;  %v1716_v7 = vmul.f32 %v1714_v26, %v7093_v3  ;;  %v7438_v31 = vmul.f32 %v9987_v60, %v7093_v3  ;;  %v7510_v60 = vmul.f32 %v9994_v44, %v7093_v3 }
 0x48e   : > { %2230 = vrot.lane.b32.xlu0 %v2225_v43, %s10096_s2 }
 0x495   : > { %1679 = vrot.lane.b32.xlu1 %v1675_v42, %s10092_s1  ;;  %1932 = vrot.lane.b32.xlu2 %v1927_v59, %s10092_s1  ;;  %v1331_v42 = vstv %s7330_s13  ;;  %v9996_v59 = vrot.slane %v7428_v14, 2  ;;  %s7644_s13 = sld [smem:[#allocation7 + $0x32]] }
 0x496   : > { %1419 = vrot.lane.b32.xlu0 %v1414_v36, %s10093_s17  ;;  %v9985_v36 = vrot.slane %v7438_v31, 1  ;;  %v1332_v44 = vmul.f32 %v1331_v42, %v7023_v6 }
 0x497   : > { %v7287_v46 = vpop.permute.xlu2 %1309 }
 0x49d   : > { %1979 = vrot.lane.b32.xlu1 %v1975_v33, %s10092_s1  ;;  %1693 = vrot.lane.b32.xlu2 %v1688_v54, %s10093_s17  ;;  %v2375_v33 = vmul.f32 %v2373_v32, %v7093_v3  ;;  %v7352_v32 = vmul.f32 %v10002_v19, %v7093_v3  ;;  %v9980_v54 = vstv %s7407_s14 }
 0x49e   : > { %1447 = vrot.lane.b32.xlu0 %v1442_v45, %s10095_s8  ;;  %v9990_v45 = vstv %s7414_s19 }
 0x49f   : > { %v7300_v9 = vpop.permute.xlu2 %2228  ;;  %v10001_v57 = vrot.slane %v7352_v32, 1 }
 0x4a5   : > { %2291 = vrot.lane.b32.xlu1 %v2287_v50, %s10092_s1  ;;  %1433 = vrot.lane.b32.xlu2 %v1428_v16, %s10094_s0 }
 0x4a6   : > { %2352 = vrot.lane.b32.xlu0 %v2347_v49, %s10093_s17 }
 0x4a7   : > { %v7313_v18 = vpop.permute.xlu2 %2242 }
 0x4ad   : > { %2009 = vrot.lane.b32.xlu1 %v2005_v15, %s10096_s2  ;;  %1721 = vrot.lane.b32.xlu2 %v1716_v7, %s10095_s8  ;;  %v7465_v7 = vmul.f32 %v9980_v54, %v7093_v3 }
 0x4ae   : > { %2366 = vrot.lane.b32.xlu0 %v2361_v40, %s10094_s0  ;;  %v7470_v40 = vmul.f32 %v9990_v45, %v7093_v3 }
 0x4af   : > { %v7326_v17 = vpop.permute.xlu1 %1569  ;;  %v7328_v56 = vpop.permute.xlu2 %1691 }
 0x4b0   : > { %10097 = vst [vmem:[#allocation34_spill] sm:$0xff] %v7328_v56  ;;  %v7332_v26 = vpop.permute.xlu0 %1295  ;;  %v9989_v54 = vrot.slane %v7470_v40, 2  ;;  %v10034_v56 = vstv %s7727_s26 }
 0x4b5   : > { %1464 = vrot.lane.b32.xlu1 %v1460_v30, %s10093_s17  ;;  %1615 = vrot.lane.b32.xlu2 %v1611_v25, %s10096_s2  ;;  %v7362_v25 = vmul.f32 %v1331_v42, %v7093_v3  ;;  %v9982_v30 = vrot.slane %v7387_v55, 2 }
 0x4b6   : > { %2380 = vrot.lane.b32.xlu0 %v2375_v33, %s10095_s8  ;;  %v9984_v33 = vstv %s7431_s20 }
 0x4b7   : > { %v7345_v27 = vpop.permute.xlu1 %1916  ;;  %v7347_v50 = vpop.permute.xlu2 %1719  ;;  %v1337_v41 = vrot.slane %v7362_v25, 1  ;;  %v7480_v11 = vmul.f32 %v9984_v33, %v7093_v3 }
 0x4b8   : > { %10098 = vst [vmem:[#allocation35_spill] sm:$0xff] %v7347_v50  ;;  %v7357_v0 = vpop.permute.xlu0 %1583 }
 0x4bd   : > { %2321 = vrot.lane.b32.xlu1 %v2317_v58, %s10096_s2  ;;  %1358 = vrot.lane.b32.xlu2 %v10001_v57, %s10092_s1  ;;  %v9993_v58 = vstv %s7355_s25  ;;  %v1336_v57 = vrot.slane %v1332_v44, 1  ;;  %v10010_v44 = vstv %s7538_s23 }
 0x4be   : > { %1341 = vrot.lane.b32.xlu0 %v1337_v41, %s10096_s2  ;;  %v7397_v28 = vmul.f32 %v9993_v58, %v7093_v3 }
 0x4bf   : > { %v7380_v35 = vpop.permute.xlu1 %1930  ;;  %v7382_v8 = vpop.permute.xlu2 %2038 }
 0x4c0   : > { %10099 = vst [vmem:[#allocation36_spill] sm:$0xff] %v7382_v8  ;;  %v7392_v15 = vpop.permute.xlu0 %1417  ;;  %v9991_v34 = vrot.slane %v7397_v28, 1  ;;  %v10120_v8 = vstv %s7355_s25  ;;  %s7693_s25 = sld [smem:[#allocation7 + $0x42]] }
 0x4c1   : > { %10100 = vst [vmem:[#allocation37_spill] sm:$0xff] %v7392_v15 }
 0x4c5   : > { %2085 = vrot.lane.b32.xlu1 %v2081_v13, %s10093_s17  ;;  %1388 = vrot.lane.b32.xlu2 %v9982_v30, %s10096_s2  ;;  %v7423_v13 = vmul.f32 %v9981_v39, %v7093_v3  ;;  %v9988_v39 = vrot.slane %v7480_v11, 1  ;;  %v9992_v30 = vstv %s7449_s15 }
 0x4c6   : > { %1962 = vrot.lane.b32.xlu0 %v9991_v34, %s10096_s2 }
 0x4c7   : > { %v7416_v20 = vpop.permute.xlu1 %1705  ;;  %v7418_v1 = vpop.permute.xlu2 %2350  ;;  %v9979_v43 = vrot.slane %v7423_v13, 1 }
 0x4c8   : > { %10101 = vst [vmem:[#allocation38_spill] sm:$0xff] %v7416_v20  ;;  %v7433_v29 = vpop.permute.xlu0 %1431  ;;  %v10123_v20 = vrot.slane %v7397_v28, 1 }
 0x4c9   : > { %10102 = vst [vmem:[#allocation39_spill] sm:$0xff] %v7418_v1 }
 0x4ca   : > { %10103 = vst [vmem:[#allocation40_spill] sm:$0xff] %v7433_v29  ;;  %v10039_v29 = vstv %s7759_s9 }
 0x4cd   : > { %2102 = vrot.lane.b32.xlu1 %v9979_v43, %s10094_s0  ;;  %1405 = vrot.lane.b32.xlu2 %v9996_v59, %s10092_s1  ;;  %v9986_v43 = vrot.slane %v7465_v7, 2 }
 0x4ce   : > { %2274 = vrot.lane.b32.xlu0 %v9985_v36, %s10096_s2 }
 0x4cf   : > { %v7458_v16 = vpop.permute.xlu2 %2066  ;;  %v7460_v49 = vpop.permute.xlu1 %2244 }
 0x4d0   : > { %10104 = vst [vmem:[#allocation41_spill] sm:$0xff] %v7458_v16  ;;  %v7475_v21 = vpop.permute.xlu0 %1445  ;;  %v10113_v16 = vrot.slane %v7352_v32, 1 }
 0x4d1   : > { %10105 = vst [vmem:[#allocation42_spill] sm:$0xff] %v7475_v21 }
 0x4d5   : > { %2153 = vrot.lane.b32.xlu1 %v9986_v43, %s10094_s0  ;;  %2026 = vrot.lane.b32.xlu2 %v9989_v54, %s10092_s1  ;;  %v7505_v43 = vmul.f32 %v9992_v30, %v7093_v3  ;;  %v9999_v30 = vrot.slane %v7510_v60, 1 }
 0x4d6   : > { %1738 = vrot.lane.b32.xlu0 %v9988_v39, %s10093_s17  ;;  %v9995_v39 = vstv %s7473_s21 }
 0x4d7   : > { %v7498_v33 = vpop.permute.xlu2 %2378  ;;  %v7500_v36 = vpop.permute.xlu1 %1707  ;;  %v7520_v45 = vmul.f32 %v9995_v39, %v7093_v3  ;;  %v9998_v34 = vrot.slane %v7505_v43, 2  ;;  %v10003_v39 = vstv %s7496_s24 }
 0x4d8   : > { %10106 = vst [vmem:[#allocation43_spill] sm:$0xff] %v7498_v33  ;;  %v7515_v54 = vpop.permute.xlu0 %2052 }
 0x4d9   : > { %10107 = vst [vmem:[#allocation44_spill] sm:$0xff] %v7500_v36  ;;  %v10000_v58 = vrot.slane %v7520_v45, 1 }
 0x4da   : > { %10108 = vst [vmem:[#allocation45_spill] sm:$0xff] %v7515_v54 }
 0x4dd   : > { %2465 = vrot.lane.b32.xlu1 %v9998_v34, %s10094_s0  ;;  %1755 = vrot.lane.b32.xlu2 %v9999_v30, %s10094_s0  ;;  %v7547_v34 = vmul.f32 %v10003_v39, %v7093_v3  ;;  %v10006_v30 = vstv %s7513_s27  ;;  %v1338_v39 = vsel %vm601_vm0, %v1336_v57, %v1337_v41  ;;  %v7584_v41 = vmul.f32 %v10010_v44, %v7093_v3 }
 0x4de   : > { %1481 = vrot.lane.b32.xlu0 %v10000_v58, %s10094_s0  ;;  %v7557_v58 = vmul.f32 %v10006_v30, %v7093_v3  ;;  %v1349_v30 = vmul.f32 %v10111_v23, %v7023_v6 }
 0x4df   : > { %v7540_v59 = vpop.permute.xlu1 %2040  ;;  %v7542_v24 = vpop.permute.xlu2 %1571  ;;  %v10007_v19 = vrot.slane %v7547_v34, 1  ;;  %v10013_v22 = vrot.slane %v7584_v41, 2 }
 0x4e0   : > { %10109 = vst [vmem:[#allocation46_spill] sm:$0xff] %v7540_v59  ;;  %v7552_v42 = vpop.permute.xlu0 %2364  ;;  %v10008_v10 = vrot.slane %v7557_v58, 2 }
 0x4e1   : > { %10110 = vst [vmem:[#allocation47_spill] sm:$0xff] %v7552_v42 }
 0x4e5   : > { %1339 = vrot.lane.b32.xlu1 %v1338_v39, %s10096_s2  ;;  %1498 = vrot.lane.b32.xlu2 %v10007_v19, %s10095_s8  ;;  %v10011_v39 = vstv %s7550_s4 }
 0x4e6   : > { %2338 = vrot.lane.b32.xlu0 %v10008_v10, %s10092_s1  ;;  %v7594_v19 = vmul.f32 %v10011_v39, %v7093_v3  ;;  %v1353_v10 = vrot.slane %v1349_v30, 1  ;;  %v10014_v30 = vstv %s7575_s3 }
 0x4e7   : > { %v7577_v25 = vpop.permute.xlu1 %2054  ;;  %v7579_v57 = vpop.permute.xlu2 %1311 }
 0x4e8   : > { %10112 = vst [vmem:[#allocation48_spill] sm:$0xff] %v7577_v25  ;;  %v7589_v23 = vpop.permute.xlu0 %1297  ;;  %v1355_v44 = vsel %vm601_vm0, %v1353_v10, %v10113_v16  ;;  %v10012_v36 = vrot.slane %v7594_v19, 1  ;;  %v7618_v16 = vmul.f32 %v10014_v30, %v7093_v3  ;;  %v10116_v30 = vstv %s7378_s18  ;;  %s7656_s18 = sld [smem:[#allocation7 + $0x23]] }
 0x4e9   : > { %v1396_v25 = vmul.f32 %v10116_v30, %v7023_v6 }
 0x4eb   : > { %v1400_v59 = vrot.slane %v1396_v25, 2  ;;  %v10022_v25 = vstv %s7644_s13 }
 0x4ed   : > { %1356 = vrot.lane.b32.xlu1 %v1355_v44, %s10092_s1  ;;  %1515 = vrot.lane.b32.xlu2 %v10013_v22, %s10093_s17  ;;  %v10015_v44 = vstv %s7587_s7  ;;  %v10016_v22 = vrot.slane %v7618_v16, 2 }
 0x4ee   : > { %1772 = vrot.lane.b32.xlu0 %v10012_v36, %s10095_s8  ;;  %v7628_v36 = vmul.f32 %v10015_v44, %v7093_v3  ;;  %v10018_v44 = vstv %s7609_s30 }
 0x4ef   : > { %v7611_v32 = vpop.permute.xlu1 %2068  ;;  %v7613_v10 = vpop.permute.xlu2 %1932 }
 0x4f0   : > { %10114 = vst [vmem:[#allocation49_spill] sm:$0xff] %v7611_v32  ;;  %v7623_v39 = vpop.permute.xlu0 %1585  ;;  %v10017_v32 = vrot.slane %v7628_v36, 2 }
 0x4f1   : > { %10115 = vst [vmem:[#allocation50_spill] sm:$0xff] %v7623_v39 }
 0x4f5   : > { %1660 = vrot.lane.b32.xlu1 %v7127_v51, %s10096_s2  ;;  %1532 = vrot.lane.b32.xlu2 %v10016_v22, %s10094_s0  ;;  %v7653_v51 = vmul.f32 %v10018_v44, %v7093_v3  ;;  %v10019_v22 = vstv %s7621_s5 }
 0x4f6   : > { %1789 = vrot.lane.b32.xlu0 %v10017_v32, %s10093_s17  ;;  %v7663_v32 = vmul.f32 %v10019_v22, %v7093_v3  ;;  %v1953_v22 = vmul.f32 %v10120_v8, %v7023_v6 }
 0x4f7   : > { %v7646_v33 = vpop.permute.xlu1 %1632  ;;  %v7648_v54 = vpop.permute.xlu2 %1693  ;;  %v10020_v42 = vrot.slane %v7653_v51, 2 }
 0x4f8   : > { %10117 = vst [vmem:[#allocation51_spill] sm:$0xff] %v7646_v33  ;;  %v7658_v30 = vpop.permute.xlu0 %1918  ;;  %v10021_v50 = vrot.slane %v7663_v32, 2 }
 0x4f9   : > { %10118 = vst [vmem:[#allocation52_spill] sm:$0xff] %v7648_v54  ;;  %v10119_v54 = vrot.slane %v7428_v14, 2 }
 0x4fb   : > { %v1402_v44 = vsel %vm693_vm1, %v1400_v59, %v10119_v54  ;;  %v7690_v54 = vmul.f32 %v10022_v25, %v7093_v3 }
 0x4fd   : > { %1403 = vrot.lane.b32.xlu1 %v1402_v44, %s10092_s1  ;;  %1549 = vrot.lane.b32.xlu2 %v10020_v42, %s10095_s8  ;;  %v10023_v44 = vstv %s7656_s18  ;;  %v10027_v1 = vrot.slane %v7690_v54, 1 }
 0x4fe   : > { %1806 = vrot.lane.b32.xlu0 %v10021_v50, %s10094_s0  ;;  %v7700_v42 = vmul.f32 %v10023_v44, %v7093_v3  ;;  %v1957_v50 = vrot.slane %v1953_v22, 1  ;;  %v10028_v44 = vstv %s7681_s11 }
 0x4ff   : > { %v7683_v14 = vpop.permute.xlu1 %1662  ;;  %v7685_v59 = vpop.permute.xlu2 %1433  ;;  %v7724_v28 = vmul.f32 %v10028_v44, %v7093_v3  ;;  %v10033_v44 = vstv %s7715_s29 }
 0x500   : > { %10121 = vst [vmem:[#allocation53_spill] sm:$0xff] %v7683_v14  ;;  %v7695_v8 = vpop.permute.xlu0 %2230  ;;  %v1959_v25 = vsel %vm601_vm0, %v1957_v50, %v10123_v20  ;;  %v10026_v14 = vrot.slane %v7700_v42, 2  ;;  %v10030_v20 = vstv %s7693_s25 }
 0x501   : > { %10122 = vst [vmem:[#allocation54_spill] sm:$0xff] %v7685_v59  ;;  %v10133_v59 = vrot.slane %v7470_v40, 2 }
 0x505   : > { %1960 = vrot.lane.b32.xlu1 %v1959_v25, %s10096_s2  ;;  %2119 = vrot.lane.b32.xlu2 %v10027_v1, %s10095_s8  ;;  %v10031_v1 = vrot.slane %v7724_v28, 2 }
 0x506   : > { %1823 = vrot.lane.b32.xlu0 %v10026_v14, %s10095_s8  ;;  %v7734_v14 = vmul.f32 %v10030_v20, %v7093_v3 }
 0x507   : > { %v7717_v22 = vpop.permute.xlu1 %1679  ;;  %v7719_v50 = vpop.permute.xlu2 %1721 }
 0x508   : > { %10124 = vst [vmem:[#allocation55_spill] sm:$0xff] %v7717_v22  ;;  %v7729_v25 = vpop.permute.xlu0 %1419  ;;  %v10032_v22 = vrot.slane %v7734_v14, 1 }
 0x509   : > { %10125 = vst [vmem:[#allocation56_spill] sm:$0xff] %v7719_v50 }
 0x50a   : > { %10126 = vst [vmem:[#allocation57_spill] sm:$0xff] %v7729_v25 }
 0x50d   : > { %1977 = vrot.lane.b32.xlu1 %v7159_v38, %s10092_s1  ;;  %2136 = vrot.lane.b32.xlu2 %v10031_v1, %s10093_s17  ;;  %v7756_v38 = vmul.f32 %v10033_v44, %v7093_v3  ;;  %v10130_v44 = vstv %s7414_s19  ;;  %s8141_s19 = sld [smem:[#allocation7 + $0x27]] }
 0x50e   : > { %2397 = vrot.lane.b32.xlu0 %v10032_v22, %s10093_s17  ;;  %v7766_v22 = vmul.f32 %v10034_v56, %v7093_v3  ;;  %v10038_v56 = vstv %s7747_s12 }
 0x50f   : > { %v7749_v20 = vpop.permute.xlu1 %1979  ;;  %v7751_v50 = vpop.permute.xlu2 %1615  ;;  %v10036_v33 = vrot.slane %v7756_v38, 2 }
 0x510   : > { %10127 = vst [vmem:[#allocation58_spill] sm:$0xff] %v7749_v20  ;;  %v7761_v1 = vpop.permute.xlu0 %1447  ;;  %v10037_v21 = vrot.slane %v7766_v22, 1  ;;  %v2017_v20 = vmul.f32 %v10130_v44, %v7023_v6 }
 0x511   : > { %10128 = vst [vmem:[#allocation59_spill] sm:$0xff] %v7751_v50 }
 0x512   : > { %10129 = vst [vmem:[#allocation60_spill] sm:$0xff] %v7761_v1 }
 0x515   : > { %2289 = vrot.lane.b32.xlu1 %v7182_v52, %s10092_s1  ;;  %2448 = vrot.lane.b32.xlu2 %v10036_v33, %s10093_s17  ;;  %v7789_v52 = vmul.f32 %v10038_v56, %v7093_v3  ;;  %v7799_v33 = vmul.f32 %v10039_v29, %v7093_v3  ;;  %v10134_v29 = vstv %s7473_s21  ;;  %s6316_s21 = smov 48  }
 0x516   : > { %2414 = vrot.lane.b32.xlu0 %v10037_v21, %s10094_s0  ;;  %v2021_v21 = vrot.slane %v2017_v20, 2 }
 0x517   : > { %v7782_v1 = vpop.permute.xlu1 %2291  ;;  %v7784_v50 = vpop.permute.xlu2 %1358  ;;  %v10042_v56 = vrot.slane %v7799_v33, 1 }
 0x518   : > { %10131 = vst [vmem:[#allocation61_spill] sm:$0xff] %v7782_v1  ;;  %v7794_v44 = vpop.permute.xlu0 %2352  ;;  %v10040_v1 = vrot.slane %v7789_v52, 2  ;;  %v2023_v15 = vsel %vm693_vm1, %v2021_v21, %v10133_v59  ;;  %v10043_v59 = vstv %s7792_s10 }
 0x519   : > { %10132 = vst [vmem:[#allocation62_spill] sm:$0xff] %v7794_v44  ;;  %v1472_v44 = vmul.f32 %v10134_v29, %v7023_v6 }
 0x51b   : > { %v1476_v39 = vrot.slane %v1472_v44, 1 }
 0x51d   : > { %2024 = vrot.lane.b32.xlu1 %v2023_v15, %s10092_s1  ;;  %2482 = vrot.lane.b32.xlu2 %v10040_v1, %s10095_s8  ;;  %v7826_v15 = vmul.f32 %v10043_v59, %v7093_v3  ;;  %v10137_v1 = vrot.slane %v7520_v45, 1  ;;  %v10139_v59 = vstv %s7513_s27  ;;  %s5692_s27 = sld [smem:[#allocation10 + $0x1c]] }
 0x51e   : > { %2431 = vrot.lane.b32.xlu0 %v10042_v56, %s10095_s8  ;;  %v10138_v56 = vstv %s7390_s22  ;;  %v2329_v44 = vmul.f32 %v10139_v59, %v7023_v6  ;;  %s8132_s22 = sld [smem:[#allocation8 + $0x2]] }
 0x51f   : > { %v7816_v40 = vpop.permute.xlu1 %2009  ;;  %v7818_v21 = vpop.permute.xlu2 %1388  ;;  %v1478_v29 = vsel %vm601_vm0, %v1476_v39, %v10137_v1  ;;  %v10044_v63 = vrot.slane %v7826_v15, 2 }
 0x520   : > { %10135 = vst [vmem:[#allocation63_spill] sm:$0xff] %v7816_v40  ;;  %v7821_v20 = vpop.permute.xlu0 %2366  ;;  %v2333_v40 = vrot.slane %v2329_v44, 2 }
 0x521   : > { %10136 = vst [vmem:[#allocation64_spill] sm:$0xff] %v7821_v20  ;;  %v2265_v20 = vmul.f32 %v10138_v56, %v7023_v6  ;;  %v10143_v56 = vrot.slane %v7438_v31, 1 }
 0x525   : > { %1479 = vrot.lane.b32.xlu1 %v1478_v29, %s10094_s0  ;;  %1613 = vrot.lane.b32.xlu2 %v7207_v61, %s10096_s2  ;;  %v2269_v29 = vrot.slane %v2265_v20, 1  ;;  %v10142_v61 = vrot.slane %v7557_v58, 2  ;;  %v10146_v58 = vstv %s7343_s6  ;;  %s8124_s6 = sld [smem:[#allocation7 + $0x6]] }
 0x526   : > { %2170 = vrot.lane.b32.xlu0 %v10044_v63, %s10095_s8  ;;  %v10144_v63 = vstv %s7431_s20  ;;  %s8153_s20 = sld [smem:[#allocation7 + $0x39]] }
 0x527   : > { %v7844_v1 = vpop.permute.xlu1 %1464  ;;  %v7846_v45 = vpop.permute.xlu2 %1405  ;;  %v2335_v25 = vsel %vm693_vm1, %v2333_v40, %v10142_v61  ;;  %v2271_v59 = vsel %vm601_vm0, %v2269_v29, %v10143_v56  ;;  %v1379_v40 = vmul.f32 %v10146_v58, %v7023_v6  ;;  %v10151_v58 = vrot.slane %v7387_v55, 2 }
 0x528   : > { %10140 = vst [vmem:[#allocation65_spill] sm:$0xff] %v7844_v1  ;;  %v7848_v39 = vpop.permute.xlu0 %2380  ;;  %v1729_v1 = vmul.f32 %v10144_v63, %v7023_v6  ;;  %v10149_v63 = vrot.slane %v7584_v41, 2  ;;  %v10156_v55 = vstv %s7550_s4  ;;  %s5691_s4 = sld [smem:[#allocation10 + $0x1b]] }
 0x529   : > { %10141 = vst [vmem:[#allocation66_spill] sm:$0xff] %v7848_v39  ;;  %v10145_v39 = vstv %s7538_s23  ;;  %v1383_v56 = vrot.slane %v1379_v40, 2  ;;  %s10296_s23 = sld [smem:[#allocation110_spill]] }
 0x52a   : > { %v1506_v20 = vmul.f32 %v10145_v39, %v7023_v6  ;;  %v1733_v29 = vrot.slane %v1729_v1, 1 }
 0x52b   : > { %v1385_v1 = vsel %vm693_vm1, %v1383_v56, %v10151_v58  ;;  %v1763_v56 = vmul.f32 %v10156_v55, %v7023_v6 }
 0x52c   : > { %v1510_v61 = vrot.slane %v1506_v20, 2  ;;  %v10152_v20 = vstv %s7621_s5  ;;  %s5822_s5 = sld [smem:[#allocation10 + $0x91]] }
 0x52d   : > { %2336 = vrot.lane.b32.xlu1 %v2335_v25, %s10092_s1  ;;  %2272 = vrot.lane.b32.xlu2 %v2271_v59, %s10096_s2  ;;  %v1797_v40 = vmul.f32 %v10152_v20, %v7023_v6  ;;  %v1767_v20 = vrot.slane %v1763_v56, 1  ;;  %v10163_v56 = vstv %s7693_s25  ;;  %s6323_s25 = smov 109  }
 0x52e   : > { %1630 = vrot.lane.b32.xlu0 %v7217_v37, %s10092_s1  ;;  %v1512_v39 = vsel %vm693_vm1, %v1510_v61, %v10149_v63  ;;  %v10150_v37 = vrot.slane %v7480_v11, 1  ;;  %v10155_v63 = vrot.slane %v7663_v32, 2 }
 0x52f   : > { %v7869_v31 = vpop.permute.xlu1 %2321  ;;  %v7871_v44 = vpop.permute.xlu2 %2026 }
 0x530   : > { %10147 = vst [vmem:[#allocation67_spill] sm:$0xff] %v7869_v31  ;;  %v7873_v25 = vpop.permute.xlu0 %1341  ;;  %v1735_v59 = vsel %vm601_vm0, %v1733_v29, %v10150_v37  ;;  %v1801_v29 = vrot.slane %v1797_v40, 2  ;;  %v10157_v37 = vstv %s7609_s30  ;;  %s6322_s30 = smov 116  }
 0x531   : > { %10148 = vst [vmem:[#allocation68_spill] sm:$0xff] %v7871_v44 }
 0x535   : > { %1513 = vrot.lane.b32.xlu1 %v1512_v39, %s10093_s17  ;;  %1736 = vrot.lane.b32.xlu2 %v1735_v59, %s10093_s17  ;;  %v1803_v39 = vsel %vm693_vm1, %v1801_v29, %v10155_v63  ;;  %v1540_v59 = vmul.f32 %v10157_v37, %v7023_v6  ;;  %v10160_v29 = vrot.slane %v7653_v51, 2  ;;  %v10161_v63 = vrot.slane %v7594_v19, 1 }
 0x536   : > { %1386 = vrot.lane.b32.xlu0 %v1385_v1, %s10096_s2  ;;  %v2388_v37 = vmul.f32 %v10163_v56, %v7023_v6  ;;  %v10170_v56 = vstv %s7727_s26  ;;  %s8111_s26 = sld [smem:[#allocation7 + $0x36]] }
 0x537   : > { %v7890_v41 = vpop.permute.xlu1 %2085  ;;  %v7892_v61 = vpop.permute.xlu2 %1755  ;;  %v1544_v40 = vrot.slane %v1540_v59, 2 }
 0x538   : > { %10153 = vst [vmem:[#allocation69_spill] sm:$0xff] %v7890_v41  ;;  %v7894_v11 = vpop.permute.xlu0 %1962  ;;  %v1365_v41 = vstv %s8124_s6  ;;  %s5684_s6 = sld [smem:[#allocation10 + $0x14]] }
 0x539   : > { %10154 = vst [vmem:[#allocation70_spill] sm:$0xff] %v7892_v61 }
 0x53d   : > { %1804 = vrot.lane.b32.xlu1 %v1803_v39, %s10094_s0  ;;  %2319 = vrot.lane.b32.xlu2 %v7240_v53, %s10096_s2  ;;  %v1546_v53 = vsel %vm693_vm1, %v1544_v40, %v10160_v29  ;;  %v1769_v39 = vsel %vm601_vm0, %v1767_v20, %v10161_v63  ;;  %v2392_v40 = vrot.slane %v2388_v37, 1  ;;  %v10167_v29 = vrot.slane %v7734_v14, 1 }
 0x53e   : > { %1677 = vrot.lane.b32.xlu0 %v7243_v5, %s10092_s1  ;;  %v10162_v5 = vstv %s7575_s3  ;;  %v10168_v63 = vrot.slane %v7618_v16, 2  ;;  %v10171_v14 = vstv %s7456_s16  ;;  %s8171_s16 = sld [smem:[#allocation7 + $0x3c]]  ;;  %s6320_s3 = smov 108  }
 0x53f   : > { %v7910_v58 = vpop.permute.xlu1 %2102  ;;  %v7912_v32 = vpop.permute.xlu2 %1498  ;;  %v1523_v55 = vmul.f32 %v10162_v5, %v7023_v6  ;;  %v1746_v16 = vmul.f32 %v10171_v14, %v7023_v6  ;;  %v10176_v14 = vrot.slane %v7510_v60, 1 }
 0x540   : > { %10158 = vst [vmem:[#allocation71_spill] sm:$0xff] %v7910_v58  ;;  %v7914_v1 = vpop.permute.xlu0 %2274 }
 0x541   : > { %10159 = vst [vmem:[#allocation72_spill] sm:$0xff] %v7912_v32  ;;  %v1527_v20 = vrot.slane %v1523_v55, 2  ;;  %v2405_v55 = vmul.f32 %v10170_v56, %v7023_v6  ;;  %v10175_v56 = vrot.slane %v7423_v13, 1  ;;  %v10179_v13 = vstv %s7496_s24  ;;  %s5712_s24 = sld [smem:[#allocation10 + $0x2f]] }
 0x545   : > { %1547 = vrot.lane.b32.xlu1 %v1546_v53, %s10095_s8  ;;  %1770 = vrot.lane.b32.xlu2 %v1769_v39, %s10095_s8  ;;  %v2394_v53 = vsel %vm601_vm0, %v2392_v40, %v10167_v29  ;;  %v1529_v39 = vsel %vm693_vm1, %v1527_v20, %v10168_v63  ;;  %v1750_v63 = vrot.slane %v1746_v16, 1 }
 0x546   : > { %2007 = vrot.lane.b32.xlu0 %v7247_v47, %s10096_s2  ;;  %v10169_v47 = vstv %s7372_s28  ;;  %s8129_s28 = sld [smem:[#allocation7 + $0x15]] }
 0x547   : > { %v7932_v51 = vpop.permute.xlu1 %2153  ;;  %v7934_v19 = vpop.permute.xlu2 %1515  ;;  %v2093_v5 = vmul.f32 %v10169_v47, %v7023_v6 }
 0x548   : > { %10164 = vst [vmem:[#allocation73_spill] sm:$0xff] %v7932_v51  ;;  %v7936_v59 = vpop.permute.xlu0 %1738  ;;  %v1752_v51 = vsel %vm601_vm0, %v1750_v63, %v10176_v14 }
 0x549   : > { %10165 = vst [vmem:[#allocation74_spill] sm:$0xff] %v7934_v19  ;;  %v2097_v29 = vrot.slane %v2093_v5, 1  ;;  %v10177_v5 = vstv %s7644_s13  ;;  %s5703_s13 = sld [smem:[#allocation10 + $0x26]] }
 0x54a   : > { %10166 = vst [vmem:[#allocation75_spill] sm:$0xff] %v7936_v59 }
 0x54d   : > { %2395 = vrot.lane.b32.xlu1 %v2394_v53, %s10093_s17  ;;  %1530 = vrot.lane.b32.xlu2 %v1529_v39, %s10094_s0  ;;  %v2409_v53 = vrot.slane %v2405_v55, 1  ;;  %v10174_v39 = vrot.slane %v7766_v22, 1  ;;  %v2110_v55 = vmul.f32 %v10177_v5, %v7023_v6  ;;  %v10178_v22 = vstv %s7759_s9  ;;  %s1283_s9 = sld [smem:[#allocation7]] }
 0x54e   : > { %1462 = vrot.lane.b32.xlu0 %v7250_v4, %s10093_s17  ;;  %v2099_v4 = vsel %vm601_vm0, %v2097_v29, %v10175_v56  ;;  %v2422_v16 = vmul.f32 %v10178_v22, %v7023_v6  ;;  %v1489_v29 = vmul.f32 %v10179_v13, %v7023_v6  ;;  %v10183_v5 = vrot.slane %v7690_v54, 1 }
 0x54f   : > { %v7957_v37 = vpop.permute.xlu1 %2465  ;;  %v7959_v20 = vpop.permute.xlu2 %1532  ;;  %v2411_v47 = vsel %vm601_vm0, %v2409_v53, %v10174_v39  ;;  %v2114_v63 = vrot.slane %v2110_v55, 1  ;;  %v10184_v22 = vrot.slane %v7547_v34, 1  ;;  %v10185_v55 = vstv %s7681_s11  ;;  %s5569_s11 = sld [smem:[#allocation7 + $0x3]] }
 0x550   : > { %10172 = vst [vmem:[#allocation76_spill] sm:$0xff] %v7957_v37  ;;  %v7961_v40 = vpop.permute.xlu0 %1481  ;;  %v1493_v56 = vrot.slane %v1489_v29, 1  ;;  %v10187_v54 = vstv %s7587_s7  ;;  %s6321_s7 = smov 115  }
 0x551   : > { %10173 = vst [vmem:[#allocation77_spill] sm:$0xff] %v7959_v20 }
 0x552   : > { %v1495_v13 = vsel %vm601_vm0, %v1493_v56, %v10184_v22 }
 0x555   : > { %2412 = vrot.lane.b32.xlu1 %v2411_v47, %s10094_s0  ;;  %2100 = vrot.lane.b32.xlu2 %v2099_v4, %s10094_s0  ;;  %v2426_v47 = vrot.slane %v2422_v16, 1  ;;  %v10182_v4 = vrot.slane %v7799_v33, 1  ;;  %v2127_v16 = vmul.f32 %v10185_v55, %v7023_v6  ;;  %v10186_v33 = vstv %s7715_s29  ;;  %s8115_s29 = sld [smem:[#allocation8 + $0x1]] }
 0x556   : > { %1753 = vrot.lane.b32.xlu0 %v1752_v51, %s10094_s0  ;;  %v2116_v51 = vsel %vm601_vm0, %v2114_v63, %v10183_v5  ;;  %v2439_v29 = vmul.f32 %v10186_v33, %v7023_v6  ;;  %v1780_v63 = vmul.f32 %v10187_v54, %v7023_v6  ;;  %v10191_v55 = vrot.slane %v7724_v28, 2 }
 0x557   : > { %v7984_v53 = vpop.permute.xlu1 %1339  ;;  %v7986_v39 = vpop.permute.xlu2 %1549  ;;  %v2428_v14 = vsel %vm601_vm0, %v2426_v47, %v10182_v4  ;;  %v2131_v56 = vrot.slane %v2127_v16, 2  ;;  %v10192_v33 = vrot.slane %v7628_v36, 2  ;;  %v10194_v54 = vstv %s7449_s15  ;;  %s8164_s15 = sld [smem:[#allocation7 + $0x2a]] }
 0x558   : > { %10180 = vst [vmem:[#allocation78_spill] sm:$0xff] %v7986_v39  ;;  %v7988_v60 = vpop.permute.xlu0 %2338  ;;  %v1784_v5 = vrot.slane %v1780_v63, 2  ;;  %v2456_v63 = vmul.f32 %v10194_v54, %v7023_v6  ;;  %v10197_v36 = vrot.slane %v7505_v43, 2  ;;  %v10201_v43 = vstv %s7656_s18  ;;  %s5702_s18 = sld [smem:[#allocation10 + $0x25]] }
 0x559   : > { %10181 = vst [vmem:[#allocation79_spill] sm:$0xff] %v7988_v60 }
 0x55a   : > { %v1786_v16 = vsel %vm693_vm1, %v1784_v5, %v10192_v33  ;;  %v10199_v33 = vstv %s7747_s12  ;;  %s8107_s12 = sld [smem:[#allocation8 + $0x3]] }
 0x55d   : > { %2429 = vrot.lane.b32.xlu1 %v2428_v14, %s10095_s8  ;;  %2117 = vrot.lane.b32.xlu2 %v2116_v51, %s10095_s8  ;;  %v2443_v14 = vrot.slane %v2439_v29, 2  ;;  %v10190_v51 = vrot.slane %v7756_v38, 2  ;;  %v10193_v29 = vstv %s7407_s14  ;;  %s8136_s14 = sld [smem:[#allocation7 + $0x18]] }
 0x55e   : > { %1496 = vrot.lane.b32.xlu0 %v1495_v13, %s10095_s8  ;;  %v2133_v13 = vsel %vm693_vm1, %v2131_v56, %v10191_v55  ;;  %v2144_v38 = vmul.f32 %v10193_v29, %v7023_v6  ;;  %v10198_v55 = vrot.slane %v7465_v7, 2  ;;  %v10200_v29 = vstv %s7792_s10  ;;  %s1281_s10 = sld [smem:[#allocation8]] }
 0x55f   : > { %v8011_v47 = vpop.permute.xlu1 %1356  ;;  %v8013_v4 = vpop.permute.xlu2 %2119  ;;  %v2445_v22 = vsel %vm693_vm1, %v2443_v14, %v10190_v51  ;;  %v2161_v54 = vmul.f32 %v10200_v29, %v7023_v6  ;;  %v10206_v29 = vrot.slane %v7700_v42, 2 }
 0x560   : > { %10188 = vst [vmem:[#allocation80_spill] sm:$0xff] %v8013_v4  ;;  %v8015_v34 = vpop.permute.xlu0 %1772  ;;  %v2148_v51 = vrot.slane %v2144_v38, 2  ;;  %v1814_v38 = vmul.f32 %v10201_v43, %v7023_v6 }
 0x561   : > { %10189 = vst [vmem:[#allocation81_spill] sm:$0xff] %v8015_v34  ;;  %v1318_v34 = vstv %s5569_s11  ;;  %s10297_s11 = sld [smem:[#allocation109_spill]] }
 0x565   : > { %2446 = vrot.lane.b32.xlu1 %v2445_v22, %s10093_s17  ;;  %2134 = vrot.lane.b32.xlu2 %v2133_v13, %s10093_s17  ;;  %v2460_v22 = vrot.slane %v2456_v63, 2  ;;  %v2150_v13 = vsel %vm693_vm1, %v2148_v51, %v10198_v55  ;;  %v10204_v55 = vrot.slane %v7789_v52, 2 }
 0x566   : > { %1787 = vrot.lane.b32.xlu0 %v1786_v16, %s10093_s17  ;;  %v2473_v16 = vmul.f32 %v10199_v33, %v7023_v6  ;;  %v10205_v33 = vrot.slane %v7826_v15, 2 }
 0x567   : > { %v8035_v28 = vpop.permute.xlu1 %1660  ;;  %v8037_v56 = vpop.permute.xlu2 %2136  ;;  %v2462_v5 = vsel %vm693_vm1, %v2460_v22, %v10197_v36  ;;  %v2165_v22 = vrot.slane %v2161_v54, 2 }
 0x568   : > { %10195 = vst [vmem:[#allocation82_spill] sm:$0xff] %v8037_v56  ;;  %v8039_v14 = vpop.permute.xlu0 %1789  ;;  %v2477_v51 = vrot.slane %v2473_v16, 2 }
 0x569   : > { %10196 = vst [vmem:[#allocation83_spill] sm:$0xff] %v8039_v14 }
 0x56d   : > { %2463 = vrot.lane.b32.xlu1 %v2462_v5, %s10094_s0  ;;  %2151 = vrot.lane.b32.xlu2 %v2150_v13, %s10094_s0  ;;  %v1818_v5 = vrot.slane %v1814_v38, 2  ;;  %v2479_v13 = vsel %vm693_vm1, %v2477_v51, %v10204_v55  ;;  %s8119_s0 = sld [smem:[#allocation7 + $0x12]] }
 0x56e   : > { %2083 = vrot.lane.b32.xlu0 %v7265_v62, %s10093_s17  ;;  %v2167_v62 = vsel %vm693_vm1, %v2165_v22, %v10205_v33 }
 0x56f   : > { %v8060_v63 = vpop.permute.xlu1 %1403  ;;  %v8064_v36 = vpop.permute.xlu2 %2448  ;;  %v1820_v16 = vsel %vm693_vm1, %v1818_v5, %v10206_v29  ;;  %v1284_v29 = vstv %s1283_s9  ;;  %s6324_s9 = smov 110  }
 0x570   : > { %v8062_v7 = vpop.permute.xlu0 %1806  ;;  %10203 = vst [vmem:[#allocation85_spill] sm:$0xff] %v8064_v36  ;;  %v1319_v36 = vmul.f32 %v1318_v34, %v7023_v6 }
 0x571   : > { %10202 = vst [vmem:[#allocation84_spill] sm:$0xff] %v8062_v7 }
 0x572   : > { %v1323_v59 = vrot.slane %v1319_v36, 1  ;;  %v1903_v36 = vstv %s8132_s22  ;;  %s5673_s22 = sld [smem:[#allocation10 + $0x9]] }
 0x575   : > { %2480 = vrot.lane.b32.xlu1 %v2479_v13, %s10095_s8  ;;  %2168 = vrot.lane.b32.xlu2 %v2167_v62, %s10095_s8 }
 0x576   : > { %1821 = vrot.lane.b32.xlu0 %v1820_v16, %s10095_s8  ;;  %s8121_s8 = sld [smem:[#allocation7 + $0x24]] }
 0x577   : > { %v8078_v54 = vpop.permute.xlu1 %1960  ;;  %v8082_v52 = vpop.permute.xlu2 %2482 }
 0x578   : > { %v8080_v43 = vpop.permute.xlu0 %1823  ;;  %10208 = vst [vmem:[#allocation87_spill] sm:$0xff] %v8082_v52  ;;  %v1282_v52 = vstv %s1281_s10  ;;  %s5861_s10 = sld [smem:[#allocation10 + $0xb5]] }
 0x579   : > { %10207 = vst [vmem:[#allocation86_spill] sm:$0xff] %v8080_v43  ;;  %v1286_v43 = vmul.f32 %v1284_v29, %v7093_v3 }
 0x57b   : > { %v1288_v7 = vadd.f32 %v1286_v43, %v1282_v52  ;;  %v1320_v43 = vmul.f32 %v1318_v34, %v7093_v3  ;;  %v1367_v34 = vmul.f32 %v1365_v41, %v7093_v3 }
 0x57d   : > { %v1302_v37 = vadd.f32 %v7589_v23, %v1288_v7  ;;  %v1324_v7 = vrot.slane %v1320_v43, 1 }
 0x57f   : > { %v8084_v38 = vpop.permute.xlu1 %1977  ;;  %v8088_v51 = vpop.permute.xlu2 %1613  ;;  %v1316_v58 = vadd.f32 %v7579_v57, %v1302_v37  ;;  %v2217_v37 = vstv %s8111_s26  ;;  %s5862_s26 = sld [smem:[#allocation10 + $0xb6]] }
 0x580   : > { %v8086_v15 = vpop.permute.xlu0 %2397  ;;  %v2219_v60 = vmul.f32 %v2217_v37, %v7093_v3 }
 0x581   : > { %10209 = vst [vmem:[#allocation88_spill] sm:$0xff] %v8086_v15  ;;  %v1329_v57 = vadd.f32 %v1324_v7, %v1316_v58  ;;  %v1592_v15 = vstv %s8129_s28  ;;  %v2218_v58 = vmul.f32 %v2217_v37, %v7023_v6  ;;  %s5674_s28 = sld [smem:[#allocation10 + $0xa]] }
 0x583   : > { %v1346_v43 = vadd.f32 %v7873_v25, %v1329_v57 }
 0x585   : > { %v1363_v57 = vadd.f32 %v7784_v50, %v1346_v43  ;;  %v1371_v50 = vrot.slane %v1367_v34, 2  ;;  %v1939_v43 = vstv %s8141_s19  ;;  %s5693_s19 = sld [smem:[#allocation10 + $0x1d]] }
 0x586   : > { %v1940_v34 = vmul.f32 %v1939_v43, %v7023_v6 }
 0x587   : > { %v8090_v22 = vpop.permute.xlu1 %2289  ;;  %v8096_v5 = vpop.permute.xlu2 %2272 }
 0x588   : > { %v8092_v55 = vpop.permute.xlu0 %2414 }
 0x589   : > { %10210 = vst [vmem:[#allocation89_spill] sm:$0xff] %v8092_v55  ;;  %v1556_v55 = vstv %s8115_s29  ;;  %s5675_s29 = sld [smem:[#allocation10 + $0xb]] }
 0x58f   : > { %v8094_v42 = vpop.permute.xlu1 %2024  ;;  %v8104_v16 = vpop.permute.xlu2 %1736 }
 0x590   : > { %10211 = vst [vmem:[#allocation90_spill] sm:$0xff] %v8094_v42  ;;  %v8098_v13 = vpop.permute.xlu0 %2431  ;;  %v1639_v42 = vstv %s8136_s14  ;;  %s6317_s14 = smov 120  }
 0x591   : > { %10212 = vst [vmem:[#allocation91_spill] sm:$0xff] %v8098_v13  ;;  %v2215_v13 = vstv %s8107_s12  ;;  %s5710_s12 = sld [smem:[#allocation10 + $0x2d]] }
 0x592   : > { %10215 = vst [vmem:[#allocation94_spill] sm:$0xff] %v8104_v16 }
 0x597   : > { %v8100_v33 = vpop.permute.xlu1 %1479  ;;  %v8126_v4 = vpop.permute.xlu2 %2319 }
 0x598   : > { %10213 = vst [vmem:[#allocation92_spill] sm:$0xff] %v8100_v33  ;;  %v8102_v62 = vpop.permute.xlu0 %2170 }
 0x599   : > { %10214 = vst [vmem:[#allocation93_spill] sm:$0xff] %v8102_v62  ;;  %v1285_v62 = vmul.f32 %v1284_v29, %v7023_v6 }
 0x59b   : > { %v1287_v61 = vadd.f32 %v1285_v62, %v1282_v52  ;;  %v1558_v62 = vstv %s8119_s0  ;;  %s5666_s0 = sld [smem:[#allocation10 + $0x2]] }
 0x59c   : > { %v1559_v39 = vmul.f32 %v1558_v62, %v7023_v6 }
 0x59d   : > { %v1301_v23 = vadd.f32 %v7332_v26, %v1287_v61  ;;  %v1905_v61 = vstv %s8121_s8  ;;  %s5665_s8 = sld [smem:[#allocation10 + $0x1]] }
 0x59e   : > { %v1906_v16 = vmul.f32 %v1905_v61, %v7023_v6  ;;  %v1907_v44 = vmul.f32 %v1905_v61, %v7093_v3 }
 0x59f   : > { %v8109_v14 = vpop.permute.xlu1 %2336  ;;  %v1315_v26 = vadd.f32 %v7287_v46, %v1301_v23  ;;  %v1325_v46 = vsel %vm601_vm0, %v1323_v59, %v1324_v7  ;;  %v8159_v25 = vpop.permute.xlu2 %1770  ;;  %v1560_v23 = vmul.f32 %v1558_v62, %v7093_v3  ;;  %v1366_v59 = vmul.f32 %v1365_v41, %v7023_v6 }
 0x5a0   : > { %10216 = vst [vmem:[#allocation95_spill] sm:$0xff] %v8109_v14  ;;  %v8113_v56 = vpop.permute.xlu0 %1630  ;;  %v8177_v62 = vmul.f32 %v1592_v15, %v7093_v3  ;;  %v1908_v61 = vadd.f32 %v1906_v16, %v1903_v36  ;;  %v1376_v41 = vadd.f32 %v1371_v50, %v1363_v57  ;;  %v10220_v16 = vmov 0.0  }
 0x5a1   : > { %10218 = vst [vmem:[#allocation97_spill] sm:$0xff] %v8159_v25  ;;  %v1328_v20 = vadd.f32 %v1325_v46, %v1315_v26  ;;  %v2220_v46 = vadd.f32 %v2218_v58, %v2215_v13  ;;  %v8182_v25 = vmul.f32 %v1639_v42, %v7093_v3  ;;  %v1562_v32 = vadd.f32 %v1560_v23, %v1556_v55 }
 0x5a2   : > { %v1370_v33 = vrot.slane %v1366_v59, 2  ;;  %v2221_v58 = vadd.f32 %v2219_v60, %v2215_v13  ;;  %v1986_v23 = vstv %s8164_s15  ;;  %s5682_s15 = sld [smem:[#allocation10 + $0x12]] }
 0x5a3   : > { %v1345_v26 = vadd.f32 %v7984_v53, %v1328_v20  ;;  %v1941_v53 = vmul.f32 %v1939_v43, %v7093_v3 }
 0x5a4   : > { %v2235_v13 = vadd.f32 %v7695_v8, %v2221_v58  ;;  %v1640_v8 = vmul.f32 %v1639_v42, %v7023_v6  ;;  %v1576_v58 = vadd.f32 %v7542_v24, %v1562_v32 }
 0x5a5   : > { %v1362_v14 = vadd.f32 %v8011_v47, %v1345_v26  ;;  %v1944_v26 = vrot.slane %v1940_v34, 1  ;;  %v1945_v60 = vrot.slane %v1941_v53, 1 }
 0x5a7   : > { %v8134_v29 = vpop.permute.xlu1 %1513  ;;  %v8208_v47 = vpop.permute.xlu2 %1530  ;;  %v1946_v32 = vsel %vm601_vm0, %v1944_v26, %v1945_v60  ;;  %v10228_v26 = vld [vmem:[#allocation54_spill] sm:$0xff] }
 0x5a8   : > { %10217 = vst [vmem:[#allocation96_spill] sm:$0xff] %v8134_v29  ;;  %v8139_v52 = vpop.permute.xlu0 %1386  ;;  %v1593_v29 = vmul.f32 %v1592_v15, %v7023_v6  ;;  %v1909_v15 = vadd.f32 %v1907_v44, %v1903_v36  ;;  %v1393_v36 = vadd.f32 %v7818_v21, %v1376_v41 }
 0x5aa   : > { %v1597_v31 = vrot.slane %v1593_v29, 1  ;;  %v1372_v29 = vsel %vm693_vm1, %v1370_v33, %v1371_v50  ;;  %v10222_v33 = vmov 1.0   ;;  %v1923_v21 = vadd.f32 %v7658_v30, %v1909_v15 }
 0x5ab   : > { %v1375_v57 = vadd.f32 %v1372_v29, %v1362_v14  ;;  %v10223_v29 = vrot.slane %v8177_v62, 1 }
 0x5ad   : > { %v1392_v14 = vadd.f32 %v8139_v52, %v1375_v57  ;;  %v2234_v52 = vadd.f32 %v7300_v9, %v2220_v46  ;;  %v2249_v9 = vadd.f32 %v7460_v49, %v2235_v13 }
 0x5af   : > { %v8166_v19 = vpop.permute.xlu1 %1804 }
 0x5b0   : > { %10219 = vst [vmem:[#allocation98_spill] sm:$0xff] %v8166_v19  ;;  %v8174_v7 = vpop.permute.xlu0 %1677  ;;  %v1561_v19 = vadd.f32 %v1559_v39, %v1556_v55  ;;  %v2251_v39 = vstv %s8153_s20  ;;  %v5529_v55 = vsel %vm776_vm9, 1.0, %v10220_v16  ;;  %s5683_s20 = sld [smem:[#allocation10 + $0x13]]  ;;  %vm3239_vm9 = vcmask 31744  }
 0x5b1   : > { %v2253_v44 = vmul.f32 %v2251_v39, %v7093_v3  ;;  %5609 = vmatpush.msk.msrb.mxu3 %vm1062_vm3, %v5529_v55  ;;  %v2252_v50 = vmul.f32 %v2251_v39, %v7023_v6  ;;  %v1937_v39 = vadd.f32 %v7613_v10, %v1923_v21  ;;  %v10224_v10 = vld [vmem:[#allocation57_spill] sm:$0xff] }
 0x5b2   : > { %v1575_v37 = vadd.f32 %v7326_v17, %v1561_v19  ;;  %v8205_v17 = vmul.f32 %v1986_v23, %v7093_v3  ;;  %v2298_v19 = vstv %s8171_s16  ;;  %s6318_s16 = smov 121  }
 0x5b3   : > { %5610 = vmatpush.msk.msrb.mxu3 %vm775_vm10, %v10222_v33  ;;  %v2257_v41 = vrot.slane %v2253_v44, 1  ;;  %v8222_v34 = vmul.f32 %v2298_v19, %v7093_v3  ;;  %v2299_v30 = vmul.f32 %v2298_v19, %v7023_v6  ;;  %v1922_v3 = vadd.f32 %v7345_v27, %v1908_v61 }
 0x5b4   : > { %v1589_v43 = vadd.f32 %v7357_v0, %v1575_v37  ;;  %v2176_v0 = vadd.s32 24, %v6763_v12  ;;  %v1410_v37 = vadd.f32 %v7846_v45, %v1393_v36  ;;  %v1409_v45 = vadd.f32 %v8060_v63, %v1392_v14 }
 0x5b5   : > { %v1987_v44 = vmul.f32 %v1986_v23, %v7023_v6  ;;  %v1936_v46 = vadd.f32 %v7380_v35, %v1922_v3  ;;  %v1992_v27 = vrot.slane %v8205_v17, 2  ;;  %v2256_v61 = vrot.slane %v2252_v50, 1  ;;  %v10236_v6 = vld [vmem:[#allocation42_spill] sm:$0xff] }
 0x5b6   : > { %vm2177_vm15 = vcmp.eq.s32.totalorder %v6749_v2, %v2176_v0  ;;  %v1424_v36 = vadd.f32 %v10224_v10, %v1410_v37  ;;  %v2304_v49 = vrot.slane %v8222_v34, 2  ;;  %v1950_v23 = vadd.f32 %v1945_v60, %v1937_v39  ;;  %v8258_v0 = vpop.permute.xlu2 %2100 }
 0x5b7   : > { %v8201_v59 = vpop.permute.xlu1 %1547  ;;  %v5632_v53 = vsel %vm2177_vm15, 1.0, %v10220_v16  ;;  %v2258_v57 = vsel %vm601_vm0, %v2256_v61, %v2257_v41  ;;  %v2262_v19 = vadd.f32 %v2257_v41, %v2249_v9  ;;  %v2303_v14 = vrot.slane %v2299_v30, 2 }
 0x5b8   : > { %10221 = vst [vmem:[#allocation99_spill] sm:$0xff] %v8201_v59  ;;  %v8210_v20 = vpop.permute.xlu0 %2007  ;;  %v1599_v59 = vsel %vm601_vm0, %v1597_v31, %v10223_v29  ;;  %5633 = vmatpush.msk.msrb.mxu0 %vm1062_vm3, %v5632_v53  ;;  %v2248_v31 = vadd.f32 %v7313_v18, %v2234_v52  ;;  %v10226_v18 = vld [vmem:[#allocation50_spill] sm:$0xff]  ;;  %v1991_v13 = vrot.slane %v1987_v44, 2  ;;  %v1967_v50 = vadd.f32 %v7894_v11, %v1950_v23  ;;  %v10232_v53 = vld [vmem:[#allocation59_spill] sm:$0xff] }
 0x5b9   : > { %v1602_v15 = vadd.f32 %v1599_v59, %v1589_v43  ;;  %v1590_v24 = vadd.f32 %v10226_v18, %v1576_v58  ;;  %v1644_v59 = vrot.slane %v1640_v8, 2  ;;  %v10227_v43 = vld [vmem:[#allocation37_spill] sm:$0xff]  ;;  %v1438_v34 = vadd.f32 %v10228_v26, %v1424_v36  ;;  %v10233_v44 = vld [vmem:[#allocation58_spill] sm:$0xff]  ;;  %v10234_v58 = vld [vmem:[#allocation60_spill] sm:$0xff] }
 0x5ba   : > { %5634 = vmatpush.msk.msrb.mxu0 %vm778_vm6, %v10222_v33  ;;  %v1423_v17 = vadd.f32 %v10227_v43, %v1409_v45  ;;  %v2261_v21 = vadd.f32 %v2258_v57, %v2248_v31  ;;  %v10229_v37 = vrot.slane %v8182_v25, 2  ;;  %v10230_v60 = vmov %v10223_v29  ;;  %v10240_v26 = vld [vmem:[#allocation34_spill] sm:$0xff]  ;;  %v10244_v25 = vld [vmem:[#allocation63_spill] sm:$0xff] }
 0x5bb   : > { %v1619_v42 = vadd.f32 %v8088_v51, %v1602_v15  ;;  %v1603_v29 = vadd.f32 %v10230_v60, %v1590_v24  ;;  %v2279_v52 = vadd.f32 %v7914_v1, %v2262_v19  ;;  %v10231_v15 = vld [vmem:[#allocation40_spill] sm:$0xff]  ;;  %v2305_v39 = vsel %vm693_vm1, %v2303_v14, %v2304_v49  ;;  %v10242_v60 = vld [vmem:[#allocation67_spill] sm:$0xff] }
 0x5bc   : > { %5779 = vmatpush.msk.msra.mxu0 %vm1062_vm3, %v5529_v55  ;;  %v1646_v55 = vsel %vm693_vm1, %v1644_v59, %v10229_v37  ;;  %v2278_v41 = vadd.f32 %v8096_v5, %v2261_v21  ;;  %v1437_v8 = vadd.f32 %v10231_v15, %v1423_v17  ;;  %v1993_v45 = vsel %vm693_vm1, %v1991_v13, %v1992_v27  ;;  %v10238_v21 = vld [vmem:[#allocation65_spill] sm:$0xff] }
 0x5bd   : > { %v1636_v35 = vadd.f32 %v8113_v56, %v1619_v42  ;;  %v1949_v56 = vadd.f32 %v1946_v32, %v1936_v46  ;;  %v1620_v3 = vadd.f32 %v10232_v53, %v1603_v29  ;;  %v1984_v31 = vadd.f32 %v10233_v44, %v1967_v50  ;;  %v10235_v42 = vld [vmem:[#allocation61_spill] sm:$0xff]  ;;  %v10237_v32 = vld [vmem:[#allocation51_spill] sm:$0xff] }
 0x5be   : > { %v1452_v62 = vadd.f32 %v10234_v58, %v1438_v34  ;;  %v2489_v1 = vadd.s32 36, %v6763_v12  ;;  %v1830_v5 = vadd.s32 12, %v6763_v12  ;;  %v2296_v46 = vadd.f32 %v10235_v42, %v2279_v52  ;;  %v8298_v43 = vpop.permute.xlu2 %2117  ;;  %v10243_v52 = vld [vmem:[#allocation95_spill] sm:$0xff] }
 0x5bf   : > { %v8245_v63 = vpop.permute.xlu1 %2395  ;;  %v1649_v30 = vadd.f32 %v1646_v55, %v1636_v35  ;;  %v1966_v11 = vadd.f32 %v8078_v54, %v1949_v56  ;;  %v2295_v54 = vadd.f32 %v8090_v22, %v2278_v41  ;;  %v1451_v18 = vadd.f32 %v10236_v6, %v1437_v8  ;;  %v10246_v53 = vld [vmem:[#allocation79_spill] sm:$0xff] }
 0x5c0   : > { %v1463_v51 = vpop.permute.xlu0 %1462  ;;  %vm2491_vm1 = vcmp.eq.s32.totalorder %v6749_v2, %v2489_v1  ;;  %vm1832_vm2 = vcmp.eq.s32.totalorder %v6749_v2, %v1830_v5  ;;  %v1829_v24 = vadd.s32 12, %v6741_v48  ;;  %v1637_v12 = vadd.f32 %v10237_v32, %v1620_v3  ;;  %v10252_v5 = vld [vmem:[#allocation68_spill] sm:$0xff] }
 0x5c1   : > { %v1983_v61 = vadd.f32 %v8084_v38, %v1966_v11  ;;  %v1666_v10 = vadd.f32 %v8035_v28, %v1649_v30  ;;  %v5657_v35 = vsel %vm2491_vm1, 1.0, %v10220_v16  ;;  %v5604_v38 = vsel %vm1832_vm2, 1.0, %v10220_v16 }
 0x5c2   : > { %v2488_v22 = vadd.s32 36, %v6741_v48  ;;  %v1468_v23 = vadd.f32 %v1463_v51, %v1451_v18  ;;  %5658 = vmatpush.msk.msrb.mxu1 %vm1062_vm3, %v5657_v35  ;;  %5605 = vmatpush.msk.msrb.mxu2 %vm1062_vm3, %v5604_v38  ;;  %vm1831_vm4 = vcmp.eq.s32.totalorder %v6749_v2, %v1829_v24  ;;  %v2309_v57 = vadd.f32 %v2304_v49, %v2296_v46  ;;  %v10255_v24 = vld [vmem:[#allocation74_spill] sm:$0xff]  ;;  %v10257_v38 = vld [vmem:[#allocation35_spill] sm:$0xff] }
 0x5c3   : > { %v1683_v28 = vadd.f32 %v8174_v7, %v1666_v10  ;;  %v2308_v59 = vadd.f32 %v2305_v39, %v2295_v54  ;;  %v5603_v17 = vsel %vm1831_vm4, 1.0, %v10220_v16  ;;  %v1997_v19 = vadd.f32 %v1992_v27, %v1984_v31  ;;  %v10248_v39 = vld [vmem:[#allocation38_spill] sm:$0xff]  ;;  %v10250_v31 = vld [vmem:[#allocation96_spill] sm:$0xff] }
 0x5c4   : > { %vm2490_vm5 = vcmp.eq.s32.totalorder %v6749_v2, %v2488_v22  ;;  %v1469_v14 = vadd.f32 %v10238_v21, %v1452_v62  ;;  %v1996_v13 = vadd.f32 %v1993_v45, %v1983_v61  ;;  %5606 = vmatpush.msk.msrb.mxu2 %vm1831_vm4, %v10222_v33  ;;  %v10239_v7 = vmov %v10229_v37  ;;  %v10241_v37 = vld [vmem:[#allocation92_spill] sm:$0xff]  ;;  %v10251_v62 = vld [vmem:[#allocation39_spill] sm:$0xff]  ;;  %v10254_v10 = vld [vmem:[#allocation62_spill] sm:$0xff] }
 0x5c5   : > { %5659 = vmatpush.msk.msrb.mxu1 %vm2490_vm5, %v10222_v33  ;;  %v1650_v51 = vadd.f32 %v10239_v7, %v1637_v12  ;;  %v2325_v49 = vadd.f32 %v8126_v4, %v2308_v59  ;;  %v1697_v34 = vadd.f32 %v10240_v26, %v1683_v28  ;;  %v1485_v55 = vadd.f32 %v10241_v37, %v1468_v23  ;;  %v10245_v4 = vld [vmem:[#allocation53_spill] sm:$0xff]  ;;  %v10253_v61 = vld [vmem:[#allocation55_spill] sm:$0xff]  ;;  %v10256_v12 = vld [vmem:[#allocation36_spill] sm:$0xff] }
 0x5c6   : > { %v1486_v50 = vadd.f32 %v7961_v40, %v1469_v14  ;;  %v2013_v27 = vadd.f32 %v8210_v20, %v1996_v13  ;;  %v2326_v29 = vadd.f32 %v10242_v60, %v2309_v57  ;;  %v2014_v30 = vadd.f32 %v10244_v25, %v1997_v19  ;;  %v10247_v40 = vld [vmem:[#allocation72_spill] sm:$0xff]  ;;  %v10249_v20 = vld [vmem:[#allocation90_spill] sm:$0xff]  ;;  %v2135_v18 = vpop.permute.xlu2 %2134  ;;  %v10258_v23 = vld [vmem:[#allocation99_spill] sm:$0xff] }
 0x5c7   : > { %v8276_v9 = vpop.permute.xlu1 %2412  ;;  %5818 = vmatpush.msk.msra.mxu1 %vm1062_vm3, %v5603_v17  ;;  %v2342_v33 = vadd.f32 %v10243_v52, %v2325_v49  ;;  %v1667_v8 = vadd.f32 %v10245_v4, %v1650_v51  ;;  %v1711_v45 = vadd.f32 %v10248_v39, %v1697_v34  ;;  %vm1837_vm6 = vcmask 97280   ;;  %v10259_v59 = vld [vmem:[#allocation47_spill] sm:$0xff]  ;;  %v10260_v21 = vld [vmem:[#allocation46_spill] sm:$0xff]  ;;  %v10261_v14 = vld [vmem:[#allocation64_spill] sm:$0xff] }
 0x5c8   : > { %v8284_v36 = vpop.permute.xlu0 %1753  ;;  %v2343_v3 = vadd.f32 %v10246_v53, %v2326_v29  ;;  %v1503_v11 = vadd.f32 %v10247_v40, %v1486_v50  ;;  %v2030_v44 = vadd.f32 %v10249_v20, %v2013_v27  ;;  %v2031_v42 = vadd.f32 %v10252_v5, %v2014_v30  ;;  %v10262_v7 = vld [vmem:[#allocation52_spill] sm:$0xff]  ;;  %v10263_v49 = vld [vmem:[#allocation77_spill] sm:$0xff]  ;;  %v10264_v26 = vld [vmem:[#allocation94_spill] sm:$0xff] }
 0x5c9   : > { %v2356_v1 = vadd.f32 %v10251_v62, %v2342_v33  ;;  %v1684_v54 = vadd.f32 %v10253_v61, %v1667_v8  ;;  %v1725_v22 = vadd.f32 %v10257_v38, %v1711_v45  ;;  %v10265_v27 = vld [vmem:[#allocation45_spill] sm:$0xff]  ;;  %v10267_v29 = vld [vmem:[#allocation48_spill] sm:$0xff]  ;;  %v10270_v8 = vld [vmem:[#allocation78_spill] sm:$0xff] }
 0x5ca   : > { %v2357_v6 = vadd.f32 %v10254_v10, %v2343_v3  ;;  %v1520_v32 = vadd.f32 %v10255_v24, %v1503_v11  ;;  %v2044_v35 = vadd.f32 %v10256_v12, %v2030_v44  ;;  %v10271_v40 = vld [vmem:[#allocation41_spill] sm:$0xff]  ;;  %v10272_v39 = vld [vmem:[#allocation88_spill] sm:$0xff]  ;;  %v10277_v24 = vld [vmem:[#allocation91_spill] sm:$0xff] }
 0x5cb   : > { %v2370_v17 = vadd.f32 %v10259_v59, %v2356_v1  ;;  %v1698_v51 = vadd.f32 %v10262_v7, %v1684_v54  ;;  %v1742_v34 = vadd.f32 %v10264_v26, %v1725_v22  ;;  %v10276_v61 = vld [vmem:[#allocation56_spill] sm:$0xff]  ;;  %v10278_v12 = vld [vmem:[#allocation69_spill] sm:$0xff]  ;;  %v10279_v38 = vld [vmem:[#allocation75_spill] sm:$0xff] }
 0x5cc   : > { %v2371_v13 = vadd.f32 %v10261_v14, %v2357_v6  ;;  %v1537_v50 = vadd.f32 %v10263_v49, %v1520_v32  ;;  %v2058_v37 = vadd.f32 %v10265_v27, %v2044_v35  ;;  %v10283_v7 = vld [vmem:[#allocation71_spill] sm:$0xff]  ;;  %v10284_v49 = vld [vmem:[#allocation70_spill] sm:$0xff] }
 0x5cd   : > { %v1759_v33 = vadd.f32 %v8284_v36, %v1742_v34  ;;  %v10274_v36 = vld [vmem:[#allocation97_spill] sm:$0xff] }
 0x5ce   : > { %v1554_v53 = vadd.f32 %v10270_v8, %v1537_v50  ;;  %v2072_v11 = vadd.f32 %v10271_v40, %v2058_v37  ;;  %v2152_v44 = vpop.permute.xlu2 %2151  ;;  %v10286_v37 = vld [vmem:[#allocation81_spill] sm:$0xff]  ;;  %v10293_v40 = vld [vmem:[#allocation86_spill] sm:$0xff] }
 0x5cf   : > { %v2430_v56 = vpop.permute.xlu1 %2429  ;;  %v1776_v1 = vadd.f32 %v10274_v36, %v1759_v33  ;;  %v10288_v33 = vld [vmem:[#allocation82_spill] sm:$0xff] }
 0x5d0   : > { %v1497_v41 = vpop.permute.xlu0 %1496 }
 0x5d1   : > { %v1502_v15 = vadd.f32 %v1497_v41, %v1485_v55  ;;  %v10266_v55 = vld [vmem:[#allocation43_spill] sm:$0xff]  ;;  %v10268_v41 = vld [vmem:[#allocation66_spill] sm:$0xff] }
 0x5d2   : > { %v2384_v60 = vadd.f32 %v10266_v55, %v2370_v17  ;;  %v2385_v25 = vadd.f32 %v10268_v41, %v2371_v13 }
 0x5d3   : > { %v1519_v58 = vadd.f32 %v10250_v31, %v1502_v15  ;;  %v10269_v15 = vld [vmem:[#allocation44_spill] sm:$0xff] }
 0x5d4   : > { %v2401_v30 = vadd.f32 %v8245_v63, %v2384_v60  ;;  %v1712_v4 = vadd.f32 %v10269_v15, %v1698_v51  ;;  %v2402_v45 = vadd.f32 %v10272_v39, %v2385_v25  ;;  %v10275_v63 = vld [vmem:[#allocation89_spill] sm:$0xff]  ;;  %v10289_v25 = vld [vmem:[#allocation83_spill] sm:$0xff] }
 0x5d5   : > { %v1536_v46 = vadd.f32 %v8208_v47, %v1519_v58  ;;  %v2045_v47 = vadd.f32 %v10260_v21, %v2031_v42  ;;  %v10273_v58 = vld [vmem:[#allocation49_spill] sm:$0xff]  ;;  %v10280_v21 = vld [vmem:[#allocation98_spill] sm:$0xff] }
 0x5d6   : > { %v2418_v20 = vadd.f32 %v8276_v9, %v2401_v30  ;;  %v2419_v42 = vadd.f32 %v10275_v63, %v2402_v45  ;;  %v1726_v54 = vadd.f32 %v10276_v61, %v1712_v4  ;;  %v2169_v34 = vpop.permute.xlu2 %2168  ;;  %v10290_v15 = vld [vmem:[#allocation33_spill] sm:$0xff]  ;;  %v10291_v4 = vld [vmem:[#allocation84_spill] sm:$0xff] }
 0x5d7   : > { %v2447_v28 = vpop.permute.xlu1 %2446  ;;  %v1553_v57 = vadd.f32 %v10258_v23, %v1536_v46  ;;  %v2059_v52 = vadd.f32 %v10267_v29, %v2045_v47  ;;  %v10287_v29 = vld [vmem:[#allocation76_spill] sm:$0xff]  ;;  %v10294_v39 = vld [vmem:[#allocation73_spill] sm:$0xff] }
 0x5d8   : > { %v1788_v19 = vpop.permute.xlu0 %1787  ;;  %v2435_v46 = vadd.f32 %v2430_v56, %v2418_v20  ;;  %v2436_v32 = vadd.f32 %v10277_v24, %v2419_v42  ;;  %v1743_v22 = vadd.f32 %v10279_v38, %v1726_v54  ;;  %v10295_v20 = vld [vmem:[#allocation93_spill] sm:$0xff]  ;;  %v2596_v56 = vld [vmem:[%s10296_s23 + $0x18] sm:$0xff] }
 0x5d9   : > { %5611 = vmatmul.msk.f32.vlgmr.msrb.gmra.mxu3 %vm1837_vm6, %v1553_v57  ;;  %v2073_v62 = vadd.f32 %v10273_v58, %v2059_v52  ;;  %v1793_v10 = vadd.f32 %v1788_v19, %v1776_v1  ;;  %v5542_v19 = vsel %vm1037_vm7, 1.0, %v10220_v16  ;;  %vm2532_vm7 = vcmask 1047936  }
 0x5da   : > { %v2452_v9 = vadd.f32 %v2447_v28, %v2435_v46  ;;  %v1760_v50 = vadd.f32 %v10284_v49, %v1743_v22 }
 0x5db   : > { %v2090_v35 = vadd.f32 %v10278_v12, %v2073_v62  ;;  %v1810_v47 = vadd.f32 %v10280_v21, %v1793_v10  ;;  %v2598_v21 = vld [vmem:[%s10296_s23 + $0x28] sm:$0xff] }
 0x5dc   : > { %v1777_v55 = vadd.f32 %v10286_v37, %v1760_v50  ;;  %2613 = vmatpush.msra.mxu3 %v2598_v21  ;;  %v5528_v37 = vsel %vm775_vm10, 1.0, %v10220_v16 }
 0x5dd   : > { %v2107_v51 = vadd.f32 %v10283_v7, %v2090_v35 }
 0x5de   : > { %v1794_v30 = vadd.f32 %v10289_v25, %v1777_v55  ;;  %v2593_v55 = vld [vmem:[%s10296_s23] sm:$0xff] }
 0x5df   : > { %v2464_v3 = vpop.permute.xlu1 %2463 }
 0x5e0   : > { %v2084_v31 = vpop.permute.xlu0 %2083  ;;  %v2469_v57 = vadd.f32 %v2464_v3, %v2452_v9  ;;  %v1811_v8 = vadd.f32 %v10291_v4, %v1794_v30  ;;  %v2790_v4 = vstv %s5684_s6  ;;  %s5823_s6 = sld [smem:[#allocation10 + $0x92]] }
 0x5e1   : > { %v2089_v5 = vadd.f32 %v2084_v31, %v2072_v11  ;;  %5612 = vmatmul.msk.f32.gmra.mxu3 %vm1837_vm6, %v1554_v53  ;;  %v10292_v53 = vld [vmem:[#allocation87_spill] sm:$0xff] }
 0x5e2   : > { %v1828_v11 = vadd.f32 %v10293_v40, %v1811_v8  ;;  %v2704_v8 = vstv %s5674_s28  ;;  %s5744_s28 = sld [smem:[#allocation10 + $0x49]] }
 0x5e3   : > { %v2106_v6 = vadd.f32 %v8258_v0, %v2089_v5  ;;  %v10282_v0 = vld [vmem:[#allocation85_spill] sm:$0xff] }
 0x5e4   : > { %v2453_v14 = vadd.f32 %v10282_v0, %v2436_v32  ;;  %v2594_v0 = vld [vmem:[%s10296_s23 + $0x8] sm:$0xff] }
 0x5e5   : > { %v2123_v23 = vadd.f32 %v8298_v43, %v2106_v6 }
 0x5e6   : > { %v2470_v52 = vadd.f32 %v10287_v29, %v2453_v14  ;;  %v2712_v29 = vstv %s5675_s29  ;;  %s5720_s29 = sld [smem:[#allocation10 + $0x37]] }
 0x5e7   : > { %v2140_v59 = vadd.f32 %v2135_v18, %v2123_v23  ;;  %v2481_v17 = vpop.permute.xlu1 %2480  ;;  %v10285_v18 = vld [vmem:[#allocation80_spill] sm:$0xff] }
 0x5e8   : > { %v2486_v13 = vadd.f32 %v2481_v17, %v2469_v57  ;;  %v1822_v28 = vpop.permute.xlu0 %1821  ;;  %v2124_v27 = vadd.f32 %v10285_v18, %v2107_v51  ;;  %v2487_v3 = vadd.f32 %v10292_v53, %v2470_v52  ;;  %v2638_v52 = vstv %s5666_s0  ;;  %s5719_s0 = sld [smem:[#allocation10 + $0x36]] }
 0x5e9   : > { %v1827_v26 = vadd.f32 %v1822_v28, %v1810_v47  ;;  %v2157_v43 = vadd.f32 %v2152_v44, %v2140_v59  ;;  %v2597_v47 = vld [vmem:[%s10296_s23 + $0x20] sm:$0xff]  ;;  %v2696_v53 = vstv %s5673_s22  ;;  %s5902_s22 = sld [smem:[#allocation10 + $0xda]] }
 0x5ea   : > { %5660 = vmatmul.msk.f32.vlgmr.msrb.gmra.mxu1 %vm1837_vm6, %v2486_v13  ;;  %v2141_v41 = vadd.f32 %v10288_v33, %v2124_v27  ;;  %2614 = vmatpush.msra.mxu3 %v2597_v47  ;;  %v2566_v27 = vld [vmem:[%s10297_s11] sm:$0x3f]  ;;  %v2630_v33 = vstv %s5665_s8  ;;  %s5711_s11 = sld [smem:[#allocation10 + $0x2e]] }
 0x5eb   : > { %5607 = vmatmul.msk.f32.vlgmr.msrb.gmra.mxu2 %vm1837_vm6, %v1827_v26  ;;  %v2174_v60 = vadd.f32 %v2169_v34, %v2157_v43  ;;  %5975 = vmatpush.msk.msrb.mxu1 %vm1062_vm3, %v5542_v19  ;;  %v2595_v19 = vld [vmem:[%s10296_s23 + $0x10] sm:$0xff]  ;;  %s5901_s8 = sld [smem:[#allocation10 + $0xd9]] }
 0x5ec   : > { %v2158_v45 = vadd.f32 %v10294_v39, %v2141_v41  ;;  %2615 = vmatpush.msra.mxu3 %v2596_v56  ;;  %v2868_v39 = vstv %s5693_s19  ;;  %s5783_s19 = sld [smem:[#allocation10 + $0x6d]] }
 0x5ed   : > { %5635 = vmatmul.msk.f32.vlgmr.msrb.gmra.mxu0 %vm1837_vm6, %v2174_v60 }
 0x5ee   : > { %5936 = vmatpush.msk.msrb.mxu0 %vm1062_vm3, %v10290_v15  ;;  %v2175_v44 = vadd.f32 %v10295_v20, %v2158_v45  ;;  %2616 = vmatpush.msra.mxu3 %v2595_v19  ;;  %v2782_v45 = vstv %s5683_s20  ;;  %v2774_v20 = vstv %s5682_s15  ;;  %v3970_v19 = vstv %s5823_s6  ;;  %s5745_s20 = sld [smem:[#allocation10 + $0x4a]] }
 0x5ef   : > { %s5791_s15 = sld [smem:[#allocation10 + $0x75]] }
 0x5f0   : > { %2617 = vmatpush.msra.mxu3 %v2594_v0  ;;  %v3299_v0 = vstv %s5744_s28  ;;  %s5754_s6 = sld [smem:[#allocation10 + $0x53]] }
 0x5f1   : > { %v4632_v56 = vstv %s5901_s8  ;;  %s5753_s8 = sld [smem:[#allocation10 + $0x52]] }
 0x5f2   : > { %5661 = vmatmul.msk.f32.gmra.mxu1 %vm1837_vm6, %v2487_v3  ;;  %2618 = vmatpush.msra.mxu3 %v2593_v55  ;;  %s5763_s28 = sld [smem:[#allocation10 + $0x5c]] }
 0x5f3   : > { %5608 = vmatmul.msk.f32.gmra.mxu2 %vm1837_vm6, %v1828_v11 }
 0x5f4   : > { %5740 = vmatpush.msk.msrb.mxu3 %vm1062_vm3, %v5528_v37 }
 0x5f5   : > { %5636 = vmatmul.msk.f32.gmra.mxu0 %vm1837_vm6, %v2175_v44 }
 0x65c   : > { %v1896_v31 = vpop.f32.mrf.mxu3 }
 0x664   : > { %v1899_v42 = vpop.f32.mrf.mxu3 }
 0x667   : > { %v2522_v1 = vpop.f32.mrf.mxu1 }
 0x66a   : > { %v2206_v58 = vpop.f32.mrf.mxu0 }
 0x66e   : > { %v1864_v62 = vpop.f32.mrf.mxu2 }
 0x66f   : > { %v1897_v36 = vadd.f32 %v1896_v31, %v1864_v62  ;;  %v2525_v6 = vpop.f32.mrf.mxu1  ;;  %v3018_v62 = vstv %s5712_s24  ;;  %s5941_s24 = sld [smem:[#allocation10 + $0xfe]] }
 0x671   : > { %v2212_v5 = vadd.f32 %v2206_v58, %v1897_v36  ;;  %v2860_v36 = vstv %s5692_s27  ;;  %s5784_s27 = sld [smem:[#allocation10 + $0x6e]] }
 0x672   : > { %v2209_v54 = vpop.f32.mrf.mxu0 }
 0x673   : > { %v2528_v63 = vadd.f32 %v2522_v1, %v2212_v5  ;;  %v2852_v1 = vstv %s5691_s4  ;;  %s5721_s4 = sld [smem:[#allocation10 + $0x38]] }
 0x675   : > { %6126 = vtanh.f32 %v2528_v63 }
 0x676   : > { %v1867_v46 = vpop.f32.mrf.mxu2 }
 0x677   : > { %v1900_v61 = vadd.f32 %v1899_v42, %v1867_v46  ;;  %v3962_v46 = vstv %s5822_s5  ;;  %s5830_s5 = sld [smem:[#allocation10 + $0x99]] }
 0x679   : > { %v2213_v10 = vadd.f32 %v2209_v54, %v1900_v61  ;;  %v2944_v61 = vstv %s5703_s13  ;;  %v2936_v54 = vstv %s5702_s18  ;;  %s5940_s13 = sld [smem:[#allocation10 + $0xfd]] }
 0x67a   : > { %s5949_s18 = sld [smem:[#allocation10 + $0x106]] }
 0x67b   : > { %v6127_v24 = vpop.eup %6126  ;;  %v2529_v32 = vadd.f32 %v2525_v6, %v2213_v10 }
 0x67c   : > { %2533 = vrot.lane.b32.xlu0 %v6127_v24, %s6316_s21 }
 0x67d   : > { %6128 = vtanh.f32 %v2529_v32  ;;  %v4295_v32 = vstv %s5861_s10  ;;  %s5752_s10 = sld [smem:[#allocation10 + $0x51]] }
 0x683   : > { %v6129_v9 = vpop.eup %6128 }
 0x684   : > { %2536 = vrot.lane.b32.xlu1 %v6129_v9, %s6316_s21 }
 0x6ee   : > { %v2534_v12 = vpop.permute.xlu0 %2533 }
 0x6ef   : > { %v2535_v35 = vsel %vm2532_vm7, %v2534_v12, %v6127_v24  ;;  %v3002_v12 = vstv %s5710_s12  ;;  %s5840_s12 = sld [smem:[#allocation10 + $0xa3]] }
 0x6f0   : > { %2539 = vrot.lane.b32.xlu2 %v2535_v35, %s6316_s21 }
 0x6f6   : > { %v2537_v38 = vpop.permute.xlu1 %2536 }
 0x6f7   : > { %v2538_v22 = vsel %vm2532_vm7, %v2537_v38, %v6129_v9 }
 0x6f8   : > { %2541 = vrot.lane.b32.xlu0 %v2538_v22, %s6316_s21  ;;  %s6319_s21 = smov 122  }
 0x74a   : > { %v2540_v23 = vpop.permute.xlu2 %2539 }
 0x74b   : > { %v2543_v57 = vsel %vm2532_vm7, %v2540_v23, %v6127_v24  ;;  %v4303_v23 = vstv %s5862_s26  ;;  %s5869_s26 = sld [smem:[#allocation10 + $0xbd]] }
 0x74c   : > { %2547 = vrot.lane.b32.xlu1 %v2543_v57, %s10096_s2  ;;  %v3088_v57 = vstv %s5720_s29  ;;  %s5832_s29 = sld [smem:[#allocation10 + $0x9b]] }
 0x76a   : > { %v2542_v59 = vpop.permute.xlu0 %2541 }
 0x76b   : > { %v2544_v17 = vsel %vm2532_vm7, %v2542_v59, %v6129_v9  ;;  %v3080_v59 = vstv %s5719_s0  ;;  %s5800_s0 = sld [smem:[#allocation10 + $0x7e]] }
 0x76c   : > { %2549 = vrot.lane.b32.xlu2 %v2544_v17, %s10096_s2 }
 0x7be   : > { %v2548_v14 = vpop.permute.xlu1 %2547 }
 0x7bf   : > { %v2553_v13 = vmax.f32 %v6127_v24, %v2548_v14 }
 0x7c1   : > { %v2555_v7 = vrot.slane %v2553_v13, 4  ;;  %v2559_v50 = vrot.slane %v2553_v13, 1 }
 0x7c6   : > { %v2550_v28 = vpop.permute.xlu2 %2549 }
 0x7c7   : > { %v2554_v51 = vmax.f32 %v6129_v9, %v2550_v28  ;;  %v3010_v9 = vstv %s5711_s11  ;;  %s5831_s11 = sld [smem:[#allocation10 + $0x9a]] }
 0x7c9   : > { %v2556_v49 = vsel %vm1188_vm13, %v2555_v7, %v2554_v51  ;;  %v4640_v7 = vstv %s5902_s22  ;;  %s5870_s22 = sld [smem:[#allocation10 + $0xbe]] }
 0x7ca   : > { %v2560_v26 = vrot.slane %v2556_v49, 1  ;;  %v3307_v49 = vstv %s5745_s20  ;;  %s5880_s20 = sld [smem:[#allocation10 + $0xc8]] }
 0x7cc   : > { %v2565_v43 = vmax.f32 %v2554_v51, %v2560_v26  ;;  %v2561_v34 = vsel %vm601_vm0, %v2559_v50, %v2560_v26  ;;  %vm2599_vm0 = vcmask 392192   ;;  %v3629_v51 = vstv %s5783_s19  ;;  %s5871_s19 = sld [smem:[#allocation10 + $0xbf]] }
 0x7cd   : > { %v2564_v18 = vmax.f32 %v2553_v13, %v2561_v34  ;;  %v3695_v34 = vstv %s5791_s15  ;;  %s5792_s15 = sld [smem:[#allocation10 + $0x76]] }
 0x7ce   : > { %5662 = vmatpush.msk.msra.mxu2 %vm1062_vm3, %v2565_v43 }
 0x7d0   : > { %2588 = vmatpush.msra.mxu2 %v2564_v18  ;;  %v4970_v18 = vstv %s5941_s24  ;;  %s5793_s24 = sld [smem:[#allocation10 + $0x77]] }
 0x7d1   : > { %5663 = vmatmul.msk.f32.vlgmr.msra.gmra.mxu2 %vm1837_vm6, %v2566_v27  ;;  %v3637_v27 = vstv %s5784_s27  ;;  %s5918_s27 = sld [smem:[#allocation10 + $0xea]] }
 0x854   : > { %v2590_v60 = vpop.f32.mrf.mxu2 }
 0x855   : > { %5664 = vmatmul.msk.f32.vlgmr.msra.gmra.mxu3 %vm2599_vm0, %v2590_v60 }
 0x8d8   : > { %v8418_v41 = vpop.f32.mrf.mxu3 }
 0x8d9   : > { %v2713_v25 = vmul.f32 %v2712_v29, %v8418_v41  ;;  %v2639_v30 = vmul.f32 %v2638_v52, %v8418_v41  ;;  %v2631_v15 = vmul.f32 %v2630_v33, %v8418_v41  ;;  %v2791_v3 = vmul.f32 %v2790_v4, %v8418_v41 }
 0x8da   : > { %v2705_v40 = vmul.f32 %v2704_v8, %v8418_v41  ;;  %v2697_v11 = vmul.f32 %v2696_v53, %v8418_v41  ;;  %v2869_v44 = vmul.f32 %v2868_v39, %v8418_v41  ;;  %v2783_v31 = vmul.f32 %v2782_v45, %v8418_v41 }
 0x8db   : > { %2715 = vrot.lane.b32.xlu2 %v2713_v25, %s6317_s14  ;;  %2641 = vrot.lane.b32.xlu1 %v2639_v30, %s10092_s1  ;;  %v2775_v58 = vmul.f32 %v2774_v20, %v8418_v41  ;;  %v3019_v5 = vmul.f32 %v3018_v62, %v8418_v41  ;;  %v2861_v63 = vmul.f32 %v2860_v36, %v8418_v41  ;;  %v3096_v29 = vstv %s5721_s4  ;;  %s5948_s4 = sld [smem:[#allocation10 + $0x105]] }
 0x8dc   : > { %2633 = vrot.lane.b32.xlu0 %v2631_v15, %s10096_s2  ;;  %v2853_v42 = vmul.f32 %v2852_v1, %v8418_v41  ;;  %v3963_v10 = vmul.f32 %v3962_v46, %v8418_v41  ;;  %v2945_v6 = vmul.f32 %v2944_v61, %v8418_v41  ;;  %v2937_v24 = vmul.f32 %v2936_v54, %v8418_v41 }
 0x8dd   : > { %v4296_v35 = vmul.f32 %v4295_v32, %v8418_v41  ;;  %v3011_v38 = vmul.f32 %v3010_v9, %v8418_v41  ;;  %v3003_v22 = vmul.f32 %v3002_v12, %v8418_v41  ;;  %v4304_v17 = vmul.f32 %v4303_v23, %v8418_v41 }
 0x8de   : > { %v3089_v21 = vmul.f32 %v3088_v57, %v8418_v41  ;;  %v3081_v47 = vmul.f32 %v3080_v59, %v8418_v41  ;;  %v4633_v14 = vmul.f32 %v4632_v56, %v8418_v41  ;;  %v3971_v13 = vmul.f32 %v3970_v19, %v8418_v41 }
 0x8df   : > { %v3300_v28 = vmul.f32 %v3299_v0, %v8418_v41  ;;  %v4641_v50 = vmul.f32 %v4640_v7, %v8418_v41  ;;  %v3630_v26 = vmul.f32 %v3629_v51, %v8418_v41  ;;  %v3308_v43 = vmul.f32 %v3307_v49, %v8418_v41 }
 0x8e0   : > { %v3696_v37 = vmul.f32 %v3695_v34, %v8418_v41  ;;  %v4971_v55 = vmul.f32 %v4970_v18, %v8418_v41  ;;  %v3638_v60 = vmul.f32 %v3637_v27, %v8418_v41  ;;  %v4028_v52 = vstv %s5830_s5  ;;  %s5909_s5 = sld [smem:[#allocation10 + $0xe1]] }
 0x8e1   : > { %v4962_v33 = vstv %s5940_s13  ;;  %v3097_v25 = vmul.f32 %v3096_v29, %v8418_v41  ;;  %v4029_v30 = vmul.f32 %v4028_v52, %v8418_v41  ;;  %v5036_v4 = vstv %s5949_s18  ;;  %s5730_s13 = sld [smem:[#allocation10 + $0x41]] }
 0x8e2   : > { %v4963_v15 = vmul.f32 %v4962_v33, %v8418_v41  ;;  %v3365_v8 = vstv %s5752_s10  ;;  %v4036_v53 = vstv %s5831_s11  ;;  %v4114_v45 = vstv %s5840_s12  ;;  %s5911_s18 = sld [smem:[#allocation10 + $0xe3]] }
 0x8e3   : > { %2793 = vrot.lane.b32.xlu2 %v2791_v3, %s10093_s17  ;;  %2707 = vrot.lane.b32.xlu1 %v2705_v40, %s6318_s16  ;;  %v5037_v3 = vmul.f32 %v5036_v4, %v8418_v41  ;;  %v3366_v40 = vmul.f32 %v3365_v8, %v8418_v41  ;;  %v4361_v20 = vstv %s5869_s26  ;;  %v3773_v1 = vstv %s5800_s0  ;;  %s5910_s10 = sld [smem:[#allocation10 + $0xe2]] }
 0x8e4   : > { %2699 = vrot.lane.b32.xlu0 %v2697_v11, %s6319_s21  ;;  %v4037_v11 = vmul.f32 %v4036_v53, %v8418_v41  ;;  %v4455_v23 = vstv %s5880_s20  ;;  %v3703_v57 = vstv %s5792_s15  ;;  %v3711_v59 = vstv %s5793_s24  ;;  %s5958_s11 = sld [smem:[#allocation10 + $0x10f]] }
 0x8e5   : > { %s5839_s12 = sld [smem:[#allocation10 + $0xa2]] }
 0x8e6   : > { %s5950_s26 = sld [smem:[#allocation10 + $0x107]] }
 0x8e7   : > { %v3174_v34 = vstv %s5730_s13  ;;  %s5762_s0 = sld [smem:[#allocation10 + $0x5b]] }
 0x8e8   : > { %v4714_v18 = vstv %s5911_s18  ;;  %s5802_s20 = sld [smem:[#allocation10 + $0x80]] }
 0x8e9   : > { %v4706_v27 = vstv %s5910_s10  ;;  %s5841_s15 = sld [smem:[#allocation10 + $0xa4]] }
 0x8ea   : > { %s5889_s24 = sld [smem:[#allocation10 + $0xd1]] }
 0x8eb   : > { %2871 = vrot.lane.b32.xlu2 %v2869_v44, %s6320_s3  ;;  %2785 = vrot.lane.b32.xlu1 %v2783_v31, %s6321_s7  ;;  %v4044_v44 = vstv %s5832_s29  ;;  %v4115_v31 = vmul.f32 %v4114_v45, %v8418_v41  ;;  %s5849_s29 = sld [smem:[#allocation10 + $0xac]] }
 0x8ec   : > { %2777 = vrot.lane.b32.xlu0 %v2775_v58, %s6322_s30  ;;  %v4362_v58 = vmul.f32 %v4361_v20, %v8418_v41  ;;  %v4045_v62 = vmul.f32 %v4044_v44, %v8418_v41  ;;  %s5957_s13 = sld [smem:[#allocation10 + $0x10e]] }
 0x8ed   : > { %v3451_v20 = vstv %s5762_s0  ;;  %s5728_s18 = sld [smem:[#allocation10 + $0x3f]] }
 0x8ee   : > { %s5967_s10 = sld [smem:[#allocation10 + $0x118]] }
 0x8ef   : > { %s5959_s0 = sld [smem:[#allocation10 + $0x110]] }
 0x8f1   : > { %v4192_v45 = vstv %s5849_s29  ;;  %s5848_s29 = sld [smem:[#allocation10 + $0xab]] }
 0x8f3   : > { %3021 = vrot.lane.b32.xlu2 %v3019_v5, %s6317_s14  ;;  %2863 = vrot.lane.b32.xlu1 %v2861_v63, %s6323_s25  ;;  %v3373_v5 = vstv %s5753_s8  ;;  %v3381_v63 = vstv %s5754_s6  ;;  %s5761_s8 = sld [smem:[#allocation10 + $0x5a]] }
 0x8f4   : > { %2855 = vrot.lane.b32.xlu0 %v2853_v42, %s6324_s9  ;;  %v3774_v42 = vmul.f32 %v3773_v1, %v8418_v41  ;;  %v3374_v46 = vmul.f32 %v3373_v5, %v8418_v41  ;;  %v3382_v61 = vmul.f32 %v3381_v63, %v8418_v41  ;;  %s5809_s6 = sld [smem:[#allocation10 + $0x87]] }
 0x8f9   : > { %v3443_v44 = vstv %s5761_s8  ;;  %s5668_s8 = sld [smem:[#allocation10 + $0x4]] }
 0x8fb   : > { %3965 = vrot.lane.b32.xlu2 %v3963_v10, %s10096_s2  ;;  %2947 = vrot.lane.b32.xlu1 %v2945_v6, %s10092_s1  ;;  %v3459_v10 = vstv %s5763_s28  ;;  %v4369_v6 = vstv %s5870_s22  ;;  %s5879_s28 = sld [smem:[#allocation10 + $0xc7]] }
 0x8fc   : > { %2939 = vrot.lane.b32.xlu0 %v2937_v24, %s10096_s2  ;;  %v4377_v24 = vstv %s5871_s19  ;;  %v3460_v32 = vmul.f32 %v3459_v10, %v8418_v41  ;;  %v4370_v9 = vmul.f32 %v4369_v6, %v8418_v41  ;;  %s5878_s22 = sld [smem:[#allocation10 + $0xc6]] }
 0x8fd   : > { %v4378_v12 = vmul.f32 %v4377_v24, %v8418_v41  ;;  %s5772_s19 = sld [smem:[#allocation10 + $0x65]] }
 0x903   : > { %4298 = vrot.lane.b32.xlu2 %v4296_v35, %s10096_s2  ;;  %3013 = vrot.lane.b32.xlu1 %v3011_v38, %s6318_s16 }
 0x904   : > { %3005 = vrot.lane.b32.xlu0 %v3003_v22, %s6319_s21 }
 0x90b   : > { %4306 = vrot.lane.b32.xlu2 %v4304_v17, %s10092_s1  ;;  %3091 = vrot.lane.b32.xlu1 %v3089_v21, %s6321_s7  ;;  %v4456_v17 = vmul.f32 %v4455_v23, %v8418_v41  ;;  %v3704_v21 = vmul.f32 %v3703_v57, %v8418_v41  ;;  %v3537_v23 = vstv %s5772_s19  ;;  %v3789_v57 = vstv %s5802_s20  ;;  %s5888_s19 = sld [smem:[#allocation10 + $0xd0]] }
 0x90c   : > { %3083 = vrot.lane.b32.xlu0 %v3081_v47, %s6322_s30  ;;  %v3712_v47 = vmul.f32 %v3711_v59, %v8418_v41  ;;  %v4122_v59 = vstv %s5841_s15  ;;  %s5887_s20 = sld [smem:[#allocation10 + $0xcf]] }
 0x90d   : > { %s5678_s15 = sld [smem:[#allocation10 + $0xe]] }
 0x913   : > { %4635 = vrot.lane.b32.xlu2 %v4633_v14, %s10096_s2  ;;  %3973 = vrot.lane.b32.xlu1 %v3971_v13, %s10092_s1  ;;  %v4776_v14 = vstv %s5918_s27  ;;  %v5028_v13 = vstv %s5948_s4  ;;  %s5729_s27 = sld [smem:[#allocation10 + $0x40]] }
 0x914   : > { %3302 = vrot.lane.b32.xlu0 %v3300_v28, %s10096_s2  ;;  %v4698_v28 = vstv %s5909_s5  ;;  %v4777_v7 = vmul.f32 %v4776_v14, %v8418_v41  ;;  %v5029_v51 = vmul.f32 %v5028_v13, %v8418_v41  ;;  %s5801_s4 = sld [smem:[#allocation10 + $0x7f]] }
 0x915   : > { %v4699_v49 = vmul.f32 %v4698_v28, %v8418_v41  ;;  %s5966_s5 = sld [smem:[#allocation10 + $0x117]] }
 0x91b   : > { %4643 = vrot.lane.b32.xlu2 %v4641_v50, %s10092_s1  ;;  %3632 = vrot.lane.b32.xlu1 %v3630_v26, %s10096_s2 }
 0x91c   : > { %3310 = vrot.lane.b32.xlu0 %v3308_v43, %s10092_s1 }
 0x923   : > { %3698 = vrot.lane.b32.xlu2 %v3696_v37, %s6319_s21  ;;  %4973 = vrot.lane.b32.xlu1 %v4971_v55, %s10092_s1  ;;  %v3175_v37 = vmul.f32 %v3174_v34, %v8418_v41  ;;  %v4715_v55 = vmul.f32 %v4714_v18, %v8418_v41 }
 0x924   : > { %3640 = vrot.lane.b32.xlu0 %v3638_v60, %s10092_s1  ;;  %v4707_v60 = vmul.f32 %v4706_v27, %v8418_v41 }
 0x92b   : > { %3099 = vrot.lane.b32.xlu2 %v3097_v25, %s10093_s17  ;;  %4031 = vrot.lane.b32.xlu1 %v4029_v30, %s6319_s21  ;;  %v5114_v25 = vstv %s5958_s11  ;;  %v4106_v30 = vstv %s5839_s12  ;;  %s5920_s11 = sld [smem:[#allocation10 + $0xec]] }
 0x92c   : > { %4965 = vrot.lane.b32.xlu0 %v4963_v15, %s10096_s2  ;;  %v5044_v15 = vstv %s5950_s26  ;;  %v5115_v4 = vmul.f32 %v5114_v25, %v8418_v41  ;;  %v4107_v8 = vmul.f32 %v4106_v30, %v8418_v41  ;;  %v5184_v25 = vstv %s5966_s5  ;;  %s5919_s12 = sld [smem:[#allocation10 + $0xeb]] }
 0x92d   : > { %v5045_v53 = vmul.f32 %v5044_v15, %v8418_v41  ;;  %v5106_v30 = vstv %s5957_s13  ;;  %v3158_v15 = vstv %s5728_s18  ;;  %s5968_s26 = sld [smem:[#allocation10 + $0x119]] }
 0x92e   : > { %s5927_s5 = sld [smem:[#allocation10 + $0xf3]] }
 0x92f   : > { %s5810_s13 = sld [smem:[#allocation10 + $0x88]] }
 0x930   : > { %s5687_s18 = sld [smem:[#allocation10 + $0x17]] }
 0x933   : > { %5039 = vrot.lane.b32.xlu2 %v5037_v3, %s6318_s16  ;;  %3368 = vrot.lane.b32.xlu1 %v3366_v40, %s6319_s21 }
 0x934   : > { %4039 = vrot.lane.b32.xlu0 %v4037_v11, %s6318_s16 }
 0x935   : > { %v8492_v39 = vpop.permute.xlu2 %2715 }
 0x93b   : > { %4117 = vrot.lane.b32.xlu2 %v4115_v31, %s6321_s7  ;;  %4364 = vrot.lane.b32.xlu1 %v4362_v58, %s6319_s21  ;;  %v4193_v31 = vmul.f32 %v4192_v45, %v8418_v41  ;;  %v3452_v58 = vmul.f32 %v3451_v20, %v8418_v41 }
 0x93c   : > { %4047 = vrot.lane.b32.xlu0 %v4045_v62, %s6317_s14  ;;  %v3444_v62 = vmul.f32 %v3443_v44, %v8418_v41 }
 0x93d   : > { %v8500_v36 = vpop.permute.xlu2 %2793 }
 0x943   : > { %3776 = vrot.lane.b32.xlu2 %v3774_v42, %s6322_s30  ;;  %3376 = vrot.lane.b32.xlu1 %v3374_v46, %s6318_s16  ;;  %v3851_v42 = vstv %s5809_s6  ;;  %v4447_v46 = vstv %s5879_s28  ;;  %s5771_s6 = sld [smem:[#allocation10 + $0x64]] }
 0x944   : > { %3384 = vrot.lane.b32.xlu0 %v3382_v61, %s6317_s14  ;;  %v4439_v61 = vstv %s5878_s22  ;;  %v3852_v10 = vmul.f32 %v3851_v42, %v8418_v41  ;;  %v4448_v6 = vmul.f32 %v4447_v46, %v8418_v41  ;;  %s5770_s28 = sld [smem:[#allocation10 + $0x63]] }
 0x945   : > { %v8508_v54 = vpop.permute.xlu2 %2871  ;;  %v4440_v24 = vmul.f32 %v4439_v61, %v8418_v41  ;;  %s5672_s22 = sld [smem:[#allocation10 + $0x8]] }
 0x94b   : > { %3462 = vrot.lane.b32.xlu2 %v3460_v32, %s10093_s17  ;;  %4372 = vrot.lane.b32.xlu1 %v4370_v9, %s6318_s16 }
 0x94c   : > { %4380 = vrot.lane.b32.xlu0 %v4378_v12, %s6317_s14 }
 0x94d   : > { %v8516_v35 = vpop.permute.xlu2 %3021  ;;  %v8518_v38 = vpop.permute.xlu1 %2641 }
 0x94e   : > { %v8520_v22 = vpop.permute.xlu0 %2633 }
 0x953   : > { %4458 = vrot.lane.b32.xlu2 %v4456_v17, %s10093_s17  ;;  %3706 = vrot.lane.b32.xlu1 %v3704_v21, %s6318_s16  ;;  %v3538_v17 = vmul.f32 %v3537_v23, %v8418_v41  ;;  %v3790_v21 = vmul.f32 %v3789_v57, %v8418_v41  ;;  %v5200_v23 = vstv %s5968_s26  ;;  %v4184_v57 = vstv %s5848_s29  ;;  %s5676_s26 = sld [smem:[#allocation10 + $0xc]] }
 0x954   : > { %3714 = vrot.lane.b32.xlu0 %v3712_v47, %s6317_s14  ;;  %v4123_v47 = vmul.f32 %v4122_v59, %v8418_v41  ;;  %v5122_v59 = vstv %s5959_s0  ;;  %s5929_s29 = sld [smem:[#allocation10 + $0xf5]] }
 0x955   : > { %v8528_v56 = vpop.permute.xlu2 %3965  ;;  %v8530_v19 = vpop.permute.xlu1 %2707  ;;  %s5696_s0 = sld [smem:[#allocation10 + $0x20]] }
 0x956   : > { %v8532_v0 = vpop.permute.xlu0 %2699 }
 0x95b   : > { %4779 = vrot.lane.b32.xlu2 %v4777_v7, %s6322_s30  ;;  %5031 = vrot.lane.b32.xlu1 %v5029_v51, %s6319_s21  ;;  %v4533_v7 = vstv %s5889_s24  ;;  %v3166_v51 = vstv %s5729_s27  ;;  %s5811_s24 = sld [smem:[#allocation10 + $0x89]] }
 0x95c   : > { %4701 = vrot.lane.b32.xlu0 %v4699_v49, %s6319_s21  ;;  %v3781_v49 = vstv %s5801_s4  ;;  %v4534_v34 = vmul.f32 %v4533_v7, %v8418_v41  ;;  %v3167_v18 = vmul.f32 %v3166_v51, %v8418_v41  ;;  %v2653_v7 = vstv %s5668_s8  ;;  %s5850_s27 = sld [smem:[#allocation10 + $0xad]] }
 0x95d   : > { %v8540_v50 = vpop.permute.xlu2 %4298  ;;  %v8542_v26 = vpop.permute.xlu1 %2785  ;;  %v3782_v27 = vmul.f32 %v3781_v49, %v8418_v41  ;;  %s5681_s4 = sld [smem:[#allocation10 + $0x11]]  ;;  %v2894_v48 = vstv %s5696_s0 }
 0x95e   : > { %v8544_v43 = vpop.permute.xlu0 %2777  ;;  %s5671_s8 = sld [smem:[#allocation10 + $0x7]] }
 0x95f   : > { %s5698_s0 = sld [smem:[#allocation10 + $0x22]] }
 0x963   : > { %3177 = vrot.lane.b32.xlu2 %v3175_v37, %s6320_s3  ;;  %4717 = vrot.lane.b32.xlu1 %v4715_v55, %s6317_s14 }
 0x964   : > { %4709 = vrot.lane.b32.xlu0 %v4707_v60, %s6318_s16 }
 0x965   : > { %v8552_v29 = vpop.permute.xlu2 %4306  ;;  %v8554_v52 = vpop.permute.xlu1 %2863 }
 0x966   : > { %v8556_v33 = vpop.permute.xlu0 %2855 }
 0x96b   : > { %5117 = vrot.lane.b32.xlu2 %v5115_v4, %s6321_s7  ;;  %4109 = vrot.lane.b32.xlu1 %v4107_v8, %s6322_s30  ;;  %v5185_v4 = vmul.f32 %v5184_v25, %v8418_v41  ;;  %v5107_v8 = vmul.f32 %v5106_v30, %v8418_v41  ;;  %v3521_v25 = vstv %s5770_s28  ;;  %s5699_s28 = sld [smem:[#allocation10 + $0x23]] }
 0x96c   : > { %5047 = vrot.lane.b32.xlu0 %v5045_v53, %s6317_s14  ;;  %v3159_v53 = vmul.f32 %v3158_v15, %v8418_v41 }
 0x96d   : > { %v8564_v3 = vpop.permute.xlu2 %4635  ;;  %v8566_v40 = vpop.permute.xlu1 %2947 }
 0x96e   : > { %v8568_v11 = vpop.permute.xlu0 %2939 }
 0x973   : > { %4195 = vrot.lane.b32.xlu2 %v4193_v31, %s6323_s25  ;;  %3454 = vrot.lane.b32.xlu1 %v3452_v58, %s6321_s7  ;;  %v5192_v31 = vstv %s5967_s10  ;;  %v4792_v58 = vstv %s5920_s11  ;;  %s5669_s10 = sld [smem:[#allocation10 + $0x5]] }
 0x974   : > { %3446 = vrot.lane.b32.xlu0 %v3444_v62, %s6322_s30  ;;  %v4784_v62 = vstv %s5919_s12  ;;  %v5193_v42 = vmul.f32 %v5192_v31, %v8418_v41  ;;  %v4793_v46 = vmul.f32 %v4792_v58, %v8418_v41  ;;  %s5928_s11 = sld [smem:[#allocation10 + $0xf4]] }
 0x975   : > { %v8576_v1 = vpop.permute.xlu2 %4643  ;;  %v8578_v5 = vpop.permute.xlu1 %3013  ;;  %v4785_v61 = vmul.f32 %v4784_v62, %v8418_v41  ;;  %s5690_s12 = sld [smem:[#allocation10 + $0x1a]] }
 0x976   : > { %v8580_v63 = vpop.permute.xlu0 %3005 }
 0x97b   : > { %3854 = vrot.lane.b32.xlu2 %v3852_v10, %s6324_s9  ;;  %4450 = vrot.lane.b32.xlu1 %v4448_v6, %s6321_s7 }
 0x97c   : > { %4442 = vrot.lane.b32.xlu0 %v4440_v24, %s6322_s30 }
 0x97d   : > { %v8588_v32 = vpop.permute.xlu2 %3698  ;;  %v8590_v9 = vpop.permute.xlu1 %3091 }
 0x97e   : > { %10298 = vst [vmem:[#allocation57_spill] sm:$0xff] %v8590_v9  ;;  %v8592_v12 = vpop.permute.xlu0 %3083 }
 0x97f   : > { %10299 = vst [vmem:[#allocation29_spill] sm:$0xff] %v8592_v12 }
 0x983   : > { %3540 = vrot.lane.b32.xlu2 %v3538_v17, %s6320_s3  ;;  %3792 = vrot.lane.b32.xlu1 %v3790_v21, %s10093_s17  ;;  %v5201_v17 = vmul.f32 %v5200_v23, %v8418_v41  ;;  %v4185_v21 = vmul.f32 %v4184_v57, %v8418_v41 }
 0x984   : > { %4125 = vrot.lane.b32.xlu0 %v4123_v47, %s10093_s17  ;;  %v5123_v47 = vmul.f32 %v5122_v59, %v8418_v41  ;;  %v2738_v59 = vstv %s5678_s15  ;;  %s5680_s15 = sld [smem:[#allocation10 + $0x10]] }
 0x985   : > { %v8600_v14 = vpop.permute.xlu2 %3099  ;;  %v8602_v13 = vpop.permute.xlu1 %3973 }
 0x986   : > { %10300 = vst [vmem:[#allocation50_spill] sm:$0xff] %v8600_v14  ;;  %v8604_v28 = vpop.permute.xlu0 %3302 }
 0x98b   : > { %4536 = vrot.lane.b32.xlu2 %v4534_v34, %s6320_s3  ;;  %3169 = vrot.lane.b32.xlu1 %v3167_v18, %s6323_s25  ;;  %v2654_v34 = vmul.f32 %v2653_v7, %v8418_v41 }
 0x98c   : > { %3784 = vrot.lane.b32.xlu0 %v3782_v27, %s6321_s7  ;;  %v3529_v27 = vstv %s5771_s6  ;;  %s5679_s6 = sld [smem:[#allocation10 + $0xf]] }
 0x98d   : > { %v8612_v37 = vpop.permute.xlu2 %5039  ;;  %v8614_v55 = vpop.permute.xlu1 %3632  ;;  %v2656_v30 = vrot.slane %v2654_v34, 1  ;;  %v3530_v15 = vmul.f32 %v3529_v27, %v8418_v41  ;;  %v3867_v34 = vstv %s5811_s24  ;;  %v4200_v27 = vstv %s5850_s27  ;;  %s5688_s24 = sld [smem:[#allocation10 + $0x18]] }
 0x98e   : > { %10301 = vst [vmem:[#allocation37_spill] sm:$0xff] %v8612_v37  ;;  %v8616_v60 = vpop.permute.xlu0 %3310  ;;  %s5709_s27 = sld [smem:[#allocation10 + $0x2c]] }
 0x993   : > { %5187 = vrot.lane.b32.xlu2 %v5185_v4, %s6324_s9  ;;  %5109 = vrot.lane.b32.xlu1 %v5107_v8, %s6322_s30  ;;  %v3522_v4 = vmul.f32 %v3521_v25, %v8418_v41  ;;  %v2687_v8 = vstv %s5672_s22  ;;  %s5677_s22 = sld [smem:[#allocation10 + $0xd]] }
 0x994   : > { %3161 = vrot.lane.b32.xlu0 %v3159_v53, %s6324_s9  ;;  %v2688_v58 = vmul.f32 %v2687_v8, %v8418_v41 }
 0x995   : > { %v8624_v45 = vpop.permute.xlu2 %4117  ;;  %v8626_v20 = vpop.permute.xlu1 %4973 }
 0x996   : > { %10302 = vst [vmem:[#allocation54_spill] sm:$0xff] %v8624_v45  ;;  %v8628_v44 = vpop.permute.xlu0 %3640  ;;  %v2921_v45 = vstv %s5699_s28  ;;  %s5708_s28 = sld [smem:[#allocation10 + $0x2b]] }
 0x99b   : > { %5195 = vrot.lane.b32.xlu2 %v5193_v42, %s6323_s25  ;;  %4795 = vrot.lane.b32.xlu1 %v4793_v46, %s10093_s17  ;;  %v4525_v42 = vstv %s5888_s19  ;;  %v4517_v46 = vstv %s5887_s20  ;;  %s5685_s19 = sld [smem:[#allocation10 + $0x15]] }
 0x99c   : > { %4787 = vrot.lane.b32.xlu0 %v4785_v61, %s6321_s7  ;;  %v2690_v61 = vrot.slane %v2688_v58, 2  ;;  %v4526_v23 = vmul.f32 %v4525_v42, %v8418_v41  ;;  %v4518_v57 = vmul.f32 %v4517_v46, %v8418_v41  ;;  %s5705_s20 = sld [smem:[#allocation10 + $0x28]] }
 0x99d   : > { %v8636_v10 = vpop.permute.xlu2 %3776  ;;  %v8638_v6 = vpop.permute.xlu1 %4031 }
 0x99e   : > { %10303 = vst [vmem:[#allocation40_spill] sm:$0xff] %v8636_v10  ;;  %v8640_v24 = vpop.permute.xlu0 %4965 }
 0x9a2   : > { %v2959_v10 = vstv %s5705_s20  ;;  %s5714_s20 = sld [smem:[#allocation10 + $0x31]] }
 0x9a3   : > { %5203 = vrot.lane.b32.xlu2 %v5201_v17, %s6320_s3  ;;  %4187 = vrot.lane.b32.xlu1 %v4185_v21, %s6324_s9 }
 0x9a4   : > { %5125 = vrot.lane.b32.xlu0 %v5123_v47, %s10093_s17  ;;  %v2739_v47 = vmul.f32 %v2738_v59, %v8418_v41 }
 0x9a5   : > { %v8648_v51 = vpop.permute.xlu2 %3462  ;;  %v8650_v49 = vpop.permute.xlu1 %3368 }
 0x9a6   : > { %10304 = vst [vmem:[#allocation59_spill] sm:$0xff] %v8648_v51  ;;  %v8653_v18 = vpop.permute.xlu0 %4039  ;;  %v2741_v25 = vrot.slane %v2739_v47, 1  ;;  %v2756_v51 = vstv %s5680_s15  ;;  %s5826_s15 = sld [smem:[#allocation10 + $0x95]] }
 0x9a8   : > { %v3035_v37 = vstv %s5714_s20  ;;  %s8878_s20 = sld [smem:[#allocation10 + $0xdc]] }
 0x9ab   : > { %2657 = vrot.lane.b32.xlu2 %v2656_v30, %s10096_s2  ;;  %3532 = vrot.lane.b32.xlu1 %v3530_v15, %s6323_s25  ;;  %v3868_v30 = vmul.f32 %v3867_v34, %v8418_v41  ;;  %v4201_v15 = vmul.f32 %v4200_v27, %v8418_v41  ;;  %v2816_v34 = vstv %s5687_s18  ;;  %v2662_v27 = vstv %s5669_s10  ;;  %s5689_s18 = sld [smem:[#allocation10 + $0x19]] }
 0x9ac   : > { %3524 = vrot.lane.b32.xlu0 %v3522_v4, %s6324_s9  ;;  %v2765_v4 = vstv %s5681_s4  ;;  %s5686_s4 = sld [smem:[#allocation10 + $0x16]] }
 0x9ad   : > { %v8660_v53 = vpop.permute.xlu2 %4458  ;;  %v8662_v31 = vpop.permute.xlu1 %4364  ;;  %v2766_v42 = vmul.f32 %v2765_v4, %v8418_v41  ;;  %s5697_s10 = sld [smem:[#allocation10 + $0x21]] }
 0x9ae   : > { %10305 = vst [vmem:[#allocation58_spill] sm:$0xff] %v8660_v53  ;;  %v8665_v62 = vpop.permute.xlu0 %4047  ;;  %v2729_v53 = vstv %s5677_s22  ;;  %s5716_s22 = sld [smem:[#allocation10 + $0x33]] }
 0x9b3   : > { %2691 = vrot.lane.b32.xlu2 %v2690_v61, %s10092_s1  ;;  %4528 = vrot.lane.b32.xlu1 %v4526_v23, %s6323_s25  ;;  %v4854_v61 = vstv %s5927_s5  ;;  %v3859_v23 = vstv %s5810_s13  ;;  %s5694_s5 = sld [smem:[#allocation10 + $0x1e]] }
 0x9b4   : > { %4520 = vrot.lane.b32.xlu0 %v4518_v57, %s6324_s9  ;;  %v2768_v57 = vrot.slane %v2766_v42, 2  ;;  %v4855_v59 = vmul.f32 %v4854_v61, %v8418_v41  ;;  %v3860_v47 = vmul.f32 %v3859_v23, %v8418_v41  ;;  %v4862_v42 = vstv %s5928_s11  ;;  %s5715_s13 = sld [smem:[#allocation10 + $0x32]] }
 0x9b5   : > { %v8672_v17 = vpop.permute.xlu2 %4779  ;;  %v8674_v21 = vpop.permute.xlu1 %3376  ;;  %v2663_v61 = vmul.f32 %v2662_v27, %v8418_v41  ;;  %s5718_s11 = sld [smem:[#allocation10 + $0x35]] }
 0x9b6   : > { %10306 = vst [vmem:[#allocation60_spill] sm:$0xff] %v8672_v17  ;;  %v8677_v7 = vpop.permute.xlu0 %3384 }
 0x9b7   : > { %10307 = vst [vmem:[#allocation61_spill] sm:$0xff] %v8677_v7 }
 0x9bb   : > { %2742 = vrot.lane.b32.xlu2 %v2741_v25, %s6317_s14  ;;  %3870 = vrot.lane.b32.xlu1 %v3868_v30, %s6320_s3 }
 0x9bc   : > { %4203 = vrot.lane.b32.xlu0 %v4201_v15, %s6320_s3  ;;  %v2817_v15 = vmul.f32 %v2816_v34, %v8418_v41 }
 0x9bd   : > { %v8684_v8 = vpop.permute.xlu2 %3177  ;;  %v8686_v58 = vpop.permute.xlu1 %4372 }
 0x9be   : > { %10308 = vst [vmem:[#allocation42_spill] sm:$0xff] %v8684_v8  ;;  %v8689_v46 = vpop.permute.xlu0 %4380  ;;  %v2819_v23 = vrot.slane %v2817_v15, 1  ;;  %v2843_v8 = vstv %s5690_s12  ;;  %s5695_s12 = sld [smem:[#allocation10 + $0x1f]] }
 0x9bf   : > { %v2844_v27 = vmul.f32 %v2843_v8, %v8418_v41 }
 0x9c1   : > { %v2846_v16 = vrot.slane %v2844_v27, 2 }
 0x9c3   : > { %2769 = vrot.lane.b32.xlu2 %v2768_v57, %s6317_s14  ;;  %4857 = vrot.lane.b32.xlu1 %v4855_v59, %s6324_s9  ;;  %v4863_v57 = vmul.f32 %v4862_v42, %v8418_v41  ;;  %v2665_v59 = vrot.slane %v2663_v61, 1  ;;  %v4870_v42 = vstv %s5929_s29  ;;  %s5747_s29 = sld [smem:[#allocation10 + $0x4c]] }
 0x9c4   : > { %3862 = vrot.lane.b32.xlu0 %v3860_v47, %s6323_s25  ;;  %v2720_v47 = vstv %s5676_s26  ;;  %s5706_s26 = sld [smem:[#allocation10 + $0x29]] }
 0x9c5   : > { %v8696_v25 = vpop.permute.xlu2 %5117  ;;  %v8698_v30 = vpop.permute.xlu1 %3706  ;;  %v2721_v61 = vmul.f32 %v2720_v47, %v8418_v41  ;;  %v2895_v47 = vmul.f32 %v2894_v48, %v8418_v41 }
 0x9c6   : > { %10309 = vst [vmem:[#allocation51_spill] sm:$0xff] %v8696_v25  ;;  %v8701_v4 = vpop.permute.xlu0 %3714  ;;  %v2678_v25 = vstv %s5671_s8  ;;  %s5713_s8 = sld [smem:[#allocation10 + $0x30]] }
 0x9c7   : > { %10310 = vst [vmem:[#allocation65_spill] sm:$0xff] %v8698_v30  ;;  %v2679_v27 = vmul.f32 %v2678_v25, %v8418_v41  ;;  %v2897_v17 = vrot.slane %v2895_v47, 1  ;;  %v2730_v47 = vmul.f32 %v2729_v53, %v8418_v41 }
 0x9c8   : > { %10311 = vst [vmem:[#allocation34_spill] sm:$0xff] %v8701_v4 }
 0x9cb   : > { %2820 = vrot.lane.b32.xlu2 %v2819_v23, %s10093_s17  ;;  %4865 = vrot.lane.b32.xlu1 %v4863_v57, %s6323_s25  ;;  %v4871_v23 = vmul.f32 %v4870_v42, %v8418_v41  ;;  %v2723_v57 = vrot.slane %v2721_v61, 1 }
 0x9cc   : > { %2666 = vrot.lane.b32.xlu0 %v2665_v59, %s10092_s1  ;;  %v2747_v59 = vstv %s5679_s6  ;;  %s5748_s6 = sld [smem:[#allocation10 + $0x4d]] }
 0x9cd   : > { %v8708_v34 = vpop.permute.xlu2 %4195  ;;  %v8710_v2 = vpop.permute.xlu1 %5031  ;;  %v2748_v61 = vmul.f32 %v2747_v59, %v8418_v41  ;;  %v2922_v59 = vmul.f32 %v2921_v45, %v8418_v41 }
 0x9ce   : > { %10312 = vst [vmem:[#allocation92_spill] sm:$0xff] %v8708_v34  ;;  %v8713_v15 = vpop.permute.xlu0 %4701 }
 0x9cf   : > { %10313 = vst [vmem:[#allocation67_spill] sm:$0xff] %v8710_v2 }
 0x9d0   : > { %10314 = vst [vmem:[#allocation95_spill] sm:$0xff] %v8713_v15 }
 0x9d3   : > { %2847 = vrot.lane.b32.xlu2 %v2846_v16, %s10093_s17  ;;  %4873 = vrot.lane.b32.xlu1 %v4871_v23, %s6320_s3  ;;  %v2681_v16 = vrot.slane %v2679_v27, 2  ;;  %v2750_v23 = vrot.slane %v2748_v61, 2 }
 0x9d4   : > { %2724 = vrot.lane.b32.xlu0 %v2723_v57, %s6319_s21  ;;  %v2798_v57 = vstv %s5685_s19  ;;  %s5829_s19 = sld [smem:[#allocation10 + $0x98]] }
 0x9d5   : > { %v8720_v8 = vpop.permute.xlu2 %3854  ;;  %v8722_v34 = vpop.permute.xlu1 %4717  ;;  %v2799_v61 = vmul.f32 %v2798_v57, %v8418_v41  ;;  %v2960_v57 = vmul.f32 %v2959_v10, %v8418_v41 }
 0x9d6   : > { %10315 = vst [vmem:[#allocation63_spill] sm:$0xff] %v8720_v8  ;;  %v8726_v42 = vpop.permute.xlu0 %4709  ;;  %v2924_v8 = vrot.slane %v2922_v59, 2  ;;  %v2757_v59 = vmul.f32 %v2756_v51, %v8418_v41 }
 0x9d7   : > { %10316 = vst [vmem:[#allocation53_spill] sm:$0xff] %v8722_v34 }
 0x9d8   : > { %10317 = vst [vmem:[#allocation79_spill] sm:$0xff] %v8726_v42 }
 0x9db   : > { %2898 = vrot.lane.b32.xlu2 %v2897_v17, %s6320_s3  ;;  %2682 = vrot.lane.b32.xlu1 %v2681_v16, %s10096_s2  ;;  %v2732_v17 = vrot.slane %v2730_v47, 1  ;;  %v2801_v16 = vrot.slane %v2799_v61, 1 }
 0x9dc   : > { %2751 = vrot.lane.b32.xlu0 %v2750_v23, %s6319_s21  ;;  %v2825_v23 = vstv %s5688_s24  ;;  %s5751_s24 = sld [smem:[#allocation10 + $0x50]] }
 0x9dd   : > { %v8732_v48 = vpop.permute.xlu2 %3540  ;;  %v8734_v25 = vpop.permute.xlu1 %4109  ;;  %v2826_v61 = vmul.f32 %v2825_v23, %v8418_v41 }
 0x9de   : > { %10318 = vst [vmem:[#allocation72_spill] sm:$0xff] %v8732_v48  ;;  %v8738_v27 = vpop.permute.xlu0 %5047  ;;  %v2962_v48 = vrot.slane %v2960_v57, 1 }
 0x9df   : > { %10319 = vst [vmem:[#allocation38_spill] sm:$0xff] %v8734_v25  ;;  %v2993_v25 = vstv %s5709_s27  ;;  %s5717_s27 = sld [smem:[#allocation10 + $0x34]] }
 0x9e0   : > { %10320 = vst [vmem:[#allocation90_spill] sm:$0xff] %v8738_v27  ;;  %v2807_v27 = vstv %s5686_s4  ;;  %v2994_v23 = vmul.f32 %v2993_v25, %v8418_v41  ;;  %s5786_s4 = sld [smem:[#allocation10 + $0x70]] }
 0x9e1   : > { %v2808_v57 = vmul.f32 %v2807_v27, %v8418_v41 }
 0x9e3   : > { %2925 = vrot.lane.b32.xlu2 %v2924_v8, %s6320_s3  ;;  %2733 = vrot.lane.b32.xlu1 %v2732_v17, %s6318_s16  ;;  %v2759_v8 = vrot.slane %v2757_v59, 2  ;;  %v2828_v17 = vrot.slane %v2826_v61, 2 }
 0x9e4   : > { %2802 = vrot.lane.b32.xlu0 %v2801_v16, %s6322_s30  ;;  %v2876_v16 = vstv %s5694_s5  ;;  %s5868_s5 = sld [smem:[#allocation10 + $0xbc]] }
 0x9e5   : > { %v8744_v45 = vpop.permute.xlu2 %4536  ;;  %v8746_v53 = vpop.permute.xlu1 %3454  ;;  %v2877_v61 = vmul.f32 %v2876_v16, %v8418_v41  ;;  %v3062_v2 = vstv %s5717_s27  ;;  %s8897_s27 = sld [smem:[#allocation10 + $0x100]] }
 0x9e6   : > { %10321 = vst [vmem:[#allocation96_spill] sm:$0xff] %v8744_v45  ;;  %v8750_v47 = vpop.permute.xlu0 %3446  ;;  %v2996_v45 = vrot.slane %v2994_v23, 2 }
 0x9e7   : > { %10322 = vst [vmem:[#allocation39_spill] sm:$0xff] %v8746_v53  ;;  %v3044_v53 = vstv %s5715_s13  ;;  %s5825_s13 = sld [smem:[#allocation10 + $0x94]] }
 0x9e8   : > { %10323 = vst [vmem:[#allocation68_spill] sm:$0xff] %v8750_v47  ;;  %v2834_v47 = vstv %s5689_s18  ;;  %v3045_v16 = vmul.f32 %v3044_v53, %v8418_v41  ;;  %s5787_s18 = sld [smem:[#allocation10 + $0x71]] }
 0x9e9   : > { %v2835_v23 = vmul.f32 %v2834_v47, %v8418_v41 }
 0x9eb   : > { %2963 = vrot.lane.b32.xlu2 %v2962_v48, %s10096_s2  ;;  %2760 = vrot.lane.b32.xlu1 %v2759_v8, %s6318_s16  ;;  %v2810_v48 = vrot.slane %v2808_v57, 1  ;;  %v2879_v8 = vrot.slane %v2877_v61, 1 }
 0x9ec   : > { %2829 = vrot.lane.b32.xlu0 %v2828_v17, %s6322_s30  ;;  %v2903_v17 = vstv %s5697_s10  ;;  %s8837_s10 = sld [smem:[#allocation10 + $0x74]] }
 0x9ed   : > { %v8756_v10 = vpop.permute.xlu2 %5187  ;;  %v8758_v51 = vpop.permute.xlu1 %4450  ;;  %v2904_v61 = vmul.f32 %v2903_v17, %v8418_v41  ;;  %v3985_v14 = vstv %s5825_s13  ;;  %s8920_s13 = sld [smem:[#allocation10 + $0xdf]] }
 0x9ee   : > { %10324 = vst [vmem:[#allocation55_spill] sm:$0xff] %v8756_v10  ;;  %v8762_v59 = vpop.permute.xlu0 %4442  ;;  %v3047_v10 = vrot.slane %v3045_v16, 1 }
 0x9ef   : > { %10325 = vst [vmem:[#allocation62_spill] sm:$0xff] %v8758_v51  ;;  %v3071_v51 = vstv %s5718_s11  ;;  %s5864_s11 = sld [smem:[#allocation10 + $0xb8]] }
 0x9f0   : > { %10326 = vst [vmem:[#allocation74_spill] sm:$0xff] %v8762_v59  ;;  %v2885_v59 = vstv %s5695_s12  ;;  %v3072_v17 = vmul.f32 %v3071_v51, %v8418_v41  ;;  %s5867_s12 = sld [smem:[#allocation10 + $0xbb]] }
 0x9f1   : > { %v2886_v16 = vmul.f32 %v2885_v59, %v8418_v41 }
 0x9f3   : > { %2997 = vrot.lane.b32.xlu2 %v2996_v45, %s10092_s1  ;;  %2811 = vrot.lane.b32.xlu1 %v2810_v48, %s6321_s7  ;;  %v2837_v45 = vrot.slane %v2835_v23, 2  ;;  %v2906_v48 = vrot.slane %v2904_v61, 2  ;;  %v4680_v7 = vstv %s8920_s13  ;;  %s9033_s13 = sld [smem:[#allocation10 + $0x39]] }
 0x9f4   : > { %2880 = vrot.lane.b32.xlu0 %v2879_v8, %s6324_s9  ;;  %v2968_v8 = vstv %s5706_s26  ;;  %s8851_s26 = sld [smem:[#allocation10]] }
 0x9f5   : > { %v8768_v25 = vpop.permute.xlu2 %5195  ;;  %v8770_v27 = vpop.permute.xlu1 %3792  ;;  %v2969_v61 = vmul.f32 %v2968_v8, %v8418_v41 }
 0x9f6   : > { %10327 = vst [vmem:[#allocation36_spill] sm:$0xff] %v8768_v25  ;;  %v8774_v57 = vpop.permute.xlu0 %4125  ;;  %v3074_v25 = vrot.slane %v3072_v17, 2 }
 0x9f7   : > { %10328 = vst [vmem:[#allocation35_spill] sm:$0xff] %v8770_v27  ;;  %v2912_v27 = vstv %s5698_s0  ;;  %s5865_s0 = sld [smem:[#allocation10 + $0xb9]] }
 0x9f8   : > { %10329 = vst [vmem:[#allocation99_spill] sm:$0xff] %v8774_v57  ;;  %v3322_v57 = vstv %s5747_s29  ;;  %v2913_v17 = vmul.f32 %v2912_v27, %v8418_v41  ;;  %s8853_s29 = sld [smem:[#allocation10 + $0xdd]] }
 0x9f9   : > { %v3323_v8 = vmul.f32 %v3322_v57, %v8418_v41 }
 0x9fb   : > { %3048 = vrot.lane.b32.xlu2 %v3047_v10, %s6317_s14  ;;  %2838 = vrot.lane.b32.xlu1 %v2837_v45, %s6321_s7  ;;  %v2888_v10 = vrot.slane %v2886_v16, 1  ;;  %v2971_v45 = vrot.slane %v2969_v61, 1 }
 0x9fc   : > { %2907 = vrot.lane.b32.xlu0 %v2906_v48, %s6324_s9  ;;  %v3026_v48 = vstv %s5713_s8  ;;  %s5789_s8 = sld [smem:[#allocation10 + $0x73]] }
 0x9fd   : > { %v8780_v53 = vpop.permute.xlu2 %5203  ;;  %v8782_v47 = vpop.permute.xlu1 %3169  ;;  %v3027_v61 = vmul.f32 %v3026_v48, %v8418_v41  ;;  %v4327_v34 = vstv %s5865_s0  ;;  %s8966_s0 = sld [smem:[#allocation10 + $0x79]] }
 0x9fe   : > { %10330 = vst [vmem:[#allocation47_spill] sm:$0xff] %v8780_v53  ;;  %v8786_v23 = vpop.permute.xlu0 %3784  ;;  %v3325_v53 = vrot.slane %v3323_v8, 1 }
 0x9ff   : > { %10331 = vst [vmem:[#allocation46_spill] sm:$0xff] %v8782_v47  ;;  %v3331_v47 = vstv %s5748_s6  ;;  %s2623_s6 = sld [smem:[#allocation11]] }
 0xa00   : > { %10332 = vst [vmem:[#allocation64_spill] sm:$0xff] %v8786_v23  ;;  %v2984_v23 = vstv %s5708_s28  ;;  %v3332_v48 = vmul.f32 %v3331_v47, %v8418_v41  ;;  %s8868_s28 = sld [smem:[#allocation10 + $0x3]] }
 0xa01   : > { %v2985_v8 = vmul.f32 %v2984_v23, %v8418_v41 }
 0xa03   : > { %3075 = vrot.lane.b32.xlu2 %v3074_v25, %s6317_s14  ;;  %2889 = vrot.lane.b32.xlu1 %v2888_v10, %s6323_s25  ;;  %v2915_v25 = vrot.slane %v2913_v17, 2  ;;  %v3029_v10 = vrot.slane %v3027_v61, 1 }
 0xa04   : > { %2972 = vrot.lane.b32.xlu0 %v2971_v45, %s10092_s1  ;;  %v3053_v45 = vstv %s5716_s22  ;;  %s8870_s22 = sld [smem:[#allocation10 + $0x101]] }
 0xa05   : > { %v8792_v51 = vpop.permute.xlu2 %2657  ;;  %v8794_v59 = vpop.permute.xlu1 %5109  ;;  %v3054_v61 = vmul.f32 %v3053_v45, %v8418_v41 }
 0xa06   : > { %10333 = vst [vmem:[#allocation52_spill] sm:$0xff] %v8794_v59  ;;  %v8798_v16 = vpop.permute.xlu0 %3161  ;;  %v4019_v59 = vstv %s5829_s19  ;;  %s8873_s19 = sld [smem:[#allocation10 + $0x97]] }
 0xa07   : > { %10334 = vst [vmem:[#allocation77_spill] sm:$0xff] %v8798_v16  ;;  %v3334_v16 = vrot.slane %v3332_v48, 1  ;;  %v4020_v45 = vmul.f32 %v4019_v59, %v8418_v41  ;;  %v3036_v48 = vmul.f32 %v3035_v37, %v8418_v41 }
 0xa0a   : > { %v4994_v12 = vstv %s8870_s22  ;;  %s8994_s22 = sld [smem:[#allocation10 + $0x24]] }
 0xa0b   : > { %3326 = vrot.lane.b32.xlu2 %v3325_v53, %s10096_s2  ;;  %2916 = vrot.lane.b32.xlu1 %v2915_v25, %s6323_s25  ;;  %v2987_v53 = vrot.slane %v2985_v8, 2  ;;  %v3056_v25 = vrot.slane %v3054_v61, 2 }
 0xa0c   : > { %3030 = vrot.lane.b32.xlu0 %v3029_v10, %s6319_s21  ;;  %v3994_v10 = vstv %s5826_s15  ;;  %s8891_s15 = sld [smem:[#allocation10 + $0x9c]] }
 0xa0d   : > { %v8804_v27 = vpop.permute.xlu2 %2691  ;;  %v8806_v57 = vpop.permute.xlu1 %4795  ;;  %v3995_v61 = vmul.f32 %v3994_v10, %v8418_v41 }
 0xa0e   : > { %10335 = vst [vmem:[#allocation94_spill] sm:$0xff] %v8806_v57  ;;  %v8810_v17 = vpop.permute.xlu0 %4787  ;;  %v4022_v57 = vrot.slane %v4020_v45, 2  ;;  %v3063_v45 = vmul.f32 %v3062_v2, %v8418_v41 }
 0xa0f   : > { %10336 = vst [vmem:[#allocation45_spill] sm:$0xff] %v8810_v17  ;;  %v3356_v17 = vstv %s5751_s24  ;;  %s8893_s24 = sld [smem:[#allocation10 + $0x4f]] }
 0xa10   : > { %v3357_v10 = vmul.f32 %v3356_v17, %v8418_v41  ;;  %v3661_v17 = vstv %s5787_s18  ;;  %s8926_s18 = sld [smem:[#allocation10 + $0xe0]] }
 0xa13   : > { %3335 = vrot.lane.b32.xlu2 %v3334_v16, %s10092_s1  ;;  %2988 = vrot.lane.b32.xlu1 %v2987_v53, %s10096_s2  ;;  %v3038_v16 = vrot.slane %v3036_v48, 1  ;;  %v3997_v53 = vrot.slane %v3995_v61, 1 }
 0xa14   : > { %3057 = vrot.lane.b32.xlu0 %v3056_v25, %s6319_s21  ;;  %v3652_v25 = vstv %s5786_s4  ;;  %s8903_s4 = sld [smem:[#allocation10 + $0x6]] }
 0xa15   : > { %v8816_v47 = vpop.permute.xlu2 %2742  ;;  %v8818_v23 = vpop.permute.xlu1 %4187  ;;  %v3653_v61 = vmul.f32 %v3652_v25, %v8418_v41  ;;  %v3347_v4 = vstv %s8893_s24  ;;  %s9014_s24 = sld [smem:[#allocation11 + $0x1]] }
 0xa16   : > { %10337 = vst [vmem:[#allocation43_spill] sm:$0xff] %v8818_v23  ;;  %v8822_v8 = vpop.permute.xlu0 %5125  ;;  %v3359_v23 = vrot.slane %v3357_v10, 2  ;;  %v3986_v10 = vmul.f32 %v3985_v14, %v8418_v41  ;;  %v4343_v14 = vstv %s5867_s12  ;;  %s8947_s12 = sld [smem:[#allocation10 + $0x78]] }
 0xa17   : > { %10338 = vst [vmem:[#allocation48_spill] sm:$0xff] %v8822_v8  ;;  %v4352_v8 = vstv %s5868_s5  ;;  %s8916_s5 = sld [smem:[#allocation10 + $0x54]] }
 0xa18   : > { %v4353_v25 = vmul.f32 %v4352_v8, %v8418_v41 }
 0xa1b   : > { %4023 = vrot.lane.b32.xlu2 %v4022_v57, %s10092_s1  ;;  %3039 = vrot.lane.b32.xlu1 %v3038_v16, %s6318_s16  ;;  %v3065_v57 = vrot.slane %v3063_v45, 2  ;;  %v3655_v16 = vrot.slane %v3653_v61, 1  ;;  %v3662_v61 = vmul.f32 %v3661_v17, %v8418_v41 }
 0xa1c   : > { %3998 = vrot.lane.b32.xlu0 %v3997_v53, %s10092_s1 }
 0xa1d   : > { %v8828_v37 = vpop.permute.xlu2 %2769  ;;  %v8830_v59 = vpop.permute.xlu1 %3532 }
 0xa1e   : > { %10339 = vst [vmem:[#allocation66_spill] sm:$0xff] %v8830_v59  ;;  %v8834_v48 = vpop.permute.xlu0 %3524  ;;  %v3664_v59 = vrot.slane %v3662_v61, 1 }
 0xa1f   : > { %10340 = vst [vmem:[#allocation44_spill] sm:$0xff] %v8834_v48  ;;  %v4318_v48 = vstv %s5864_s11  ;;  %s8942_s11 = sld [smem:[#allocation10 + $0x9d]] }
 0xa23   : > { %3360 = vrot.lane.b32.xlu2 %v3359_v23, %s10092_s1  ;;  %3066 = vrot.lane.b32.xlu1 %v3065_v57, %s6318_s16  ;;  %v4355_v23 = vrot.slane %v4353_v25, 2  ;;  %v3988_v57 = vrot.slane %v3986_v10, 1  ;;  %v4319_v10 = vmul.f32 %v4318_v48, %v8418_v41  ;;  %v3677_v48 = vstv %s5789_s8  ;;  %s8976_s8 = sld [smem:[#allocation10 + $0xc1]] }
 0xa24   : > { %3656 = vrot.lane.b32.xlu0 %v3655_v16, %s10096_s2  ;;  %v3686_v16 = vstv %s8837_s10  ;;  %s8938_s10 = sld [smem:[#allocation10 + $0xc0]] }
 0xa25   : > { %v8842_v2 = vpop.permute.xlu2 %2820  ;;  %v8844_v53 = vpop.permute.xlu1 %4528  ;;  %v3687_v25 = vmul.f32 %v3686_v16, %v8418_v41 }
 0xa26   : > { %10341 = vst [vmem:[#allocation78_spill] sm:$0xff] %v8844_v53  ;;  %v8848_v45 = vpop.permute.xlu0 %4520  ;;  %v4321_v53 = vrot.slane %v4319_v10, 1  ;;  %v4328_v10 = vmul.f32 %v4327_v34, %v8418_v41  ;;  %v2646_v34 = vstv %s8868_s28  ;;  %s8985_s28 = sld [smem:[#allocation10 + $0x57]] }
 0xa27   : > { %10342 = vst [vmem:[#allocation41_spill] sm:$0xff] %v8848_v45  ;;  %v4664_v45 = vstv %s8853_s29  ;;  %s8961_s29 = sld [smem:[#allocation10 + $0x103]] }
 0xa28   : > { %v4330_v9 = vrot.slane %v4328_v10, 1  ;;  %v4995_v10 = vmul.f32 %v4994_v12, %v8418_v41  ;;  %v4985_v12 = vstv %s8897_s27  ;;  %s9020_s27 = sld [smem:[#allocation10 + $0x27]] }
 0xa2b   : > { %4356 = vrot.lane.b32.xlu2 %v4355_v23, %s10092_s1  ;;  %3989 = vrot.lane.b32.xlu1 %v3988_v57, %s10096_s2  ;;  %v4344_v23 = vmul.f32 %v4343_v14, %v8418_v41  ;;  %v3689_v57 = vrot.slane %v3687_v25, 2  ;;  %v4665_v25 = vmul.f32 %v4664_v45, %v8418_v41  ;;  %v4010_v45 = vstv %s8873_s19  ;;  %s8996_s19 = sld [smem:[#allocation10 + $0x56]] }
 0xa2c   : > { %3665 = vrot.lane.b32.xlu0 %v3664_v59, %s10092_s1 }
 0xa2d   : > { %v8859_v8 = vpop.permute.xlu2 %2847  ;;  %v8861_v17 = vpop.permute.xlu1 %3870  ;;  %v4346_v59 = vrot.slane %v4344_v23, 2 }
 0xa2e   : > { %10343 = vst [vmem:[#allocation88_spill] sm:$0xff] %v8861_v17  ;;  %v8865_v61 = vpop.permute.xlu0 %4203  ;;  %v2626_v17 = vstv %s8851_s26  ;;  %s8956_s26 = sld [smem:[#allocation10 + $0x55]] }
 0xa2f   : > { %10344 = vst [vmem:[#allocation49_spill] sm:$0xff] %v8865_v61  ;;  %v2627_v23 = vmul.f32 %v2626_v17, %v8418_v41  ;;  %v2624_v61 = vstv %s2623_s6  ;;  %v4655_v17 = vstv %s8878_s20  ;;  %s8980_s6 = sld [smem:[#allocation10 + $0x9e]] }
 0xa30   : > { %s9001_s20 = sld [smem:[#allocation10 + $0x104]] }
 0xa33   : > { %3690 = vrot.lane.b32.xlu2 %v3689_v57, %s10092_s1  ;;  %4322 = vrot.lane.b32.xlu1 %v4321_v53, %s10096_s2  ;;  %v3678_v57 = vmul.f32 %v3677_v48, %v8418_v41 }
 0xa34   : > { %4347 = vrot.lane.b32.xlu0 %v4346_v59, %s10096_s2  ;;  %v4667_v59 = vrot.slane %v4665_v25, 1 }
 0xa35   : > { %v8881_v16 = vpop.permute.xlu2 %2898  ;;  %v8883_v14 = vpop.permute.xlu1 %4857  ;;  %v3680_v42 = vrot.slane %v3678_v57, 2 }
 0xa36   : > { %10345 = vst [vmem:[#allocation97_spill] sm:$0xff] %v8883_v14  ;;  %v8888_v53 = vpop.permute.xlu0 %3862  ;;  %v2628_v14 = vadd.f32 %v2627_v23, %v2624_v61  ;;  %v4011_v23 = vmul.f32 %v4010_v45, %v8418_v41  ;;  %v2671_v45 = vstv %s8903_s4  ;;  %s9024_s4 = sld [smem:[#allocation10 + $0xc2]] }
 0xa37   : > { %10346 = vst [vmem:[#allocation89_spill] sm:$0xff] %v8888_v53 }
 0xa38   : > { %v2636_v48 = vadd.f32 %v8520_v22, %v2628_v14  ;;  %v4997_v14 = vrot.slane %v4995_v10, 1  ;;  %v4013_v53 = vrot.slane %v4011_v23, 2  ;;  %v3348_v10 = vmul.f32 %v3347_v4, %v8418_v41 }
 0xa39   : > { %v4689_v4 = vstv %s8926_s18  ;;  %s9046_s18 = sld [smem:[#allocation10 + $0xa0]] }
 0xa3a   : > { %v2644_v22 = vadd.f32 %v8518_v38, %v2636_v48 }
 0xa3b   : > { %4668 = vrot.lane.b32.xlu2 %v4667_v59, %s10092_s1  ;;  %4331 = vrot.lane.b32.xlu1 %v4330_v9, %s10092_s1  ;;  %v2647_v9 = vmul.f32 %v2646_v34, %v8418_v41  ;;  %v4656_v59 = vmul.f32 %v4655_v17, %v8418_v41 }
 0xa3c   : > { %3681 = vrot.lane.b32.xlu0 %v3680_v42, %s10096_s2 }
 0xa3d   : > { %v8907_v61 = vpop.permute.xlu2 %2925  ;;  %v8909_v25 = vpop.permute.xlu1 %4865  ;;  %v2649_v42 = vrot.slane %v2647_v9, 1  ;;  %v4658_v15 = vrot.slane %v4656_v59, 1  ;;  %v4986_v9 = vmul.f32 %v4985_v12, %v8418_v41  ;;  %v2672_v59 = vmul.f32 %v2671_v45, %v8418_v41 }
 0xa3e   : > { %10347 = vst [vmem:[#allocation56_spill] sm:$0xff] %v8909_v25  ;;  %v2667_v57 = vpop.permute.xlu0 %2666  ;;  %v4052_v25 = vstv %s8891_s15  ;;  %v4681_v45 = vmul.f32 %v4680_v7, %v8418_v41  ;;  %v3719_v7 = vstv %s8947_s12  ;;  %s9006_s15 = sld [smem:[#allocation10 + $0xc3]] }
 0xa3f   : > { %v2651_v34 = vadd.f32 %v2649_v42, %v2644_v22  ;;  %v4053_v48 = vmul.f32 %v4052_v25, %v8418_v41  ;;  %v4988_v42 = vrot.slane %v4986_v9, 1  ;;  %v2674_v30 = vrot.slane %v2672_v59, 2  ;;  %s9058_s12 = sld [smem:[#allocation10 + $0x2a]] }
 0xa40   : > { %v4683_v59 = vrot.slane %v4681_v45, 2 }
 0xa43   : > { %4998 = vrot.lane.b32.xlu2 %v4997_v14, %s10092_s1  ;;  %4014 = vrot.lane.b32.xlu1 %v4013_v53, %s10096_s2  ;;  %v2660_v53 = vadd.f32 %v8792_v51, %v2651_v34  ;;  %v4055_v14 = vrot.slane %v4053_v48, 1 }
 0xa44   : > { %4659 = vrot.lane.b32.xlu0 %v4658_v15, %s10096_s2  ;;  %v3350_v15 = vrot.slane %v3348_v10, 2  ;;  %v4690_v10 = vmul.f32 %v4689_v4, %v8418_v41 }
 0xa45   : > { %v8929_v38 = vpop.permute.xlu2 %2963  ;;  %v8931_v17 = vpop.permute.xlu1 %4873  ;;  %v2669_v22 = vadd.f32 %v2667_v57, %v2660_v53 }
 0xa46   : > { %10348 = vst [vmem:[#allocation91_spill] sm:$0xff] %v8931_v17  ;;  %v2725_v23 = vpop.permute.xlu0 %2724  ;;  %v3389_v17 = vstv %s8916_s5  ;;  %s9028_s5 = sld [smem:[#allocation10 + $0x9f]] }
 0xa47   : > { %v2676_v51 = vadd.f32 %v2674_v30, %v2669_v22  ;;  %v3390_v12 = vmul.f32 %v3389_v17, %v8418_v41  ;;  %v4692_v22 = vrot.slane %v4690_v10, 2 }
 0xa49   : > { %v3392_v9 = vrot.slane %v3390_v12, 1  ;;  %v3720_v12 = vmul.f32 %v3719_v7, %v8418_v41 }
 0xa4b   : > { %4056 = vrot.lane.b32.xlu2 %v4055_v14, %s6319_s21  ;;  %3351 = vrot.lane.b32.xlu1 %v3350_v15, %s10096_s2  ;;  %v4385_v14 = vstv %s8938_s10  ;;  %v4061_v15 = vstv %s8942_s11  ;;  %s9049_s10 = sld [smem:[#allocation10 + $0x7a]] }
 0xa4c   : > { %4989 = vrot.lane.b32.xlu0 %v4988_v42, %s10096_s2  ;;  %v4386_v42 = vmul.f32 %v4385_v14, %v8418_v41  ;;  %v4062_v4 = vmul.f32 %v4061_v15, %v8418_v41  ;;  %s9053_s11 = sld [smem:[#allocation10 + $0xa1]] }
 0xa4d   : > { %v8950_v25 = vpop.permute.xlu2 %2997  ;;  %v2683_v57 = vpop.permute.xlu1 %2682 }
 0xa4e   : > { %v2685_v34 = vadd.f32 %v2683_v57, %v2676_v51  ;;  %v2752_v48 = vpop.permute.xlu0 %2751  ;;  %v4064_v10 = vrot.slane %v4062_v4, 1 }
 0xa50   : > { %v2694_v53 = vadd.f32 %v8804_v27, %v2685_v34  ;;  %v4388_v34 = vrot.slane %v4386_v42, 1 }
 0xa52   : > { %v2702_v30 = vadd.f32 %v8532_v0, %v2694_v53 }
 0xa53   : > { %3393 = vrot.lane.b32.xlu2 %v3392_v9, %s6319_s21  ;;  %4684 = vrot.lane.b32.xlu1 %v4683_v59, %s10096_s2  ;;  %v3398_v9 = vstv %s8956_s26  ;;  %v5010_v59 = vstv %s8961_s29  ;;  %s9077_s26 = sld [smem:[#allocation10 + $0x58]] }
 0xa54   : > { %4693 = vrot.lane.b32.xlu0 %v4692_v22, %s10092_s1  ;;  %v2710_v27 = vadd.f32 %v8530_v19, %v2702_v30  ;;  %v3722_v19 = vrot.slane %v3720_v12, 1  ;;  %v3728_v30 = vstv %s8966_s0  ;;  %v3399_v14 = vmul.f32 %v3398_v9, %v8418_v41  ;;  %s9083_s29 = sld [smem:[#allocation10 + $0x7c]] }
 0xa55   : > { %v8970_v17 = vpop.permute.xlu2 %3048  ;;  %v2734_v0 = vpop.permute.xlu1 %2733  ;;  %v5011_v15 = vmul.f32 %v5010_v59, %v8418_v41  ;;  %s9096_s0 = sld [smem:[#allocation11 + $0x4]] }
 0xa56   : > { %v2718_v51 = vadd.f32 %v8492_v39, %v2710_v27  ;;  %v2803_v57 = vpop.permute.xlu0 %2802 }
 0xa57   : > { %v5013_v4 = vrot.slane %v5011_v15, 2 }
 0xa58   : > { %v2727_v45 = vadd.f32 %v2725_v23, %v2718_v51 }
 0xa5a   : > { %v2736_v53 = vadd.f32 %v2734_v0, %v2727_v45  ;;  %v3729_v0 = vmul.f32 %v3728_v30, %v8418_v41  ;;  %v4394_v45 = vstv %s8976_s8  ;;  %s9100_s8 = sld [smem:[#allocation10 + $0xe4]] }
 0xa5b   : > { %4389 = vrot.lane.b32.xlu2 %v4388_v34, %s6319_s21  ;;  %4065 = vrot.lane.b32.xlu1 %v4064_v10, %s6318_s16  ;;  %v4070_v34 = vstv %s8980_s6  ;;  %s9104_s6 = sld [smem:[#allocation10 + $0xc4]] }
 0xa5c   : > { %v2745_v39 = vadd.f32 %v8816_v47, %v2736_v53  ;;  %3723 = vrot.lane.b32.xlu0 %v3722_v19, %s6319_s21  ;;  %v3401_v47 = vrot.slane %v3399_v14, 1  ;;  %v3731_v12 = vrot.slane %v3729_v0, 1  ;;  %v4395_v19 = vmul.f32 %v4394_v45, %v8418_v41 }
 0xa5d   : > { %v8989_v23 = vpop.permute.xlu2 %3075  ;;  %v2761_v22 = vpop.permute.xlu1 %2760  ;;  %v4071_v9 = vmul.f32 %v4070_v34, %v8418_v41  ;;  %v2930_v34 = vstv %s9014_s24  ;;  %s9130_s24 = sld [smem:[#allocation10 + $0x59]] }
 0xa5e   : > { %v2754_v7 = vadd.f32 %v2752_v48, %v2745_v39  ;;  %v2830_v27 = vpop.permute.xlu0 %2829  ;;  %v3416_v48 = vstv %s8985_s28  ;;  %v4397_v14 = vrot.slane %v4395_v19, 1  ;;  %s9109_s28 = sld [smem:[#allocation10 + $0xe5]] }
 0xa5f   : > { %v4073_v15 = vrot.slane %v4071_v9, 1 }
 0xa60   : > { %v2763_v42 = vadd.f32 %v2761_v22, %v2754_v7  ;;  %v2932_v22 = vstv %s8994_s22  ;;  %s9111_s22 = sld [smem:[#allocation10 + $0x6c]] }
 0xa62   : > { %v2772_v51 = vadd.f32 %v8828_v37, %v2763_v42  ;;  %v3407_v42 = vstv %s8996_s19  ;;  %s9114_s19 = sld [smem:[#allocation10 + $0x90]] }
 0xa63   : > { %3402 = vrot.lane.b32.xlu2 %v3401_v47, %s6318_s16  ;;  %5014 = vrot.lane.b32.xlu1 %v5013_v4, %s10096_s2  ;;  %v5019_v47 = vstv %s9001_s20  ;;  %v2933_v4 = vmul.f32 %v2932_v22, %v8418_v41  ;;  %s9120_s20 = sld [smem:[#allocation11 + $0x3]] }
 0xa64   : > { %v2780_v10 = vadd.f32 %v8544_v43, %v2772_v51  ;;  %3732 = vrot.lane.b32.xlu0 %v3731_v12, %s6318_s16  ;;  %v3417_v43 = vmul.f32 %v3416_v48, %v8418_v41  ;;  %v3408_v12 = vmul.f32 %v3407_v42, %v8418_v41  ;;  %v5020_v45 = vmul.f32 %v5019_v47, %v8418_v41 }
 0xa65   : > { %v9010_v53 = vpop.permute.xlu2 %3326  ;;  %v2812_v37 = vpop.permute.xlu1 %2811  ;;  %v2934_v9 = vadd.f32 %v2933_v4, %v2930_v34 }
 0xa66   : > { %v2788_v59 = vadd.f32 %v8542_v26, %v2780_v10  ;;  %v9017_v30 = vpop.permute.xlu0 %2880  ;;  %v3419_v0 = vrot.slane %v3417_v43, 2  ;;  %v4412_v26 = vstv %s9006_s15  ;;  %v3410_v43 = vrot.slane %v3408_v12, 1  ;;  %s9126_s15 = sld [smem:[#allocation10 + $0x6f]] }
 0xa68   : > { %v2796_v39 = vadd.f32 %v8500_v36, %v2788_v59  ;;  %v2952_v59 = vstv %s9020_s27  ;;  %s9132_s27 = sld [smem:[#allocation10 + $0x3a]] }
 0xa69   : > { %v2953_v42 = vmul.f32 %v2952_v59, %v8418_v41  ;;  %v4088_v59 = vstv %s9046_s18  ;;  %s9158_s18 = sld [smem:[#allocation10 + $0xb4]] }
 0xa6a   : > { %v2805_v7 = vadd.f32 %v2803_v57, %v2796_v39  ;;  %v5022_v39 = vrot.slane %v5020_v45, 2 }
 0xa6b   : > { %4398 = vrot.lane.b32.xlu2 %v4397_v14, %s6318_s16  ;;  %4074 = vrot.lane.b32.xlu1 %v4073_v15, %s6317_s14  ;;  %v4403_v15 = vstv %s9024_s4  ;;  %v2955_v34 = vrot.slane %v2953_v42, 1  ;;  %s9137_s4 = sld [smem:[#allocation10 + $0x3c]] }
 0xa6c   : > { %v2814_v36 = vadd.f32 %v2812_v37, %v2805_v7  ;;  %3420 = vrot.lane.b32.xlu0 %v3419_v0, %s6319_s21  ;;  %v4413_v37 = vmul.f32 %v4412_v26, %v8418_v41  ;;  %v4079_v7 = vstv %s9028_s5  ;;  %s9142_s5 = sld [smem:[#allocation10 + $0x93]] }
 0xa6d   : > { %v9037_v57 = vpop.permute.xlu2 %3335  ;;  %v2839_v51 = vpop.permute.xlu1 %2838  ;;  %v4080_v4 = vmul.f32 %v4079_v7, %v8418_v41 }
 0xa6e   : > { %v2823_v48 = vadd.f32 %v8842_v2, %v2814_v36  ;;  %v9043_v10 = vpop.permute.xlu0 %2907  ;;  %v4415_v14 = vrot.slane %v4413_v37, 2  ;;  %v3104_v2 = vstv %s9033_s13  ;;  %v4404_v36 = vmul.f32 %v4403_v15, %v8418_v41  ;;  %s9152_s13 = sld [smem:[#allocation11 + $0x5]] }
 0xa6f   : > { %v4082_v37 = vrot.slane %v4080_v4, 2 }
 0xa70   : > { %v2832_v19 = vadd.f32 %v2830_v27, %v2823_v48  ;;  %v2942_v27 = vadd.f32 %v8568_v11, %v2934_v9  ;;  %v3105_v11 = vmul.f32 %v3104_v2, %v8418_v41  ;;  %v4406_v48 = vrot.slane %v4404_v36, 1 }
 0xa72   : > { %v2841_v22 = vadd.f32 %v2839_v51, %v2832_v19  ;;  %v3107_v9 = vrot.slane %v3105_v11, 1 }
 0xa73   : > { %3411 = vrot.lane.b32.xlu2 %v3410_v43, %s6317_s14  ;;  %5023 = vrot.lane.b32.xlu1 %v5022_v39, %s10092_s1  ;;  %s9072_s1 = sld [smem:[#allocation10 + $0x7b]]  ;;  %v3737_v43 = vstv %s9049_s10 }
 0xa74   : > { %v2850_v0 = vadd.f32 %v8859_v8, %v2841_v22  ;;  %4416 = vrot.lane.b32.xlu0 %v4415_v14, %s6319_s21  ;;  %v2950_v8 = vadd.f32 %v8566_v40, %v2942_v27  ;;  %v2977_v40 = vstv %s9058_s12  ;;  %v4089_v14 = vmul.f32 %v4088_v59, %v8418_v41  ;;  %s9162_s10 = sld [smem:[#allocation11 + $0x6]] }
 0xa75   : > { %v9064_v47 = vpop.permute.xlu2 %4023  ;;  %v2890_v26 = vpop.permute.xlu1 %2889  ;;  %v3738_v15 = vmul.f32 %v3737_v43, %v8418_v41  ;;  %s9172_s12 = sld [smem:[#allocation10 + $0x108]] }
 0xa76   : > { %v2858_v51 = vadd.f32 %v8556_v33, %v2850_v0  ;;  %v2973_v12 = vpop.permute.xlu0 %2972  ;;  %v4097_v33 = vstv %s9053_s11  ;;  %v4091_v4 = vrot.slane %v4089_v14, 2  ;;  %v4722_v14 = vstv %s9100_s8  ;;  %s9168_s11 = sld [smem:[#allocation10 + $0xc5]] }
 0xa77   : > { %v4098_v0 = vmul.f32 %v4097_v33, %v8418_v41  ;;  %s9199_s8 = sld [smem:[#allocation11 + $0x7]] }
 0xa78   : > { %v2866_v45 = vadd.f32 %v8554_v52, %v2858_v51  ;;  %v2957_v52 = vadd.f32 %v2955_v34, %v2950_v8  ;;  %v3740_v51 = vrot.slane %v3738_v15, 1  ;;  %v3755_v34 = vstv %s9083_s29  ;;  %s9184_s29 = sld [smem:[#allocation11 + $0x2]] }
 0xa79   : > { %v3746_v11 = vstv %s9072_s1  ;;  %v3756_v33 = vmul.f32 %v3755_v34, %v8418_v41  ;;  %v4421_v15 = vstv %s9104_s6  ;;  %s9178_s1 = sld [smem:[#allocation10 + $0x10a]] }
 0xa7a   : > { %v2874_v19 = vadd.f32 %v8508_v54, %v2866_v45  ;;  %v2966_v7 = vadd.f32 %v8929_v38, %v2957_v52  ;;  %v3425_v45 = vstv %s9077_s26  ;;  %s9180_s26 = sld [smem:[#allocation10 + $0xd8]] }
 0xa7b   : > { %4407 = vrot.lane.b32.xlu2 %v4406_v48, %s6317_s14  ;;  %4083 = vrot.lane.b32.xlu1 %v4082_v37, %s6319_s21  ;;  %v3747_v37 = vmul.f32 %v3746_v11, %v8418_v41  ;;  %s9204_s6 = sld [smem:[#allocation10 + $0xb7]] }
 0xa7c   : > { %v2883_v39 = vadd.f32 %v9017_v30, %v2874_v19  ;;  %3108 = vrot.lane.b32.xlu0 %v3107_v9, %s6322_s30  ;;  %v2978_v30 = vmul.f32 %v2977_v40, %v8418_v41  ;;  %v2975_v36 = vadd.f32 %v2973_v12, %v2966_v7  ;;  %v3426_v19 = vmul.f32 %v3425_v45, %v8418_v41 }
 0xa7d   : > { %v9087_v54 = vpop.permute.xlu2 %3360  ;;  %v2917_v22 = vpop.permute.xlu1 %2916  ;;  %v3749_v52 = vrot.slane %v3747_v37, 2  ;;  %v3625_v7 = vstv %s9111_s22  ;;  %v3434_v37 = vstv %s9130_s24  ;;  %s9210_s22 = sld [smem:[#allocation10 + $0x7d]] }
 0xa7e   : > { %v2892_v2 = vadd.f32 %v2890_v26, %v2883_v39  ;;  %v9092_v27 = vpop.permute.xlu0 %3030  ;;  %v4100_v26 = vrot.slane %v4098_v0, 2  ;;  %v2980_v8 = vrot.slane %v2978_v30, 2  ;;  %v3428_v39 = vrot.slane %v3426_v19, 2  ;;  %s9229_s24 = sld [smem:[#allocation10 + $0xba]] }
 0xa7f   : > { %v3626_v11 = vmul.f32 %v3625_v7, %v8418_v41  ;;  %v3113_v19 = vstv %s9132_s27  ;;  %s9232_s27 = sld [smem:[#allocation10 + $0x4b]] }
 0xa80   : > { %v2901_v42 = vadd.f32 %v8881_v16, %v2892_v2  ;;  %v2982_v12 = vadd.f32 %v2980_v8, %v2975_v36  ;;  %v4422_v36 = vmul.f32 %v4421_v15, %v8418_v41  ;;  %v3114_v15 = vmul.f32 %v3113_v19, %v8418_v41 }
 0xa82   : > { %v2910_v38 = vadd.f32 %v9043_v10, %v2901_v42  ;;  %v4723_v42 = vmul.f32 %v4722_v14, %v8418_v41  ;;  %v4424_v34 = vrot.slane %v4422_v36, 2  ;;  %v3435_v14 = vmul.f32 %v3434_v37, %v8418_v41 }
 0xa83   : > { %4092 = vrot.lane.b32.xlu2 %v4091_v4, %s6318_s16  ;;  %3741 = vrot.lane.b32.xlu1 %v3740_v51, %s6317_s14  ;;  %v3116_v36 = vrot.slane %v3114_v15, 1 }
 0xa84   : > { %v2919_v16 = vadd.f32 %v2917_v22, %v2910_v38  ;;  %4101 = vrot.lane.b32.xlu0 %v4100_v26, %s6317_s14  ;;  %v3758_v22 = vrot.slane %v3756_v33, 2  ;;  %v3623_v26 = vstv %s9120_s20  ;;  %v4725_v45 = vrot.slane %v4723_v42, 1  ;;  %s9219_s20 = sld [smem:[#allocation10 + $0x72]] }
 0xa85   : > { %v9116_v10 = vpop.permute.xlu2 %4356  ;;  %v2989_v48 = vpop.permute.xlu1 %2988  ;;  %v3978_v33 = vstv %s9142_s5  ;;  %s9244_s5 = sld [smem:[#allocation10 + $0xe6]] }
 0xa86   : > { %v2928_v9 = vadd.f32 %v8907_v61, %v2919_v16  ;;  %v2991_v59 = vadd.f32 %v2989_v48, %v2982_v12  ;;  %v9123_v43 = vpop.permute.xlu0 %3057  ;;  %v3645_v16 = vstv %s9126_s15  ;;  %s9221_s15 = sld [smem:[#allocation10 + $0xfc]] }
 0xa88   : > { %v3000_v40 = vadd.f32 %v8950_v25, %v2991_v59  ;;  %5741 = vmatmul.msk.f32.vlgmr.msrb.gmra.mxu3 %vm3239_vm9, %v2928_v9  ;;  %v4731_v25 = vstv %s9109_s28  ;;  %v3627_v9 = vadd.f32 %v3626_v11, %v3623_v26  ;;  %v3131_v59 = vstv %s9137_s4  ;;  %s9206_s28 = sld [smem:[#allocation10 + $0x3b]] }
 0xa89   : > { %v4430_v11 = vstv %s9168_s11  ;;  %s9240_s4 = sld [smem:[#allocation10 + $0x109]] }
 0xa8a   : > { %v3008_v61 = vadd.f32 %v8580_v63, %v3000_v40  ;;  %v3958_v63 = vstv %s9114_s19  ;;  %s9216_s19 = sld [smem:[#allocation10 + $0xe8]] }
 0xa8b   : > { %3750 = vrot.lane.b32.xlu2 %v3749_v52, %s6319_s21  ;;  %3429 = vrot.lane.b32.xlu1 %v3428_v39, %s6318_s16  ;;  %v3959_v38 = vmul.f32 %v3958_v63, %v8418_v41  ;;  %v3635_v52 = vadd.f32 %v8614_v55, %v3627_v9  ;;  %v3132_v55 = vmul.f32 %v3131_v59, %v8418_v41  ;;  %v4289_v59 = vstv %s9152_s13  ;;  %s9248_s13 = sld [smem:[#allocation10 + $0x5d]] }
 0xa8c   : > { %3759 = vrot.lane.b32.xlu0 %v3758_v22, %s6318_s16  ;;  %v3016_v2 = vadd.f32 %v8578_v5, %v3008_v61  ;;  %v4732_v5 = vmul.f32 %v4731_v25, %v8418_v41  ;;  %v3646_v22 = vmul.f32 %v3645_v16, %v8418_v41  ;;  %v4431_v16 = vmul.f32 %v4430_v11, %v8418_v41  ;;  %s9261_s11 = sld [smem:[#allocation10 + $0xdb]] }
 0xa8d   : > { %v9148_v0 = vpop.permute.xlu2 %3690  ;;  %v3040_v30 = vpop.permute.xlu1 %3039  ;;  %v3643_v63 = vadd.f32 %v8628_v44, %v3635_v52  ;;  %v4291_v44 = vstv %s9158_s18  ;;  %s9254_s18 = sld [smem:[#allocation10 + $0x96]] }
 0xa8e   : > { %v3024_v4 = vadd.f32 %v8516_v35, %v3016_v2  ;;  %v9155_v51 = vpop.permute.xlu0 %3998  ;;  %v3956_v35 = vstv %s9096_s0  ;;  %v4734_v48 = vrot.slane %v4732_v5, 1  ;;  %s9193_s0 = sld [smem:[#allocation10 + $0x48]]  ;;  %v3979_v2 = vmul.f32 %v3978_v33, %v8418_v41 }
 0xa8f   : > { %v3648_v42 = vrot.slane %v3646_v22, 1 }
 0xa90   : > { %v3033_v8 = vadd.f32 %v9092_v27, %v3024_v4  ;;  %v3960_v27 = vadd.f32 %v3959_v38, %v3956_v35  ;;  %v3134_v4 = vrot.slane %v3132_v55, 2  ;;  %v3981_v5 = vrot.slane %v3979_v2, 1 }
 0xa91   : > { %v5052_v38 = vstv %s9172_s12  ;;  %v3650_v26 = vadd.f32 %v3648_v42, %v3643_v63  ;;  %v4758_v55 = vstv %s9216_s19  ;;  %v3670_v42 = vstv %s9219_s20  ;;  %s9278_s12 = sld [smem:[#allocation10 + $0x3d]] }
 0xa92   : > { %v3042_v12 = vadd.f32 %v3040_v30, %v3033_v8  ;;  %v3968_v25 = vadd.f32 %v8528_v56, %v3960_v27  ;;  %v4628_v27 = vstv %s9180_s26  ;;  %s9289_s26 = sld [smem:[#allocation10 + $0x4e]] }
 0xa93   : > { %4726 = vrot.lane.b32.xlu2 %v4725_v45, %s6319_s21  ;;  %4425 = vrot.lane.b32.xlu1 %v4424_v34, %s6318_s16  ;;  %s9349_s19 = sld [smem:[#allocation10 + $0x10b]] }
 0xa94   : > { %v3051_v40 = vadd.f32 %v8970_v17, %v3042_v12  ;;  %4735 = vrot.lane.b32.xlu0 %v4734_v48, %s6318_s16  ;;  %v3976_v30 = vadd.f32 %v8602_v13, %v3968_v25  ;;  %v5070_v13 = vstv %s9178_s1  ;;  %v5053_v12 = vmul.f32 %v5052_v38, %v8418_v41  ;;  %s9282_s1 = sld [smem:[#allocation10 + $0xc9]] }
 0xa95   : > { %v9187_v39 = vpop.permute.xlu2 %4668  ;;  %v3067_v61 = vpop.permute.xlu1 %3066  ;;  %v4292_v48 = vmul.f32 %v4291_v44, %v8418_v41  ;;  %v5071_v9 = vmul.f32 %v5070_v13, %v8418_v41  ;;  %v3295_v52 = vstv %s9193_s0  ;;  %v4336_v13 = vstv %s9229_s24  ;;  %s9310_s0 = sld [smem:[#allocation10 + $0x3e]] }
 0xa96   : > { %v3060_v17 = vadd.f32 %v9123_v43, %v3051_v40  ;;  %v3657_v7 = vpop.permute.xlu0 %3656  ;;  %v3437_v43 = vrot.slane %v3435_v14, 2  ;;  %v3983_v8 = vadd.f32 %v3981_v5, %v3976_v30  ;;  %v5055_v22 = vrot.slane %v5053_v12, 1  ;;  %s9355_s20 = sld [smem:[#allocation10 + $0x10d]] }
 0xa97   : > { %v3659_v35 = vadd.f32 %v3657_v7, %v3650_v26  ;;  %v4311_v14 = vstv %s9204_s6  ;;  %v4293_v15 = vadd.f32 %v4292_v48, %v4289_v59  ;;  %v5073_v25 = vrot.slane %v5071_v9, 1  ;;  %s9319_s6 = sld [smem:[#allocation10 + $0xa7]] }
 0xa98   : > { %v9202_v56 = vadd.f32 %v3067_v61, %v3060_v17  ;;  %v4433_v61 = vrot.slane %v4431_v16, 2  ;;  %v3122_v17 = vstv %s9206_s28  ;;  %v3764_v7 = vstv %s9210_s22  ;;  %s9325_s28 = sld [smem:[#allocation10 + $0xde]] }
 0xa99   : > { %v4301_v2 = vadd.f32 %v8540_v50, %v4293_v15  ;;  %v3296_v63 = vmul.f32 %v3295_v52, %v8418_v41  ;;  %v4312_v30 = vmul.f32 %v4311_v14, %v8418_v41  ;;  %v3123_v11 = vmul.f32 %v3122_v17, %v8418_v41  ;;  %s9344_s22 = sld [smem:[#allocation10 + $0xa6]] }
 0xa9a   : > { %v3765_v50 = vmul.f32 %v3764_v7, %v8418_v41  ;;  %v4759_v26 = vmul.f32 %v4758_v55, %v8418_v41  ;;  %v3315_v16 = vstv %s9232_s27  ;;  %v3467_v52 = vstv %s9248_s13  ;;  %s9372_s24 = sld [smem:[#allocation10 + $0xe9]] }
 0xa9b   : > { %3438 = vrot.lane.b32.xlu2 %v3437_v43, %s6317_s14  ;;  %3117 = vrot.lane.b32.xlu1 %v3116_v36, %s6321_s7  ;;  %v4626_v43 = vstv %s9162_s10  ;;  %v3293_v36 = vstv %s9184_s29  ;;  %v4309_v38 = vadd.f32 %v8552_v29, %v4301_v2  ;;  %v4314_v12 = vrot.slane %v4312_v30, 1  ;;  %s9274_s10 = sld [smem:[#allocation10 + $0xe7]] }
 0xa9c   : > { %3135 = vrot.lane.b32.xlu0 %v3134_v4, %s6322_s30  ;;  %v3125_v48 = vrot.slane %v3123_v11, 1  ;;  %v4337_v29 = vmul.f32 %v4336_v13, %v8418_v41  ;;  %v4761_v59 = vrot.slane %v4759_v26, 2  ;;  %v4003_v15 = vstv %s9254_s18  ;;  %s9295_s29 = sld [smem:[#allocation10 + $0xff]] }
 0xa9d   : > { %v9223_v45 = vpop.permute.xlu2 %4998  ;;  %v3990_v34 = vpop.permute.xlu1 %3989  ;;  %v4316_v9 = vadd.f32 %v4314_v12, %v4309_v38  ;;  %v4958_v17 = vstv %s9221_s15  ;;  %s9366_s15 = sld [smem:[#allocation10 + $0x10c]] }
 0xa9e   : > { %v3992_v37 = vadd.f32 %v3990_v34, %v3983_v8  ;;  %v3666_v19 = vpop.permute.xlu0 %3665  ;;  %v3671_v8 = vmul.f32 %v3670_v42, %v8418_v41  ;;  %v3297_v34 = vadd.f32 %v3296_v63, %v3293_v36  ;;  %v4339_v36 = vrot.slane %v4337_v29, 2  ;;  %s9376_s27 = sld [smem:[#allocation10 + $0x82]] }
 0xa9f   : > { %v9234_v33 = vadd.f32 %v3666_v19, %v3659_v35  ;;  %v5061_v19 = vstv %s9240_s4  ;;  %v4959_v38 = vmul.f32 %v4958_v17, %v8418_v41  ;;  %s9381_s4 = sld [smem:[#allocation10 + $0x102]] }
 0xaa0   : > { %v9238_v40 = vadd.f32 %v9155_v51, %v3992_v37  ;;  %v4629_v51 = vmul.f32 %v4628_v27, %v8418_v41  ;;  %v3767_v37 = vrot.slane %v3765_v50, 2  ;;  %v4740_v27 = vstv %s9244_s5  ;;  %s9395_s5 = sld [smem:[#allocation10 + $0x81]] }
 0xaa1   : > { %v3673_v14 = vrot.slane %v3671_v8, 2  ;;  %v5062_v30 = vmul.f32 %v5061_v19, %v8418_v41  ;;  %v4741_v42 = vmul.f32 %v4740_v27, %v8418_v41  ;;  %v4004_v50 = vmul.f32 %v4003_v15, %v8418_v41  ;;  %s9399_s13 = sld [smem:[#allocation10 + $0x5e]] }
 0xaa2   : > { %v4630_v35 = vadd.f32 %v4629_v51, %v4626_v43  ;;  %v4648_v51 = vstv %s9261_s11  ;;  %v3468_v43 = vmul.f32 %v3467_v52, %v8418_v41  ;;  %v4749_v12 = vstv %s9274_s10  ;;  %s9405_s18 = sld [smem:[#allocation10 + $0x60]] }
 0xaa3   : > { %4434 = vrot.lane.b32.xlu2 %v4433_v61, %s6317_s14  ;;  %5056 = vrot.lane.b32.xlu1 %v5055_v22, %s6319_s21  ;;  %v4956_v61 = vstv %s9199_s8  ;;  %v3316_v22 = vmul.f32 %v3315_v16, %v8418_v41  ;;  %v3675_v63 = vadd.f32 %v3673_v14, %v9234_v33  ;;  %v4649_v13 = vmul.f32 %v4648_v51, %v8418_v41  ;;  %s9315_s8 = sld [smem:[#allocation10 + $0xa5]] }
 0xaa4   : > { %5074 = vrot.lane.b32.xlu0 %v5073_v25, %s6317_s14  ;;  %v4638_v25 = vadd.f32 %v8564_v3, %v4630_v35  ;;  %v3305_v3 = vadd.f32 %v8604_v28, %v3297_v34  ;;  %v5064_v34 = vrot.slane %v5062_v30, 1  ;;  %v4006_v19 = vrot.slane %v4004_v50, 2  ;;  %s9417_s11 = sld [smem:[#allocation10 + $0xca]] }
 0xaa5   : > { %v9265_v4 = vpop.permute.xlu2 %4056  ;;  %v4323_v5 = vpop.permute.xlu1 %4322  ;;  %v3318_v26 = vrot.slane %v3316_v22, 1  ;;  %v3340_v27 = vstv %s9289_s26  ;;  %v4978_v14 = vstv %s9295_s29  ;;  %s5884_s10 = sld [smem:[#allocation10 + $0xcc]] }
 0xaa6   : > { %v4348_v44 = vpop.permute.xlu0 %4347  ;;  %v4325_v7 = vadd.f32 %v4323_v5, %v4316_v9  ;;  %v4646_v8 = vadd.f32 %v8576_v1, %v4638_v25  ;;  %v3313_v35 = vadd.f32 %v8616_v60, %v3305_v3  ;;  %v3140_v9 = vstv %s9278_s12  ;;  %s9437_s12 = sld [smem:[#allocation10 + $0x42]] }
 0xaa7   : > { %v4463_v1 = vstv %s9282_s1  ;;  %v4960_v60 = vadd.f32 %v4959_v38, %v4956_v61  ;;  %v4008_v22 = vadd.f32 %v4006_v19, %v9238_v40  ;;  %s9447_s1 = sld [smem:[#allocation10 + $0xa9]] }
 0xaa8   : > { %v3320_v52 = vadd.f32 %v3318_v26, %v3313_v35  ;;  %v4464_v51 = vmul.f32 %v4463_v1, %v8418_v41  ;;  %s9451_s26 = sld [smem:[#allocation10 + $0x83]] }
 0xaa9   : > { %v4968_v61 = vadd.f32 %v8640_v24, %v4960_v60  ;;  %v4979_v24 = vmul.f32 %v4978_v14, %v8418_v41  ;;  %v5079_v14 = vstv %s9349_s19  ;;  %s9456_s29 = sld [smem:[#allocation10 + $0xaa]] }
 0xaaa   : > { %v4466_v38 = vrot.slane %v4464_v51, 1  ;;  %s5922_s19 = sld [smem:[#allocation10 + $0xee]] }
 0xaab   : > { %3126 = vrot.lane.b32.xlu2 %v3125_v48, %s10093_s17  ;;  %3768 = vrot.lane.b32.xlu1 %v3767_v37, %s6317_s14  ;;  %v4743_v48 = vrot.slane %v4741_v42, 1  ;;  %v3470_v37 = vrot.slane %v3468_v43, 1  ;;  %v3341_v42 = vmul.f32 %v3340_v27, %v8418_v41 }
 0xaac   : > { %4762 = vrot.lane.b32.xlu0 %v4761_v59, %s6318_s16  ;;  %v4651_v59 = vrot.slane %v4649_v13, 1  ;;  %v4130_v13 = vstv %s9315_s8  ;;  %s9475_s8 = sld [smem:[#allocation10 + $0x61]] }
 0xaad   : > { %v9297_v55 = vpop.permute.xlu2 %3393  ;;  %v4332_v2 = vpop.permute.xlu1 %4331 }
 0xaae   : > { %v4334_v5 = vadd.f32 %v4332_v2, %v4325_v7  ;;  %v3682_v11 = vpop.permute.xlu0 %3681  ;;  %v4653_v17 = vadd.f32 %v4651_v59, %v4646_v8  ;;  %v3141_v7 = vmul.f32 %v3140_v9, %v8418_v41  ;;  %v3329_v2 = vadd.f32 %v9010_v53, %v3320_v52 }
 0xaaf   : > { %v3684_v33 = vadd.f32 %v3682_v11, %v3675_v63  ;;  %v3149_v53 = vstv %s9310_s0  ;;  %v4139_v52 = vstv %s9344_s22  ;;  %s9471_s0 = sld [smem:[#allocation10 + $0x84]] }
 0xab0   : > { %v4341_v16 = vadd.f32 %v4339_v36, %v4334_v5  ;;  %v3338_v3 = vadd.f32 %v9037_v57, %v3329_v2  ;;  %v3143_v50 = vrot.slane %v3141_v7, 2  ;;  %v3343_v57 = vrot.slane %v3341_v42, 2  ;;  %s5885_s22 = sld [smem:[#allocation10 + $0xcd]] }
 0xab1   : > { %v9313_v28 = vadd.f32 %v9148_v0, %v3684_v33  ;;  %v4750_v0 = vmul.f32 %v4749_v12, %v8418_v41  ;;  %v3150_v12 = vmul.f32 %v3149_v53, %v8418_v41  ;;  %v3806_v53 = vstv %s9376_s27  ;;  %s9520_s27 = sld [smem:[#allocation10 + $0xce]] }
 0xab2   : > { %v4350_v29 = vadd.f32 %v4348_v44, %v4341_v16  ;;  %v3345_v8 = vadd.f32 %v3343_v57, %v3338_v3 }
 0xab3   : > { %5065 = vrot.lane.b32.xlu2 %v5064_v34, %s6318_s16  ;;  %4744 = vrot.lane.b32.xlu1 %v4743_v48, %s6317_s14  ;;  %v4752_v43 = vrot.slane %v4750_v0, 2  ;;  %v4131_v34 = vmul.f32 %v4130_v13, %v8418_v41  ;;  %v3152_v0 = vrot.slane %v3150_v12, 2  ;;  %v3476_v12 = vstv %s9399_s13  ;;  %s9537_s13 = sld [smem:[#allocation10 + $0x44]] }
 0xab4   : > { %v4359_v44 = vadd.f32 %v9116_v10, %v4350_v29  ;;  %3471 = vrot.lane.b32.xlu0 %v3470_v37, %s6322_s30 }
 0xab5   : > { %v4390_v15 = vpop.permute.xlu2 %4389  ;;  %v4015_v25 = vpop.permute.xlu1 %4014  ;;  %v4133_v27 = vrot.slane %v4131_v34, 1  ;;  %v3494_v34 = vstv %s9405_s18  ;;  %s9541_s18 = sld [smem:[#allocation10 + $0x86]] }
 0xab6   : > { %v4367_v63 = vadd.f32 %v8662_v31, %v4359_v44  ;;  %v4017_v10 = vadd.f32 %v4015_v25, %v4008_v22  ;;  %v4660_v30 = vpop.permute.xlu0 %4659  ;;  %v4976_v31 = vadd.f32 %v8626_v20, %v4968_v61  ;;  %v4148_v20 = vstv %s9319_s6  ;;  %s9480_s6 = sld [smem:[#allocation10 + $0x85]] }
 0xab7   : > { %v4662_v40 = vadd.f32 %v4660_v30, %v4653_v17  ;;  %v4149_v29 = vmul.f32 %v4148_v20, %v8418_v41  ;;  %v4140_v25 = vmul.f32 %v4139_v52, %v8418_v41  ;;  %v5080_v17 = vmul.f32 %v5079_v14, %v8418_v41 }
 0xab8   : > { %v4375_v36 = vadd.f32 %v8686_v58, %v4367_v63  ;;  %v4026_v5 = vadd.f32 %v9064_v47, %v4017_v10  ;;  %v4981_v58 = vrot.slane %v4979_v24, 1  ;;  %v4673_v47 = vstv %s9325_s28  ;;  %v10349_v63 = vld [vmem:[#allocation61_spill] sm:$0xff]  ;;  %s9492_s28 = sld [smem:[#allocation10 + $0xed]] }
 0xab9   : > { %v4671_v11 = vadd.f32 %v9187_v39, %v4662_v40  ;;  %v4674_v19 = vmul.f32 %v4673_v47, %v8418_v41  ;;  %v4151_v22 = vrot.slane %v4149_v29, 1  ;;  %v5082_v42 = vrot.slane %v5080_v17, 2  ;;  %v10350_v40 = vld [vmem:[#allocation65_spill] sm:$0xff] }
 0xaba   : > { %v4383_v26 = vadd.f32 %v8689_v46, %v4375_v36  ;;  %v4034_v33 = vadd.f32 %v8638_v6, %v4026_v5  ;;  %v4983_v16 = vadd.f32 %v4981_v58, %v4976_v31  ;;  %v5088_v36 = vstv %s9366_s15  ;;  %s5732_s15 = sld [smem:[#allocation10 + $0x43]] }
 0xabb   : > { %4753 = vrot.lane.b32.xlu2 %v4752_v43, %s6319_s21  ;;  %3144 = vrot.lane.b32.xlu1 %v3143_v50, %s6321_s7  ;;  %v4767_v5 = vstv %s9372_s24  ;;  %v5003_v31 = vstv %s9381_s4  ;;  %v10351_v50 = vld [vmem:[#allocation34_spill] sm:$0xff]  ;;  %v3807_v20 = vmul.f32 %v3806_v53, %v8418_v41  ;;  %s5734_s24 = sld [smem:[#allocation10 + $0x45]] }
 0xabc   : > { %v4392_v39 = vadd.f32 %v4390_v15, %v4383_v26  ;;  %4467 = vrot.lane.b32.xlu0 %v4466_v38, %s6322_s30  ;;  %v4042_v46 = vadd.f32 %v8653_v18, %v4034_v33  ;;  %v5089_v26 = vmul.f32 %v5088_v36, %v8418_v41  ;;  %v4768_v33 = vmul.f32 %v4767_v5, %v8418_v41  ;;  %s9523_s4 = sld [smem:[#allocation10 + $0x111]] }
 0xabd   : > { %v3403_v6 = vpop.permute.xlu2 %3402  ;;  %v3352_v35 = vpop.permute.xlu1 %3351  ;;  %v5004_v47 = vmul.f32 %v5003_v31, %v8418_v41  ;;  %v4490_v14 = vstv %s5884_s10  ;;  %s9561_s10 = sld [smem:[#allocation10 + $0xef]] }
 0xabe   : > { %v3354_v48 = vadd.f32 %v3352_v35, %v3345_v8  ;;  %v4990_v37 = vpop.permute.xlu0 %4989  ;;  %v4050_v9 = vadd.f32 %v8665_v62, %v4042_v46  ;;  %v4676_v62 = vrot.slane %v4674_v19, 2  ;;  %v5091_v8 = vrot.slane %v5089_v26, 2 }
 0xabf   : > { %v4992_v1 = vadd.f32 %v4990_v37, %v4983_v16  ;;  %v4770_v46 = vrot.slane %v4768_v33, 2  ;;  %v5006_v35 = vrot.slane %v5004_v47, 2  ;;  %v3797_v16 = vstv %s9395_s5  ;;  %s5962_s5 = sld [smem:[#allocation10 + $0x113]] }
 0xac0   : > { %v3363_v18 = vadd.f32 %v9087_v54, %v3354_v48  ;;  %v4059_v60 = vadd.f32 %v9265_v4, %v4050_v9  ;;  %v5097_v54 = vstv %s9355_s20  ;;  %v4678_v4 = vadd.f32 %v4676_v62, %v4671_v11  ;;  %s9506_s20 = sld [smem:[#allocation10 + $0x62]] }
 0xac1   : > { %v9369_v59 = vadd.f32 %v9223_v45, %v4992_v1  ;;  %v3798_v19 = vmul.f32 %v3797_v16, %v8418_v41  ;;  %v3477_v9 = vmul.f32 %v3476_v12, %v8418_v41 }
 0xac2   : > { %v3371_v44 = vadd.f32 %v8650_v49, %v3363_v18  ;;  %v3701_v49 = vadd.f32 %v8588_v32, %v9313_v28  ;;  %v4142_v28 = vrot.slane %v4140_v25, 1  ;;  %v4491_v25 = vmul.f32 %v4490_v14, %v8418_v41 }
 0xac3   : > { %3153 = vrot.lane.b32.xlu2 %v3152_v0, %s10093_s17  ;;  %4134 = vrot.lane.b32.xlu1 %v4133_v27, %s6322_s30  ;;  %v5008_v48 = vadd.f32 %v5006_v35, %v9369_v59  ;;  %v3495_v0 = vmul.f32 %v3494_v34, %v8418_v41  ;;  %v3800_v52 = vrot.slane %v3798_v19, 1  ;;  %v4472_v59 = vstv %s9417_s11  ;;  %s9555_s11 = sld [smem:[#allocation10 + $0x112]] }
 0xac4   : > { %v3379_v45 = vadd.f32 %v8674_v21, %v3371_v44  ;;  %4152 = vrot.lane.b32.xlu0 %v4151_v22, %s10093_s17  ;;  %v5098_v21 = vmul.f32 %v5097_v54, %v8418_v41  ;;  %v3709_v43 = vadd.f32 %v10350_v40, %v3701_v49  ;;  %v3479_v44 = vrot.slane %v3477_v9, 1 }
 0xac5   : > { %v4399_v61 = vpop.permute.xlu2 %4398  ;;  %v4685_v15 = vpop.permute.xlu1 %4684  ;;  %v3497_v22 = vrot.slane %v3495_v0, 2  ;;  %v4473_v49 = vmul.f32 %v4472_v59, %v8418_v41  ;;  %v3503_v0 = vstv %s9475_s8  ;;  %s9616_s8 = sld [smem:[#allocation10 + $0xaf]] }
 0xac6   : > { %v4401_v7 = vadd.f32 %v4399_v61, %v4392_v39  ;;  %v4687_v51 = vadd.f32 %v4685_v15, %v4678_v4  ;;  %v4694_v2 = vpop.permute.xlu0 %4693  ;;  %v3387_v10 = vadd.f32 %v10349_v63, %v3379_v45  ;;  %v5100_v24 = vrot.slane %v5098_v21, 2 }
 0xac7   : > { %v3717_v38 = vadd.f32 %v10351_v50, %v3709_v43  ;;  %v4493_v21 = vrot.slane %v4491_v25, 2  ;;  %v3504_v59 = vmul.f32 %v3503_v0, %v8418_v41 }
 0xac8   : > { %v9391_v30 = vadd.f32 %v4694_v2, %v4687_v51  ;;  %v3396_v32 = vadd.f32 %v9297_v55, %v3387_v10  ;;  %v4475_v2 = vrot.slane %v4473_v49, 1 }
 0xaca   : > { %v3405_v3 = vadd.f32 %v3403_v6, %v3396_v32  ;;  %v3809_v6 = vrot.slane %v3807_v20, 1  ;;  %v3182_v32 = vstv %s9437_s12  ;;  %v10356_v20 = vld [vmem:[#allocation53_spill] sm:$0xff]  ;;  %s9579_s12 = sld [smem:[#allocation10 + $0x46]] }
 0xacb   : > { %4143 = vrot.lane.b32.xlu2 %v4142_v28, %s6321_s7  ;;  %5083 = vrot.lane.b32.xlu1 %v5082_v42, %s6319_s21  ;;  %s9413_s21 = sld [smem:[#allocation10 + $0x5f]]  ;;  %v10352_v28 = vld [vmem:[#allocation95_spill] sm:$0xff]  ;;  %v3183_v53 = vmul.f32 %v3182_v32, %v8418_v41 }
 0xacc   : > { %5101 = vrot.lane.b32.xlu0 %v5100_v24, %s6317_s14  ;;  %v4704_v42 = vadd.f32 %v10352_v28, %v9391_v30  ;;  %v10354_v30 = vld [vmem:[#allocation79_spill] sm:$0xff] }
 0xacd   : > { %v3412_v55 = vpop.permute.xlu2 %3411  ;;  %v4066_v11 = vpop.permute.xlu1 %4065  ;;  %v3185_v33 = vrot.slane %v3183_v53, 1 }
 0xace   : > { %v3414_v57 = vadd.f32 %v3412_v55, %v3405_v3  ;;  %v4068_v13 = vadd.f32 %v4066_v11, %v4059_v60  ;;  %v3724_v58 = vpop.permute.xlu0 %3723  ;;  %v4712_v55 = vadd.f32 %v10354_v30, %v4704_v42 }
 0xacf   : > { %v3726_v39 = vadd.f32 %v3724_v58, %v3717_v38  ;;  %v10355_v38 = vld [vmem:[#allocation57_spill] sm:$0xff]  ;;  %v4175_v58 = vstv %s9456_s29  ;;  %s9598_s29 = sld [smem:[#allocation10 + $0xae]] }
 0xad0   : > { %v4720_v47 = vadd.f32 %v10356_v20, %v4712_v55 }
 0xad1   : > { %v3485_v62 = vstv %s9413_s21  ;;  %s9545_s21 = sld [smem:[#allocation10 + $0xf1]] }
 0xad2   : > { %v3486_v4 = vmul.f32 %v3485_v62, %v8418_v41 }
 0xad3   : > { %5092 = vrot.lane.b32.xlu2 %v5091_v8, %s6318_s16  ;;  %4771 = vrot.lane.b32.xlu1 %v4770_v46, %s6317_s14  ;;  %s9429_s14 = sld [smem:[#allocation10 + $0xcb]]  ;;  %v10357_v46 = vld [vmem:[#allocation50_spill] sm:$0xff] }
 0xad4   : > { %3810 = vrot.lane.b32.xlu0 %v3809_v6, %s6321_s7  ;;  %s9433_s16 = sld [smem:[#allocation10 + $0xa8]]  ;;  %v3488_v51 = vrot.slane %v3486_v4, 1 }
 0xad5   : > { %v4408_v37 = vpop.permute.xlu2 %4407  ;;  %v5015_v29 = vpop.permute.xlu1 %5014 }
 0xad6   : > { %v4410_v1 = vadd.f32 %v4408_v37, %v4401_v7  ;;  %v5017_v18 = vadd.f32 %v5015_v29, %v5008_v48  ;;  %v3733_v60 = vpop.permute.xlu0 %3732  ;;  %v3078_v7 = vadd.f32 %v8989_v23, %v9202_v56  ;;  %v10353_v23 = vld [vmem:[#allocation29_spill] sm:$0xff]  ;;  %v4176_v37 = vmul.f32 %v4175_v58, %v8418_v41 }
 0xad7   : > { %v9427_v27 = vadd.f32 %v3733_v60, %v3726_v39  ;;  %v3824_v60 = vstv %s9471_s0  ;;  %s9603_s0 = sld [smem:[#allocation10 + $0x67]] }
 0xad8   : > { %v3086_v56 = vadd.f32 %v10353_v23, %v3078_v7  ;;  %v3825_v62 = vmul.f32 %v3824_v60, %v8418_v41  ;;  %v4800_v7 = vstv %s9492_s28  ;;  %s9627_s28 = sld [smem:[#allocation10 + $0xd3]] }
 0xad9   : > { %v4481_v63 = vstv %s9429_s14  ;;  %s9566_s14 = sld [smem:[#allocation10 + $0x66]] }
 0xada   : > { %v4157_v10 = vstv %s9433_s16  ;;  %v4482_v24 = vmul.f32 %v4481_v63, %v8418_v41  ;;  %v3094_v26 = vadd.f32 %v10355_v38, %v3086_v56  ;;  %v4801_v63 = vmul.f32 %v4800_v7, %v8418_v41  ;;  %s9573_s16 = sld [smem:[#allocation10 + $0xf0]] }
 0xadb   : > { %3801 = vrot.lane.b32.xlu2 %v3800_v52, %s6322_s30  ;;  %3480 = vrot.lane.b32.xlu1 %v3479_v44, %s6321_s7  ;;  %v4158_v3 = vmul.f32 %v4157_v10, %v8418_v41  ;;  %v3833_v52 = vstv %s9480_s6  ;;  %s9620_s6 = sld [smem:[#allocation10 + $0x114]] }
 0xadc   : > { %3498 = vrot.lane.b32.xlu0 %v3497_v22, %s6322_s30  ;;  %v4484_v11 = vrot.slane %v4482_v24, 1  ;;  %v3102_v6 = vadd.f32 %v10357_v46, %v3094_v26 }
 0xadd   : > { %v4093_v54 = vpop.permute.xlu2 %4092  ;;  %v4075_v45 = vpop.permute.xlu1 %4074  ;;  %v4160_v50 = vrot.slane %v4158_v3, 2  ;;  %v3512_v3 = vstv %s9506_s20  ;;  %s9653_s20 = sld [smem:[#allocation10 + $0x68]] }
 0xade   : > { %v4077_v61 = vadd.f32 %v4075_v45, %v4068_v13  ;;  %v3421_v15 = vpop.permute.xlu0 %3420  ;;  %v3815_v13 = vstv %s9451_s26  ;;  %v3834_v45 = vmul.f32 %v3833_v52, %v8418_v41  ;;  %v3513_v55 = vmul.f32 %v3512_v3, %v8418_v41  ;;  %s9594_s26 = sld [smem:[#allocation10 + $0x47]] }
 0xadf   : > { %v9443_v17 = vadd.f32 %v3421_v15, %v3414_v57  ;;  %v4166_v57 = vstv %s9447_s1  ;;  %v3816_v16 = vmul.f32 %v3815_v13, %v8418_v41  ;;  %v3506_v15 = vrot.slane %v3504_v59, 2  ;;  %s9584_s1 = sld [smem:[#allocation10 + $0xd2]] }
 0xae0   : > { %v4167_v35 = vmul.f32 %v4166_v57, %v8418_v41  ;;  %v3836_v25 = vrot.slane %v3834_v45, 2  ;;  %v3515_v13 = vrot.slane %v3513_v55, 2  ;;  %v3200_v52 = vstv %s9537_s13  ;;  %v10362_v55 = vld [vmem:[#allocation39_spill] sm:$0xff]  ;;  %s9692_s13 = sld [smem:[#allocation10 + $0x8c]] }
 0xae2   : > { %v4169_v9 = vrot.slane %v4167_v35, 2 }
 0xae3   : > { %3489 = vrot.lane.b32.xlu2 %v3488_v51, %s10093_s17  ;;  %4476 = vrot.lane.b32.xlu1 %v4475_v2, %s6321_s7  ;;  %v4499_v51 = vstv %s5885_s22  ;;  %v4809_v2 = vstv %s5922_s19  ;;  %s9644_s22 = sld [smem:[#allocation10 + $0x115]] }
 0xae4   : > { %4494 = vrot.lane.b32.xlu0 %v4493_v21, %s6322_s30  ;;  %v4500_v10 = vmul.f32 %v4499_v51, %v8418_v41  ;;  %v4810_v42 = vmul.f32 %v4809_v2, %v8418_v41  ;;  %s9648_s19 = sld [smem:[#allocation10 + $0xf2]] }
 0xae5   : > { %v3751_v40 = vpop.permute.xlu2 %3750  ;;  %v5024_v43 = vpop.permute.xlu1 %5023 }
 0xae6   : > { %v9464_v36 = vadd.f32 %v5024_v43, %v5017_v18  ;;  %v4417_v5 = vpop.permute.xlu0 %4416  ;;  %v4178_v18 = vrot.slane %v4176_v37, 2  ;;  %v4502_v43 = vrot.slane %v4500_v10, 2  ;;  %v4812_v24 = vrot.slane %v4810_v42, 1 }
 0xae7   : > { %v9467_v31 = vadd.f32 %v4417_v5, %v4410_v1  ;;  %v3818_v1 = vrot.slane %v3816_v16, 1  ;;  %v3191_v5 = vstv %s5732_s15  ;;  %v3545_v10 = vstv %s9566_s14  ;;  %s9661_s15 = sld [smem:[#allocation10 + $0xb0]] }
 0xae8   : > { %s9726_s14 = sld [smem:[#allocation10 + $0xf6]] }
 0xaeb   : > { %4485 = vrot.lane.b32.xlu2 %v4484_v11, %s10093_s17  ;;  %4161 = vrot.lane.b32.xlu1 %v4160_v50, %s6322_s30  ;;  %v3192_v11 = vmul.f32 %v3191_v5, %v8418_v41 }
 0xaec   : > { %3186 = vrot.lane.b32.xlu0 %v3185_v33, %s6324_s9 }
 0xaed   : > { %v4727_v39 = vpop.permute.xlu2 %4726  ;;  %v4084_v8 = vpop.permute.xlu1 %4083  ;;  %v3194_v58 = vrot.slane %v3192_v11, 1 }
 0xaee   : > { %v9487_v12 = vadd.f32 %v4727_v39, %v4720_v47  ;;  %v4086_v34 = vadd.f32 %v4084_v8, %v4077_v61  ;;  %v3109_v48 = vpop.permute.xlu0 %3108  ;;  %v3827_v61 = vrot.slane %v3825_v62, 2  ;;  %v4508_v47 = vstv %s9520_s27  ;;  %v10358_v8 = vld [vmem:[#allocation67_spill] sm:$0xff]  ;;  %s5892_s27 = sld [smem:[#allocation10 + $0xd4]] }
 0xaef   : > { %v9490_v29 = vadd.f32 %v3109_v48, %v3102_v6  ;;  %v5130_v39 = vstv %s9523_s4  ;;  %v5034_v46 = vadd.f32 %v10358_v8, %v9464_v36  ;;  %v4509_v16 = vmul.f32 %v4508_v47, %v8418_v41  ;;  %v10364_v47 = vld [vmem:[#allocation59_spill] sm:$0xff]  ;;  %s5813_s4 = sld [smem:[#allocation10 + $0x8b]] }
 0xaf0   : > { %v4095_v19 = vadd.f32 %v4093_v54, %v4086_v34 }
 0xaf1   : > { %v4511_v36 = vrot.slane %v4509_v16, 2 }
 0xaf3   : > { %4170 = vrot.lane.b32.xlu2 %v4169_v9, %s6321_s7  ;;  %3819 = vrot.lane.b32.xlu1 %v3818_v1, %s10093_s17  ;;  %v10359_v9 = vld [vmem:[#allocation37_spill] sm:$0xff] }
 0xaf4   : > { %4179 = vrot.lane.b32.xlu0 %v4178_v18, %s10093_s17  ;;  %v5042_v1 = vadd.f32 %v10359_v9, %v5034_v46  ;;  %v3227_v9 = vstv %s9594_s26  ;;  %s5778_s26 = sld [smem:[#allocation10 + $0x6b]] }
 0xaf5   : > { %v3439_v44 = vpop.permute.xlu2 %3438  ;;  %v3742_v22 = vpop.permute.xlu1 %3741 }
 0xaf6   : > { %v3744_v14 = vadd.f32 %v3742_v22, %v9427_v27  ;;  %v4102_v54 = vpop.permute.xlu0 %4101  ;;  %v10360_v22 = vld [vmem:[#allocation90_spill] sm:$0xff] }
 0xaf7   : > { %v9504_v4 = vadd.f32 %v4102_v54, %v4095_v19  ;;  %v5050_v62 = vadd.f32 %v10360_v22, %v5042_v1  ;;  %v3201_v54 = vmul.f32 %v3200_v52, %v8418_v41  ;;  %v4208_v1 = vstv %s9598_s29  ;;  %v10367_v52 = vld [vmem:[#allocation40_spill] sm:$0xff]  ;;  %s9754_s29 = sld [smem:[#allocation10 + $0x8f]] }
 0xaf8   : > { %v3753_v49 = vadd.f32 %v3751_v40, %v3744_v14  ;;  %v4803_v40 = vrot.slane %v4801_v63, 1  ;;  %v4818_v63 = vstv %s9561_s10  ;;  %s9711_s10 = sld [smem:[#allocation10 + $0x6a]] }
 0xaf9   : > { %v3203_v7 = vrot.slane %v3201_v54, 1  ;;  %v4209_v54 = vmul.f32 %v4208_v1, %v8418_v41 }
 0xafb   : > { %3828 = vrot.lane.b32.xlu2 %v3827_v61, %s6322_s30  ;;  %3507 = vrot.lane.b32.xlu1 %v3506_v15, %s6321_s7 }
 0xafc   : > { %3837 = vrot.lane.b32.xlu0 %v3836_v25, %s6321_s7 }
 0xafd   : > { %v4435_v27 = vpop.permute.xlu2 %4434  ;;  %v3430_v21 = vpop.permute.xlu1 %3429 }
 0xafe   : > { %v3432_v32 = vadd.f32 %v3430_v21, %v9443_v17  ;;  %v3760_v28 = vpop.permute.xlu0 %3759  ;;  %v3209_v17 = vstv %s5734_s24  ;;  %v5139_v21 = vstv %s9555_s11  ;;  %s5812_s24 = sld [smem:[#allocation10 + $0x8a]] }
 0xaff   : > { %v9516_v23 = vadd.f32 %v3760_v28, %v3753_v49  ;;  %v3210_v26 = vmul.f32 %v3209_v17, %v8418_v41  ;;  %v3546_v17 = vmul.f32 %v3545_v10, %v8418_v41  ;;  %s9707_s11 = sld [smem:[#allocation10 + $0x8d]] }
 0xb00   : > { %v9518_v56 = vadd.f32 %v3439_v44, %v3432_v32  ;;  %v3842_v44 = vstv %s9541_s18  ;;  %v10361_v32 = vld [vmem:[#allocation68_spill] sm:$0xff]  ;;  %s5893_s18 = sld [smem:[#allocation10 + $0xd5]] }
 0xb01   : > { %v3212_v20 = vrot.slane %v3210_v26, 2  ;;  %v3843_v45 = vmul.f32 %v3842_v44, %v8418_v41  ;;  %v4541_v26 = vstv %s9584_s1  ;;  %s5816_s1 = sld [smem:[#allocation10 + $0x8e]] }
 0xb02   : > { %v3449_v28 = vadd.f32 %v10361_v32, %v9518_v56  ;;  %v4827_v56 = vstv %s9573_s16  ;;  %v4217_v32 = vstv %s9616_s8  ;;  %s5894_s16 = sld [smem:[#allocation10 + $0xd6]] }
 0xb03   : > { %4804 = vrot.lane.b32.xlu2 %v4803_v40, %s6322_s30  ;;  %4503 = vrot.lane.b32.xlu1 %v4502_v43, %s6321_s7  ;;  %v3845_v51 = vrot.slane %v3843_v45, 2  ;;  %v5140_v43 = vmul.f32 %v5139_v21, %v8418_v41  ;;  %s5931_s8 = sld [smem:[#allocation10 + $0xf7]] }
 0xb04   : > { %4813 = vrot.lane.b32.xlu0 %v4812_v24, %s6321_s7  ;;  %v4819_v24 = vmul.f32 %v4818_v63, %v8418_v41  ;;  %v3457_v11 = vadd.f32 %v10362_v55, %v3449_v28  ;;  %v4211_v63 = vrot.slane %v4209_v54, 1  ;;  %v5157_v28 = vstv %s9620_s6  ;;  %s9768_s6 = sld [smem:[#allocation10 + $0xf9]] }
 0xb05   : > { %v3127_v53 = vpop.permute.xlu2 %3126  ;;  %v4426_v30 = vpop.permute.xlu1 %4425  ;;  %v3875_v1 = vstv %s5812_s24  ;;  %s9811_s24 = sld [smem:[#allocation10 + $0x11f]] }
 0xb06   : > { %v4428_v50 = vadd.f32 %v4426_v30, %v9467_v31  ;;  %v4736_v38 = vpop.permute.xlu0 %4735  ;;  %v5148_v31 = vstv %s5962_s5  ;;  %v4821_v30 = vrot.slane %v4819_v24, 1  ;;  %s5776_s5 = sld [smem:[#allocation10 + $0x69]] }
 0xb07   : > { %v9533_v33 = vadd.f32 %v4736_v38, %v9487_v12  ;;  %v5131_v12 = vmul.f32 %v5130_v39, %v8418_v41  ;;  %v5149_v37 = vmul.f32 %v5148_v31, %v8418_v41  ;;  %v3218_v38 = vstv %s9579_s12  ;;  %s9741_s12 = sld [smem:[#allocation10 + $0xd7]] }
 0xb08   : > { %v9535_v57 = vadd.f32 %v4435_v27, %v4428_v50  ;;  %v3548_v50 = vrot.slane %v3546_v17, 1  ;;  %v3465_v39 = vadd.f32 %v10364_v47, %v3457_v11  ;;  %v4828_v31 = vmul.f32 %v4827_v56, %v8418_v41 }
 0xb09   : > { %v5133_v18 = vrot.slane %v5131_v12, 1  ;;  %v5151_v0 = vrot.slane %v5149_v37, 1  ;;  %v3219_v8 = vmul.f32 %v3218_v38, %v8418_v41  ;;  %v4218_v17 = vmul.f32 %v4217_v32, %v8418_v41 }
 0xb0a   : > { %v4845_v47 = vstv %s9648_s19  ;;  %s9787_s19 = sld [smem:[#allocation10 + $0x11d]] }
 0xb0b   : > { %3516 = vrot.lane.b32.xlu2 %v3515_v13, %s10093_s17  ;;  %3195 = vrot.lane.b32.xlu1 %v3194_v58, %s6323_s25  ;;  %v4220_v38 = vrot.slane %v4218_v17, 1 }
 0xb0c   : > { %3213 = vrot.lane.b32.xlu0 %v3212_v20, %s6324_s9 }
 0xb0d   : > { %v5066_v6 = vpop.permute.xlu2 %5065  ;;  %v3118_v35 = vpop.permute.xlu1 %3117 }
 0xb0e   : > { %v3120_v34 = vadd.f32 %v3118_v35, %v9490_v29  ;;  %v3136_v48 = vpop.permute.xlu0 %3135  ;;  %v4836_v29 = vstv %s9545_s21  ;;  %v4542_v35 = vmul.f32 %v4541_v26, %v8418_v41  ;;  %s9701_s21 = sld [smem:[#allocation10 + $0xb2]] }
 0xb0f   : > { %v4837_v15 = vmul.f32 %v4836_v29, %v8418_v41 }
 0xb10   : > { %v3129_v19 = vadd.f32 %v3127_v53, %v3120_v34  ;;  %v5142_v53 = vrot.slane %v5140_v43, 1  ;;  %v3221_v34 = vrot.slane %v3219_v8, 2  ;;  %v10372_v43 = vld [vmem:[#allocation99_spill] sm:$0xff] }
 0xb11   : > { %v4839_v27 = vrot.slane %v4837_v15, 2 }
 0xb12   : > { %v9557_v60 = vadd.f32 %v3136_v48, %v3129_v19  ;;  %v10365_v48 = vld [vmem:[#allocation62_spill] sm:$0xff]  ;;  %v4544_v19 = vrot.slane %v4542_v35, 1 }
 0xb13   : > { %4512 = vrot.lane.b32.xlu2 %v4511_v36, %s10093_s17  ;;  %5134 = vrot.lane.b32.xlu1 %v5133_v18, %s6322_s30  ;;  %v10366_v18 = vld [vmem:[#allocation38_spill] sm:$0xff] }
 0xb14   : > { %5152 = vrot.lane.b32.xlu0 %v5151_v0, %s10093_s17  ;;  %v4112_v0 = vadd.f32 %v10366_v18, %v9504_v4 }
 0xb15   : > { %v4754_v59 = vpop.permute.xlu2 %4753  ;;  %v5057_v14 = vpop.permute.xlu1 %5056 }
 0xb16   : > { %v5059_v49 = vadd.f32 %v5057_v14, %v5050_v62  ;;  %v5075_v61 = vpop.permute.xlu0 %5074  ;;  %v10368_v62 = vld [vmem:[#allocation58_spill] sm:$0xff]  ;;  %v3228_v14 = vmul.f32 %v3227_v9, %v8418_v41  ;;  %v4226_v9 = vstv %s9661_s15  ;;  %s9795_s15 = sld [smem:[#allocation10 + $0x11c]] }
 0xb18   : > { %v5068_v25 = vadd.f32 %v5066_v6, %v5059_v49  ;;  %v3230_v21 = vrot.slane %v3228_v14, 2 }
 0xb1a   : > { %v9575_v2 = vadd.f32 %v5075_v61, %v5068_v25  ;;  %v10369_v25 = vld [vmem:[#allocation64_spill] sm:$0xff] }
 0xb1b   : > { %3204 = vrot.lane.b32.xlu2 %v3203_v7, %s6320_s3  ;;  %3846 = vrot.lane.b32.xlu1 %v3845_v51, %s10093_s17  ;;  %v10370_v51 = vld [vmem:[#allocation54_spill] sm:$0xff] }
 0xb1c   : > { %4840 = vrot.lane.b32.xlu0 %v4839_v27, %s6321_s7  ;;  %v4120_v27 = vadd.f32 %v10370_v51, %v4112_v0  ;;  %v4227_v0 = vmul.f32 %v4226_v9, %v8418_v41 }
 0xb1d   : > { %v3154_v42 = vpop.permute.xlu2 %3153  ;;  %v3769_v40 = vpop.permute.xlu1 %3768 }
 0xb1e   : > { %v3771_v3 = vadd.f32 %v3769_v40, %v9516_v23  ;;  %v4763_v5 = vpop.permute.xlu0 %4762  ;;  %v10363_v23 = vld [vmem:[#allocation74_spill] sm:$0xff]  ;;  %v4128_v24 = vadd.f32 %v10372_v43, %v4120_v27  ;;  %v3893_v43 = vstv %s9692_s13 }
 0xb1f   : > { %v4445_v13 = vadd.f32 %v10363_v23, %v9535_v57  ;;  %v4830_v57 = vrot.slane %v4828_v31, 2 }
 0xb20   : > { %v3779_v44 = vadd.f32 %v10367_v52, %v3771_v3  ;;  %v3876_v52 = vmul.f32 %v3875_v1, %v8418_v41 }
 0xb21   : > { %v4453_v37 = vadd.f32 %v10365_v48, %v4445_v13 }
 0xb22   : > { %v3787_v7 = vadd.f32 %v10369_v25, %v3779_v44  ;;  %v3878_v14 = vrot.slane %v3876_v52, 1  ;;  %v4878_v52 = vstv %s9726_s14 }
 0xb23   : > { %5143 = vrot.lane.b32.xlu2 %v5142_v53, %s6321_s7  ;;  %4822 = vrot.lane.b32.xlu1 %v4821_v30, %s10093_s17  ;;  %v5158_v53 = vmul.f32 %v5157_v28, %v8418_v41 }
 0xb24   : > { %3549 = vrot.lane.b32.xlu0 %v3548_v50, %s6324_s9 }
 0xb25   : > { %v4144_v58 = vpop.permute.xlu2 %4143  ;;  %v4745_v20 = vpop.permute.xlu1 %4744  ;;  %v5160_v26 = vrot.slane %v5158_v53, 2 }
 0xb26   : > { %v4747_v46 = vadd.f32 %v4745_v20, %v9533_v33  ;;  %v3472_v6 = vpop.permute.xlu0 %3471  ;;  %v3554_v33 = vstv %s9603_s0  ;;  %v5166_v20 = vstv %s9644_s22  ;;  %s5969_s0 = sld [smem:[#allocation10 + $0x11a]] }
 0xb27   : > { %v9613_v16 = vadd.f32 %v3472_v6, %v3465_v39  ;;  %v3555_v4 = vmul.f32 %v3554_v33, %v8418_v41  ;;  %v3563_v39 = vstv %s9653_s20  ;;  %v5167_v8 = vmul.f32 %v5166_v20, %v8418_v41  ;;  %s5932_s22 = sld [smem:[#allocation10 + $0xf8]] }
 0xb28   : > { %v4756_v12 = vadd.f32 %v4754_v59, %v4747_v46  ;;  %v4461_v59 = vadd.f32 %v10368_v62, %v4453_v37  ;;  %v4846_v46 = vmul.f32 %v4845_v47, %v8418_v41  ;;  %s9791_s20 = sld [smem:[#allocation10 + $0xfa]] }
 0xb29   : > { %v3557_v10 = vrot.slane %v3555_v4, 1  ;;  %v3572_v4 = vstv %s5776_s5 }
 0xb2a   : > { %v9622_v36 = vadd.f32 %v4763_v5, %v4756_v12  ;;  %v3564_v12 = vmul.f32 %v3563_v39, %v8418_v41  ;;  %v4848_v48 = vrot.slane %v4846_v46, 2 }
 0xb2b   : > { %4831 = vrot.lane.b32.xlu2 %v4830_v57, %s6322_s30  ;;  %3222 = vrot.lane.b32.xlu1 %v3221_v34, %s6323_s25  ;;  %v5169_v34 = vrot.slane %v5167_v8, 2  ;;  %v10375_v8 = vld [vmem:[#allocation94_spill] sm:$0xff] }
 0xb2c   : > { %4545 = vrot.lane.b32.xlu0 %v4544_v19, %s6324_s9  ;;  %v3566_v19 = vrot.slane %v3564_v12, 1 }
 0xb2d   : > { %v5093_v29 = vpop.permute.xlu2 %5092  ;;  %v3145_v22 = vpop.permute.xlu1 %3144 }
 0xb2e   : > { %v3147_v45 = vadd.f32 %v3145_v22, %v9557_v60  ;;  %v4468_v49 = vpop.permute.xlu0 %4467  ;;  %v4550_v60 = vstv %s9627_s28  ;;  %s9771_s28 = sld [smem:[#allocation10 + $0x11b]] }
 0xb2f   : > { %v9638_v61 = vadd.f32 %v4468_v49, %v4461_v59  ;;  %v4551_v50 = vmul.f32 %v4550_v60, %v8418_v41  ;;  %v4229_v59 = vrot.slane %v4227_v0, 1  ;;  %v3884_v49 = vstv %s5813_s4  ;;  %s10404_s4 = sld [smem:[#allocation112_spill]] }
 0xb30   : > { %v9640_v15 = vadd.f32 %v3154_v42, %v3147_v45  ;;  %v10371_v42 = vld [vmem:[#allocation35_spill] sm:$0xff]  ;;  %v3885_v51 = vmul.f32 %v3884_v49, %v8418_v41 }
 0xb31   : > { %v3795_v40 = vadd.f32 %v10371_v42, %v3787_v7  ;;  %v4553_v13 = vrot.slane %v4551_v50, 1 }
 0xb32   : > { %v3887_v28 = vrot.slane %v3885_v51, 1  ;;  %v4586_v51 = vstv %s9741_s12 }
 0xb33   : > { %3231 = vrot.lane.b32.xlu2 %v3230_v21, %s6320_s3  ;;  %4212 = vrot.lane.b32.xlu1 %v4211_v63, %s6324_s9  ;;  %v3573_v63 = vmul.f32 %v3572_v4, %v8418_v41 }
 0xb34   : > { %3558 = vrot.lane.b32.xlu0 %v3557_v10, %s6323_s25 }
 0xb35   : > { %v3802_v3 = vpop.permute.xlu2 %3801  ;;  %v4135_v5 = vpop.permute.xlu1 %4134  ;;  %v3575_v42 = vrot.slane %v3573_v63, 2 }
 0xb36   : > { %v3804_v30 = vadd.f32 %v3802_v3, %v3795_v40  ;;  %v4137_v55 = vadd.f32 %v4135_v5, %v4128_v24  ;;  %v4153_v11 = vpop.permute.xlu0 %4152  ;;  %v10373_v24 = vld [vmem:[#allocation60_spill] sm:$0xff] }
 0xb38   : > { %v4146_v56 = vadd.f32 %v4144_v58, %v4137_v55 }
 0xb3a   : > { %v9663_v23 = vadd.f32 %v4153_v11, %v4146_v56 }
 0xb3b   : > { %4221 = vrot.lane.b32.xlu2 %v4220_v38, %s6323_s25  ;;  %5161 = vrot.lane.b32.xlu1 %v5160_v26, %s6322_s30  ;;  %s9675_s30 = sld [smem:[#allocation10 + $0x116]]  ;;  %v10374_v38 = vld [vmem:[#allocation45_spill] sm:$0xff] }
 0xb3c   : > { %4554 = vrot.lane.b32.xlu0 %v4553_v13, %s6323_s25 }
 0xb3d   : > { %v3490_v58 = vpop.permute.xlu2 %3489  ;;  %v5084_v31 = vpop.permute.xlu1 %5083 }
 0xb3e   : > { %v5086_v6 = vadd.f32 %v5084_v31, %v9575_v2  ;;  %v5102_v35 = vpop.permute.xlu0 %5101  ;;  %v4559_v2 = vstv %s5892_s27  ;;  %v3902_v31 = vstv %s9707_s11  ;;  %s9815_s27 = sld [smem:[#allocation10 + $0x11e]] }
 0xb3f   : > { %v4560_v22 = vmul.f32 %v4559_v2, %v8418_v41 }
 0xb40   : > { %v5095_v57 = vadd.f32 %v5093_v29, %v5086_v6 }
 0xb41   : > { %v4562_v54 = vrot.slane %v4560_v22, 1  ;;  %v5175_v45 = vstv %s9675_s30  ;;  %s9821_s30 = sld [smem:[#allocation10 + $0xfb]] }
 0xb42   : > { %v9677_v37 = vadd.f32 %v5102_v35, %v5095_v57  ;;  %v5176_v7 = vmul.f32 %v5175_v45, %v8418_v41  ;;  %v3903_v57 = vmul.f32 %v3902_v31, %v8418_v41 }
 0xb43   : > { %5170 = vrot.lane.b32.xlu2 %v5169_v34, %s6321_s7  ;;  %4849 = vrot.lane.b32.xlu1 %v4848_v48, %s10093_s17  ;;  %s9689_s7 = sld [smem:[#allocation10 + $0xb1]] }
 0xb44   : > { %3567 = vrot.lane.b32.xlu0 %v3566_v19, %s6320_s3  ;;  %v5178_v32 = vrot.slane %v5176_v7, 2 }
 0xb45   : > { %v4486_v33 = vpop.permute.xlu2 %4485  ;;  %v4772_v18 = vpop.permute.xlu1 %4771 }
 0xb46   : > { %v4774_v44 = vadd.f32 %v4772_v18, %v9622_v36  ;;  %v3811_v29 = vpop.permute.xlu0 %3810 }
 0xb47   : > { %v9687_v62 = vadd.f32 %v3811_v29, %v3804_v30  ;;  %v3894_v30 = vmul.f32 %v3893_v43, %v8418_v41 }
 0xb48   : > { %v4782_v3 = vadd.f32 %v10373_v24, %v4774_v44  ;;  %v4577_v44 = vstv %s5894_s16  ;;  %s10407_s16 = sld [smem:[#allocation111_spill]] }
 0xb49   : > { %v4235_v40 = vstv %s9689_s7  ;;  %v3896_v20 = vrot.slane %v3894_v30, 1  ;;  %v4578_v45 = vmul.f32 %v4577_v44, %v8418_v41 }
 0xb4a   : > { %v4236_v53 = vmul.f32 %v4235_v40, %v8418_v41  ;;  %v4790_v26 = vadd.f32 %v10374_v38, %v4782_v3 }
 0xb4b   : > { %4230 = vrot.lane.b32.xlu2 %v4229_v59, %s6320_s3  ;;  %3879 = vrot.lane.b32.xlu1 %v3878_v14, %s6324_s9  ;;  %v4879_v59 = vmul.f32 %v4878_v52, %v8418_v41  ;;  %v4580_v7 = vrot.slane %v4578_v45, 2 }
 0xb4c   : > { %4563 = vrot.lane.b32.xlu0 %v4562_v54, %s6320_s3  ;;  %v4238_v13 = vrot.slane %v4236_v53, 2  ;;  %v4798_v46 = vadd.f32 %v10375_v8, %v4790_v26  ;;  %v5208_v53 = vstv %s5969_s0  ;;  %v5217_v8 = vstv %s9771_s28 }
 0xb4d   : > { %v4171_v36 = vpop.permute.xlu2 %4170  ;;  %v3481_v25 = vpop.permute.xlu1 %3480 }
 0xb4e   : > { %v3483_v27 = vadd.f32 %v3481_v25, %v9613_v16  ;;  %v3499_v21 = vpop.permute.xlu0 %3498  ;;  %v4568_v16 = vstv %s5893_s18  ;;  %v4881_v25 = vrot.slane %v4879_v59, 1  ;;  %v5235_v59 = vstv %s9787_s19 }
 0xb4f   : > { %v4569_v50 = vmul.f32 %v4568_v16, %v8418_v41 }
 0xb50   : > { %v3492_v10 = vadd.f32 %v3490_v58, %v3483_v27  ;;  %v4244_v58 = vstv %s9701_s21  ;;  %v3911_v27 = vstv %s5816_s1 }
 0xb51   : > { %v4571_v39 = vrot.slane %v4569_v50, 2  ;;  %v4245_v12 = vmul.f32 %v4244_v58, %v8418_v41  ;;  %v5209_v50 = vmul.f32 %v5208_v53, %v8418_v41  ;;  %v4923_v53 = vstv %s9821_s30 }
 0xb52   : > { %v9703_v60 = vadd.f32 %v3499_v21, %v3492_v10  ;;  %v3590_v21 = vstv %s5778_s26  ;;  %v4587_v10 = vmul.f32 %v4586_v51, %v8418_v41  ;;  %v5236_v51 = vmul.f32 %v5235_v59, %v8418_v41 }
 0xb53   : > { %5179 = vrot.lane.b32.xlu2 %v5178_v32, %s10093_s17  ;;  %3888 = vrot.lane.b32.xlu1 %v3887_v28, %s6323_s25  ;;  %s9720_s17 = sld [smem:[#allocation10 + $0xb3]]  ;;  %v4247_v2 = vrot.slane %v4245_v12, 2  ;;  %v3912_v32 = vmul.f32 %v3911_v27, %v8418_v41  ;;  %v3591_v40 = vmul.f32 %v3590_v21, %v8418_v41  ;;  %v5211_v58 = vrot.slane %v5209_v50, 1 }
 0xb54   : > { %3576 = vrot.lane.b32.xlu0 %v3575_v42, %s6324_s9  ;;  %v4589_v24 = vrot.slane %v4587_v10, 2  ;;  %v10383_v10 = vld [vmem:[#allocation77_spill] sm:$0xff] }
 0xb55   : > { %v3829_v5 = vpop.permute.xlu2 %3828  ;;  %v4477_v17 = vpop.permute.xlu1 %4476  ;;  %v3914_v3 = vrot.slane %v3912_v32, 2  ;;  %v3164_v32 = vadd.f32 %v10383_v10, %v9640_v15 }
 0xb56   : > { %v4479_v55 = vadd.f32 %v4477_v17, %v9638_v61  ;;  %v4495_v11 = vpop.permute.xlu0 %4494  ;;  %v3581_v61 = vstv %s9711_s10  ;;  %v3920_v17 = vstv %s9754_s29  ;;  %s10406_s10 = sld [smem:[#allocation23_spill]] }
 0xb57   : > { %v3582_v9 = vmul.f32 %v3581_v61, %v8418_v41  ;;  %v4905_v61 = vstv %s9768_s6  ;;  %s10409_s6 = sld [smem:[#allocation113_spill]] }
 0xb58   : > { %v4488_v56 = vadd.f32 %v4486_v33, %v4479_v55  ;;  %v3905_v33 = vrot.slane %v3903_v57, 2  ;;  %v4906_v57 = vmul.f32 %v4905_v61, %v8418_v41  ;;  %v10386_v61 = vld [vmem:[#allocation42_spill] sm:$0xff] }
 0xb59   : > { %v3584_v18 = vrot.slane %v3582_v9, 2  ;;  %v4253_v0 = vstv %s9720_s17 }
 0xb5a   : > { %v9722_v47 = vadd.f32 %v4495_v11, %v4488_v56  ;;  %v4254_v22 = vmul.f32 %v4253_v0, %v8418_v41  ;;  %v3921_v11 = vmul.f32 %v3920_v17, %v8418_v41  ;;  %v10379_v0 = vmov 0.0  }
 0xb5b   : > { %4239 = vrot.lane.b32.xlu2 %v4238_v13, %s6324_s9  ;;  %3897 = vrot.lane.b32.xlu1 %v3896_v20, %s6320_s3  ;;  %v5530_v44 = vsel %vm777_vm8, 1.0, %v10379_v0  ;;  %v5244_v17 = vstv %s9815_s27 }
 0xb5c   : > { %4572 = vrot.lane.b32.xlu0 %v4571_v39, %s6324_s9  ;;  %v3923_v39 = vrot.slane %v3921_v11, 2  ;;  %v10385_v11 = vld [vmem:[#allocation44_spill] sm:$0xff]  ;;  %s5981_s29 = sshll.u32 %s10406_s10, 1 }
 0xb5d   : > { %v4805_v6 = vpop.permute.xlu2 %4804  ;;  %v4162_v35 = vpop.permute.xlu1 %4161  ;;  %s5377_s28 = scalar_lea.hbm %s10409_s6, %s5981_s29 }
 0xb5e   : > { %v9735_v34 = vadd.f32 %v4805_v6, %v4798_v46  ;;  %v4164_v48 = vadd.f32 %v4162_v35, %v9663_v23  ;;  %v9738_v19 = vpop.permute.xlu0 %3186  ;;  %v10376_v46 = vld [vmem:[#allocation52_spill] sm:$0xff] }
 0xb5f   : > { %v5112_v6 = vadd.f32 %v10376_v46, %v9677_v37  ;;  %v10380_v37 = vld [vmem:[#allocation30_spill] sm:$0xff] }
 0xb60   : > { %v4173_v1 = vadd.f32 %v4171_v36, %v4164_v48  ;;  %v4256_v36 = vrot.slane %v4254_v22, 2 }
 0xb63   : > { %4248 = vrot.lane.b32.xlu2 %v4247_v2, %s6323_s25  ;;  %3906 = vrot.lane.b32.xlu1 %v3905_v33, %s6324_s9  ;;  %v10378_v33 = vld [vmem:[#allocation28_spill] sm:$0xff] }
 0xb64   : > { %3585 = vrot.lane.b32.xlu0 %v3584_v18, %s6323_s25  ;;  %v3235_v18 = vadd.s32 4, %v10378_v33 }
 0xb65   : > { %v3517_v23 = vpop.permute.xlu2 %3516  ;;  %v3820_v29 = vpop.permute.xlu1 %3819 }
 0xb66   : > { %v3822_v14 = vadd.f32 %v3820_v29, %v9687_v62  ;;  %v4180_v54 = vpop.permute.xlu0 %4179  ;;  %vm3236_vm10 = vcmp.eq.s32.totalorder %v10380_v37, %v3235_v18 }
 0xb67   : > { %v9752_v49 = vadd.f32 %v4180_v54, %v4173_v1  ;;  %v10377_v1 = vld [vmem:[#allocation51_spill] sm:$0xff]  ;;  %v5226_v54 = vstv %s9795_s15  ;;  %v5737_v45 = vsel %vm3236_vm10, 1.0, %v10379_v0 }
 0xb68   : > { %v3831_v4 = vadd.f32 %v3829_v5, %v3822_v14  ;;  %v3593_v5 = vrot.slane %v3591_v40, 2  ;;  %v5120_v2 = vadd.f32 %v10377_v1, %v5112_v6  ;;  %v4914_v14 = vstv %s9791_s20  ;;  %5738 = vmatpush.msk.msrb.mxu2 %vm1062_vm3, %v5737_v45  ;;  %v10387_v6 = vld [vmem:[#allocation66_spill] sm:$0xff]  ;;  %v10388_v1 = vld [vmem:[#allocation72_spill] sm:$0xff]  ;;  %s5381_s20 = sshll.u32 %s5377_s28, 4  ;;  %s5382_s20 = int_to_ptr.hbm [resolvable:$true] %s5381_s20 }
 0xb69   : > { %v4915_v27 = vmul.f32 %v4914_v14, %v8418_v41 }
 0xb6a   : > { %5857 = vmatpush.msk.msra.mxu2 %vm1062_vm3, %v5530_v44 }
 0xb6b   : > { %4257 = vrot.lane.b32.xlu2 %v4256_v36, %s6320_s3  ;;  %4882 = vrot.lane.b32.xlu1 %v4881_v25, %s6324_s9  ;;  %v4917_v40 = vrot.slane %v4915_v27, 2 }
 0xb6c   : > { %4581 = vrot.lane.b32.xlu0 %v4580_v7, %s6323_s25 }
 0xb6d   : > { %v4513_v62 = vpop.permute.xlu2 %4512  ;;  %v3508_v63 = vpop.permute.xlu1 %3507 }
 0xb6e   : > { %v3510_v28 = vadd.f32 %v3508_v63, %v9703_v60  ;;  %v3838_v42 = vpop.permute.xlu0 %3837  ;;  %v4887_v60 = vstv %s5931_s8  ;;  %v5227_v63 = vmul.f32 %v5226_v54, %v8418_v41 }
 0xb6f   : > { %v9764_v43 = vadd.f32 %v3838_v42, %v3831_v4  ;;  %v4888_v26 = vmul.f32 %v4887_v60, %v8418_v41  ;;  %v10382_v4 = vld [vmem:[#allocation48_spill] sm:$0xff]  ;;  %v5238_v42 = vrot.slane %v5236_v51, 2  ;;  %v10384_v60 = vld [vmem:[#allocation46_spill] sm:$0xff]  ;;  %v10389_v51 = vld [vmem:[#allocation43_spill] sm:$0xff] }
 0xb70   : > { %v9766_v16 = vadd.f32 %v3517_v23, %v3510_v28  ;;  %v4908_v23 = vrot.slane %v4906_v57, 2  ;;  %v5128_v36 = vadd.f32 %v10382_v4, %v5120_v2 }
 0xb71   : > { %v4890_v31 = vrot.slane %v4888_v26, 1  ;;  %v5245_v26 = vmul.f32 %v5244_v17, %v8418_v41 }
 0xb72   : > { %v3527_v50 = vadd.f32 %v10385_v11, %v9766_v16  ;;  %v4594_v11 = vadd.s32 20, %v10378_v33  ;;  %v10393_v33 = vld [vmem:[#allocation78_spill] sm:$0xff] }
 0xb73   : > { %4590 = vrot.lane.b32.xlu2 %v4589_v24, %s6320_s3  ;;  %3915 = vrot.lane.b32.xlu1 %v3914_v3, %s6323_s25  ;;  %v5229_v3 = vrot.slane %v5227_v63, 1  ;;  %v5247_v46 = vrot.slane %v5245_v26, 2 }
 0xb74   : > { %3594 = vrot.lane.b32.xlu0 %v3593_v5, %s6320_s3  ;;  %v5253_v5 = vstv %s9811_s24  ;;  %vm4595_vm8 = vcmp.eq.s32.totalorder %v10380_v37, %v4594_v11  ;;  %v10394_v37 = vld [vmem:[#allocation63_spill] sm:$0xff]  ;;  %s6236_s24 = sshra.s32 %s5382_s20, 4  ;;  %s6237_s24 = int_to_ptr.hbm [resolvable:$true] %s6236_s24 }
 0xb75   : > { %v9776_v30 = vpop.permute.xlu2 %3204  ;;  %v4504_v55 = vpop.permute.xlu1 %4503  ;;  %v10402_v11 = vld [vmem:[#allocation91_spill] sm:$0xff]  ;;  %s6238_s27 = scalar_lea.hbm %s6237_s24, 2  ;;  %p6243_p3 = scmp.lt.s32.totalorder %s6237_s24, %s10409_s6 }
 0xb76   : > { %v4506_v56 = vadd.f32 %v4504_v55, %v9722_v47  ;;  %v4814_v38 = vpop.permute.xlu0 %4813  ;;  %v4896_v47 = vstv %s5932_s22  ;;  %v3172_v55 = vadd.f32 %v10384_v60, %v3164_v32  ;;  %p6239_p0 = scmp.ne.s32.totalorder %s6237_s24, %s6238_s27 }
 0xb77   : > { %v9783_v13 = vadd.f32 %v4814_v38, %v9735_v34  ;;  %v5218_v34 = vmul.f32 %v5217_v8, %v8418_v41  ;;  %v4897_v9 = vmul.f32 %v4896_v47, %v8418_v41  ;;  %v5254_v38 = vmul.f32 %v5253_v5, %v8418_v41 }
 0xb78   : > { %v9785_v20 = vadd.f32 %v4513_v62, %v4506_v56  ;;  %v3180_v8 = vadd.f32 %v10386_v61, %v3172_v55  ;;  %p6240_p1 = pnand %p6239_p0, %p6434_p5 }
 0xb79   : > { %v5220_v29 = vrot.slane %v5218_v34, 1  ;;  %v4899_v22 = vrot.slane %v4897_v9, 1  ;;  %v5256_v47 = vrot.slane %v5254_v38, 2 }
 0xb7a   : > { %v3189_v16 = vadd.f32 %v9738_v19, %v3180_v8  ;;  %p6241_p2 = pneg %p6240_p1 }
 0xb7b   : > { %3924 = vrot.lane.b32.xlu2 %v3923_v39, %s6320_s3  ;;  %5212 = vrot.lane.b32.xlu1 %v5211_v58, %s6324_s9 }
 0xb7c   : > { %4891 = vrot.lane.b32.xlu0 %v4890_v31, %s6323_s25  ;;  %v4924_v31 = vmul.f32 %v4923_v53, %v8418_v41 }
 0xb7d   : > { %v5144_v35 = vpop.permute.xlu2 %5143  ;;  %v3196_v12 = vpop.permute.xlu1 %3195 }
 0xb7e   : > { %v9802_v48 = vpop.permute.xlu0 %3213  ;;  %v4926_v57 = vrot.slane %v4924_v31, 2  ;;  %v3198_v34 = vadd.f32 %v3196_v12, %v3189_v16 }
 0xb80   : > { %v3207_v44 = vadd.f32 %v9776_v30, %v3198_v34  ;;  %v4190_v30 = vadd.f32 %v10389_v51, %v9752_v49  ;;  %v10396_v34 = vld [vmem:[#allocation89_spill] sm:$0xff] }
 0xb83   : > { %4909 = vrot.lane.b32.xlu2 %v4908_v23, %s6324_s9  ;;  %5221 = vrot.lane.b32.xlu1 %v5220_v29, %s6323_s25  ;;  %v3216_v29 = vadd.f32 %v9802_v48, %v3207_v44 }
 0xb84   : > { %4900 = vrot.lane.b32.xlu0 %v4899_v22, %s6320_s3 }
 0xb85   : > { %v4832_v25 = vpop.permute.xlu2 %4831  ;;  %v5135_v7 = vpop.permute.xlu1 %5134 }
 0xb86   : > { %v5137_v21 = vadd.f32 %v5135_v7, %v5128_v36  ;;  %v5153_v62 = vpop.permute.xlu0 %5152 }
 0xb88   : > { %v5146_v28 = vadd.f32 %v5144_v35, %v5137_v21  ;;  %v3535_v35 = vadd.f32 %v10387_v6, %v3527_v50  ;;  %v5896_v50 = vsel %vm4595_vm8, 1.0, %v10379_v0  ;;  %v10395_v6 = vld [vmem:[#allocation96_spill] sm:$0xff] }
 0xb89   : > { %5897 = vmatpush.msk.msra.mxu3 %vm1062_vm3, %v5896_v50 }
 0xb8a   : > { %v5155_v24 = vadd.f32 %v5153_v62, %v5146_v28  ;;  %v3543_v41 = vadd.f32 %v10388_v1, %v3535_v35  ;;  %v10390_v62 = vld [vmem:[#allocation92_spill] sm:$0xff]  ;;  %v10391_v28 = vld [vmem:[#allocation49_spill] sm:$0xff] }
 0xb8b   : > { %5239 = vrot.lane.b32.xlu2 %v5238_v42, %s6324_s9  ;;  %4918 = vrot.lane.b32.xlu1 %v4917_v40, %s6323_s25  ;;  %v4198_v48 = vadd.f32 %v10390_v62, %v4190_v30 }
 0xb8c   : > { %5230 = vrot.lane.b32.xlu0 %v5229_v3, %s6320_s3 }
 0xb8d   : > { %v3232_v15 = vpop.permute.xlu2 %3231  ;;  %v3847_v56 = vpop.permute.xlu1 %3846  ;;  %v4206_v42 = vadd.f32 %v10391_v28, %v4198_v48  ;;  %v10398_v48 = vld [vmem:[#allocation97_spill] sm:$0xff]  ;;  %v10399_v28 = vld [vmem:[#allocation55_spill] sm:$0xff] }
 0xb8e   : > { %v9845_v39 = vadd.f32 %v3847_v56, %v9764_v43  ;;  %v4841_v58 = vpop.permute.xlu0 %4840 }
 0xb93   : > { %5257 = vrot.lane.b32.xlu2 %v5256_v47, %s6320_s3  ;;  %5248 = vrot.lane.b32.xlu1 %v5247_v46, %s6323_s25  ;;  %v3857_v46 = vadd.f32 %v10394_v37, %v9845_v39  ;;  %s6242_s25 = scalar_lea.hbm %s10409_s6, 4 }
 0xb94   : > { %4927 = vrot.lane.b32.xlu0 %v4926_v57, %s6320_s3  ;;  %s6325_s3 = smov 32   ;;  %p6244_p4 = scmp.lt.s32.totalorder %s6242_s25, %s6238_s27 }
 0xb95   : > { %v4222_v43 = vpop.permute.xlu2 %4221  ;;  %v4823_v9 = vpop.permute.xlu1 %4822 }
 0xb96   : > { %v4825_v2 = vadd.f32 %v4823_v9, %v9783_v13  ;;  %v3550_v18 = vpop.permute.xlu0 %3549  ;;  %p6245_p7 = por %p6244_p4, %p6243_p3 }
 0xb97   : > { %v3552_v52 = vadd.f32 %v3550_v18, %v3543_v41  ;;  %v10397_v41 = vld [vmem:[#allocation88_spill] sm:$0xff] }
 0xb98   : > { %v4834_v23 = vadd.f32 %v4832_v25, %v4825_v2  ;;  %p6246_p8 = pnand %p6245_p7, %p6241_p2 }
 0xb9a   : > { %v9857_v19 = vadd.f32 %v4841_v58, %v4834_v23  ;;  %v10392_v58 = vld [vmem:[#allocation41_spill] sm:$0xff] }
 0xb9b   : > { %v4523_v31 = vadd.f32 %v10392_v58, %v9785_v20 }
 0xb9d   : > { %v5171_v22 = vpop.permute.xlu2 %5170  ;;  %v3223_v59 = vpop.permute.xlu1 %3222  ;;  %v4531_v47 = vadd.f32 %v10393_v33, %v4523_v31 }
 0xb9e   : > { %v3225_v12 = vadd.f32 %v3223_v59, %v3216_v29  ;;  %v4546_v14 = vpop.permute.xlu0 %4545 }
 0xb9f   : > { %v4539_v0 = vadd.f32 %v10395_v6, %v4531_v47 }
 0xba0   : > { %v3234_v54 = vadd.f32 %v3232_v15, %v3225_v12 }
 0xba1   : > { %v4548_v57 = vadd.f32 %v4546_v14, %v4539_v0 }
 0xba2   : > { %5739 = vmatmul.msk.f32.vlgmr.msrb.gmra.mxu2 %vm3239_vm9, %v3234_v54 }
 0xba5   : > { %v4231_v45 = vpop.permute.xlu2 %4230  ;;  %v4213_v4 = vpop.permute.xlu1 %4212 }
 0xba6   : > { %v3559_v36 = vpop.permute.xlu0 %3558  ;;  %v4215_v3 = vadd.f32 %v4213_v4, %v4206_v42 }
 0xba8   : > { %v4224_v5 = vadd.f32 %v4222_v43, %v4215_v3  ;;  %v3865_v43 = vadd.f32 %v10396_v34, %v3857_v46  ;;  %v10400_v3 = vld [vmem:[#allocation56_spill] sm:$0xff] }
 0xbaa   : > { %v4233_v55 = vadd.f32 %v4231_v45, %v4224_v5  ;;  %v3873_v2 = vadd.f32 %v10397_v41, %v3865_v43 }
 0xbad   : > { %v5180_v13 = vpop.permute.xlu2 %5179  ;;  %v5162_v7 = vpop.permute.xlu1 %5161 }
 0xbae   : > { %v5164_v25 = vadd.f32 %v5162_v7, %v5155_v24  ;;  %v4555_v27 = vpop.permute.xlu0 %4554 }
 0xbaf   : > { %v4557_v9 = vadd.f32 %v4555_v27, %v4548_v57  ;;  %v3289_v57 = vpop.f32.mrf.mxu3 }
 0xbb0   : > { %v5173_v21 = vadd.f32 %v5171_v22, %v5164_v25  ;;  %v3561_v22 = vadd.f32 %v3559_v36, %v3552_v52 }
 0xbb2   : > { %v5182_v63 = vadd.f32 %v5180_v13, %v5173_v21 }
 0xbb4   : > { %v5190_v42 = vadd.f32 %v10399_v28, %v5182_v63 }
 0xbb5   : > { %v4240_v10 = vpop.permute.xlu2 %4239  ;;  %v4850_v32 = vpop.permute.xlu1 %4849 }
 0xbb6   : > { %v3568_v40 = vpop.permute.xlu0 %3567  ;;  %v4242_v49 = vadd.f32 %v4240_v10, %v4233_v55  ;;  %v4852_v52 = vadd.f32 %v4850_v32, %v9857_v19 }
 0xbb7   : > { %v3570_v39 = vadd.f32 %v3568_v40, %v3561_v22 }
 0xbb8   : > { %v4860_v10 = vadd.f32 %v10398_v48, %v4852_v52 }
 0xbba   : > { %v4868_v5 = vadd.f32 %v10400_v3, %v4860_v10  ;;  %v5309_v10 = vld [vmem:[%s10407_s16] sm:$0x3] }
 0xbbd   : > { %v4249_v17 = vpop.permute.xlu2 %4248  ;;  %v3880_v53 = vpop.permute.xlu1 %3879 }
 0xbbe   : > { %v4564_v60 = vpop.permute.xlu0 %4563  ;;  %v4251_v24 = vadd.f32 %v4249_v17, %v4242_v49  ;;  %v3882_v23 = vadd.f32 %v3880_v53, %v3873_v2  ;;  %v10401_v53 = vld [vmem:[#allocation36_spill] sm:$0xff]  ;;  %v4876_v49 = vadd.f32 %v10402_v11, %v4868_v5 }
 0xbbf   : > { %v4566_v1 = vadd.f32 %v4564_v60, %v4557_v9  ;;  %v5198_v60 = vadd.f32 %v10401_v53, %v5190_v42 }
 0xbc5   : > { %v4258_v15 = vpop.permute.xlu2 %4257  ;;  %v3889_v56 = vpop.permute.xlu1 %3888 }
 0xbc6   : > { %v4260_v38 = vadd.f32 %v4258_v15, %v4251_v24  ;;  %v3577_v26 = vpop.permute.xlu0 %3576  ;;  %v3891_v12 = vadd.f32 %v3889_v56, %v3882_v23  ;;  %v10403_v24 = vld [vmem:[#allocation47_spill] sm:$0xff] }
 0xbc7   : > { %v3579_v4 = vadd.f32 %v3577_v26, %v3570_v39  ;;  %v5206_v50 = vadd.f32 %v10403_v24, %v5198_v60 }
 0xbc8   : > { %5858 = vmatmul.msk.f32.vlgmr.msra.gmra.mxu2 %vm3239_vm9, %v4260_v38 }
 0xbcd   : > { %v3898_v61 = vpop.permute.xlu1 %3897  ;;  %v4591_v18 = vpop.permute.xlu2 %4590 }
 0xbce   : > { %v4573_v8 = vpop.permute.xlu0 %4572  ;;  %v3900_v45 = vadd.f32 %v3898_v61, %v3891_v12 }
 0xbcf   : > { %v4575_v20 = vadd.f32 %v4573_v8, %v4566_v1 }
 0xbd5   : > { %v3907_v35 = vpop.permute.xlu1 %3906  ;;  %v3925_v25 = vpop.permute.xlu2 %3924 }
 0xbd6   : > { %v3586_v16 = vpop.permute.xlu0 %3585  ;;  %v3909_v14 = vadd.f32 %v3907_v35, %v3900_v45 }
 0xbd7   : > { %v3588_v13 = vadd.f32 %v3586_v16, %v3579_v4 }
 0xbdd   : > { %v4883_v44 = vpop.permute.xlu1 %4882  ;;  %v4910_v40 = vpop.permute.xlu2 %4909 }
 0xbde   : > { %v4582_v29 = vpop.permute.xlu0 %4581  ;;  %v4885_v15 = vadd.f32 %v4883_v44, %v4876_v49 }
 0xbdf   : > { %v4584_v59 = vadd.f32 %v4582_v29, %v4575_v20 }
 0xbe1   : > { %v4593_v54 = vadd.f32 %v4591_v18, %v4584_v59 }
 0xbe3   : > { %5898 = vmatmul.msk.f32.vlgmr.msra.gmra.mxu3 %vm3239_vm9, %v4593_v54 }
 0xbe5   : > { %v3916_v7 = vpop.permute.xlu1 %3915  ;;  %v5240_v19 = vpop.permute.xlu2 %5239 }
 0xbe6   : > { %v3918_v51 = vadd.f32 %v3916_v7, %v3909_v14  ;;  %v3595_v30 = vpop.permute.xlu0 %3594  ;;  %v5339_v14 = vld [vmem:[%s10404_s4 + $0x18] sm:$0xff]  ;;  %v5337_v7 = vld [vmem:[%s10404_s4 + $0x8] sm:$0xff] }
 0xbe7   : > { %v3597_v27 = vadd.f32 %v3595_v30, %v3588_v13  ;;  %v5338_v13 = vld [vmem:[%s10404_s4 + $0x10] sm:$0xff]  ;;  %5356 = vmatpush.msrb.mxu3 %v5339_v14 }
 0xbe8   : > { %v3927_v21 = vadd.f32 %v3925_v25, %v3918_v51  ;;  %v5336_v51 = vld [vmem:[%s10404_s4] sm:$0xff] }
 0xbe9   : > { %5780 = vmatmul.msk.f32.vlgmr.msra.gmra.mxu0 %vm3239_vm9, %v3597_v27  ;;  %5357 = vmatpush.msrb.mxu3 %v5338_v13 }
 0xbea   : > { %5819 = vmatmul.msk.f32.vlgmr.msra.gmra.mxu1 %vm3239_vm9, %v3927_v21 }
 0xbeb   : > { %5358 = vmatpush.msrb.mxu3 %v5337_v7 }
 0xbed   : > { %v5213_v36 = vpop.permute.xlu1 %5212  ;;  %v5258_v6 = vpop.permute.xlu2 %5257  ;;  %5359 = vmatpush.msrb.mxu3 %v5336_v51 }
 0xbee   : > { %v4892_v62 = vpop.permute.xlu0 %4891  ;;  %v5215_v56 = vadd.f32 %v5213_v36, %v5206_v50 }
 0xbef   : > { %v4894_v32 = vadd.f32 %v4892_v62, %v4885_v15 }
 0xbf5   : > { %v5222_v17 = vpop.permute.xlu1 %5221 }
 0xbf6   : > { %v4901_v55 = vpop.permute.xlu0 %4900  ;;  %v5224_v26 = vadd.f32 %v5222_v17, %v5215_v56 }
 0xbf7   : > { %v4903_v31 = vadd.f32 %v4901_v55, %v4894_v32 }
 0xbf9   : > { %v4912_v61 = vadd.f32 %v4910_v40, %v4903_v31 }
 0xbfd   : > { %v4919_v38 = vpop.permute.xlu1 %4918 }
 0xbfe   : > { %v5231_v58 = vpop.permute.xlu0 %5230  ;;  %v4921_v33 = vadd.f32 %v4919_v38, %v4912_v61 }
 0xbff   : > { %v5233_v63 = vadd.f32 %v5231_v58, %v5224_v26 }
 0xc01   : > { %v5242_v8 = vadd.f32 %v5240_v19, %v5233_v63 }
 0xc05   : > { %v5249_v47 = vpop.permute.xlu1 %5248 }
 0xc06   : > { %v5251_v37 = vadd.f32 %v5249_v47, %v5242_v8  ;;  %v4928_v46 = vpop.permute.xlu0 %4927 }
 0xc07   : > { %v4930_v0 = vadd.f32 %v4928_v46, %v4921_v33 }
 0xc08   : > { %v5260_v35 = vadd.f32 %v5258_v6, %v5251_v37 }
 0xc09   : > { %5937 = vmatmul.msk.f32.vlgmr.msrb.gmra.mxu0 %vm3239_vm9, %v4930_v0 }
 0xc0a   : > { %5976 = vmatmul.msk.f32.vlgmr.msrb.gmra.mxu1 %vm3239_vm9, %v5260_v35 }
 0xc25   : > { %v3263_v16 = vpop.f32.mrf.mxu2 }
 0xc26   : > { %v3290_v43 = vadd.f32 %v3289_v57, %v3263_v16 }
 0xc4b   : > { %v4284_v2 = vpop.f32.mrf.mxu2 }
 0xc66   : > { %v3618_v34 = vpop.f32.mrf.mxu0  ;;  %v4621_v20 = vpop.f32.mrf.mxu3 }
 0xc67   : > { %v3621_v9 = vadd.f32 %v3618_v34, %v3290_v43  ;;  %v3951_v1 = vpop.f32.mrf.mxu1 }
 0xc69   : > { %v3954_v41 = vadd.f32 %v3951_v1, %v3621_v9 }
 0xc6b   : > { %v4287_v18 = vadd.f32 %v4284_v2, %v3954_v41 }
 0xc6d   : > { %v4624_v44 = vadd.f32 %v4621_v20, %v4287_v18 }
 0xc86   : > { %v4951_v23 = vpop.f32.mrf.mxu0 }
 0xc87   : > { %v4954_v29 = vadd.f32 %v4951_v23, %v4624_v44  ;;  %v5284_v22 = vpop.f32.mrf.mxu1 }
 0xc89   : > { %v5287_v59 = vadd.f32 %v5284_v22, %v4954_v29 }
 0xc8b   : > { %6130 = vtanh.f32 %v5287_v59 }
 0xc91   : > { %v6131_v12 = vpop.eup %6130 }
 0xc92   : > { %5290 = vrot.lane.b32.xlu0 %v6131_v12, %s6325_s3 }
 0xd04   : > { %v5291_v39 = vpop.permute.xlu0 %5290 }
 0xd05   : > { %v5292_v54 = vsel %vm5289_vm11, %v5291_v39, %v6131_v12 }
 0xd06   : > { %5293 = vrot.lane.b32.xlu1 %v5292_v54, %s6325_s3 }
 0xd78   : > { %v5294_v45 = vpop.permute.xlu1 %5293 }
 0xd79   : > { %v5295_v4 = vsel %vm5289_vm11, %v5294_v45, %v6131_v12 }
 0xd7a   : > { %5297 = vrot.lane.b32.xlu2 %v5295_v4, %s10096_s2  ;;  %s10405_s2 = sld [smem:[#allocation20_spill]] }
 0xd80   : > { %s508_s12 = sand.u32 1, %s10405_s2  }
 0xd81   : > { %s5517_s1 = sshll.u32 %s508_s12, 1  ;;  %s5367_s15 = scalar_lea.sflag [#allocation3], %s508_s12 }
 0xd82   : > { %s510_s22 = scalar_lea.vmem [#allocation13], %s5517_s1 }
 0xd83   : > { %s5379_s19 = sshll.u32 %s510_s22, 4  ;;  %s5380_s19 = int_to_ptr.vmem [resolvable:$true] %s5379_s19 }
 0xdd4   : > { %v5298_v30 = vpop.permute.xlu2 %5297 }
 0xdd5   : > { %v5300_v25 = vmax.f32 %v6131_v12, %v5298_v30 }
 0xdd7   : > { %v5301_v27 = vrot.slane %v5300_v25, 4 }
 0xdd9   : > { %v5302_v21 = vsel %vm1188_vm13, %v5301_v27, %v5300_v25 }
 0xdda   : > { %v5303_v52 = vrot.slane %v5302_v21, 4 }
 0xddc   : > { %v5304_v36 = vsel %vm1188_vm13, %v5303_v52, %v5300_v25  ;;  %vm5364_vm13 = vcmask 123904  }
 0xddd   : > { %v5306_v62 = vrot.slane %v5304_v36, 1 }
 0xddf   : > { %v5308_v48 = vmax.f32 %v5300_v25, %v5306_v62 }
 0xde1   : > { %5977 = vmatpush.msk.msrb.mxu2 %vm1062_vm3, %v5308_v48 }
 0xde2   : > { %5978 = vmatmul.msk.f32.vlgmr.msrb.gmra.mxu2 %vm3239_vm9, %v5309_v10 }
 0xe65   : > { %v5333_v28 = vpop.f32.mrf.mxu2 }
 0xe66   : > { %5979 = vmatmul.msk.f32.vlgmr.msrb.gmra.mxu3 %vm5340_vm12, %v5333_v28 }
 0xee9   : > { %v5361_v42 = vpop.f32.mrf.mxu3 }
 0xeea   : > { %5365 = vst.msk [vmem:[%s510_s22] sm:$0x3] %vm5364_vm13, %v5361_v42 }
 0xeeb   : > { %6249 = shalt.err (!%p6246_p8)
}
 0xeec   : > { %6009 = dma.vmem_to_hbm [thread:$0]  (%p6434_p5), %s5380_s19, 32, %s5382_s20, %s5367_s15  }
 0xeed PF: > { %s10410_s7 = sld [smem:[#allocation22_spill]] }
 0xeee   : > { %s10411_s13 = sld [smem:[#allocation19_spill]] }
 0xef3   : > { %p6046_p9 = scmp.ge.s32.totalorder %s10410_s7, 2 }
 0xef4   : > { %s5393_s21 = sand.u32 1, %s10411_s13  }
 0xef5   : > { %p6031_p10 = pnand %p6046_p9, %p6438_p6  ;;  %s5394_s11 = scalar_lea.sflag [#allocation3], %s5393_s21 }
 0xef7   : > { %p6032_p11 = pneg %p6031_p10 }
 0xef9   : > { %6283 = dma.done.wait (%p6032_p11), %s5394_s11, 32  }
 0xefa   : > { %6285 = vsyncadd (%p6032_p11), %s5394_s11, 4294967264  ;;  %s10413_s28 = sld [smem:[#allocation24_spill]] }
 0xefb   : > { %s10414_s25 = sld [smem:[#allocation20_spill]] }
 0xefc   : > { %s10415_s26 = sld [smem:[#allocation21_spill]] }
 0xefd   : > { %s10416_s27 = sld [smem:[#allocation25_spill]] }
 0xf00   : > { %p27_p12 = scmp.ge.s32.totalorder %s10413_s28, 4  }
 0xf02   :  { %29 = sbr.rel (!%p27_p12) target bundleno = 22 (0x16), region = 132 }
 0xf07   :  { %5400 = vsyncpa [#allocation3], 1 }
 0xf08   :  { %5402 = vsyncpa [#allocation3 + $0x1], 1 }
 0xf09   :  { %5403 = vsyncpa [#allocation4], 1 }
 0xf0a   :  { %5405 = vsyncpa [#allocation4 + $0x1], 1 }
 0xf0b   :  { %5406 = vsyncpa [#allocation6], 1 }
 0xf0c   :  { %5407 = vsyncpa [#allocation9], 1 }
 0xf0d   :  { %5408 = vsyncpa [#allocation12], 1 }

</bundles_post_ra>
